<compile_context>
chip_gen: v7x
topology: tpu7x:2x2x1
jax: 0.10.0
libtpu: 0.0.40
codegen_flags: <defaults>
</compile_context>

<pallas_src>
import math
from functools import partial

import jax
import jax.numpy as jnp
from jax import lax
from jax.experimental import pallas as pl
from jax.experimental.pallas import tpu as pltpu

# ----------------------------- configuration --------------------------------
G = 8                    # glimpse patch base size g
K = 2                    # number of glimpse scales k
S = 2                    # scale factor s
C = 1                    # image channels c
H_G = 24                 # h_g
H_L = 8                  # h_l
HIDDEN = H_G + H_L       # CoreNetwork(hidden, hidden) => 32
NUM_CLASSES = 10
STD = 0.17
LATENT = 16              # Decoder latent size
DEC_OUT = 784            # Decoder output size (28*28)
DEC_PAD = 896            # 7 * 128 lane-dense padding of the decoder output
IMG = 28                 # image spatial size
IMG_ROWS = 32            # padded image rows inside the kernel
IMG_LANES = 128          # padded image cols (lane-dense)
BATCH = 2
D_IN = K * G * G * C     # flattened glimpse size fed to fc1 (= 128)
assert D_IN == 128

# ---- merged "main" weight slab (rows x 128 lanes), built once -------------
ROW_W1 = 0               # fc1   (128, 24)  cols 0:24
ROW_W2 = 128             # fc2   (2, 8)     cols 0:8
ROW_W3 = 136             # fc3   (24, 32)   cols 0:32
ROW_W4 = 160             # fc4   (8, 32)    cols 0:32
ROW_WI = 168             # i2h   (32, 32)
ROW_WH = 200             # h2h   (32, 32)
ROW_WHD = 232            # heads (32, 48) = [crit | dec_mu | dec_lv | cls | loc]
ROW_B1 = 264             # biases: b1(0:24) b2(24:32) b3+b4(32:64) bi+bh(64:96)
ROW_B2 = 272             # head biases (0:48)
W_MAIN_ROWS = 280
W_DEC_ROWS = 24          # rows 0:16 = dec_out weight, row 16 = dec_out bias
HEAD_W = 48              # padded head width (45 real)

# Packed per-step output row (128 lanes)
P_H = (0, 32)            # h_t
P_L = (32, 34)           # l_t (clipped)
P_LOGPI = 34             # log_pi
P_BT = 35                # critic b_t              (heads lane 0)
P_MU = (36, 52)          # decoder mu              (heads lanes 1:17)
P_LV = (52, 68)          # decoder logvar          (heads lanes 17:33)
P_LP = (68, 78)          # classifier log_probas   (heads lanes 33:43 - lse)
P_USED = 78

# Noise row layout (128 lanes)
NS_LOC = (0, 2)
NS_Z = (2, 18)

PARAM_ORDER = [
    "fc1", "fc2", "fc3", "fc4",          # GlimpseNetwork
    "i2h", "h2h",                        # CoreNetwork (Linear)
    "loc", "cls", "crit",                # Location / Action / Critic heads
    "dec_mu", "dec_lv", "dec_out",       # Decoder (VAE style)
]


def _denormalize(l):
    """l in [-1,1] -> integer pixel coordinate in [0, IMG] (trunc == floor here)."""
    return jnp.floor(0.5 * ((l + 1.0) * IMG)).astype(jnp.int32)


# ------------------------------ Pallas kernel --------------------------------
def _ram_fused_kernel(std, img_ref, init_ref, noise_ref, wm_ref, wd_ref,
                      packed_ref, dec_ref, state_ref):
    f32 = jnp.float32
    tb = state_ref.shape[0]
    t = pl.program_id(1)

    # Seed the carried state (h at lanes 0:32, l at 32:34) at the first step.
    @pl.when(t == 0)
    def _():
        state_ref[...] = init_ref[...]

    h_prev = state_ref[:, 0:HIDDEN]                    # (tb, 32)
    l_prev = state_ref[:, HIDDEN:HIDDEN + 2]           # (tb, 2)

    # ---- Retina: foveated glimpse (k=2 scales) via selector matmuls --------
    # phi lane p = k*64 + j*8 + q  (scale, out-row, out-col), matching the
    # PyTorch concat-over-scales + flatten order.  Out-of-image indices fall
    # on zero selector entries / zero padding => identical to F.pad semantics.
    start = _denormalize(l_prev)                       # (tb, 2) int32, (x, y)
    sx = start[:, 0:1, None]                           # (tb, 1, 1) column start
    sy = start[:, 1:2, None]                           # (tb, 1, 1) row start

    p_r = lax.broadcasted_iota(jnp.int32, (tb, 128, IMG_ROWS), 1)
    r_r = lax.broadcasted_iota(jnp.int32, (tb, 128, IMG_ROWS), 2)
    kk_r = 1 + (p_r >> 6)                              # pool factor 1 / 2
    lo_r = sy - 4 * kk_r + ((p_r & 63) >> 3) * kk_r
    a_sel = ((r_r >= lo_r) & (r_r < lo_r + kk_r)).astype(f32)   # (tb,128,32)

    p_c = lax.broadcasted_iota(jnp.int32, (tb, 128, IMG_LANES), 1)
    w_c = lax.broadcasted_iota(jnp.int32, (tb, 128, IMG_LANES), 2)
    kk_c = 1 + (p_c >> 6)
    lo_c = sx - 4 * kk_c + (p_c & 7) * kk_c
    inv = jnp.where(kk_c == 1, 1.0, 0.25)              # 1/kk^2 pooling weight
    b_sel = jnp.where((w_c >= lo_c) & (w_c < lo_c + kk_c), inv, 0.0)

    img = img_ref[...]                                 # (tb, 32, 128)
    m_rows = jnp.einsum('bpr,brw->bpw', a_sel, img,
                        preferred_element_type=f32)    # (tb, 128, 128)
    phi = jnp.sum(b_sel * m_rows, axis=-1)             # (tb, 128)

    # ---- weight / bias views (static slices of the resident slab) ----------
    w1 = wm_ref[ROW_W1:ROW_W1 + D_IN, 0:H_G]           # (128, 24)
    w2 = wm_ref[ROW_W2:ROW_W2 + 2, 0:H_L]              # (2, 8)
    w3 = wm_ref[ROW_W3:ROW_W3 + H_G, 0:HIDDEN]         # (24, 32)
    w4 = wm_ref[ROW_W4:ROW_W4 + H_L, 0:HIDDEN]         # (8, 32)
    wi = wm_ref[ROW_WI:ROW_WI + HIDDEN, 0:HIDDEN]      # (32, 32)
    wh = wm_ref[ROW_WH:ROW_WH + HIDDEN, 0:HIDDEN]      # (32, 32)
    whd = wm_ref[ROW_WHD:ROW_WHD + HIDDEN, 0:HEAD_W]   # (32, 48)
    brow = wm_ref[ROW_B1:ROW_B1 + 1, :]                # (1, 128)
    b1, b2 = brow[:, 0:24], brow[:, 24:32]
    b34, bcore = brow[:, 32:64], brow[:, 64:96]
    bhd = wm_ref[ROW_B2:ROW_B2 + 1, 0:HEAD_W]          # (1, 48)

    relu = lambda v: jnp.maximum(v, 0.0)
    dot = lambda a, b: jnp.dot(a, b, preferred_element_type=f32)

    # ---- GlimpseNetwork (no lane-concat: separate small dots) --------------
    a_phi = relu(dot(phi, w1) + b1)                                    # (tb,24)
    a_loc = relu(l_prev[:, 0:1] * w2[0:1, :] +
                 l_prev[:, 1:2] * w2[1:2, :] + b2)                     # (tb,8)
    g_t = relu(dot(a_phi, w3) + dot(a_loc, w4) + b34)                  # (tb,32)

    # ---- CoreNetwork (Linear): relu(i2h(g_t) + h2h(h_prev)) ----------------
    h_t = relu(dot(g_t, wi) + dot(h_prev, wh) + bcore)                 # (tb,32)

    # ---- all heads in one matmul: [crit | dec_mu | dec_lv | cls | loc] -----
    heads = dot(h_t, whd) + bhd                                        # (tb,48)

    noise = noise_ref[0]                                               # (tb,128)
    nloc = noise[:, NS_LOC[0]:NS_LOC[1]]
    nz = noise[:, NS_Z[0]:NS_Z[1]]

    # LocationNetwork: tanh mean, Normal(mu, std) sample, log-prob, clamp.
    # (l_sample - mu)/std == noise exactly => log_pi = -0.5*sum(noise^2)+const
    mu_l = jnp.tanh(heads[:, 43:45])
    l_t = jnp.clip(mu_l + std * nloc, -1.0, 1.0)
    logpi_c = -(2.0 * math.log(std) + math.log(2.0 * math.pi))
    log_pi = -0.5 * jnp.sum(nloc * nloc, axis=1, keepdims=True) + logpi_c

    # ActionNetwork: log_softmax in place on the logit lanes of heads[:,0:43].
    logits = heads[:, 33:43]
    mmax = jnp.max(logits, axis=1, keepdims=True)
    lse = mmax + jnp.log(jnp.sum(jnp.exp(logits - mmax), axis=1, keepdims=True))
    lane = lax.broadcasted_iota(jnp.int32, (1, 43), 1)
    logit_mask = ((lane >= 33) & (lane < 43)).astype(f32)
    heads_adj = heads[:, 0:43] - lse * logit_mask   # [b_t | mu | logvar | log_probas]

    # Decoder: reparameterize + sigmoid reconstruction (lane-padded to 896).
    mu_z = heads[:, 1:17]
    logvar = heads[:, 17:33]
    z = mu_z + nz * jnp.exp(0.5 * logvar)
    dec_ref[0] = jax.nn.sigmoid(dot(z, wd_ref[0:LATENT, :]) +
                                wd_ref[LATENT:LATENT + 1, :])

    # Single lane-dense 128-wide row: carried state + all small outputs.
    pad = jnp.zeros((tb, 128 - P_USED), f32)
    row = jnp.concatenate([h_t, l_t, log_pi, heads_adj, pad], axis=1)  # (tb,128)
    state_ref[...] = row                  # carry h_t / l_t to the next step
    packed_ref[0] = row


# ------------------------------ params ---------------------------------------
def init_params(key):
    """Deterministic PyTorch-Linear-style init: U(-1/sqrt(fan_in), 1/sqrt(fan_in))."""
    defs = {
        "fc1": (D_IN, H_G), "fc2": (2, H_L), "fc3": (H_G, HIDDEN), "fc4": (H_L, HIDDEN),
        "i2h": (HIDDEN, HIDDEN), "h2h": (HIDDEN, HIDDEN),
        "loc": (HIDDEN, 2), "cls": (HIDDEN, NUM_CLASSES), "crit": (HIDDEN, 1),
        "dec_mu": (HIDDEN, LATENT), "dec_lv": (HIDDEN, LATENT), "dec_out": (LATENT, DEC_OUT),
    }
    params = {}
    for name in PARAM_ORDER:
        fin, fout = defs[name]
        key, k1, k2 = jax.random.split(key, 3)
        bound = 1.0 / math.sqrt(fin)
        w = jax.random.uniform(k1, (fin, fout), jnp.float32, -bound, bound)
        b = jax.random.uniform(k2, (1, fout), jnp.float32, -bound, bound)
        params[name] = (w, b)
    return params


def pack_params(params):
    """Merge the 24 parameter arrays into 2 lane-aligned slabs (built once)."""
    def w(name):
        return params[name][0]

    def b(name):
        return params[name][1]

    f32 = jnp.float32
    wm = jnp.zeros((W_MAIN_ROWS, 128), f32)
    wm = wm.at[ROW_W1:ROW_W1 + D_IN, 0:H_G].set(w("fc1"))
    wm = wm.at[ROW_W2:ROW_W2 + 2, 0:H_L].set(w("fc2"))
    wm = wm.at[ROW_W3:ROW_W3 + H_G, 0:HIDDEN].set(w("fc3"))
    wm = wm.at[ROW_W4:ROW_W4 + H_L, 0:HIDDEN].set(w("fc4"))
    wm = wm.at[ROW_WI:ROW_WI + HIDDEN, 0:HIDDEN].set(w("i2h"))
    wm = wm.at[ROW_WH:ROW_WH + HIDDEN, 0:HIDDEN].set(w("h2h"))
    whead = jnp.concatenate(
        [w("crit"), w("dec_mu"), w("dec_lv"), w("cls"), w("loc")], axis=1)   # (32,45)
    wm = wm.at[ROW_WHD:ROW_WHD + HIDDEN, 0:45].set(whead)
    wm = wm.at[ROW_B1, 0:24].set(b("fc1")[0])
    wm = wm.at[ROW_B1, 24:32].set(b("fc2")[0])
    wm = wm.at[ROW_B1, 32:64].set(b("fc3")[0] + b("fc4")[0])
    wm = wm.at[ROW_B1, 64:96].set(b("i2h")[0] + b("h2h")[0])
    bhead = jnp.concatenate(
        [b("crit"), b("dec_mu"), b("dec_lv"), b("cls"), b("loc")], axis=1)[0]  # (45,)
    wm = wm.at[ROW_B2, 0:45].set(bhead)

    wd = jnp.zeros((W_DEC_ROWS, DEC_PAD), f32)
    wd = wd.at[0:LATENT, 0:DEC_OUT].set(w("dec_out"))
    wd = wd.at[LATENT, 0:DEC_OUT].set(b("dec_out")[0])
    return {"w_main": wm, "w_dec": wd}


# ------------------------------ JAX glue --------------------------------------
def _extract_patch(x, l, size):
    """Reference retina: (size, size) patch per sample at denormalized l."""
    B, Cc, H, W = x.shape
    pad = size // 2
    xp = jnp.pad(x, ((0, 0), (0, 0), (pad, pad), (pad, pad)))
    start = _denormalize(l)                          # columns are (x, y)

    def one(img, st):
        return jax.lax.dynamic_slice(img, (0, st[1], st[0]), (Cc, size, size))

    return jax.vmap(one)(xp, start)


def retina_foveate(x, l):
    """Reference foveation: k patches, avg-pooled to (G,G), flattened."""
    B, Cc, _, _ = x.shape
    phis = []
    size = G
    for _ in range(K):
        p = _extract_patch(x, l, size)
        if size > G:
            kk = size // G
            p = p.reshape(B, Cc, G, kk, G, kk).mean(axis=(3, 5))
        phis.append(p)
        size = int(S * size)
    phi = jnp.concatenate(phis, axis=1)
    return phi.reshape(B, -1)


def glimpse_mask(x, l):
    """Binary mask of pixels covered by the (largest) glimpse patch."""
    # TODO(synk): exact mask semantics live in the repo's modules.py (not shown).
    B, _, H, W = x.shape
    size = G * (S ** (K - 1))
    center = _denormalize(l)
    top = center[:, 1] - size // 2
    left = center[:, 0] - size // 2
    rows = jnp.arange(H)[None, :, None]
    cols = jnp.arange(W)[None, None, :]
    m = ((rows >= top[:, None, None]) & (rows < (top + size)[:, None, None]) &
         (cols >= left[:, None, None]) & (cols < (left + size)[:, None, None]))
    return m[:, None, :, :].astype(x.dtype)


# ------------------------------ wrappers --------------------------------------
def ram_forward_fused(packed_params, x, l_t_prev, h_t_prev, noise_loc, noise_z,
                      std, *, batch_block=None, masks=None):
    """Run T fused RAM timesteps in ONE pallas_call.

    Returns per-step sequences (T leading dim) of
    (h_t, l_t, b_t, log_pi, log_probas, decoded, mu, logvar) plus the final
    accumulated coverage masks.
    """
    B = x.shape[0]
    T = noise_loc.shape[0]
    b_pad = max(8, ((B + 7) // 8) * 8)
    # Default batch tile is small (gather selector temporaries scale with tb and
    # must stay under v5e's 16 MiB scoped-VMEM default).  Raise toward b_pad on
    # single-TC v5e/v6e for fewer grid steps; pick b_pad//2 on v7x (>=16) so the
    # "parallel" batch axis feeds both TensorCores.
    tb = batch_block if batch_block is not None else min(b_pad, 8)
    assert b_pad % tb == 0 and tb % 8 == 0
    nb = b_pad // tb

    f32 = jnp.float32
    img = jnp.zeros((b_pad, IMG_ROWS, IMG_LANES), f32)
    img = img.at[:B, :IMG, :IMG].set(x[:, 0].astype(f32))          # C == 1
    init = jnp.zeros((b_pad, 128), f32)
    init = init.at[:B, 0:HIDDEN].set(h_t_prev)
    init = init.at[:B, HIDDEN:HIDDEN + 2].set(l_t_prev)
    noise = jnp.zeros((T, b_pad, 128), f32)
    noise = noise.at[:, :B, NS_LOC[0]:NS_LOC[1]].set(noise_loc)
    noise = noise.at[:, :B, NS_Z[0]:NS_Z[1]].set(noise_z)

    packed_out, dec_out = pl.pallas_call(
        partial(_ram_fused_kernel, float(std)),
        out_shape=(jax.ShapeDtypeStruct((T, b_pad, 128), f32),
                   jax.ShapeDtypeStruct((T, b_pad, DEC_PAD), f32)),
        grid_spec=pltpu.PrefetchScalarGridSpec(
            num_scalar_prefetch=0,
            grid=(nb, T),
            in_specs=[
                pl.BlockSpec((tb, IMG_ROWS, IMG_LANES), lambda b, t: (b, 0, 0)),
                pl.BlockSpec((tb, 128), lambda b, t: (b, 0)),
                pl.BlockSpec((1, tb, 128), lambda b, t: (t, b, 0)),
                pl.BlockSpec((W_MAIN_ROWS, 128), lambda b, t: (0, 0)),
                pl.BlockSpec((W_DEC_ROWS, DEC_PAD), lambda b, t: (0, 0)),
            ],
            out_specs=(
                pl.BlockSpec((1, tb, 128), lambda b, t: (t, b, 0)),
                pl.BlockSpec((1, tb, DEC_PAD), lambda b, t: (t, b, 0)),
            ),
            scratch_shapes=[pltpu.VMEM((tb, 128), jnp.float32)],
        ),
        compiler_params=pltpu.CompilerParams(
            dimension_semantics=("parallel", "arbitrary")),
    )(img, init, noise, packed_params["w_main"], packed_params["w_dec"])

    # Unpack the lane-dense output slab in the wrapper (cheap XLA slices).
    h_seq = packed_out[:, :B, P_H[0]:P_H[1]]
    l_seq = packed_out[:, :B, P_L[0]:P_L[1]]
    log_pi_seq = packed_out[:, :B, P_LOGPI]
    b_seq = packed_out[:, :B, P_BT]
    mu_seq = packed_out[:, :B, P_MU[0]:P_MU[1]]
    lv_seq = packed_out[:, :B, P_LV[0]:P_LV[1]]
    lp_seq = packed_out[:, :B, P_LP[0]:P_LP[1]]
    dec_seq = dec_out[:, :B, :DEC_OUT]

    # Coverage masks (glue): step t uses the location that produced its glimpse.
    l_prev_seq = jnp.concatenate([l_t_prev[None], l_seq[:-1]], axis=0)
    for t in range(T):
        m = glimpse_mask(x, l_prev_seq[t])
        masks = m if masks is None else jnp.maximum(masks, m)

    return h_seq, l_seq, b_seq, log_pi_seq, lp_seq, dec_seq, mu_seq, lv_seq, masks


def ram_forward(packed_params, x, l_t_prev, h_t_prev, noise_loc, noise_z, std,
                masks=None):
    """Single RAM timestep (module-equivalent forward) == fused call with T=1."""
    outs = ram_forward_fused(packed_params, x, l_t_prev, h_t_prev,
                             noise_loc[None], noise_z[None], std, masks=masks)
    h, l, b, lpi, lp, dec, mu, lv, masks = outs
    return h[0], l[0], b[0], lpi[0], lp[0], dec[0], mu[0], lv[0], masks


# ------------------------ pure-JAX reference (validation) ---------------------
def reference_step(raw, x, l_prev, h_prev, nloc, nz, std):
    def dense(name, v):
        w, b = raw[name]
        return v @ w + b

    relu = jax.nn.relu
    phi = retina_foveate(x, l_prev)
    a_phi = relu(dense("fc1", phi))
    a_loc = relu(dense("fc2", l_prev))
    g = relu(dense("fc3", a_phi) + dense("fc4", a_loc))
    h = relu(dense("i2h", g) + dense("h2h", h_prev))
    mu_l = jnp.tanh(dense("loc", h))
    l_samp = mu_l + std * nloc
    log_pi = jnp.sum(-0.5 * ((l_samp - mu_l) / std) ** 2
                     - math.log(std) - 0.5 * math.log(2.0 * math.pi), axis=1)
    l_t = jnp.clip(l_samp, -1.0, 1.0)
    log_probas = jax.nn.log_softmax(dense("cls", h), axis=1)
    b_t = dense("crit", h)[:, 0]
    mu = dense("dec_mu", h)
    lv = dense("dec_lv", h)
    z = mu + nz * jnp.exp(0.5 * lv)
    dec = jax.nn.sigmoid(dense("dec_out", z))
    return h, l_t, b_t, log_pi, log_probas, dec, mu, lv


def _check(name, got, want, atol=3e-2, rtol=3e-2):
    excess = jnp.max(jnp.abs(got - want) - (atol + rtol * jnp.abs(want)))
    assert bool(excess <= 0.0), f"{name}: mismatch (max excess {float(excess):.5f})"


# --------------------------------- main ---------------------------------------
if __name__ == "__main__":
    key = jax.random.PRNGKey(0)
    kp, kx, kl, kh, kn1, kn2 = jax.random.split(key, 6)

    raw_params = init_params(kp)
    packed_params = pack_params(raw_params)       # built once, reused every call

    T = 6
    x = jax.random.normal(kx, (BATCH, C, IMG, IMG), jnp.float32)
    l0 = jnp.clip(jax.random.normal(kl, (BATCH, 2), jnp.float32), -1.0, 1.0)
    h0 = jax.random.normal(kh, (BATCH, HIDDEN), jnp.float32)
    noise_loc = jax.random.normal(kn1, (T, BATCH, 2), jnp.float32)
    noise_z = jax.random.normal(kn2, (T, BATCH, LATENT), jnp.float32)

    outs = ram_forward_fused(packed_params, x, l0, h0, noise_loc, noise_z, STD)
    outs = jax.block_until_ready(outs)
    h_seq, l_seq, b_seq, lpi_seq, lp_seq, dec_seq, mu_seq, lv_seq, masks = outs

    # Shape / sanity checks.
    assert h_seq.shape == (T, BATCH, HIDDEN)
    assert l_seq.shape == (T, BATCH, 2)
    assert b_seq.shape == (T, BATCH)
    assert lpi_seq.shape == (T, BATCH)
    assert lp_seq.shape == (T, BATCH, NUM_CLASSES)
    assert dec_seq.shape == (T, BATCH, DEC_OUT)
    assert mu_seq.shape == (T, BATCH, LATENT)
    assert lv_seq.shape == (T, BATCH, LATENT)
    assert masks.shape == (BATCH, 1, IMG, IMG)
    assert bool(jnp.all(jnp.isfinite(dec_seq)) & jnp.all(jnp.isfinite(lp_seq)))
    assert bool(jnp.all(l_seq >= -1.0) & jnp.all(l_seq <= 1.0))

    # Teacher-forced per-step validation against a pure-JAX reference: each
    # step is recomputed from the kernel's own carried state, so matmul
    # rounding cannot compound through the recurrence / retina coordinates.
    l_prev_seq = jnp.concatenate([l0[None], l_seq[:-1]], axis=0)
    h_prev_seq = jnp.concatenate([h0[None], h_seq[:-1]], axis=0)
    for t in range(T):
        rh, rl, rb, rpi, rlp, rdec, rmu, rlv = reference_step(
            raw_params, x, l_prev_seq[t], h_prev_seq[t],
            noise_loc[t], noise_z[t], STD)
        _check(f"h[{t}]", h_seq[t], rh)
        _check(f"l[{t}]", l_seq[t], rl)
        _check(f"b[{t}]", b_seq[t], rb)
        _check(f"log_pi[{t}]", lpi_seq[t], rpi)
        _check(f"log_probas[{t}]", lp_seq[t], rlp)
        _check(f"decoded[{t}]", dec_seq[t], rdec)
        _check(f"mu[{t}]", mu_seq[t], rmu)
        _check(f"logvar[{t}]", lv_seq[t], rlv)

    # Module-equivalent single-step API (T == 1 instance of the same kernel).
    step = ram_forward(packed_params, x, l0, h0, noise_loc[0], noise_z[0], STD)
    step = jax.block_until_ready(step)
    assert step[0].shape == (BATCH, HIDDEN)
    assert step[1].shape == (BATCH, 2)
    assert step[5].shape == (BATCH, DEC_OUT)

    print("KERNEL_OK")
</pallas_src>

<mosaic_0001>
module attributes {stable_mosaic.version = 11 : i64} {
  func.func @_ram_fused_kernel(%arg0: i32, %arg1: i32, %arg2: memref<8x32x128xf32, #tpu.memory_space<vmem>>, %arg3: memref<8x128xf32, #tpu.memory_space<vmem>>, %arg4: memref<1x8x128xf32, #tpu.memory_space<vmem>>, %arg5: memref<280x128xf32, #tpu.memory_space<vmem>>, %arg6: memref<24x896xf32, #tpu.memory_space<vmem>>, %arg7: memref<1x8x128xf32, #tpu.memory_space<vmem>>, %arg8: memref<1x8x896xf32, #tpu.memory_space<vmem>>, %arg9: memref<8x128xf32, #tpu.memory_space<vmem>>) attributes {dimension_semantics = [#tpu.dimension_semantics<parallel>, #tpu.dimension_semantics<arbitrary>], iteration_bounds = array<i64: 1, 6>, scalar_prefetch = 0 : i64, scratch_operands = 1 : i64, tpu.core_type = #tpu.core_type<tc>, window_params = [{transform_indices = @transform_0, window_bounds = array<i64: 8, 32, 128>}, {transform_indices = @transform_1, window_bounds = array<i64: 8, 128>}, {transform_indices = @transform_2, window_bounds = array<i64: 1, 8, 128>}, {pipeline_mode = #tpu.pipeline_mode<synchronous>, transform_indices = @transform_3, window_bounds = array<i64: 280, 128>}, {pipeline_mode = #tpu.pipeline_mode<synchronous>, transform_indices = @transform_4, window_bounds = array<i64: 24, 896>}, {transform_indices = @transform_5, window_bounds = array<i64: 1, 8, 128>}, {transform_indices = @transform_6, window_bounds = array<i64: 1, 8, 896>}]} {
    %c0_i32 = arith.constant 0 : i32
    %0 = arith.cmpi eq, %arg1, %c0_i32 : i32
    %1 = arith.extui %0 : i1 to i32
    %c0_i32_0 = arith.constant 0 : i32
    %2 = arith.cmpi ne, %1, %c0_i32_0 : i32
    scf.if %2 {
      %c0_63 = arith.constant 0 : index
      %c0_64 = arith.constant 0 : index
      %187 = vector.load %arg3[%c0_63, %c0_64] : memref<8x128xf32, #tpu.memory_space<vmem>>, vector<8x128xf32>
      %c0_65 = arith.constant 0 : index
      %c0_66 = arith.constant 0 : index
      %188 = vector.load %arg9[%c0_65, %c0_66] : memref<8x128xf32, #tpu.memory_space<vmem>>, vector<8x128xf32>
      tpu.vector_store %arg9[%c0_65, %c0_66], %187 {strides = array<i32>} : memref<8x128xf32, #tpu.memory_space<vmem>>, vector<8x128xf32>,
    } else {
    }
    %c0 = arith.constant 0 : index
    %c0_1 = arith.constant 0 : index
    %3 = vector.load %arg9[%c0, %c0_1] : memref<8x128xf32, #tpu.memory_space<vmem>>, vector<8x32xf32>
    %c0_2 = arith.constant 0 : index
    %c32 = arith.constant 32 : index
    %4 = vector.load %arg9[%c0_2, %c32] : memref<8x128xf32, #tpu.memory_space<vmem>>, vector<8x2xf32>
    %cst = arith.constant 1.000000e+00 : f32
    %5 = vector.broadcast %cst : f32 to vector<8x2xf32>
    %6 = arith.addf %4, %5 : vector<8x2xf32>
    %cst_3 = arith.constant 2.800000e+01 : f32
    %7 = vector.broadcast %cst_3 : f32 to vector<8x2xf32>
    %8 = arith.mulf %6, %7 : vector<8x2xf32>
    %cst_4 = arith.constant 5.000000e-01 : f32
    %9 = vector.broadcast %cst_4 : f32 to vector<8x2xf32>
    %10 = arith.mulf %9, %8 : vector<8x2xf32>
    %11 = math.floor %10 : vector<8x2xf32>
    %12 = arith.fptosi %11 : vector<8x2xf32> to vector<8x2xi32>
    %13 = vector.extract_strided_slice %12 {offsets = [0, 0], sizes = [8, 1], strides = [1, 1]} : vector<8x2xi32> to vector<8x1xi32>
    %14 = vector.shape_cast %13 : vector<8x1xi32> to vector<8x1x1xi32>
    %15 = vector.extract_strided_slice %12 {offsets = [0, 1], sizes = [8, 1], strides = [1, 1]} : vector<8x2xi32> to vector<8x1xi32>
    %16 = vector.shape_cast %15 : vector<8x1xi32> to vector<8x1x1xi32>
    %17 = tpu.iota {dimensions = array<i32: 1>} : vector<8x128x32xi32>
    %18 = tpu.iota {dimensions = array<i32: 2>} : vector<8x128x32xi32>
    %c6_i32 = arith.constant 6 : i32
    %19 = vector.broadcast %c6_i32 : i32 to vector<8x128x32xi32>
    %20 = arith.shrsi %17, %19 : vector<8x128x32xi32>
    %c1_i32 = arith.constant 1 : i32
    %21 = vector.broadcast %c1_i32 : i32 to vector<8x128x32xi32>
    %22 = arith.addi %21, %20 : vector<8x128x32xi32>
    %c4_i32 = arith.constant 4 : i32
    %23 = vector.broadcast %c4_i32 : i32 to vector<8x128x32xi32>
    %24 = arith.muli %23, %22 : vector<8x128x32xi32>
    %25 = vector.broadcast %16 : vector<8x1x1xi32> to vector<8x128x32xi32>
    %26 = arith.subi %25, %24 : vector<8x128x32xi32>
    %c63_i32 = arith.constant 63 : i32
    %27 = vector.broadcast %c63_i32 : i32 to vector<8x128x32xi32>
    %28 = arith.andi %17, %27 : vector<8x128x32xi32>
    %c3_i32 = arith.constant 3 : i32
    %29 = vector.broadcast %c3_i32 : i32 to vector<8x128x32xi32>
    %30 = arith.shrsi %28, %29 : vector<8x128x32xi32>
    %31 = arith.muli %30, %22 : vector<8x128x32xi32>
    %32 = arith.addi %26, %31 : vector<8x128x32xi32>
    %33 = arith.cmpi sge, %18, %32 : vector<8x128x32xi32>
    %34 = arith.addi %32, %22 : vector<8x128x32xi32>
    %35 = arith.cmpi slt, %18, %34 : vector<8x128x32xi32>
    %36 = arith.andi %33, %35 : vector<8x128x32xi1>
    %37 = arith.extui %36 : vector<8x128x32xi1> to vector<8x128x32xi32>
    %38 = arith.sitofp %37 : vector<8x128x32xi32> to vector<8x128x32xf32>
    %39 = tpu.iota {dimensions = array<i32: 1>} : vector<8x128x128xi32>
    %40 = tpu.iota {dimensions = array<i32: 2>} : vector<8x128x128xi32>
    %c6_i32_5 = arith.constant 6 : i32
    %41 = vector.broadcast %c6_i32_5 : i32 to vector<8x128x128xi32>
    %42 = arith.shrsi %39, %41 : vector<8x128x128xi32>
    %c1_i32_6 = arith.constant 1 : i32
    %43 = vector.broadcast %c1_i32_6 : i32 to vector<8x128x128xi32>
    %44 = arith.addi %43, %42 : vector<8x128x128xi32>
    %c4_i32_7 = arith.constant 4 : i32
    %45 = vector.broadcast %c4_i32_7 : i32 to vector<8x128x128xi32>
    %46 = arith.muli %45, %44 : vector<8x128x128xi32>
    %47 = vector.broadcast %14 : vector<8x1x1xi32> to vector<8x128x128xi32>
    %48 = arith.subi %47, %46 : vector<8x128x128xi32>
    %c7_i32 = arith.constant 7 : i32
    %49 = vector.broadcast %c7_i32 : i32 to vector<8x128x128xi32>
    %50 = arith.andi %39, %49 : vector<8x128x128xi32>
    %51 = arith.muli %50, %44 : vector<8x128x128xi32>
    %52 = arith.addi %48, %51 : vector<8x128x128xi32>
    %c1_i32_8 = arith.constant 1 : i32
    %53 = vector.broadcast %c1_i32_8 : i32 to vector<8x128x128xi32>
    %54 = arith.cmpi eq, %44, %53 : vector<8x128x128xi32>
    %cst_9 = arith.constant 1.000000e+00 : f32
    %cst_10 = arith.constant 2.500000e-01 : f32
    %55 = vector.broadcast %cst_9 : f32 to vector<8x128x128xf32>
    %56 = vector.broadcast %cst_10 : f32 to vector<8x128x128xf32>
    %57 = arith.select %54, %55, %56 : vector<8x128x128xi1>, vector<8x128x128xf32>
    %58 = arith.cmpi sge, %40, %52 : vector<8x128x128xi32>
    %59 = arith.addi %52, %44 : vector<8x128x128xi32>
    %60 = arith.cmpi slt, %40, %59 : vector<8x128x128xi32>
    %61 = arith.andi %58, %60 : vector<8x128x128xi1>
    %cst_11 = arith.constant 0.000000e+00 : f32
    %62 = vector.broadcast %cst_11 : f32 to vector<8x128x128xf32>
    %63 = arith.select %61, %57, %62 : vector<8x128x128xi1>, vector<8x128x128xf32>
    %c0_12 = arith.constant 0 : index
    %c0_13 = arith.constant 0 : index
    %c0_14 = arith.constant 0 : index
    %64 = vector.load %arg2[%c0_12, %c0_13, %c0_14] : memref<8x32x128xf32, #tpu.memory_space<vmem>>, vector<8x32x128xf32>
    "tpu.trace_start"() <{level = 10 : i32, message = "bpr,brw->bpw"}> : () -> ()
    %cst_15 = arith.constant dense<0.000000e+00> : vector<8x128x128xf32>
    %65 = tpu.matmul %38, %64, %cst_15 {dimension_numbers = #tpu.dot_dimension_numbers<[2], [1], [1], [2], [0, 0, 0, 1, 1, 2], [0], [0]>} : vector<8x128x32xf32>, vector<8x32x128xf32>, vector<8x128x128xf32> -> vector<8x128x128xf32>
    "tpu.trace_stop"() : () -> ()
    %66 = arith.mulf %63, %65 : vector<8x128x128xf32>
    %cst_16 = arith.constant dense<0.000000e+00> : vector<8x128xf32>
    %67 = vector.multi_reduction <add>, %66, %cst_16 [2] : vector<8x128x128xf32> to vector<8x128xf32>
    %c0_17 = arith.constant 0 : index
    %c0_18 = arith.constant 0 : index
    %68 = vector.load %arg5[%c0_17, %c0_18] : memref<280x128xf32, #tpu.memory_space<vmem>>, vector<128x24xf32>
    %c128 = arith.constant 128 : index
    %c0_19 = arith.constant 0 : index
    %69 = vector.load %arg5[%c128, %c0_19] : memref<280x128xf32, #tpu.memory_space<vmem>>, vector<2x8xf32>
    %c136 = arith.constant 136 : index
    %c0_20 = arith.constant 0 : index
    %70 = vector.load %arg5[%c136, %c0_20] : memref<280x128xf32, #tpu.memory_space<vmem>>, vector<24x32xf32>
    %c160 = arith.constant 160 : index
    %c0_21 = arith.constant 0 : index
    %71 = vector.load %arg5[%c160, %c0_21] : memref<280x128xf32, #tpu.memory_space<vmem>>, vector<8x32xf32>
    %c168 = arith.constant 168 : index
    %c0_22 = arith.constant 0 : index
    %72 = vector.load %arg5[%c168, %c0_22] : memref<280x128xf32, #tpu.memory_space<vmem>>, vector<32x32xf32>
    %c200 = arith.constant 200 : index
    %c0_23 = arith.constant 0 : index
    %73 = vector.load %arg5[%c200, %c0_23] : memref<280x128xf32, #tpu.memory_space<vmem>>, vector<32x32xf32>
    %c232 = arith.constant 232 : index
    %c0_24 = arith.constant 0 : index
    %74 = vector.load %arg5[%c232, %c0_24] : memref<280x128xf32, #tpu.memory_space<vmem>>, vector<32x48xf32>
    %c264 = arith.constant 264 : index
    %c0_25 = arith.constant 0 : index
    %75 = vector.load %arg5[%c264, %c0_25] : memref<280x128xf32, #tpu.memory_space<vmem>>, vector<1x128xf32>
    %76 = vector.extract_strided_slice %75 {offsets = [0, 0], sizes = [1, 24], strides = [1, 1]} : vector<1x128xf32> to vector<1x24xf32>
    %77 = vector.extract_strided_slice %75 {offsets = [0, 24], sizes = [1, 8], strides = [1, 1]} : vector<1x128xf32> to vector<1x8xf32>
    %78 = vector.extract_strided_slice %75 {offsets = [0, 32], sizes = [1, 32], strides = [1, 1]} : vector<1x128xf32> to vector<1x32xf32>
    %79 = vector.extract_strided_slice %75 {offsets = [0, 64], sizes = [1, 32], strides = [1, 1]} : vector<1x128xf32> to vector<1x32xf32>
    %c272 = arith.constant 272 : index
    %c0_26 = arith.constant 0 : index
    %80 = vector.load %arg5[%c272, %c0_26] : memref<280x128xf32, #tpu.memory_space<vmem>>, vector<1x48xf32>
    %cst_27 = arith.constant dense<0.000000e+00> : vector<8x24xf32>
    %81 = tpu.matmul %67, %68, %cst_27 {dimension_numbers = #tpu.dot_dimension_numbers<[1], [0], [0], [1], [0, 0, 1, 1], [], []>} : vector<8x128xf32>, vector<128x24xf32>, vector<8x24xf32> -> vector<8x24xf32>
    %82 = vector.broadcast %76 : vector<1x24xf32> to vector<8x24xf32>
    %83 = arith.addf %81, %82 : vector<8x24xf32>
    %cst_28 = arith.constant 0.000000e+00 : f32
    %84 = vector.broadcast %cst_28 : f32 to vector<8x24xf32>
    %85 = arith.maximumf %83, %84 : vector<8x24xf32>
    %86 = vector.extract_strided_slice %4 {offsets = [0, 0], sizes = [8, 1], strides = [1, 1]} : vector<8x2xf32> to vector<8x1xf32>
    %87 = vector.extract_strided_slice %69 {offsets = [0, 0], sizes = [1, 8], strides = [1, 1]} : vector<2x8xf32> to vector<1x8xf32>
    %88 = vector.broadcast %86 : vector<8x1xf32> to vector<8x8xf32>
    %89 = vector.broadcast %87 : vector<1x8xf32> to vector<8x8xf32>
    %90 = arith.mulf %88, %89 : vector<8x8xf32>
    %91 = vector.extract_strided_slice %4 {offsets = [0, 1], sizes = [8, 1], strides = [1, 1]} : vector<8x2xf32> to vector<8x1xf32>
    %92 = vector.extract_strided_slice %69 {offsets = [1, 0], sizes = [1, 8], strides = [1, 1]} : vector<2x8xf32> to vector<1x8xf32>
    %93 = vector.broadcast %91 : vector<8x1xf32> to vector<8x8xf32>
    %94 = vector.broadcast %92 : vector<1x8xf32> to vector<8x8xf32>
    %95 = arith.mulf %93, %94 : vector<8x8xf32>
    %96 = arith.addf %90, %95 : vector<8x8xf32>
    %97 = vector.broadcast %77 : vector<1x8xf32> to vector<8x8xf32>
    %98 = arith.addf %96, %97 : vector<8x8xf32>
    %cst_29 = arith.constant 0.000000e+00 : f32
    %99 = vector.broadcast %cst_29 : f32 to vector<8x8xf32>
    %100 = arith.maximumf %98, %99 : vector<8x8xf32>
    %cst_30 = arith.constant dense<0.000000e+00> : vector<8x32xf32>
    %101 = tpu.matmul %85, %70, %cst_30 {dimension_numbers = #tpu.dot_dimension_numbers<[1], [0], [0], [1], [0, 0, 1, 1], [], []>} : vector<8x24xf32>, vector<24x32xf32>, vector<8x32xf32> -> vector<8x32xf32>
    %cst_31 = arith.constant dense<0.000000e+00> : vector<8x32xf32>
    %102 = tpu.matmul %100, %71, %cst_31 {dimension_numbers = #tpu.dot_dimension_numbers<[1], [0], [0], [1], [0, 0, 1, 1], [], []>} : vector<8x8xf32>, vector<8x32xf32>, vector<8x32xf32> -> vector<8x32xf32>
    %103 = arith.addf %101, %102 : vector<8x32xf32>
    %104 = vector.broadcast %78 : vector<1x32xf32> to vector<8x32xf32>
    %105 = arith.addf %103, %104 : vector<8x32xf32>
    %cst_32 = arith.constant 0.000000e+00 : f32
    %106 = vector.broadcast %cst_32 : f32 to vector<8x32xf32>
    %107 = arith.maximumf %105, %106 : vector<8x32xf32>
    %cst_33 = arith.constant dense<0.000000e+00> : vector<8x32xf32>
    %108 = tpu.matmul %107, %72, %cst_33 {dimension_numbers = #tpu.dot_dimension_numbers<[1], [0], [0], [1], [0, 0, 1, 1], [], []>} : vector<8x32xf32>, vector<32x32xf32>, vector<8x32xf32> -> vector<8x32xf32>
    %cst_34 = arith.constant dense<0.000000e+00> : vector<8x32xf32>
    %109 = tpu.matmul %3, %73, %cst_34 {dimension_numbers = #tpu.dot_dimension_numbers<[1], [0], [0], [1], [0, 0, 1, 1], [], []>} : vector<8x32xf32>, vector<32x32xf32>, vector<8x32xf32> -> vector<8x32xf32>
    %110 = arith.addf %108, %109 : vector<8x32xf32>
    %111 = vector.broadcast %79 : vector<1x32xf32> to vector<8x32xf32>
    %112 = arith.addf %110, %111 : vector<8x32xf32>
    %cst_35 = arith.constant 0.000000e+00 : f32
    %113 = vector.broadcast %cst_35 : f32 to vector<8x32xf32>
    %114 = arith.maximumf %112, %113 : vector<8x32xf32>
    %cst_36 = arith.constant dense<0.000000e+00> : vector<8x48xf32>
    %115 = tpu.matmul %114, %74, %cst_36 {dimension_numbers = #tpu.dot_dimension_numbers<[1], [0], [0], [1], [0, 0, 1, 1], [], []>} : vector<8x32xf32>, vector<32x48xf32>, vector<8x48xf32> -> vector<8x48xf32>
    %116 = vector.broadcast %80 : vector<1x48xf32> to vector<8x48xf32>
    %117 = arith.addf %115, %116 : vector<8x48xf32>
    %c0_37 = arith.constant 0 : index
    %c0_38 = arith.constant 0 : index
    %c0_39 = arith.constant 0 : index
    %118 = vector.load %arg4[%c0_37, %c0_38, %c0_39] : memref<1x8x128xf32, #tpu.memory_space<vmem>>, vector<1x8x128xf32>
    %119 = vector.shape_cast %118 : vector<1x8x128xf32> to vector<8x128xf32>
    %120 = vector.extract_strided_slice %119 {offsets = [0, 0], sizes = [8, 2], strides = [1, 1]} : vector<8x128xf32> to vector<8x2xf32>
    %121 = vector.extract_strided_slice %119 {offsets = [0, 2], sizes = [8, 16], strides = [1, 1]} : vector<8x128xf32> to vector<8x16xf32>
    %122 = vector.extract_strided_slice %117 {offsets = [0, 43], sizes = [8, 2], strides = [1, 1]} : vector<8x48xf32> to vector<8x2xf32>
    %123 = math.tanh %122 : vector<8x2xf32>
    %cst_40 = arith.constant 1.700000e-01 : f32
    %124 = vector.broadcast %cst_40 : f32 to vector<8x2xf32>
    %125 = arith.mulf %124, %120 : vector<8x2xf32>
    %126 = arith.addf %123, %125 : vector<8x2xf32>
    %cst_41 = arith.constant -1.000000e+00 : f32
    %cst_42 = arith.constant 1.000000e+00 : f32
    %127 = vector.broadcast %cst_41 : f32 to vector<8x2xf32>
    %128 = arith.maximumf %127, %126 : vector<8x2xf32>
    %129 = vector.broadcast %cst_42 : f32 to vector<8x2xf32>
    %130 = arith.minimumf %129, %128 : vector<8x2xf32>
    %131 = arith.mulf %120, %120 : vector<8x2xf32>
    %cst_43 = arith.constant dense<0.000000e+00> : vector<8xf32>
    %132 = vector.multi_reduction <add>, %131, %cst_43 [1] : vector<8x2xf32> to vector<8xf32>
    %133 = vector.shape_cast %132 : vector<8xf32> to vector<8x1xf32>
    %cst_44 = arith.constant -5.000000e-01 : f32
    %134 = vector.broadcast %cst_44 : f32 to vector<8x1xf32>
    %135 = arith.mulf %134, %133 : vector<8x1xf32>
    %cst_45 = arith.constant 1.70603657 : f32
    %136 = vector.broadcast %cst_45 : f32 to vector<8x1xf32>
    %137 = arith.addf %135, %136 : vector<8x1xf32>
    %138 = vector.extract_strided_slice %117 {offsets = [0, 33], sizes = [8, 10], strides = [1, 1]} : vector<8x48xf32> to vector<8x10xf32>
    %cst_46 = arith.constant dense<0xFF800000> : vector<8xf32>
    %139 = vector.multi_reduction <maximumf>, %138, %cst_46 [1] : vector<8x10xf32> to vector<8xf32>
    %140 = vector.shape_cast %139 : vector<8xf32> to vector<8x1xf32>
    %141 = vector.broadcast %140 : vector<8x1xf32> to vector<8x10xf32>
    %142 = arith.subf %138, %141 : vector<8x10xf32>
    %143 = math.exp %142 : vector<8x10xf32>
    %cst_47 = arith.constant dense<0.000000e+00> : vector<8xf32>
    %144 = vector.multi_reduction <add>, %143, %cst_47 [1] : vector<8x10xf32> to vector<8xf32>
    %145 = vector.shape_cast %144 : vector<8xf32> to vector<8x1xf32>
    %146 = math.log %145 : vector<8x1xf32>
    %147 = arith.addf %140, %146 : vector<8x1xf32>
    %148 = tpu.iota {dimensions = array<i32: 1>} : vector<1x43xi32>
    %c33_i32 = arith.constant 33 : i32
    %149 = vector.broadcast %c33_i32 : i32 to vector<1x43xi32>
    %150 = arith.cmpi sge, %148, %149 : vector<1x43xi32>
    %c43_i32 = arith.constant 43 : i32
    %151 = vector.broadcast %c43_i32 : i32 to vector<1x43xi32>
    %152 = arith.cmpi slt, %148, %151 : vector<1x43xi32>
    %153 = arith.andi %150, %152 : vector<1x43xi1>
    %154 = arith.extui %153 : vector<1x43xi1> to vector<1x43xi32>
    %155 = arith.sitofp %154 : vector<1x43xi32> to vector<1x43xf32>
    %156 = vector.extract_strided_slice %117 {offsets = [0, 0], sizes = [8, 43], strides = [1, 1]} : vector<8x48xf32> to vector<8x43xf32>
    %157 = vector.broadcast %147 : vector<8x1xf32> to vector<8x43xf32>
    %158 = vector.broadcast %155 : vector<1x43xf32> to vector<8x43xf32>
    %159 = arith.mulf %157, %158 : vector<8x43xf32>
    %160 = arith.subf %156, %159 : vector<8x43xf32>
    %161 = vector.extract_strided_slice %117 {offsets = [0, 1], sizes = [8, 16], strides = [1, 1]} : vector<8x48xf32> to vector<8x16xf32>
    %162 = vector.extract_strided_slice %117 {offsets = [0, 17], sizes = [8, 16], strides = [1, 1]} : vector<8x48xf32> to vector<8x16xf32>
    %cst_48 = arith.constant 5.000000e-01 : f32
    %163 = vector.broadcast %cst_48 : f32 to vector<8x16xf32>
    %164 = arith.mulf %163, %162 : vector<8x16xf32>
    %165 = math.exp %164 : vector<8x16xf32>
    %166 = arith.mulf %121, %165 : vector<8x16xf32>
    %167 = arith.addf %161, %166 : vector<8x16xf32>
    %c0_49 = arith.constant 0 : index
    %c0_50 = arith.constant 0 : index
    %168 = vector.load %arg6[%c0_49, %c0_50] : memref<24x896xf32, #tpu.memory_space<vmem>>, vector<16x896xf32>
    %cst_51 = arith.constant dense<0.000000e+00> : vector<8x896xf32>
    %169 = tpu.matmul %167, %168, %cst_51 {dimension_numbers = #tpu.dot_dimension_numbers<[1], [0], [0], [1], [0, 0, 1, 1], [], []>} : vector<8x16xf32>, vector<16x896xf32>, vector<8x896xf32> -> vector<8x896xf32>
    %c16 = arith.constant 16 : index
    %c0_52 = arith.constant 0 : index
    %170 = vector.load %arg6[%c16, %c0_52] : memref<24x896xf32, #tpu.memory_space<vmem>>, vector<1x896xf32>
    %171 = vector.broadcast %170 : vector<1x896xf32> to vector<8x896xf32>
    %172 = arith.addf %169, %171 : vector<8x896xf32>
    %173 = arith.negf %172 : vector<8x896xf32>
    %174 = math.exp %173 : vector<8x896xf32>
    %cst_53 = arith.constant 1.000000e+00 : f32
    %175 = vector.broadcast %cst_53 : f32 to vector<8x896xf32>
    %176 = arith.addf %175, %174 : vector<8x896xf32>
    %177 = arith.divf %175, %176 : vector<8x896xf32>
    %c0_54 = arith.constant 0 : index
    %c0_55 = arith.constant 0 : index
    %c0_56 = arith.constant 0 : index
    %178 = vector.load %arg8[%c0_54, %c0_55, %c0_56] : memref<1x8x896xf32, #tpu.memory_space<vmem>>, vector<1x8x896xf32>
    %179 = vector.shape_cast %178 : vector<1x8x896xf32> to vector<8x896xf32>
    %180 = vector.shape_cast %177 : vector<8x896xf32> to vector<1x8x896xf32>
    tpu.vector_store %arg8[%c0_54, %c0_55, %c0_56], %180 {strides = array<i32>} : memref<1x8x896xf32, #tpu.memory_space<vmem>>, vector<1x8x896xf32>,
    %cst_57 = arith.constant 0.000000e+00 : f32
    %181 = vector.broadcast %cst_57 : f32 to vector<8x50xf32>
    %182 = tpu.concatenate %114, %130, %137, %160, %181 in 1 : vector<8x32xf32>, vector<8x2xf32>, vector<8x1xf32>, vector<8x43xf32>, vector<8x50xf32> -> vector<8x128xf32>
    %c0_58 = arith.constant 0 : index
    %c0_59 = arith.constant 0 : index
    %183 = vector.load %arg9[%c0_58, %c0_59] : memref<8x128xf32, #tpu.memory_space<vmem>>, vector<8x128xf32>
    tpu.vector_store %arg9[%c0_58, %c0_59], %182 {strides = array<i32>} : memref<8x128xf32, #tpu.memory_space<vmem>>, vector<8x128xf32>,
    %c0_60 = arith.constant 0 : index
    %c0_61 = arith.constant 0 : index
    %c0_62 = arith.constant 0 : index
    %184 = vector.load %arg7[%c0_60, %c0_61, %c0_62] : memref<1x8x128xf32, #tpu.memory_space<vmem>>, vector<1x8x128xf32>
    %185 = vector.shape_cast %184 : vector<1x8x128xf32> to vector<8x128xf32>
    %186 = vector.shape_cast %182 : vector<8x128xf32> to vector<1x8x128xf32>
    tpu.vector_store %arg7[%c0_60, %c0_61, %c0_62], %186 {strides = array<i32>} : memref<1x8x128xf32, #tpu.memory_space<vmem>>, vector<1x8x128xf32>,
    return
  }
  func.func @transform_0(%arg0: i32, %arg1: i32) -> (i32, i32, i32) {
    %c0_i32 = arith.constant 0 : i32
    %c0_i32_0 = arith.constant 0 : i32
    %c0_i32_1 = arith.constant 0 : i32
    return %arg0, %c0_i32, %c0_i32_0 : i32, i32, i32
  }
  func.func @transform_1(%arg0: i32, %arg1: i32) -> (i32, i32) {
    %c0_i32 = arith.constant 0 : i32
    %c0_i32_0 = arith.constant 0 : i32
    return %arg0, %c0_i32 : i32, i32
  }
  func.func @transform_2(%arg0: i32, %arg1: i32) -> (i32, i32, i32) {
    %c0_i32 = arith.constant 0 : i32
    %c0_i32_0 = arith.constant 0 : i32
    return %arg1, %arg0, %c0_i32 : i32, i32, i32
  }
  func.func @transform_3(%arg0: i32, %arg1: i32) -> (i32, i32) {
    %c0_i32 = arith.constant 0 : i32
    %c0_i32_0 = arith.constant 0 : i32
    %c0_i32_1 = arith.constant 0 : i32
    return %c0_i32, %c0_i32_0 : i32, i32
  }
  func.func @transform_4(%arg0: i32, %arg1: i32) -> (i32, i32) {
    %c0_i32 = arith.constant 0 : i32
    %c0_i32_0 = arith.constant 0 : i32
    %c0_i32_1 = arith.constant 0 : i32
    return %c0_i32, %c0_i32_0 : i32, i32
  }
  func.func @transform_5(%arg0: i32, %arg1: i32) -> (i32, i32, i32) {
    %c0_i32 = arith.constant 0 : i32
    %c0_i32_0 = arith.constant 0 : i32
    return %arg1, %arg0, %c0_i32 : i32, i32, i32
  }
  func.func @transform_6(%arg0: i32, %arg1: i32) -> (i32, i32, i32) {
    %c0_i32 = arith.constant 0 : i32
    %c0_i32_0 = arith.constant 0 : i32
    return %arg1, %arg0, %c0_i32 : i32, i32, i32
  }
}

</mosaic_0001>

<bundles_post_ra>
// kernel: tpu_custom_call.1
= control target key start
LH: loop header
LB: loop body
LE: loop exit
PB: predicated region body
PF: predicated region fallthrough
CT: control target
= control target key end

     0   :  { %s12700_s0 = inlined_call_operand.hbm [shape: f32[8,32,128], index: 0, kind: input, shape index: {}]   ;;  %s12701_s1 = inlined_call_operand.hbm [shape: f32[8,128], index: 1, kind: input, shape index: {}]   ;;  %s12702_s2 = inlined_call_operand.hbm [shape: f32[6,8,128], index: 2, kind: input, shape index: {}]   ;;  %s12703_s3 = inlined_call_operand.hbm [shape: f32[280,128], index: 3, kind: input, shape index: {}]   ;;  %s12704_s4 = inlined_call_operand.hbm [shape: f32[24,896], index: 4, kind: input, shape index: {}]   ;;  %s12705_s5 = inlined_call_operand.hbm [shape: f32[6,8,128], index: 5, kind: output, shape index: {0}]   ;;  %s12706_s6 = inlined_call_operand.hbm [shape: f32[6,8,896], index: 6, kind: output, shape index: {1}]  }
   0x1   :  { %12964 = sst [smem:[#allocation88_spill]] %s12700_s0 }
   0x2   :  { %12965 = sst [smem:[#allocation89_spill]] %s12701_s1 }
   0x3   :  { %12 = vsyncpa [#allocation4], 0 }
   0x4   :  { %13 = vsyncpa [#allocation7], 0 }
   0x5   :  { %14 = vsyncpa [#allocation11], 0 }
   0x6   :  { %15 = vsyncpa [#allocation5], 0 }
   0x7   :  { %17 = vsyncpa [#allocation5 + $0x1], 0 }
   0x8   :  { %18 = vsyncpa [#allocation14], 0 }
   0x9   :  { %20 = vsyncpa [#allocation14 + $0x1], 0  ;;  %s8027_s21 = smov 0   ;;  %s8029_s22 = smov 0  }
   0xa   :  { %s8031_s23 = smov 0   ;;  %s8033_s24 = smov 0  }
   0xb   :  { %s8035_s25 = smov 0   ;;  %s8037_s26 = smov 0  }
   0xc LB: > { %s8058_s27 = sadd.s32 4294967295, %s7963_s26   ;;  %p6549_p0 = scmp.ge.s32.totalorder %s7963_s26, 1  ;;  %s7963_s26 = sphi %s8037_s26, %s26_s26   ;;  %s7959_s25 = sphi %s8035_s25, %s13477_s25   ;;  %s7955_s24 = sphi %s8033_s24, %s13476_s24   ;;  %s7951_s23 = sphi %s8031_s23, %s13475_s23   ;;  %s7947_s22 = sphi %s8029_s22, %s13474_s22   ;;  %s7943_s21 = sphi %s8027_s21, %s13473_s21  }
   0xd   : > { %p12707_p1 = scmp.eq.s32.totalorder %s8058_s27, 0  ;;  %p221_p3 = scmp.lt.s32.totalorder %s7963_s26, 7 }
   0xe   : > { %s7965_s29 = smov [#allocation3]   ;;  %s7966_s8 = smov [#allocation6]  }
   0xf   : > { %p8064_p4 = pnand %p6549_p0, %p221_p3  ;;  %s237_s30 = sshll.u32 %s7965_s29, 4  ;;  %s8068_s30 = int_to_ptr.vmem [resolvable:$true] %s237_s30 }
  0x10   : > { %s253_s9 = sshll.u32 %s7966_s8, 4  ;;  %s7967_s10 = smov [#allocation9]   ;;  %s8078_s9 = int_to_ptr.vmem [resolvable:$true] %s253_s9 }
  0x11   : > { %s12966_s28 = scalar_select %p8064_p4, 1, 0 }
  0x12   : > { %p7542_p5 = pneg %p8064_p4  ;;  %s263_s11 = sshll.u32 %s7967_s10, 4  ;;  %s8080_s11 = int_to_ptr.vmem [resolvable:$true] %s263_s11 }
  0x13   : > { %s12968_s0 = sld [smem:[#allocation88_spill]] }
  0x14   : > { %p8074_p6 = pnand %p7542_p5, %p12707_p1 }
  0x16   : > { %p8090_p8 = pneg %p8074_p6 }
  0x19   : > { %s7691_s14 = scalar_lea.hbm %s12968_s0, 4096 }
  0x1a   : > { %p7692_p7 = scmp.ne.s32.totalorder %s12968_s0, %s7691_s14  ;;  %p7698_p11 = scmp.lt.u32.totalorder %s7691_s14, %s12968_s0 }
  0x1c   : > { %p7694_p9 = pnand %p8090_p8, %p7692_p7 }
  0x1e   : > { %p7695_p10 = pneg %p7694_p9 }
  0x20   : > { %p7700_p12 = pnand %p7698_p11, %p7695_p10 }
  0x22   : > { %7703 = shalt.err (!%p7700_p12)
}
  0x23   : > { %s7704_s20 = scalar_lea.vmem %s8068_s30, 4096  ;;  %p7712_p5 = scmp.lt.s32.totalorder %s8068_s30, %s8068_s30 }
  0x24   : > { %p7705_p13 = scmp.ne.s32.totalorder %s8068_s30, %s7704_s20  ;;  %p7713_p2 = scmp.lt.s32.totalorder %s7704_s20, %s7704_s20 }
  0x26   : > { %p7707_p0 = pnand %p7705_p13, %p8090_p8  ;;  %p7714_p7 = por %p7713_p2, %p7712_p5 }
  0x28   : > { %p7708_p3 = pneg %p7707_p0 }
  0x2a   : > { %p7715_p9 = pnand %p7714_p7, %p7708_p3 }
  0x2c   : > { %7718 = shalt.err (!%p7715_p9)
}
  0x2d   : > { %s7968_s29 = smov 128   ;;  %s7969_s8 = smov 8  }
  0x2e   : > { %7545 = dma.hbm_to_vmem [thread:$0]  (!%p8074_p6), %s12968_s0, 4096, %s8068_s30, [#allocation4], %s7968_s29, %s7968_s29, %s7969_s8  }
  0x2f   : > { %s12970_s1 = sld [smem:[#allocation89_spill]] }
  0x35   : > { %s7719_s15 = scalar_lea.hbm %s12970_s1, 128 }
  0x36   : > { %p7720_p2 = scmp.ne.s32.totalorder %s12970_s1, %s7719_s15  ;;  %p7726_p12 = scmp.lt.u32.totalorder %s7719_s15, %s12970_s1 }
  0x38   : > { %p7722_p10 = pnand %p7720_p2, %p8090_p8 }
  0x3a   : > { %p7723_p11 = pneg %p7722_p10 }
  0x3c   : > { %p7728_p13 = pnand %p7726_p12, %p7723_p11 }
  0x3e   : > { %7731 = shalt.err (!%p7728_p13)
}
  0x3f   : > { %s7732_s30 = scalar_lea.vmem %s8078_s9, 128  ;;  %p7740_p7 = scmp.lt.s32.totalorder %s8078_s9, %s8078_s9 }
  0x40   : > { %p7733_p0 = scmp.ne.s32.totalorder %s8078_s9, %s7732_s30  ;;  %p7741_p9 = scmp.lt.s32.totalorder %s7732_s30, %s7732_s30 }
  0x42   : > { %p7735_p3 = pnand %p7733_p0, %p8090_p8  ;;  %p7742_p2 = por %p7741_p9, %p7740_p7 }
  0x44   : > { %p7736_p5 = pneg %p7735_p3 }
  0x46   : > { %p7743_p10 = pnand %p7742_p2, %p7736_p5 }
  0x48   : > { %7746 = shalt.err (!%p7743_p10)
}
  0x49   : > { %7548 = dma.hbm_to_vmem [thread:$0]  (!%p8074_p6), %s12970_s1, 128, %s8078_s9, [#allocation7]  }
  0x4a   : > { %s7747_s15 = scalar_lea.hbm %s12703_s3, 4480 }
  0x4b   : > { %p7748_p11 = scmp.ne.s32.totalorder %s12703_s3, %s7747_s15  ;;  %p7754_p0 = scmp.lt.u32.totalorder %s7747_s15, %s12703_s3 }
  0x4d   : > { %p7750_p12 = pnand %p7748_p11, %p8090_p8 }
  0x4f   : > { %p7751_p13 = pneg %p7750_p12 }
  0x51   : > { %p7756_p3 = pnand %p7754_p0, %p7751_p13 }
  0x53   : > { %7759 = shalt.err (!%p7756_p3)
}
  0x54   : > { %s7760_s9 = scalar_lea.vmem %s8080_s11, 4480  ;;  %p7768_p2 = scmp.lt.s32.totalorder %s8080_s11, %s8080_s11 }
  0x55   : > { %p7761_p5 = scmp.ne.s32.totalorder %s8080_s11, %s7760_s9  ;;  %p7769_p10 = scmp.lt.s32.totalorder %s7760_s9, %s7760_s9 }
  0x57   : > { %p7763_p7 = pnand %p7761_p5, %p8090_p8  ;;  %p7770_p11 = por %p7769_p10, %p7768_p2 }
  0x59   : > { %p7764_p9 = pneg %p7763_p7 }
  0x5b   : > { %p7771_p12 = pnand %p7770_p11, %p7764_p9 }
  0x5d   : > { %7774 = shalt.err (!%p7771_p12)
}
  0x5e   : > { %7551 = dma.hbm_to_vmem [thread:$0]  (!%p8074_p6), %s12703_s3, 4480, %s8080_s11, [#allocation7], %s7968_s29, %s7968_s29, %s7969_s8  }
  0x5f   : > { %s7970_s12 = smov [#allocation10]   ;;  %s7775_s16 = scalar_lea.hbm %s12704_s4, 2688 }
  0x60   : > { %s276_s13 = sshll.u32 %s7970_s12, 4  ;;  %p7776_p13 = scmp.ne.s32.totalorder %s12704_s4, %s7775_s16  ;;  %s277_s13 = int_to_ptr.vmem [resolvable:$true] %s276_s13 }
  0x61   : > { %p7782_p5 = scmp.lt.u32.totalorder %s7775_s16, %s12704_s4 }
  0x62   : > { %p7778_p0 = pnand %p7776_p13, %p8090_p8 }
  0x64   : > { %p7779_p3 = pneg %p7778_p0 }
  0x66   : > { %p7784_p7 = pnand %p7782_p5, %p7779_p3 }
  0x68   : > { %7787 = shalt.err (!%p7784_p7)
}
  0x69   : > { %s7788_s11 = scalar_lea.vmem %s277_s13, 2688  ;;  %p7796_p11 = scmp.lt.s32.totalorder %s277_s13, %s277_s13 }
  0x6a   : > { %p7789_p9 = scmp.ne.s32.totalorder %s277_s13, %s7788_s11  ;;  %p7797_p12 = scmp.lt.s32.totalorder %s7788_s11, %s7788_s11 }
  0x6c   : > { %p7791_p2 = pnand %p7789_p9, %p8090_p8  ;;  %p7798_p1 = por %p7797_p12, %p7796_p11 }
  0x6e   : > { %p7792_p10 = pneg %p7791_p2 }
  0x70   : > { %p7799_p4 = pnand %p7798_p1, %p7792_p10 }
  0x72   : > { %7802 = shalt.err (!%p7799_p4)
}
  0x73   : > { %s7971_s29 = smov 896   ;;  %s7972_s17 = smov 56  }
  0x74   : > { %7554 = dma.hbm_to_vmem [thread:$0]  (!%p8074_p6), %s12704_s4, 2688, %s277_s13, [#allocation11], %s7971_s29, %s7971_s29, %s7972_s17  }
  0x75   : > { %s6548_s10 = sadd.s32 4294967294, %s7963_s26   ;;  %s35_s12 = sadd.s32 1, %s7959_s25 }
  0x76   : > { %s99_s14 = sadd.s32 1, %s7951_s23  ;;  %p36_p1 = scmp.ge.s32.totalorder %s35_s12, 6 }
  0x77   : > { %p106_p4 = scmp.ne.s32.totalorder %s7951_s23, %s7947_s22  ;;  %p107_p8 = scmp.eq.s32.totalorder %s7963_s26, 0 }
  0x78   : > { %p112_p13 = scmp.ne.s32.totalorder %s7947_s22, %s7943_s21  ;;  %s13479_s12 = smov (%p36_p1, %s35_s12), 0 }
  0x79   : > { %p8191_p0 = por %p107_p8, %p106_p4  ;;  %p12972_p3 = scmp.eq.s32.totalorder %s8058_s27, 0 }
  0x7a   : > { %s94_s15 = ssub.s32 %s7959_s25, %s13479_s12  ;;  %p12974_p5 = scmp.eq.s32.totalorder %s8058_s27, 5 }
  0x7b   : > { %p8197_p6 = por %p12972_p3, %p112_p13  ;;  %p97_p9 = scmp.eq.s32.totalorder %s94_s15, 0 }
  0x7c   : > { %p8205_p7 = por %p12974_p5, %p106_p4  ;;  %p186_p2 = scmp.eq.s32.totalorder %s6548_s10, 5 }
  0x7d   : > { %p7570_p10 = scmp.lt.s32.totalorder %s7963_s26, 6  ;;  %s290_s18 = sand.u32 1, %s7963_s26  }
  0x7e   : > { %s12975_s16 = scalar_select %p8205_p7, 1, 0 }
  0x7f   : > { %s8212_s19 = scalar_select %p97_p9, %s7951_s23, %s99_s14  }
  0x80   : > { %p8214_p11 = por %p186_p2, %p112_p13  ;;  %s292_s9 = sand.u32 1, %s7951_s23  }
  0x81   : > { %s6556_s11 = sshll.u32 %s7959_s25, 7  ;;  %s6555_s29 = sshll.u32 %s292_s9, 3 }
  0x82   : > { %s12976_s20 = scalar_select %p8214_p11, 1, 0 }
  0x83   : > { %s8223_s30 = scalar_lea.hbm %s12702_s2, %s6556_s11  ;;  %p8227_p12 = pnand %p7570_p10, %p8191_p0 }
  0x84   : > { %s294_s14 = scalar_lea.vmem [#allocation8], %s6555_s29  ;;  %s291_s9 = scalar_lea.sflag [#allocation4], %s290_s18 }
  0x85   : > { %s302_s15 = sshll.u32 %s294_s14, 4  ;;  %s7803_s0 = scalar_lea.hbm %s8223_s30, 128  ;;  %s8231_s15 = int_to_ptr.vmem [resolvable:$true] %s302_s15 }
  0x86   : > { %p7804_p1 = scmp.ne.s32.totalorder %s8223_s30, %s7803_s0  ;;  %p7805_p4 = pneg %p8227_p12 }
  0x87   : > { %s7808_s17 = scalar_lea.hbm %s12702_s2, 768  ;;  %p7809_p0 = scmp.lt.u32.totalorder %s8223_s30, %s12702_s2 }
  0x88   : > { %p7806_p8 = pnand %p7805_p4, %p7804_p1  ;;  %p7810_p3 = scmp.lt.u32.totalorder %s7808_s17, %s7803_s0 }
  0x89   : > { %p7812_p9 = scmp.lt.u32.totalorder %s7803_s0, %s8223_s30 }
  0x8a   : > { %p7807_p13 = pneg %p7806_p8  ;;  %p7811_p5 = por %p7810_p3, %p7809_p0 }
  0x8c   : > { %p7813_p2 = por %p7812_p9, %p7811_p5 }
  0x8e   : > { %p7814_p10 = pnand %p7813_p2, %p7807_p13 }
  0x90   : > { %7817 = shalt.err (!%p7814_p10)
}
  0x91   : > { %s7818_s18 = scalar_lea.vmem %s8231_s15, 128  ;;  %s7973_s29 = smov [#allocation8]  }
  0x92   : > { %p7819_p1 = scmp.ne.s32.totalorder %s8231_s15, %s7818_s18  ;;  %s7823_s14 = sshll.u32 %s7973_s29, 4  ;;  %s7824_s14 = int_to_ptr.vmem [resolvable:$false] %s7823_s14 }
  0x93   : > { %s7825_s1 = scalar_lea.vmem %s7824_s14, 256  ;;  %p7826_p7 = scmp.lt.s32.totalorder %s8231_s15, %s7824_s14 }
  0x94   : > { %p7821_p8 = pnand %p7819_p1, %p7805_p4  ;;  %p7827_p0 = scmp.lt.s32.totalorder %s7825_s1, %s7818_s18 }
  0x96   : > { %p7822_p11 = pneg %p7821_p8  ;;  %p7828_p3 = por %p7827_p0, %p7826_p7 }
  0x98   : > { %p7829_p5 = pnand %p7828_p3, %p7822_p11 }
  0x9a   : > { %7832 = shalt.err (!%p7829_p5)
}
  0x9b   : > { %7558 = dma.hbm_to_vmem [thread:$0]  (!%p8227_p12), %s8223_s30, 128, %s8231_s15, %s291_s9  }
  0x9c   : > { %p12978_p13 = scmp.ne.s32.totalorder %s12966_s28, 0 }
  0x9e   : > { %311 = sbr.rel (%p12978_p13) target bundleno = 2570 (0xa0a), region = 40 }
  0xa5   : > { %p12979_p4 = scmp.eq.s32.totalorder %s8058_s27, 0 }
  0xa7   : > { %7914 = dma.done.wait (%p12979_p4), [#allocation4], 4096   ;;  %p12980_p9 = pmov %p12979_p4 }
  0xa8   : > { %p12981_p2 = pmov %p12979_p4 }
  0xa9   : > { %7916 = vsyncadd (%p12980_p9), [#allocation4], 4294963200 }
  0xaa   : > { %7918 = dma.done.wait (%p12981_p2), [#allocation7], 128   ;;  %p12982_p7 = pmov %p12981_p2 }
  0xab   : > { %s321_s0 = sand.u32 1, %s8058_s27   ;;  %s8270_s30 = sand.u32 1, %s7947_s22  }
  0xac   : > { %7920 = vsyncadd (%p12982_p7), [#allocation7], 4294967168  ;;  %s6560_s28 = sshll.u32 %s8270_s30, 3  ;;  %s322_s10 = scalar_lea.sflag [#allocation4], %s321_s0 }
  0xad   : > { %s8273_s15 = scalar_lea.vmem [#allocation8], %s6560_s28 }
  0xae   : > { %7922 = dma.done.wait (%p8197_p6), %s322_s10, 128  }
  0xaf   : > { %7924 = vsyncadd (%p8197_p6), %s322_s10, 4294967168  ;;  %p12983_p11 = pmov %p12981_p2 }
  0xb0   : > { %p12984_p12 = pmov %p12981_p2 }
  0xb1   : > { %7926 = dma.done.wait (%p12983_p11), [#allocation7], 4480  }
  0xb2   : > { %7928 = vsyncadd (%p12984_p12), [#allocation7], 4294962816  ;;  %p12985_p10 = pmov %p12981_p2 }
  0xb3   : > { %p12986_p1 = pmov %p12981_p2 }
  0xb4   : > { %7930 = dma.done.wait (%p12985_p10), [#allocation11], 2688  }
  0xb5   : > { %7932 = vsyncadd (%p12986_p1), [#allocation11], 4294964608  ;;  %s7516_s9 = smul.u32 56, %s8270_s30  ;;  %s8288_s7 = scalar_lea.vmem [#allocation12], %s6560_s28 }
  0xb6   : > { %p6564_p6 = scmp.ne.s32.totalorder %s7955_s24, 0 }
  0xb7   : > { %s8290_s11 = scalar_lea.vmem [#allocation13], %s7516_s9  ;;  %v372_v0 = vld [vmem:[#allocation6] sm:$0xff] (!%p6564_p6) }
  0xb8   : > { %371 = sbr.rel (%p6564_p6) target bundleno = 191 (0xbf), region = 64  ;;  %373 = vst [vmem:[#allocation2] sm:$0xff] (!%p6564_p6), %v372_v0 }
  0xbf PF: > { %v374_v1 = vld [vmem:[#allocation2] sm:$0xff]  ;;  %v12716_v2 = vmov 33   ;;  %v7975_v4 = vmov 1966171168   ;;  %v12710_v6 = vlaneseq  ;;  %v2608_v25 = vld [vmem:[#allocation3] sm:$0xff]  ;;  %v2609_v26 = vld [vmem:[#allocation3 + $0x8] sm:$0xff] }
  0xc0   : > { %7648 = vset.pattern.permute.xlu0 %v12716_v2  ;;  %v375_v3 = vadd.f32 1.0, %v374_v1  ;;  %v382_v5 = vunpack.c.l.s4 %v7975_v4  ;;  %7649 = vset.pattern.permute.xlu1 %v12716_v2  ;;  %v7392_v31 = vpack.c.bf16 %v2609_v26, %v2608_v25  ;;  %v2610_v34 = vld [vmem:[#allocation3 + $0x10] sm:$0xff]  ;;  %v2611_v35 = vld [vmem:[#allocation3 + $0x18] sm:$0xff]  ;;  %v2612_v36 = vld [vmem:[#allocation3 + $0x20] sm:$0xff]  ;;  %vm12774_vm0 = vcmask 261120   ;;  %s7981_s27 = smov 104  }
  0xc1   : > { %v8296_v10 = vshrl.u32 %v12710_v6, 7  ;;  %v7396_v39 = vpack.c.bf16 %v2611_v35, %v2610_v34  ;;  %v2613_v40 = vld [vmem:[#allocation3 + $0x28] sm:$0xff]  ;;  %v2614_v45 = vld [vmem:[#allocation3 + $0x30] sm:$0xff]  ;;  %v2615_v46 = vld [vmem:[#allocation3 + $0x38] sm:$0xff]  ;;  %s7982_s13 = smov 96   ;;  %s7983_s17 = smov 64  }
  0xc2   : > { %v376_v7 = vmul.f32 28.0, %v375_v3  ;;  %v383_v9 = vunpack.c.0.s8 %v382_v5  ;;  %7393 = vmatprep.subr.bf16.mxu0 %v7392_v31  ;;  %v7400_v41 = vpack.c.bf16 %v2613_v40, %v2612_v36  ;;  %v7404_v47 = vpack.c.bf16 %v2615_v46, %v2614_v45  ;;  %v2616_v49 = vld [vmem:[#allocation3 + $0x40] sm:$0xff]  ;;  %v2617_v50 = vld [vmem:[#allocation3 + $0x48] sm:$0xff]  ;;  %s7984_s8 = smov 113   ;;  %s7985_s18 = smov 127  }
  0xc3   : > { %12987 = vst [vmem:[#allocation22_spill] sm:$0xff] %v8296_v10  ;;  %v8300_v16 = vsub.s32 0, %v8296_v10  ;;  %7395 = vmatpush3.bf16.msra.mxu0 %v7392_v31  ;;  %v8334_v51 = vpack.c.bf16 %v2617_v50, %v2616_v49  ;;  %v2620_v52 = vld [vmem:[#allocation3 + $0x60] sm:$0xff]  ;;  %v2621_v53 = vld [vmem:[#allocation3 + $0x68] sm:$0xff]  ;;  %v8341_v55 = vadd.s32 8, %v8296_v10  ;;  %v8344_v56 = vadd.s32 16, %v8296_v10 }
  0xc4   : > { %v377_v8 = vmul.f32 0.5, %v376_v7  ;;  %v386_v13 = vsub.s32 %v383_v9, %v8296_v10  ;;  %7397 = vmatprep.subr.bf16.mxu0 %v7396_v39  ;;  %7401 = vmatprep.subr.bf16.mxu1 %v7400_v41  ;;  %v8337_v54 = vpack.c.bf16 %v2621_v53, %v2620_v52  ;;  %v448_v57 = vshra.s32 %v8296_v10, 6  ;;  %s7986_s29 = smov 43   ;;  %s7987_s14 = smov 95  }
  0xc5   : > { %12988 = vst [vmem:[#allocation23_spill] sm:$0xff] %v8300_v16  ;;  %7403 = vmatpush3.bf16.msra.mxu1 %v7400_v41  ;;  %12989 = vst [vmem:[#allocation24_spill] sm:$0xff] %v8341_v55  ;;  %v449_v58 = vshra.s32 %v8341_v55, 6  ;;  %v8349_v59 = vadd.s32 24, %v8296_v10  ;;  %v680_v60 = vand.u32 63, %v8296_v10  ;;  %v8353_v61 = vadd.s32 32, %v8296_v10 }
  0xc6   : > { %v378_v11 = vfloor.f32 %v377_v8  ;;  %7405 = vmatprep.subr.bf16.mxu1 %v7404_v47  ;;  %12990 = vst [vmem:[#allocation25_spill] sm:$0xff] %v8344_v56  ;;  %v681_v62 = vand.u32 63, %v8341_v55  ;;  %v450_v63 = vshra.s32 %v8344_v56, 6  ;;  %v8357_v0 = vadd.s32 1, %v448_v57  ;;  %s7988_s1 = smov 117   ;;  %s7519_s0 = smul.u32 896, %s7955_s24 }
  0xc7   : > { %7399 = vmatpush3.bf16.msra.mxu0 %v7396_v39  ;;  %12991 = vst [vmem:[#allocation26_spill] sm:$0xff] %v8349_v59  ;;  %12992 = vst [vmem:[#allocation27_spill] sm:$0xff] %v8353_v61  ;;  %v682_v1 = vand.u32 63, %v8344_v56  ;;  %v8361_v3 = vadd.s32 40, %v8296_v10  ;;  %v8363_v4 = vadd.s32 1, %v449_v58  ;;  %v451_v5 = vshra.s32 %v8349_v59, 6 }
  0xc8   : > { %v7517_v12 = vtrunc.f32 %v378_v11  ;;  %7409 = vmatprep.subr.bf16.mxu0 %v8334_v51  ;;  %12993 = vst [vmem:[#allocation28_spill] sm:$0xff] %v8357_v0  ;;  %v8367_v7 = vadd.s32 48, %v8296_v10  ;;  %v696_v8 = vshra.s32 %v680_v60, 3  ;;  %v683_v9 = vand.u32 63, %v8349_v59  ;;  %v2630_v59 = vld [vmem:[#allocation3 + $0xb0] sm:$0xff]  ;;  %s6390_s28 = sshll.u32 %s8290_s11, 4  ;;  %s12617_s28 = int_to_ptr.vmem [resolvable:$true] %s6390_s28 }
  0xc9   : > { %7407 = vmatpush3.bf16.msra.mxu1 %v7404_v47  ;;  %12994 = vst [vmem:[#allocation29_spill] sm:$0xff] %v8361_v3  ;;  %12995 = vst [vmem:[#allocation30_spill] sm:$0xff] %v8363_v4  ;;  %v452_v11 = vshra.s32 %v8353_v61, 6  ;;  %v8403_v34 = vadd.s32 64, %v8296_v10  ;;  %v8420_v45 = vadd.s32 72, %v8296_v10  ;;  %v8429_v47 = vadd.s32 80, %v8296_v10 }
  0xca   : > { %v7518_v14 = vcvt.f32.s32 %v7517_v12  ;;  %7417 = vmatprep.subr.bf16.mxu1 %v8337_v54  ;;  %12996 = vst [vmem:[#allocation31_spill] sm:$0xff] %v8367_v7  ;;  %v7976_v12 = vmov 32   ;;  %v8391_v25 = vmul.u32 %v696_v8, %v8357_v0  ;;  %v699_v26 = vshra.s32 %v683_v9, 3  ;;  %s7989_s10 = smov 35   ;;  %p13470_p0 = scmp.ne.s32.totalorder %s12975_s16, 0 }
  0xcb   : > { %13004 = vst [vmem:[#allocation39_spill] sm:$0xff] %v8403_v34  ;;  %13008 = vst [vmem:[#allocation43_spill] sm:$0xff] %v8420_v45  ;;  %v456_v50 = vshra.s32 %v8403_v34, 6  ;;  %v688_v52 = vand.u32 63, %v8403_v34  ;;  %v8437_v53 = vadd.s32 88, %v8296_v10  ;;  %v689_v8 = vand.u32 63, %v8420_v45 }
  0xcc   : > { %v387_v15 = vrot.slane %v7518_v14, %v386_v13  ;;  %v380_v17 = vcombine.high %v7518_v14, %v7518_v14  ;;  %v8371_v14 = vadd.s32 1, %v450_v63  ;;  %13010 = vst [vmem:[#allocation45_spill] sm:$0xff] %v8429_v47  ;;  %v458_v9 = vshra.s32 %v8429_v47, 6 }
  0xcd   : > { %13011 = vst [vmem:[#allocation46_spill] sm:$0xff] %v8437_v53  ;;  %v13037_v55 = vlaneseq }
  0xce   : > { %v403_v18 = vrot.slane %v387_v15, %v386_v13  ;;  %v395_v19 = vcombine.high %v387_v15, %v387_v15  ;;  %v394_v20 = vrot.slane %v380_v17, %v386_v13  ;;  %12997 = vst [vmem:[#allocation32_spill] sm:$0xff] %v8371_v14  ;;  %v684_v15 = vand.u32 63, %v8353_v61  ;;  %v2627_v61 = vld [vmem:[#allocation3 + $0x98] sm:$0xff] }
  0xcf   : > { %v8377_v17 = vmul.u32 4, %v8357_v0  ;;  %v8400_v31 = vmul.u32 4, %v8371_v14 }
  0xd0   : > { %v8303_v21 = vrot.slane %v403_v18, %v8300_v16  ;;  %v417_v22 = vrot.slane %v395_v19, %v386_v13  ;;  %v425_v23 = vcombine.high %v403_v18, %v403_v18  ;;  %v396_v24 = vcombine.high %v394_v20, %v394_v20 }
  0xd1   : > { %v410_v28 = vrot.slane %v394_v20, %v386_v13  ;;  %12998 = vst [vmem:[#allocation33_spill] sm:$0xff] %v8377_v17  ;;  %v698_v18 = vshra.s32 %v682_v1, 3  ;;  %v453_v19 = vshra.s32 %v8361_v3, 6  ;;  %v8381_v20 = vadd.s32 56, %v8296_v10  ;;  %13003 = vst [vmem:[#allocation38_spill] sm:$0xff] %v8400_v31 }
  0xd2   : > { %529 = vperm.xlu0 %7648, %v8303_v21   ;;  %v8307_v27 = vrot.slane %v417_v22, %v8300_v16  ;;  %v8310_v29 = vrot.slane %v425_v23, %v8300_v16  ;;  %v427_v30 = vcombine.high %v417_v22, %v417_v22  ;;  %v424_v32 = vrot.slane %v396_v24, %v386_v13 }
  0xd3   : > { %v8318_v37 = vrot.slane %v410_v28, %v8300_v16  ;;  %v426_v38 = vcombine.high %v410_v28, %v410_v28  ;;  %v697_v13 = vshra.s32 %v681_v62, 3  ;;  %12999 = vst [vmem:[#allocation34_spill] sm:$0xff] %v8381_v20  ;;  %v8384_v22 = vmul.u32 4, %v8363_v4 }
  0xd4   : > { %535 = vperm.xlu1 %7649, %v8310_v29   ;;  %v8314_v33 = vrot.slane %v427_v30, %v8300_v16  ;;  %v8322_v42 = vrot.slane %v424_v32, %v8300_v16  ;;  %v428_v43 = vcombine.high %v424_v32, %v424_v32  ;;  %v8386_v23 = vadd.s32 1, %v451_v5 }
  0xd5   : > { %v8326_v44 = vrot.slane %v426_v38, %v8300_v16  ;;  %13000 = vst [vmem:[#allocation35_spill] sm:$0xff] %v8384_v22  ;;  %v685_v24 = vand.u32 63, %v8361_v3  ;;  %v686_v28 = vand.u32 63, %v8367_v7  ;;  %v8397_v30 = vmul.u32 %v697_v13, %v8363_v4  ;;  %v2628_v3 = vld [vmem:[#allocation3 + $0xa0] sm:$0xff] }
  0xd6   : > { %532 = vperm.xlu0 %7648, %v8307_v27   ;;  %v8330_v48 = vrot.slane %v428_v43, %v8300_v16  ;;  %13001 = vst [vmem:[#allocation36_spill] sm:$0xff] %v8386_v23  ;;  %v700_v32 = vshra.s32 %v684_v15, 3  ;;  %v8408_v35 = vmul.u32 %v698_v18, %v8371_v14  ;;  %v8410_v36 = vadd.s32 1, %v453_v19 }
  0xd7   : > { %v455_v38 = vshra.s32 %v8381_v20, 6  ;;  %v687_v39 = vand.u32 63, %v8381_v20  ;;  %v8415_v40 = vmul.u32 4, %v8386_v23  ;;  %v701_v41 = vshra.s32 %v685_v24, 3 }
  0xd8   : > { %538 = vperm.xlu1 %7649, %v8314_v33   ;;  %13005 = vst [vmem:[#allocation40_spill] sm:$0xff] %v8410_v36  ;;  %v702_v46 = vshra.s32 %v686_v28, 3  ;;  %v8442_v57 = vmul.u32 4, %v8410_v36  ;;  %v8447_v62 = vadd.s32 96, %v8296_v10  ;;  %v457_v5 = vshra.s32 %v8420_v45, 6  ;;  %v2623_v45 = vld [vmem:[#allocation3 + $0x78] sm:$0xff] }
  0xd9   : > { %13006 = vst [vmem:[#allocation41_spill] sm:$0xff] %v8415_v40  ;;  %v8444_v58 = vadd.s32 1, %v455_v38  ;;  %v703_v60 = vshra.s32 %v687_v39, 3  ;;  %v8450_v63 = vmul.u32 %v701_v41, %v8410_v36  ;;  %v704_v13 = vshra.s32 %v688_v52, 3 }
  0xda   : > { %541 = vperm.xlu0 %7648, %v8318_v37   ;;  %13012 = vst [vmem:[#allocation47_spill] sm:$0xff] %v8442_v57  ;;  %13014 = vst [vmem:[#allocation49_spill] sm:$0xff] %v8447_v62  ;;  %v690_v15 = vand.u32 63, %v8429_v47  ;;  %v459_v18 = vshra.s32 %v8437_v53, 6  ;;  %v8481_v28 = vadd.s32 1, %v457_v5  ;;  %v8488_v39 = vadd.s32 1, %v458_v9 }
  0xdb   : > { %13013 = vst [vmem:[#allocation48_spill] sm:$0xff] %v8444_v58  ;;  %v8474_v19 = vmul.u32 4, %v8444_v58  ;;  %v8477_v24 = vmul.u32 %v703_v60, %v8444_v58 }
  0xdc   : > { %544 = vperm.xlu1 %7649, %v8322_v42   ;;  %13020 = vst [vmem:[#allocation55_spill] sm:$0xff] %v8481_v28  ;;  %13022 = vst [vmem:[#allocation57_spill] sm:$0xff] %v8488_v39  ;;  %v8492_v52 = vadd.s32 1, %v459_v18 }
  0xdd   : > { %13019 = vst [vmem:[#allocation54_spill] sm:$0xff] %v8474_v19 }
  0xde   : > { %547 = vperm.xlu0 %7648, %v8326_v44   ;;  %13023 = vst [vmem:[#allocation58_spill] sm:$0xff] %v8492_v52 }
  0xe0   : > { %550 = vperm.xlu1 %7649, %v8330_v48  }
  0xe2   : > { %7650 = vset.pattern.permute.xlu0 %v7976_v12 }
  0xe3   : > { %1625 = vperm.xlu0 %7650, %v8303_v21   ;;  %v454_v21 = vshra.s32 %v8367_v7, 6  ;;  %v2625_v7 = vld [vmem:[#allocation3 + $0x88] sm:$0xff] }
  0xe4   : > { %7651 = vset.pattern.permute.xlu1 %v7976_v12  ;;  %v8467_v12 = vadd.s32 1, %v456_v50  ;;  %v706_v50 = vshra.s32 %v690_v15, 3 }
  0xe5   : > { %1628 = vperm.xlu1 %7651, %v8307_v27   ;;  %v8393_v27 = vadd.s32 1, %v452_v11  ;;  %v8417_v43 = vadd.s32 1, %v454_v21  ;;  %v8465_v11 = vadd.s32 112, %v8296_v10  ;;  %v691_v21 = vand.u32 63, %v8437_v53  ;;  %v2622_v53 = vld [vmem:[#allocation3 + $0x70] sm:$0xff] }
  0xe6   : > { %13018 = vst [vmem:[#allocation53_spill] sm:$0xff] %v8467_v12  ;;  %v8498_v6 = vmul.u32 4, %v8467_v12  ;;  %v8520_v34 = vmul.u32 %v706_v50, %v8488_v39 }
  0xe7   : > { %13002 = vst [vmem:[#allocation37_spill] sm:$0xff] %v8393_v27  ;;  %1634 = vperm.xlu0 %7650, %v8314_v33   ;;  %13007 = vst [vmem:[#allocation42_spill] sm:$0xff] %v8417_v43  ;;  %v8426_v33 = vmul.u32 4, %v8393_v27  ;;  %v8432_v49 = vmul.u32 %v700_v32, %v8393_v27  ;;  %v692_v32 = vand.u32 63, %v8447_v62  ;;  %v694_v60 = vand.u32 63, %v8465_v11 }
  0xe8   : > { %v8453_v1 = vmul.u32 4, %v8417_v43  ;;  %13017 = vst [vmem:[#allocation52_spill] sm:$0xff] %v8465_v11  ;;  %13024 = vst [vmem:[#allocation59_spill] sm:$0xff] %v8498_v6  ;;  %v707_v9 = vshra.s32 %v691_v21, 3  ;;  %v2618_v21 = vld [vmem:[#allocation3 + $0x50] sm:$0xff] }
  0xe9   : > { %1631 = vperm.xlu1 %7651, %v8310_v29   ;;  %v8423_v29 = vmul.u32 %v699_v26, %v8386_v23  ;;  %13009 = vst [vmem:[#allocation44_spill] sm:$0xff] %v8426_v33  ;;  %v460_v26 = vshra.s32 %v8447_v62, 6  ;;  %v8506_v62 = vmul.u32 4, %v8481_v28  ;;  %v708_v15 = vshra.s32 %v692_v32, 3  ;;  %13030 = vst [vmem:[#allocation65_spill] sm:$0xff] %v8520_v34 }
  0xea   : > { %13015 = vst [vmem:[#allocation50_spill] sm:$0xff] %v8453_v1  ;;  %v8523_v32 = vmul.u32 4, %v8492_v52  ;;  %v8526_v20 = vmul.u32 %v707_v9, %v8492_v52  ;;  %v8540_v9 = vand.u32 127, %v13037_v55 }
  0xeb   : > { %1640 = vperm.xlu0 %7650, %v8322_v42   ;;  %v8457_v42 = vadd.s32 104, %v8296_v10  ;;  %v8503_v16 = vadd.s32 1, %v460_v26  ;;  %13026 = vst [vmem:[#allocation61_spill] sm:$0xff] %v8506_v62  ;;  %v2619_v26 = vld [vmem:[#allocation3 + $0x58] sm:$0xff] }
  0xec   : > { %13031 = vst [vmem:[#allocation66_spill] sm:$0xff] %v8523_v32  ;;  %13032 = vst [vmem:[#allocation67_spill] sm:$0xff] %v8526_v20 }
  0xed   : > { %1637 = vperm.xlu1 %7651, %v8318_v37   ;;  %13016 = vst [vmem:[#allocation51_spill] sm:$0xff] %v8457_v42  ;;  %v8460_v37 = vmul.u32 %v702_v46, %v8417_v43  ;;  %v461_v38 = vshra.s32 %v8457_v42, 6  ;;  %v693_v41 = vand.u32 63, %v8457_v42  ;;  %v462_v46 = vshra.s32 %v8465_v11, 6  ;;  %13025 = vst [vmem:[#allocation60_spill] sm:$0xff] %v8503_v16 }
  0xee   : > { %v8532_v50 = vmul.u32 %v708_v15, %v8503_v16 }
  0xef   : > { %1646 = vperm.xlu0 %7650, %v8330_v48   ;;  %v8486_v48 = vadd.s32 120, %v8296_v10  ;;  %v8508_v18 = vadd.s32 1, %v461_v38  ;;  %v709_v47 = vshra.s32 %v693_v41, 3  ;;  %v710_v38 = vshra.s32 %v694_v60, 3  ;;  %v2631_v10 = vld [vmem:[#allocation3 + $0xb8] sm:$0xff] }
  0xf0   : > { %v8529_v41 = vmul.u32 4, %v8503_v16  ;;  %13034 = vst [vmem:[#allocation69_spill] sm:$0xff] %v8532_v50 }
  0xf1   : > { %1643 = vperm.xlu1 %7651, %v8326_v44   ;;  %13021 = vst [vmem:[#allocation56_spill] sm:$0xff] %v8486_v48  ;;  %v705_v44 = vshra.s32 %v689_v8, 3  ;;  %v695_v5 = vand.u32 63, %v8486_v48  ;;  %v8501_v8 = vmul.u32 %v704_v13, %v8467_v12  ;;  %13027 = vst [vmem:[#allocation62_spill] sm:$0xff] %v8508_v18  ;;  %v463_v11 = vshra.s32 %v8486_v48, 6 }
  0xf2   : > { %v8517_v13 = vadd.s32 1, %v462_v46  ;;  %13033 = vst [vmem:[#allocation68_spill] sm:$0xff] %v8529_v41  ;;  %v2626_v46 = vld [vmem:[#allocation3 + $0x90] sm:$0xff]  ;;  %v8535_v56 = vmul.u32 4, %v8508_v18  ;;  %v8543_v52 = vmul.u32 %v709_v47, %v8508_v18 }
  0xf3   : > { %v8512_v42 = vmul.u32 %v705_v44, %v8481_v28  ;;  %v711_v48 = vshra.s32 %v695_v5, 3  ;;  %v2624_v44 = vld [vmem:[#allocation3 + $0x80] sm:$0xff]  ;;  %v8537_v60 = vadd.s32 1, %v463_v11  ;;  %v2629_v5 = vld [vmem:[#allocation3 + $0xa8] sm:$0xff]  ;;  %v8554_v11 = vpack.c.bf16 %v2619_v26, %v2618_v21 }
  0xf4   : > { %13029 = vst [vmem:[#allocation64_spill] sm:$0xff] %v8517_v13  ;;  %13035 = vst [vmem:[#allocation70_spill] sm:$0xff] %v8535_v56  ;;  %v8546_v20 = vmul.u32 4, %v8517_v13  ;;  %v8549_v15 = vmul.u32 %v710_v38, %v8517_v13  ;;  %v8556_v56 = vpack.c.bf16 %v2623_v45, %v2622_v53  ;;  %v8560_v55 = vpack.c.bf16 %v2625_v7, %v2624_v44 }
  0xf5   : > { %7652 = vset.pattern.permute.xlu1 %v12716_v2  ;;  %v8515_v2 = vmul.u32 4, %v8488_v39  ;;  %13036 = vst [vmem:[#allocation71_spill] sm:$0xff] %v8537_v60  ;;  %v8552_v16 = vmul.u32 %v711_v48, %v8537_v60  ;;  %v8562_v47 = vpack.c.bf16 %v2627_v61, %v2626_v46  ;;  %v8564_v18 = vpack.c.bf16 %v2629_v5, %v2628_v3 }
  0xf6   : > { %13038 = vst [vmem:[#allocation72_spill] sm:$0xff] %v8546_v20  ;;  %v8566_v20 = vpack.c.bf16 %v2631_v10, %v2630_v59 }
  0xf7   : > { %13028 = vst [vmem:[#allocation63_spill] sm:$0xff] %v8515_v2  ;;  %13039 = vst [vmem:[#allocation73_spill] sm:$0xff] %v8552_v16 }
  0xf8   : > { %13040 = vst [vmem:[#allocation74_spill] sm:$0xff] %v8562_v47  ;;  %13041 = vst [vmem:[#allocation75_spill] sm:$0xff] %v8566_v20 }
 0x151   : > { %v8558_v50 = vpop.permute.xlu0 %529 }
 0x152   : > { %v552_v38 = vsub.s32 %v8558_v50, %v8377_v17  ;;  %v553_v48 = vsub.s32 %v8558_v50, %v8384_v22  ;;  %v554_v45 = vsub.s32 %v8558_v50, %v8400_v31  ;;  %v555_v53 = vsub.s32 %v8558_v50, %v8415_v40 }
 0x153   : > { %v556_v61 = vsub.s32 %v8558_v50, %v8426_v33  ;;  %v557_v3 = vsub.s32 %v8558_v50, %v8442_v57  ;;  %v558_v10 = vsub.s32 %v8558_v50, %v8453_v1  ;;  %v559_v59 = vsub.s32 %v8558_v50, %v8474_v19 }
 0x154   : > { %v728_v7 = vadd.s32 %v8391_v25, %v552_v38  ;;  %v729_v21 = vadd.s32 %v8397_v30, %v553_v48  ;;  %v730_v26 = vadd.s32 %v8408_v35, %v554_v45  ;;  %v731_v44 = vadd.s32 %v8423_v29, %v555_v53 }
 0x155   : > { %v8588_v46 = vpop.permute.xlu0 %532  ;;  %v732_v5 = vadd.s32 %v8432_v49, %v556_v61  ;;  %v733_v20 = vadd.s32 %v8450_v63, %v557_v3  ;;  %v8593_v47 = vadd.s32 %v8460_v37, %v558_v10  ;;  %v8596_v16 = vadd.s32 %v8477_v24, %v559_v59 }
 0x156   : > { %vm856_vm1 = vcmp.ge.s32.totalorder %v8540_v9, %v728_v7  ;;  %v984_v38 = vadd.s32 %v728_v7, %v8357_v0  ;;  %vm857_vm2 = vcmp.ge.s32.totalorder %v8540_v9, %v729_v21  ;;  %v985_v48 = vadd.s32 %v729_v21, %v8363_v4 }
 0x157   : > { %vm858_vm3 = vcmp.ge.s32.totalorder %v8540_v9, %v730_v26  ;;  %v986_v45 = vadd.s32 %v730_v26, %v8371_v14  ;;  %v568_v53 = vsub.s32 %v8588_v46, %v8377_v17  ;;  %vm859_vm4 = vcmp.ge.s32.totalorder %v8540_v9, %v731_v44 }
 0x158   : > { %vm1112_vm5 = vcmp.lt.s32.totalorder %v8540_v9, %v984_v38  ;;  %vm1113_vm6 = vcmp.lt.s32.totalorder %v8540_v9, %v985_v48  ;;  %v987_v61 = vadd.s32 %v731_v44, %v8386_v23  ;;  %v569_v3 = vsub.s32 %v8588_v46, %v8384_v22 }
 0x159   : > { %vm1240_vm7 = vmand %vm856_vm1, %vm1112_vm5  ;;  %vm1114_vm8 = vcmp.lt.s32.totalorder %v8540_v9, %v986_v45  ;;  %v744_v10 = vadd.s32 %v8391_v25, %v568_v53  ;;  %vm860_vm9 = vcmp.ge.s32.totalorder %v8540_v9, %v732_v5  ;;  %v988_v59 = vadd.s32 %v732_v5, %v8393_v27 }
 0x15a   : > { %v12755_v7 = vmov 0.0   ;;  %vm1241_vm10 = vmand %vm857_vm2, %vm1113_vm6  ;;  %vm1115_vm11 = vcmp.lt.s32.totalorder %v8540_v9, %v987_v61  ;;  %v745_v38 = vadd.s32 %v8397_v30, %v569_v3  ;;  %v570_v48 = vsub.s32 %v8588_v46, %v8400_v31 }
 0x15b   : > { %v6565_v17 = vsel %vm1240_vm7, 1.0, %v12755_v7  ;;  %v6566_v45 = vsel %vm1241_vm10, 1.0, %v12755_v7  ;;  %vm1242_vm12 = vmand %vm858_vm3, %vm1114_vm8  ;;  %vm872_vm13 = vcmp.ge.s32.totalorder %v8540_v9, %v744_v10  ;;  %v1000_v53 = vadd.s32 %v744_v10, %v8357_v0 }
 0x15c   : > { %7055 = vmatprep.mubr.msk.f32.mxu0 %vm12774_vm0, %v6565_v17  ;;  %vm1116_vm14 = vcmp.lt.s32.totalorder %v8540_v9, %v988_v59  ;;  %v6567_v21 = vsel %vm1242_vm12, 1.0, %v12755_v7  ;;  %vm1243_vm15 = vmand %vm859_vm4, %vm1115_vm11  ;;  %vm873_vm1 = vcmp.ge.s32.totalorder %v8540_v9, %v745_v38  ;;  %v1001_v17 = vadd.s32 %v745_v38, %v8363_v4 }
 0x15d   : > { %7056 = vmatmul.mubr.msk.f32.vlgmr.msra.gmra.mrb[0].mxu0 %vm12774_vm0, %v6566_v45  ;;  %v746_v26 = vadd.s32 %v8408_v35, %v570_v48  ;;  %vm1128_vm2 = vcmp.lt.s32.totalorder %v8540_v9, %v1000_v53  ;;  %v6568_v61 = vsel %vm1243_vm15, 1.0, %v12755_v7  ;;  %vm1244_vm3 = vmand %vm860_vm9, %vm1116_vm14  ;;  %vm861_vm5 = vcmp.ge.s32.totalorder %v8540_v9, %v733_v20 }
 0x15e   : > { %7058 = vmatprep.mubr.msk.f32.mxu0 %vm12774_vm0, %v6567_v21  ;;  %v989_v44 = vadd.s32 %v733_v20, %v8410_v36  ;;  %7411 = vmatpush3.bf16.msra.mxu0 %v8334_v51  ;;  %vm1256_vm4 = vmand %vm872_vm13, %vm1128_vm2  ;;  %vm1129_vm6 = vcmp.lt.s32.totalorder %v8540_v9, %v1001_v17  ;;  %v6569_v3 = vsel %vm1244_vm3, 1.0, %v12755_v7  ;;  %v571_v51 = vsub.s32 %v8588_v46, %v8415_v40 }
 0x15f   : > { %vm874_vm7 = vcmp.ge.s32.totalorder %v8540_v9, %v746_v26  ;;  %v1002_v59 = vadd.s32 %v746_v26, %v8371_v14  ;;  %7413 = vmatprep.subr.bf16.mxu0 %v8554_v11  ;;  %v6581_v5 = vsel %vm1256_vm4, 1.0, %v12755_v7  ;;  %vm1257_vm8 = vmand %vm873_vm1, %vm1129_vm6  ;;  %vm862_vm10 = vcmp.ge.s32.totalorder %v8540_v9, %v8593_v47 }
 0x160   : > { %vm1117_vm9 = vcmp.lt.s32.totalorder %v8540_v9, %v989_v44  ;;  %7087 = vmatprep.mubr.msk.f32.mxu1 %vm12774_vm0, %v6581_v5  ;;  %v6582_v10 = vsel %vm1257_vm8, 1.0, %v12755_v7  ;;  %v990_v38 = vadd.s32 %v8593_v47, %v8417_v43  ;;  %v572_v48 = vsub.s32 %v8588_v46, %v8426_v33 }
 0x161   : > { %7059 = vmatmul.mubr.msk.f32.gmra.mrb[2].mxu0 %vm12774_vm0, %v6568_v61  ;;  %vm1130_vm11 = vcmp.lt.s32.totalorder %v8540_v9, %v1002_v59  ;;  %vm1245_vm12 = vmand %vm861_vm5, %vm1117_vm9  ;;  %7088 = vmatmul.mubr.msk.f32.vlgmr.msra.gmra.mrb[0].mxu1 %vm12774_vm0, %v6582_v10  ;;  %v747_v53 = vadd.s32 %v8423_v29, %v571_v51  ;;  %vm863_vm14 = vcmp.ge.s32.totalorder %v8540_v9, %v8596_v16 }
 0x162   : > { %7061 = vmatprep.mubr.msk.f32.mxu0 %vm12774_vm0, %v6569_v3  ;;  %vm1258_vm13 = vmand %vm874_vm7, %vm1130_vm11  ;;  %v6570_v45 = vsel %vm1245_vm12, 1.0, %v12755_v7  ;;  %v991_v20 = vadd.s32 %v8596_v16, %v8444_v58  ;;  %vm1118_vm15 = vcmp.lt.s32.totalorder %v8540_v9, %v990_v38  ;;  %v748_v17 = vadd.s32 %v8432_v49, %v572_v48  ;;  %7415 = vmatpush3.bf16.msra.mxu0 %v8554_v11 }
 0x163   : > { %v6583_v21 = vsel %vm1258_vm13, 1.0, %v12755_v7  ;;  %v573_v26 = vsub.s32 %v8588_v46, %v8442_v57  ;;  %7419 = vmatpush3.bf16.msra.mxu1 %v8337_v54  ;;  %vm875_vm1 = vcmp.ge.s32.totalorder %v8540_v9, %v747_v53  ;;  %v1003_v61 = vadd.s32 %v747_v53, %v8386_v23  ;;  %vm1246_vm2 = vmand %vm862_vm10, %vm1118_vm15  ;;  %7425 = vmatprep.subr.bf16.mxu0 %v8560_v55 }
 0x164   : > { %7090 = vmatprep.mubr.msk.f32.mxu1 %vm12774_vm0, %v6583_v21  ;;  %vm1119_vm3 = vcmp.lt.s32.totalorder %v8540_v9, %v991_v20  ;;  %v560_v44 = vsub.s32 %v8558_v50, %v8498_v6  ;;  %v6571_v11 = vsel %vm1246_vm2, 1.0, %v12755_v7  ;;  %vm876_vm5 = vcmp.ge.s32.totalorder %v8540_v9, %v748_v17  ;;  %7421 = vmatprep.subr.bf16.mxu1 %v8556_v56 }
 0x165   : > { %7062 = vmatmul.mubr.msk.f32.gmra.mrb[4].mxu0 %vm12774_vm0, %v6570_v45  ;;  %v1004_v54 = vadd.s32 %v748_v17, %v8393_v27  ;;  %vm1247_vm4 = vmand %vm863_vm14, %vm1119_vm3  ;;  %v749_v47 = vadd.s32 %v8450_v63, %v573_v26  ;;  %vm1131_vm6 = vcmp.lt.s32.totalorder %v8540_v9, %v1003_v61  ;;  %v574_v5 = vsub.s32 %v8588_v46, %v8453_v1 }
 0x166   : > { %7064 = vmatprep.mubr.msk.f32.mxu0 %vm12774_vm0, %v6571_v11  ;;  %v6572_v3 = vsel %vm1247_vm4, 1.0, %v12755_v7  ;;  %v736_v59 = vadd.s32 %v8501_v8, %v560_v44  ;;  %vm1259_vm7 = vmand %vm875_vm1, %vm1131_vm6  ;;  %v561_v51 = vsub.s32 %v8558_v50, %v8506_v62  ;;  %v575_v53 = vsub.s32 %v8588_v46, %v8474_v19 }
 0x167   : > { %vm1132_vm8 = vcmp.lt.s32.totalorder %v8540_v9, %v1004_v54  ;;  %vm877_vm9 = vcmp.ge.s32.totalorder %v8540_v9, %v749_v47  ;;  %v1005_v16 = vadd.s32 %v749_v47, %v8410_v36  ;;  %7423 = vmatpush3.bf16.msra.mxu1 %v8556_v56  ;;  %v6584_v10 = vsel %vm1259_vm7, 1.0, %v12755_v7 }
 0x168   : > { %vm1260_vm10 = vmand %vm876_vm5, %vm1132_vm8  ;;  %vm864_vm11 = vcmp.ge.s32.totalorder %v8540_v9, %v736_v59  ;;  %v992_v38 = vadd.s32 %v736_v59, %v8467_v12  ;;  %v750_v48 = vadd.s32 %v8460_v37, %v574_v5  ;;  %7433 = vmatprep.subr.bf16.mxu1 %v8564_v18  ;;  %7091 = vmatmul.mubr.msk.f32.gmra.mrb[2].mxu1 %vm12774_vm0, %v6584_v10 }
 0x169   : > { %v6585_v45 = vsel %vm1260_vm10, 1.0, %v12755_v7  ;;  %7065 = vmatmul.mubr.msk.f32.gmra.mrb[6].mxu0 %vm12774_vm0, %v6572_v3  ;;  %vm1133_vm12 = vcmp.lt.s32.totalorder %v8540_v9, %v1005_v16  ;;  %v737_v56 = vadd.s32 %v8512_v42, %v561_v51  ;;  %v562_v21 = vsub.s32 %v8558_v50, %v8515_v2 }
 0x16a   : > { %7093 = vmatprep.mubr.msk.f32.mxu1 %vm12774_vm0, %v6585_v45  ;;  %vm1261_vm13 = vmand %vm877_vm9, %vm1133_vm12  ;;  %vm1120_vm14 = vcmp.lt.s32.totalorder %v8540_v9, %v992_v38  ;;  %vm878_vm15 = vcmp.ge.s32.totalorder %v8540_v9, %v750_v48  ;;  %v1006_v20 = vadd.s32 %v750_v48, %v8417_v43  ;;  %v751_v61 = vadd.s32 %v8477_v24, %v575_v53  ;;  %v13043_v53 = vld [vmem:[#allocation67_spill] sm:$0xff] }
 0x16b   : > { %v6586_v17 = vsel %vm1261_vm13, 1.0, %v12755_v7  ;;  %vm1248_vm1 = vmand %vm864_vm11, %vm1120_vm14  ;;  %vm865_vm2 = vcmp.ge.s32.totalorder %v8540_v9, %v737_v56  ;;  %v993_v26 = vadd.s32 %v737_v56, %v8481_v28  ;;  %v738_v11 = vadd.s32 %v8520_v34, %v562_v21 }
 0x16c   : > { %v6573_v44 = vsel %vm1248_vm1, 1.0, %v12755_v7  ;;  %vm1134_vm3 = vcmp.lt.s32.totalorder %v8540_v9, %v1006_v20  ;;  %v576_v54 = vsub.s32 %v8588_v46, %v8498_v6  ;;  %7094 = vmatmul.mubr.msk.f32.gmra.mrb[4].mxu1 %vm12774_vm0, %v6586_v17  ;;  %vm879_vm6 = vcmp.ge.s32.totalorder %v8540_v9, %v751_v61 }
 0x16d   : > { %7067 = vmatprep.mubr.msk.f32.mxu0 %vm12774_vm0, %v6573_v44  ;;  %vm1262_vm5 = vmand %vm878_vm15, %vm1134_vm3  ;;  %vm1121_vm4 = vcmp.lt.s32.totalorder %v8540_v9, %v993_v26  ;;  %v1007_v47 = vadd.s32 %v751_v61, %v8444_v58  ;;  %v8759_v3 = vmul.u32 4, %v8537_v60  ;;  %vm866_vm8 = vcmp.ge.s32.totalorder %v8540_v9, %v738_v11  ;;  %v13044_v61 = vld [vmem:[#allocation69_spill] sm:$0xff] }
 0x16e   : > { %v6587_v59 = vsel %vm1262_vm5, 1.0, %v12755_v7  ;;  %vm1249_vm7 = vmand %vm865_vm2, %vm1121_vm4  ;;  %v994_v5 = vadd.s32 %v738_v11, %v8488_v39  ;;  %v752_v16 = vadd.s32 %v8501_v8, %v576_v54  ;;  %v563_v10 = vsub.s32 %v8558_v50, %v8523_v32  ;;  %v13045_v54 = vld [vmem:[#allocation70_spill] sm:$0xff] }
 0x16f   : > { %13042 = vst [vmem:[#allocation76_spill] sm:$0xff] %v8759_v3  ;;  %7096 = vmatprep.mubr.msk.f32.mxu1 %vm12774_vm0, %v6587_v59  ;;  %v6574_v51 = vsel %vm1249_vm7, 1.0, %v12755_v7  ;;  %vm1135_vm9 = vcmp.lt.s32.totalorder %v8540_v9, %v1007_v47  ;;  %v577_v38 = vsub.s32 %v8588_v46, %v8506_v62  ;;  %v564_v45 = vsub.s32 %v8558_v50, %v8529_v41  ;;  %v13046_v11 = vld [vmem:[#allocation58_spill] sm:$0xff] }
 0x170   : > { %7068 = vmatmul.mubr.msk.f32.gmra.mrb[8].mxu0 %vm12774_vm0, %v6574_v51  ;;  %vm1263_vm10 = vmand %vm879_vm6, %vm1135_vm9  ;;  %vm1122_vm11 = vcmp.lt.s32.totalorder %v8540_v9, %v994_v5  ;;  %vm880_vm12 = vcmp.ge.s32.totalorder %v8540_v9, %v752_v16  ;;  %v1008_v48 = vadd.s32 %v752_v16, %v8467_v12  ;;  %v739_v20 = vadd.s32 %v13043_v53, %v563_v10  ;;  %v13047_v51 = vld [vmem:[#allocation60_spill] sm:$0xff] }
 0x171   : > { %v6588_v56 = vsel %vm1263_vm10, 1.0, %v12755_v7  ;;  %vm1250_vm13 = vmand %vm866_vm8, %vm1122_vm11  ;;  %v753_v21 = vadd.s32 %v8512_v42, %v577_v38  ;;  %v578_v17 = vsub.s32 %v8588_v46, %v8515_v2  ;;  %v740_v44 = vadd.s32 %v13044_v61, %v564_v45 }
 0x172   : > { %7097 = vmatmul.mubr.msk.f32.gmra.mrb[6].mxu1 %vm12774_vm0, %v6588_v56  ;;  %v6575_v26 = vsel %vm1250_vm13, 1.0, %v12755_v7  ;;  %vm1136_vm14 = vcmp.lt.s32.totalorder %v8540_v9, %v1008_v48  ;;  %v565_v47 = vsub.s32 %v8558_v50, %v13045_v54  ;;  %vm867_vm1 = vcmp.ge.s32.totalorder %v8540_v9, %v739_v20 }
 0x173   : > { %7070 = vmatprep.mubr.msk.f32.mxu0 %vm12774_vm0, %v6575_v26  ;;  %vm1264_vm15 = vmand %vm880_vm12, %vm1136_vm14  ;;  %v995_v59 = vadd.s32 %v739_v20, %v13046_v11  ;;  %vm881_vm2 = vcmp.ge.s32.totalorder %v8540_v9, %v753_v21  ;;  %v1009_v5 = vadd.s32 %v753_v21, %v8481_v28  ;;  %vm868_vm3 = vcmp.ge.s32.totalorder %v8540_v9, %v740_v44  ;;  %v13048_v20 = vld [vmem:[#allocation72_spill] sm:$0xff] }
 0x174   : > { %v6589_v16 = vsel %vm1264_vm15, 1.0, %v12755_v7  ;;  %v996_v10 = vadd.s32 %v740_v44, %v13047_v51  ;;  %v754_v38 = vadd.s32 %v8520_v34, %v578_v17  ;;  %v741_v48 = vadd.s32 %v8543_v52, %v565_v47  ;;  %v13049_v47 = vld [vmem:[#allocation62_spill] sm:$0xff] }
 0x175   : > { %7099 = vmatprep.mubr.msk.f32.mxu1 %vm12774_vm0, %v6589_v16  ;;  %vm1123_vm5 = vcmp.lt.s32.totalorder %v8540_v9, %v995_v59  ;;  %vm1137_vm4 = vcmp.lt.s32.totalorder %v8540_v9, %v1009_v5  ;;  %v579_v45 = vsub.s32 %v8588_v46, %v8523_v32  ;;  %v566_v17 = vsub.s32 %v8558_v50, %v13048_v20 }
 0x176   : > { %vm1251_vm6 = vmand %vm867_vm1, %vm1123_vm5  ;;  %vm1124_vm7 = vcmp.lt.s32.totalorder %v8540_v9, %v996_v10  ;;  %vm882_vm8 = vcmp.ge.s32.totalorder %v8540_v9, %v754_v38  ;;  %v1010_v56 = vadd.s32 %v754_v38, %v8488_v39  ;;  %vm869_vm10 = vcmp.ge.s32.totalorder %v8540_v9, %v741_v48 }
 0x177   : > { %v6576_v26 = vsel %vm1251_vm6, 1.0, %v12755_v7  ;;  %vm1265_vm9 = vmand %vm881_vm2, %vm1137_vm4  ;;  %v997_v59 = vadd.s32 %v741_v48, %v13049_v47  ;;  %v755_v5 = vadd.s32 %v13043_v53, %v579_v45  ;;  %v742_v10 = vadd.s32 %v8549_v15, %v566_v17  ;;  %v8835_v45 = vpop.permute.xlu1 %535 }
 0x178   : > { %7071 = vmatmul.mubr.msk.f32.gmra.mrb[10].mxu0 %vm12774_vm0, %v6576_v26  ;;  %v6590_v16 = vsel %vm1265_vm9, 1.0, %v12755_v7  ;;  %vm1252_vm11 = vmand %vm868_vm3, %vm1124_vm7  ;;  %vm1138_vm12 = vcmp.lt.s32.totalorder %v8540_v9, %v1010_v56  ;;  %v580_v21 = vsub.s32 %v8588_v46, %v8529_v41 }
 0x179   : > { %7100 = vmatmul.mubr.msk.f32.gmra.mrb[8].mxu1 %vm12774_vm0, %v6590_v16  ;;  %v6577_v32 = vsel %vm1252_vm11, 1.0, %v12755_v7  ;;  %vm1266_vm13 = vmand %vm882_vm8, %vm1138_vm12  ;;  %vm1125_vm14 = vcmp.lt.s32.totalorder %v8540_v9, %v997_v59  ;;  %vm883_vm15 = vcmp.ge.s32.totalorder %v8540_v9, %v755_v5  ;;  %v1011_v44 = vadd.s32 %v755_v5, %v13046_v11  ;;  %v13051_v5 = vld [vmem:[#allocation33_spill] sm:$0xff] }
 0x17a   : > { %7073 = vmatprep.mubr.msk.f32.mxu0 %vm12774_vm0, %v6577_v32  ;;  %v6591_v56 = vsel %vm1266_vm13, 1.0, %v12755_v7  ;;  %vm1253_vm1 = vmand %vm869_vm10, %vm1125_vm14  ;;  %vm870_vm2 = vcmp.ge.s32.totalorder %v8540_v9, %v742_v10  ;;  %v998_v38 = vadd.s32 %v742_v10, %v8517_v13  ;;  %v756_v17 = vadd.s32 %v13044_v61, %v580_v21 }
 0x17b   : > { %7102 = vmatprep.mubr.msk.f32.mxu1 %vm12774_vm0, %v6591_v56  ;;  %v6578_v26 = vsel %vm1253_vm1, 1.0, %v12755_v7  ;;  %vm1139_vm3 = vcmp.lt.s32.totalorder %v8540_v9, %v1011_v44  ;;  %v567_v32 = vsub.s32 %v8558_v50, %v8759_v3  ;;  %v581_v59 = vsub.s32 %v8588_v46, %v13045_v54  ;;  %v13050_v50 = vld [vmem:[#allocation73_spill] sm:$0xff] }
 0x17c   : > { %7074 = vmatmul.mubr.msk.f32.gmra.mrb[12].mxu0 %vm12774_vm0, %v6578_v26  ;;  %vm1267_vm5 = vmand %vm883_vm15, %vm1139_vm3  ;;  %vm1126_vm4 = vcmp.lt.s32.totalorder %v8540_v9, %v998_v38  ;;  %vm884_vm6 = vcmp.ge.s32.totalorder %v8540_v9, %v756_v17  ;;  %v1012_v48 = vadd.s32 %v756_v17, %v13047_v51  ;;  %v582_v16 = vsub.s32 %v8588_v46, %v13048_v20 }
 0x17d   : > { %v6592_v21 = vsel %vm1267_vm5, 1.0, %v12755_v7  ;;  %vm1254_vm7 = vmand %vm870_vm2, %vm1126_vm4  ;;  %v743_v44 = vadd.s32 %v13050_v50, %v567_v32  ;;  %v757_v56 = vadd.s32 %v8543_v52, %v581_v59  ;;  %v584_v26 = vsub.s32 %v8835_v45, %v13051_v5 }
 0x17e   : > { %7103 = vmatmul.mubr.msk.f32.gmra.mrb[10].mxu1 %vm12774_vm0, %v6592_v21  ;;  %v6579_v38 = vsel %vm1254_vm7, 1.0, %v12755_v7  ;;  %vm1140_vm8 = vcmp.lt.s32.totalorder %v8540_v9, %v1012_v48  ;;  %v758_v17 = vadd.s32 %v8549_v15, %v582_v16  ;;  %v583_v20 = vsub.s32 %v8588_v46, %v8759_v3  ;;  %v8881_v46 = vpop.permute.xlu1 %538 }
 0x17f   : > { %7076 = vmatprep.mubr.msk.f32.mxu0 %vm12774_vm0, %v6579_v38  ;;  %vm1268_vm9 = vmand %vm884_vm6, %vm1140_vm8  ;;  %vm871_vm10 = vcmp.ge.s32.totalorder %v8540_v9, %v743_v44  ;;  %v999_v10 = vadd.s32 %v743_v44, %v8537_v60  ;;  %vm885_vm11 = vcmp.ge.s32.totalorder %v8540_v9, %v757_v56  ;;  %v1013_v32 = vadd.s32 %v757_v56, %v13049_v47 }
 0x180   : > { %v6593_v59 = vsel %vm1268_vm9, 1.0, %v12755_v7  ;;  %vm886_vm12 = vcmp.ge.s32.totalorder %v8540_v9, %v758_v17  ;;  %v1014_v48 = vadd.s32 %v758_v17, %v8517_v13  ;;  %v760_v16 = vadd.s32 %v8391_v25, %v584_v26 }
 0x181   : > { %7105 = vmatprep.mubr.msk.f32.mxu1 %vm12774_vm0, %v6593_v59  ;;  %vm1127_vm13 = vcmp.lt.s32.totalorder %v8540_v9, %v999_v10  ;;  %vm1141_vm14 = vcmp.lt.s32.totalorder %v8540_v9, %v1013_v32  ;;  %v759_v21 = vadd.s32 %v13050_v50, %v583_v20  ;;  %v585_v44 = vsub.s32 %v8835_v45, %v8384_v22 }
 0x182   : > { %vm1255_vm15 = vmand %vm871_vm10, %vm1127_vm13  ;;  %vm1142_vm1 = vcmp.lt.s32.totalorder %v8540_v9, %v1014_v48  ;;  %vm888_vm2 = vcmp.ge.s32.totalorder %v8540_v9, %v760_v16  ;;  %v1016_v26 = vadd.s32 %v760_v16, %v8357_v0  ;;  %v586_v38 = vsub.s32 %v8835_v45, %v8400_v31 }
 0x183   : > { %v6580_v59 = vsel %vm1255_vm15, 1.0, %v12755_v7  ;;  %vm1269_vm3 = vmand %vm885_vm11, %vm1141_vm14  ;;  %vm887_vm5 = vcmp.ge.s32.totalorder %v8540_v9, %v759_v21  ;;  %v1015_v20 = vadd.s32 %v759_v21, %v8537_v60  ;;  %v761_v10 = vadd.s32 %v8397_v30, %v585_v44 }
 0x184   : > { %7077 = vmatmul.mubr.msk.f32.gmra.mrb[14].mxu0 %vm12774_vm0, %v6580_v59  ;;  %v6594_v32 = vsel %vm1269_vm3, 1.0, %v12755_v7  ;;  %vm1270_vm4 = vmand %vm886_vm12, %vm1142_vm1  ;;  %vm1144_vm6 = vcmp.lt.s32.totalorder %v8540_v9, %v1016_v26  ;;  %v762_v48 = vadd.s32 %v8408_v35, %v586_v38  ;;  %v600_v56 = vsub.s32 %v8881_v46, %v13051_v5 }
 0x185   : > { %7106 = vmatmul.mubr.msk.f32.gmra.mrb[12].mxu1 %vm12774_vm0, %v6594_v32  ;;  %v6595_v60 = vsel %vm1270_vm4, 1.0, %v12755_v7  ;;  %vm1272_vm7 = vmand %vm888_vm2, %vm1144_vm6  ;;  %vm1143_vm8 = vcmp.lt.s32.totalorder %v8540_v9, %v1015_v20  ;;  %vm889_vm9 = vcmp.ge.s32.totalorder %v8540_v9, %v761_v10  ;;  %v1017_v17 = vadd.s32 %v761_v10, %v8363_v4 }
 0x186   : > { %7108 = vmatprep.mubr.msk.f32.mxu1 %vm12774_vm0, %v6595_v60  ;;  %v6597_v44 = vsel %vm1272_vm7, 1.0, %v12755_v7  ;;  %vm1271_vm10 = vmand %vm887_vm5, %vm1143_vm8  ;;  %vm890_vm11 = vcmp.ge.s32.totalorder %v8540_v9, %v762_v48  ;;  %v1018_v26 = vadd.s32 %v762_v48, %v8371_v14  ;;  %v776_v16 = vadd.s32 %v8391_v25, %v600_v56 }
 0x187   : > { %7119 = vmatprep.mubr.msk.f32.mxu0 %vm12774_vm0, %v6597_v44  ;;  %v6596_v38 = vsel %vm1271_vm10, 1.0, %v12755_v7  ;;  %vm1145_vm12 = vcmp.lt.s32.totalorder %v8540_v9, %v1017_v17  ;;  %v587_v60 = vsub.s32 %v8835_v45, %v8415_v40  ;;  %v601_v59 = vsub.s32 %v8881_v46, %v8384_v22 }
 0x188   : > { %vm1273_vm13 = vmand %vm889_vm9, %vm1145_vm12  ;;  %vm1146_vm14 = vcmp.lt.s32.totalorder %v8540_v9, %v1018_v26  ;;  %vm904_vm15 = vcmp.ge.s32.totalorder %v8540_v9, %v776_v16  ;;  %v1032_v21 = vadd.s32 %v776_v16, %v8357_v0  ;;  %v588_v20 = vsub.s32 %v8835_v45, %v8426_v33 }
 0x189   : > { %7109 = vmatmul.mubr.msk.f32.gmra.mrb[14].mxu1 %vm12774_vm0, %v6596_v38  ;;  %v6598_v10 = vsel %vm1273_vm13, 1.0, %v12755_v7  ;;  %vm1274_vm1 = vmand %vm890_vm11, %vm1146_vm14  ;;  %v763_v32 = vadd.s32 %v8423_v29, %v587_v60  ;;  %v777_v56 = vadd.s32 %v8397_v30, %v601_v59  ;;  %v602_v17 = vsub.s32 %v8881_v46, %v8400_v31 }
 0x18a   : > { %7120 = vmatmul.mubr.msk.f32.vlgmr.msra.gmra.mrb[16].mxu0 %vm12774_vm0, %v6598_v10  ;;  %v6599_v44 = vsel %vm1274_vm1, 1.0, %v12755_v7  ;;  %vm1160_vm2 = vcmp.lt.s32.totalorder %v8540_v9, %v1032_v21  ;;  %v764_v26 = vadd.s32 %v8432_v49, %v588_v20  ;;  %v589_v38 = vsub.s32 %v8835_v45, %v8442_v57 }
 0x18b   : > { %7122 = vmatprep.mubr.msk.f32.mxu0 %vm12774_vm0, %v6599_v44  ;;  %vm1288_vm3 = vmand %vm904_vm15, %vm1160_vm2  ;;  %vm891_vm5 = vcmp.ge.s32.totalorder %v8540_v9, %v763_v32  ;;  %v1019_v48 = vadd.s32 %v763_v32, %v8386_v23  ;;  %vm905_vm4 = vcmp.ge.s32.totalorder %v8540_v9, %v777_v56  ;;  %v1033_v60 = vadd.s32 %v777_v56, %v8363_v4 }
 0x18c   : > { %v6613_v59 = vsel %vm1288_vm3, 1.0, %v12755_v7  ;;  %vm892_vm6 = vcmp.ge.s32.totalorder %v8540_v9, %v764_v26  ;;  %v1020_v21 = vadd.s32 %v764_v26, %v8393_v27  ;;  %v778_v20 = vadd.s32 %v8408_v35, %v602_v17  ;;  %7427 = vmatpush3.bf16.msra.mxu0 %v8560_v55  ;;  %v13052_v17 = vld [vmem:[#allocation74_spill] sm:$0xff] }
 0x18d   : > { %7151 = vmatprep.mubr.msk.f32.mxu1 %vm12774_vm0, %v6613_v59  ;;  %vm1147_vm7 = vcmp.lt.s32.totalorder %v8540_v9, %v1019_v48  ;;  %vm1161_vm8 = vcmp.lt.s32.totalorder %v8540_v9, %v1033_v60  ;;  %v765_v16 = vadd.s32 %v8450_v63, %v589_v38  ;;  %v603_v10 = vsub.s32 %v8881_v46, %v8415_v40 }
 0x18e   : > { %vm1275_vm9 = vmand %vm891_vm5, %vm1147_vm7  ;;  %vm1148_vm10 = vcmp.lt.s32.totalorder %v8540_v9, %v1020_v21  ;;  %vm906_vm11 = vcmp.ge.s32.totalorder %v8540_v9, %v778_v20  ;;  %v1034_v32 = vadd.s32 %v778_v20, %v8371_v14  ;;  %v590_v55 = vsub.s32 %v8835_v45, %v8453_v1  ;;  %7429 = vmatprep.subr.bf16.mxu0 %v13052_v17 }
 0x18f   : > { %v6600_v44 = vsel %vm1275_vm9, 1.0, %v12755_v7  ;;  %vm1289_vm12 = vmand %vm905_vm4, %vm1161_vm8  ;;  %vm893_vm13 = vcmp.ge.s32.totalorder %v8540_v9, %v765_v16  ;;  %v1021_v38 = vadd.s32 %v765_v16, %v8410_v36  ;;  %v779_v48 = vadd.s32 %v8423_v29, %v603_v10 }
 0x190   : > { %7123 = vmatmul.mubr.msk.f32.gmra.mrb[18].mxu0 %vm12774_vm0, %v6600_v44  ;;  %v6614_v60 = vsel %vm1289_vm12, 1.0, %v12755_v7  ;;  %vm1276_vm14 = vmand %vm892_vm6, %vm1148_vm10  ;;  %vm1162_vm15 = vcmp.lt.s32.totalorder %v8540_v9, %v1034_v32  ;;  %v766_v59 = vadd.s32 %v8460_v37, %v590_v55  ;;  %v604_v56 = vsub.s32 %v8881_v46, %v8426_v33  ;;  %v13053_v44 = vld [vmem:[#allocation75_spill] sm:$0xff] }
 0x191   : > { %7152 = vmatmul.mubr.msk.f32.vlgmr.msra.gmra.mrb[16].mxu1 %vm12774_vm0, %v6614_v60  ;;  %v6601_v21 = vsel %vm1276_vm14, 1.0, %v12755_v7  ;;  %vm1290_vm1 = vmand %vm906_vm11, %vm1162_vm15  ;;  %vm1149_vm2 = vcmp.lt.s32.totalorder %v8540_v9, %v1021_v38  ;;  %vm907_vm3 = vcmp.ge.s32.totalorder %v8540_v9, %v779_v48  ;;  %v1035_v26 = vadd.s32 %v779_v48, %v8386_v23  ;;  %7431 = vmatpush3.bf16.msra.mxu0 %v13052_v17 }
 0x192   : > { %7125 = vmatprep.mubr.msk.f32.mxu0 %vm12774_vm0, %v6601_v21  ;;  %v6615_v10 = vsel %vm1290_vm1, 1.0, %v12755_v7  ;;  %vm1277_vm5 = vmand %vm893_vm13, %vm1149_vm2  ;;  %vm894_vm4 = vcmp.ge.s32.totalorder %v8540_v9, %v766_v59  ;;  %v1022_v20 = vadd.s32 %v766_v59, %v8417_v43  ;;  %v780_v32 = vadd.s32 %v8432_v49, %v604_v56  ;;  %7435 = vmatpush3.bf16.msra.mxu1 %v8564_v18 }
 0x193   : > { %7154 = vmatprep.mubr.msk.f32.mxu1 %vm12774_vm0, %v6615_v10  ;;  %v6602_v55 = vsel %vm1277_vm5, 1.0, %v12755_v7  ;;  %vm1163_vm6 = vcmp.lt.s32.totalorder %v8540_v9, %v1035_v26  ;;  %v591_v17 = vsub.s32 %v8835_v45, %v8474_v19  ;;  %v605_v16 = vsub.s32 %v8881_v46, %v8442_v57  ;;  %7437 = vmatprep.subr.bf16.mxu1 %v13053_v44 }
 0x194   : > { %7126 = vmatmul.mubr.msk.f32.gmra.mrb[20].mxu0 %vm12774_vm0, %v6602_v55  ;;  %vm1291_vm7 = vmand %vm907_vm3, %vm1163_vm6  ;;  %vm1150_vm8 = vcmp.lt.s32.totalorder %v8540_v9, %v1022_v20  ;;  %vm908_vm9 = vcmp.ge.s32.totalorder %v8540_v9, %v780_v32  ;;  %v1036_v18 = vadd.s32 %v780_v32, %v8393_v27  ;;  %v592_v38 = vsub.s32 %v8835_v45, %v8498_v6 }
 0x195   : > { %v6616_v60 = vsel %vm1291_vm7, 1.0, %v12755_v7  ;;  %vm1278_vm10 = vmand %vm894_vm4, %vm1150_vm8  ;;  %v767_v56 = vadd.s32 %v8477_v24, %v591_v17  ;;  %v781_v21 = vadd.s32 %v8450_v63, %v605_v16  ;;  %v606_v48 = vsub.s32 %v8881_v46, %v8453_v1 }
 0x196   : > { %7155 = vmatmul.mubr.msk.f32.gmra.mrb[18].mxu1 %vm12774_vm0, %v6616_v60  ;;  %v6603_v26 = vsel %vm1278_vm10, 1.0, %v12755_v7  ;;  %vm1164_vm11 = vcmp.lt.s32.totalorder %v8540_v9, %v1036_v18  ;;  %v768_v10 = vadd.s32 %v8501_v8, %v592_v38  ;;  %v593_v20 = vsub.s32 %v8835_v45, %v8506_v62 }
 0x197   : > { %7128 = vmatprep.mubr.msk.f32.mxu0 %vm12774_vm0, %v6603_v26  ;;  %vm1292_vm12 = vmand %vm908_vm9, %vm1164_vm11  ;;  %vm895_vm13 = vcmp.ge.s32.totalorder %v8540_v9, %v767_v56  ;;  %v1023_v59 = vadd.s32 %v767_v56, %v8444_v58  ;;  %vm909_vm14 = vcmp.ge.s32.totalorder %v8540_v9, %v781_v21  ;;  %v1037_v32 = vadd.s32 %v781_v21, %v8410_v36 }
 0x198   : > { %v6617_v55 = vsel %vm1292_vm12, 1.0, %v12755_v7  ;;  %vm896_vm15 = vcmp.ge.s32.totalorder %v8540_v9, %v768_v10  ;;  %v1024_v17 = vadd.s32 %v768_v10, %v8467_v12  ;;  %v782_v16 = vadd.s32 %v8460_v37, %v606_v48  ;;  %7439 = vmatpush3.bf16.msra.mxu1 %v13053_v44 }
 0x199   : > { %7157 = vmatprep.mubr.msk.f32.mxu1 %vm12774_vm0, %v6617_v55  ;;  %vm1151_vm1 = vcmp.lt.s32.totalorder %v8540_v9, %v1023_v59  ;;  %vm1165_vm2 = vcmp.lt.s32.totalorder %v8540_v9, %v1037_v32  ;;  %v769_v18 = vadd.s32 %v8512_v42, %v593_v20  ;;  %v607_v38 = vsub.s32 %v8881_v46, %v8474_v19 }
 0x19a   : > { %vm1279_vm3 = vmand %vm895_vm13, %vm1151_vm1  ;;  %vm1152_vm5 = vcmp.lt.s32.totalorder %v8540_v9, %v1024_v17  ;;  %vm910_vm4 = vcmp.ge.s32.totalorder %v8540_v9, %v782_v16  ;;  %v1038_v60 = vadd.s32 %v782_v16, %v8417_v43  ;;  %v594_v44 = vsub.s32 %v8835_v45, %v8515_v2 }
 0x19b   : > { %v6604_v56 = vsel %vm1279_vm3, 1.0, %v12755_v7  ;;  %vm1293_vm6 = vmand %vm909_vm14, %vm1165_vm2  ;;  %vm897_vm7 = vcmp.ge.s32.totalorder %v8540_v9, %v769_v18  ;;  %v1025_v48 = vadd.s32 %v769_v18, %v8481_v28  ;;  %v783_v26 = vadd.s32 %v8477_v24, %v607_v38 }
 0x19c   : > { %7129 = vmatmul.mubr.msk.f32.gmra.mrb[22].mxu0 %vm12774_vm0, %v6604_v56  ;;  %v6618_v20 = vsel %vm1293_vm6, 1.0, %v12755_v7  ;;  %vm1280_vm8 = vmand %vm896_vm15, %vm1152_vm5  ;;  %vm1166_vm9 = vcmp.lt.s32.totalorder %v8540_v9, %v1038_v60  ;;  %v770_v59 = vadd.s32 %v8520_v34, %v594_v44  ;;  %v608_v21 = vsub.s32 %v8881_v46, %v8498_v6  ;;  %v13054_v60 = vld [vmem:[#allocation66_spill] sm:$0xff] }
 0x19d   : > { %7158 = vmatmul.mubr.msk.f32.gmra.mrb[20].mxu1 %vm12774_vm0, %v6618_v20  ;;  %v6605_v32 = vsel %vm1280_vm8, 1.0, %v12755_v7  ;;  %vm1294_vm10 = vmand %vm910_vm4, %vm1166_vm9  ;;  %vm1153_vm11 = vcmp.lt.s32.totalorder %v8540_v9, %v1025_v48  ;;  %vm911_vm12 = vcmp.ge.s32.totalorder %v8540_v9, %v783_v26  ;;  %v1039_v10 = vadd.s32 %v783_v26, %v8444_v58 }
 0x19e   : > { %7131 = vmatprep.mubr.msk.f32.mxu0 %vm12774_vm0, %v6605_v32  ;;  %v6619_v55 = vsel %vm1294_vm10, 1.0, %v12755_v7  ;;  %vm1281_vm13 = vmand %vm897_vm7, %vm1153_vm11  ;;  %vm898_vm14 = vcmp.ge.s32.totalorder %v8540_v9, %v770_v59  ;;  %v1026_v17 = vadd.s32 %v770_v59, %v8488_v39  ;;  %v784_v16 = vadd.s32 %v8501_v8, %v608_v21 }
 0x19f   : > { %7160 = vmatprep.mubr.msk.f32.mxu1 %vm12774_vm0, %v6619_v55  ;;  %v6606_v38 = vsel %vm1281_vm13, 1.0, %v12755_v7  ;;  %vm1167_vm15 = vcmp.lt.s32.totalorder %v8540_v9, %v1039_v10  ;;  %v595_v44 = vsub.s32 %v8835_v45, %v13054_v60  ;;  %v609_v56 = vsub.s32 %v8881_v46, %v8506_v62 }
 0x1a0   : > { %7132 = vmatmul.mubr.msk.f32.gmra.mrb[24].mxu0 %vm12774_vm0, %v6606_v38  ;;  %vm1295_vm1 = vmand %vm911_vm12, %vm1167_vm15  ;;  %vm1154_vm2 = vcmp.lt.s32.totalorder %v8540_v9, %v1026_v17  ;;  %vm912_vm3 = vcmp.ge.s32.totalorder %v8540_v9, %v784_v16  ;;  %v1040_v18 = vadd.s32 %v784_v16, %v8467_v12  ;;  %v596_v48 = vsub.s32 %v8835_v45, %v8529_v41 }
 0x1a1   : > { %v6620_v26 = vsel %vm1295_vm1, 1.0, %v12755_v7  ;;  %vm1282_vm5 = vmand %vm898_vm14, %vm1154_vm2  ;;  %v771_v20 = vadd.s32 %v13043_v53, %v595_v44  ;;  %v785_v21 = vadd.s32 %v8512_v42, %v609_v56  ;;  %v610_v32 = vsub.s32 %v8881_v46, %v8515_v2 }
 0x1a2   : > { %7161 = vmatmul.mubr.msk.f32.gmra.mrb[22].mxu1 %vm12774_vm0, %v6620_v26  ;;  %v6607_v10 = vsel %vm1282_vm5, 1.0, %v12755_v7  ;;  %vm1168_vm4 = vcmp.lt.s32.totalorder %v8540_v9, %v1040_v18  ;;  %v772_v55 = vadd.s32 %v13044_v61, %v596_v48  ;;  %v597_v17 = vsub.s32 %v8835_v45, %v13045_v54 }
 0x1a3   : > { %7134 = vmatprep.mubr.msk.f32.mxu0 %vm12774_vm0, %v6607_v10  ;;  %vm1296_vm6 = vmand %vm912_vm3, %vm1168_vm4  ;;  %vm899_vm7 = vcmp.ge.s32.totalorder %v8540_v9, %v771_v20  ;;  %v1027_v59 = vadd.s32 %v771_v20, %v13046_v11  ;;  %vm913_vm8 = vcmp.ge.s32.totalorder %v8540_v9, %v785_v21  ;;  %v1041_v16 = vadd.s32 %v785_v21, %v8481_v28  ;;  %v13055_v20 = vld [vmem:[#allocation72_spill] sm:$0xff] }
 0x1a4   : > { %v6621_v38 = vsel %vm1296_vm6, 1.0, %v12755_v7  ;;  %vm900_vm9 = vcmp.ge.s32.totalorder %v8540_v9, %v772_v55  ;;  %v1028_v44 = vadd.s32 %v772_v55, %v13047_v51  ;;  %v786_v56 = vadd.s32 %v8520_v34, %v610_v32 }
 0x1a5   : > { %7163 = vmatprep.mubr.msk.f32.mxu1 %vm12774_vm0, %v6621_v38  ;;  %vm1155_vm10 = vcmp.lt.s32.totalorder %v8540_v9, %v1027_v59  ;;  %vm1169_vm11 = vcmp.lt.s32.totalorder %v8540_v9, %v1041_v16  ;;  %v773_v18 = vadd.s32 %v8543_v52, %v597_v17  ;;  %v611_v48 = vsub.s32 %v8881_v46, %v13054_v60 }
 0x1a6   : > { %vm1283_vm12 = vmand %vm899_vm7, %vm1155_vm10  ;;  %vm1156_vm13 = vcmp.lt.s32.totalorder %v8540_v9, %v1028_v44  ;;  %vm914_vm14 = vcmp.ge.s32.totalorder %v8540_v9, %v786_v56  ;;  %v1042_v26 = vadd.s32 %v786_v56, %v8488_v39  ;;  %v598_v32 = vsub.s32 %v8835_v45, %v13055_v20 }
 0x1a7   : > { %v6608_v10 = vsel %vm1283_vm12, 1.0, %v12755_v7  ;;  %vm1297_vm15 = vmand %vm913_vm8, %vm1169_vm11  ;;  %vm901_vm1 = vcmp.ge.s32.totalorder %v8540_v9, %v773_v18  ;;  %v1029_v17 = vadd.s32 %v773_v18, %v13049_v47  ;;  %v787_v59 = vadd.s32 %v13043_v53, %v611_v48  ;;  %v9146_v48 = vpop.permute.xlu0 %541 }
 0x1a8   : > { %7135 = vmatmul.mubr.msk.f32.gmra.mrb[26].mxu0 %vm12774_vm0, %v6608_v10  ;;  %v6622_v16 = vsel %vm1297_vm15, 1.0, %v12755_v7  ;;  %vm1284_vm2 = vmand %vm900_vm9, %vm1156_vm13  ;;  %vm1170_vm3 = vcmp.lt.s32.totalorder %v8540_v9, %v1042_v26  ;;  %v774_v38 = vadd.s32 %v8549_v15, %v598_v32  ;;  %v612_v21 = vsub.s32 %v8881_v46, %v8529_v41 }
 0x1a9   : > { %7164 = vmatmul.mubr.msk.f32.gmra.mrb[24].mxu1 %vm12774_vm0, %v6622_v16  ;;  %v6609_v44 = vsel %vm1284_vm2, 1.0, %v12755_v7  ;;  %vm1298_vm5 = vmand %vm914_vm14, %vm1170_vm3  ;;  %vm1157_vm4 = vcmp.lt.s32.totalorder %v8540_v9, %v1029_v17  ;;  %vm915_vm6 = vcmp.ge.s32.totalorder %v8540_v9, %v787_v59  ;;  %v1043_v55 = vadd.s32 %v787_v59, %v13046_v11 }
 0x1aa   : > { %7137 = vmatprep.mubr.msk.f32.mxu0 %vm12774_vm0, %v6609_v44  ;;  %v6623_v26 = vsel %vm1298_vm5, 1.0, %v12755_v7  ;;  %vm1285_vm7 = vmand %vm901_vm1, %vm1157_vm4  ;;  %vm902_vm8 = vcmp.ge.s32.totalorder %v8540_v9, %v774_v38  ;;  %v1030_v56 = vadd.s32 %v774_v38, %v8517_v13  ;;  %v788_v32 = vadd.s32 %v13044_v61, %v612_v21  ;;  %v13056_v38 = vld [vmem:[#allocation71_spill] sm:$0xff] }
 0x1ab   : > { %7166 = vmatprep.mubr.msk.f32.mxu1 %vm12774_vm0, %v6623_v26  ;;  %v6610_v10 = vsel %vm1285_vm7, 1.0, %v12755_v7  ;;  %vm1171_vm9 = vcmp.lt.s32.totalorder %v8540_v9, %v1043_v55  ;;  %v599_v17 = vsub.s32 %v8835_v45, %v8759_v3  ;;  %v613_v16 = vsub.s32 %v8881_v46, %v13045_v54 }
 0x1ac   : > { %7138 = vmatmul.mubr.msk.f32.gmra.mrb[28].mxu0 %vm12774_vm0, %v6610_v10  ;;  %vm1299_vm10 = vmand %vm915_vm6, %vm1171_vm9  ;;  %vm1158_vm11 = vcmp.lt.s32.totalorder %v8540_v9, %v1030_v56  ;;  %vm916_vm12 = vcmp.ge.s32.totalorder %v8540_v9, %v788_v32  ;;  %v1044_v18 = vadd.s32 %v788_v32, %v13047_v51  ;;  %v614_v21 = vsub.s32 %v8881_v46, %v13055_v20 }
 0x1ad   : > { %v6624_v44 = vsel %vm1299_vm10, 1.0, %v12755_v7  ;;  %vm1286_vm13 = vmand %vm902_vm8, %vm1158_vm11  ;;  %v775_v45 = vadd.s32 %v13050_v50, %v599_v17  ;;  %v789_v55 = vadd.s32 %v8543_v52, %v613_v16  ;;  %v616_v59 = vsub.s32 %v9146_v48, %v13051_v5 }
 0x1ae   : > { %7167 = vmatmul.mubr.msk.f32.gmra.mrb[26].mxu1 %vm12774_vm0, %v6624_v44  ;;  %v6611_v26 = vsel %vm1286_vm13, 1.0, %v12755_v7  ;;  %vm1172_vm14 = vcmp.lt.s32.totalorder %v8540_v9, %v1044_v18  ;;  %v790_v56 = vadd.s32 %v8549_v15, %v614_v21  ;;  %v615_v32 = vsub.s32 %v8881_v46, %v8759_v3 }
 0x1af   : > { %7140 = vmatprep.mubr.msk.f32.mxu0 %vm12774_vm0, %v6611_v26  ;;  %vm1300_vm15 = vmand %vm916_vm12, %vm1172_vm14  ;;  %vm903_vm1 = vcmp.ge.s32.totalorder %v8540_v9, %v775_v45  ;;  %v1031_v10 = vadd.s32 %v775_v45, %v13056_v38  ;;  %vm917_vm2 = vcmp.ge.s32.totalorder %v8540_v9, %v789_v55  ;;  %v1045_v17 = vadd.s32 %v789_v55, %v13049_v47  ;;  %v9203_v26 = vpop.permute.xlu1 %544 }
 0x1b0   : > { %v6625_v16 = vsel %vm1300_vm15, 1.0, %v12755_v7  ;;  %vm918_vm3 = vcmp.ge.s32.totalorder %v8540_v9, %v790_v56  ;;  %v1046_v18 = vadd.s32 %v790_v56, %v8517_v13  ;;  %v792_v21 = vadd.s32 %v8391_v25, %v616_v59 }
 0x1b1   : > { %7169 = vmatprep.mubr.msk.f32.mxu1 %vm12774_vm0, %v6625_v16  ;;  %vm1159_vm5 = vcmp.lt.s32.totalorder %v8540_v9, %v1031_v10  ;;  %vm1173_vm4 = vcmp.lt.s32.totalorder %v8540_v9, %v1045_v17  ;;  %v791_v46 = vadd.s32 %v13050_v50, %v615_v32  ;;  %v617_v44 = vsub.s32 %v9146_v48, %v8384_v22 }
 0x1b2   : > { %vm1287_vm6 = vmand %vm903_vm1, %vm1159_vm5  ;;  %vm1174_vm7 = vcmp.lt.s32.totalorder %v8540_v9, %v1046_v18  ;;  %vm920_vm8 = vcmp.ge.s32.totalorder %v8540_v9, %v792_v21  ;;  %v1048_v45 = vadd.s32 %v792_v21, %v8357_v0  ;;  %v618_v59 = vsub.s32 %v9146_v48, %v8400_v31 }
 0x1b3   : > { %v6612_v10 = vsel %vm1287_vm6, 1.0, %v12755_v7  ;;  %vm1301_vm9 = vmand %vm917_vm2, %vm1173_vm4  ;;  %vm919_vm10 = vcmp.ge.s32.totalorder %v8540_v9, %v791_v46  ;;  %v1047_v32 = vadd.s32 %v791_v46, %v13056_v38  ;;  %v793_v17 = vadd.s32 %v8397_v30, %v617_v44 }
 0x1b4   : > { %7141 = vmatmul.mubr.msk.f32.gmra.mrb[30].mxu0 %vm12774_vm0, %v6612_v10  ;;  %v6626_v16 = vsel %vm1301_vm9, 1.0, %v12755_v7  ;;  %vm1302_vm11 = vmand %vm918_vm3, %vm1174_vm7  ;;  %vm1176_vm12 = vcmp.lt.s32.totalorder %v8540_v9, %v1048_v45  ;;  %v794_v18 = vadd.s32 %v8408_v35, %v618_v59  ;;  %v632_v55 = vsub.s32 %v9203_v26, %v13051_v5 }
 0x1b5   : > { %7170 = vmatmul.mubr.msk.f32.gmra.mrb[28].mxu1 %vm12774_vm0, %v6626_v16  ;;  %v6627_v38 = vsel %vm1302_vm11, 1.0, %v12755_v7  ;;  %vm1304_vm13 = vmand %vm920_vm8, %vm1176_vm12  ;;  %vm1175_vm14 = vcmp.lt.s32.totalorder %v8540_v9, %v1047_v32  ;;  %vm921_vm15 = vcmp.ge.s32.totalorder %v8540_v9, %v793_v17  ;;  %v1049_v56 = vadd.s32 %v793_v17, %v8363_v4 }
 0x1b6   : > { %7172 = vmatprep.mubr.msk.f32.mxu1 %vm12774_vm0, %v6627_v38  ;;  %v6629_v44 = vsel %vm1304_vm13, 1.0, %v12755_v7  ;;  %vm1303_vm1 = vmand %vm919_vm10, %vm1175_vm14  ;;  %vm922_vm2 = vcmp.ge.s32.totalorder %v8540_v9, %v794_v18  ;;  %v1050_v45 = vadd.s32 %v794_v18, %v8371_v14  ;;  %v808_v21 = vadd.s32 %v8391_v25, %v632_v55 }
 0x1b7   : > { %7183 = vmatprep.mubr.msk.f32.mxu0 %vm12774_vm0, %v6629_v44  ;;  %v6628_v59 = vsel %vm1303_vm1, 1.0, %v12755_v7  ;;  %vm1177_vm3 = vcmp.lt.s32.totalorder %v8540_v9, %v1049_v56  ;;  %v619_v38 = vsub.s32 %v9146_v48, %v8415_v40  ;;  %v633_v10 = vsub.s32 %v9203_v26, %v8384_v22 }
 0x1b8   : > { %vm1305_vm5 = vmand %vm921_vm15, %vm1177_vm3  ;;  %vm1178_vm4 = vcmp.lt.s32.totalorder %v8540_v9, %v1050_v45  ;;  %vm936_vm6 = vcmp.ge.s32.totalorder %v8540_v9, %v808_v21  ;;  %v1064_v46 = vadd.s32 %v808_v21, %v8357_v0  ;;  %v620_v32 = vsub.s32 %v9146_v48, %v8426_v33 }
 0x1b9   : > { %7173 = vmatmul.mubr.msk.f32.gmra.mrb[30].mxu1 %vm12774_vm0, %v6628_v59  ;;  %v6630_v17 = vsel %vm1305_vm5, 1.0, %v12755_v7  ;;  %vm1306_vm7 = vmand %vm922_vm2, %vm1178_vm4  ;;  %v795_v16 = vadd.s32 %v8423_v29, %v619_v38  ;;  %v809_v55 = vadd.s32 %v8397_v30, %v633_v10  ;;  %v634_v56 = vsub.s32 %v9203_v26, %v8400_v31 }
 0x1ba   : > { %7184 = vmatmul.mubr.msk.f32.vlgmr.msra.gmra.mrb[32].mxu0 %vm12774_vm0, %v6630_v17  ;;  %v6631_v44 = vsel %vm1306_vm7, 1.0, %v12755_v7  ;;  %vm1192_vm8 = vcmp.lt.s32.totalorder %v8540_v9, %v1064_v46  ;;  %v796_v45 = vadd.s32 %v8432_v49, %v620_v32  ;;  %v621_v59 = vsub.s32 %v9146_v48, %v8442_v57 }
 0x1bb   : > { %7186 = vmatprep.mubr.msk.f32.mxu0 %vm12774_vm0, %v6631_v44  ;;  %vm1320_vm9 = vmand %vm936_vm6, %vm1192_vm8  ;;  %vm923_vm10 = vcmp.ge.s32.totalorder %v8540_v9, %v795_v16  ;;  %v1051_v18 = vadd.s32 %v795_v16, %v8386_v23  ;;  %vm937_vm11 = vcmp.ge.s32.totalorder %v8540_v9, %v809_v55  ;;  %v1065_v38 = vadd.s32 %v809_v55, %v8363_v4 }
 0x1bc   : > { %v6645_v10 = vsel %vm1320_vm9, 1.0, %v12755_v7  ;;  %vm924_vm12 = vcmp.ge.s32.totalorder %v8540_v9, %v796_v45  ;;  %v1052_v46 = vadd.s32 %v796_v45, %v8393_v27  ;;  %v810_v32 = vadd.s32 %v8408_v35, %v634_v56 }
 0x1bd   : > { %7215 = vmatprep.mubr.msk.f32.mxu1 %vm12774_vm0, %v6645_v10  ;;  %vm1179_vm13 = vcmp.lt.s32.totalorder %v8540_v9, %v1051_v18  ;;  %vm1193_vm14 = vcmp.lt.s32.totalorder %v8540_v9, %v1065_v38  ;;  %v797_v21 = vadd.s32 %v8450_v63, %v621_v59  ;;  %v635_v17 = vsub.s32 %v9203_v26, %v8415_v40 }
 0x1be   : > { %vm1307_vm15 = vmand %vm923_vm10, %vm1179_vm13  ;;  %vm1180_vm1 = vcmp.lt.s32.totalorder %v8540_v9, %v1052_v46  ;;  %vm938_vm2 = vcmp.ge.s32.totalorder %v8540_v9, %v810_v32  ;;  %v1066_v16 = vadd.s32 %v810_v32, %v8371_v14  ;;  %v622_v56 = vsub.s32 %v9146_v48, %v8453_v1 }
 0x1bf   : > { %v6632_v44 = vsel %vm1307_vm15, 1.0, %v12755_v7  ;;  %vm1321_vm3 = vmand %vm937_vm11, %vm1193_vm14  ;;  %vm925_vm5 = vcmp.ge.s32.totalorder %v8540_v9, %v797_v21  ;;  %v1053_v59 = vadd.s32 %v797_v21, %v8410_v36  ;;  %v811_v18 = vadd.s32 %v8423_v29, %v635_v17 }
 0x1c0   : > { %7187 = vmatmul.mubr.msk.f32.gmra.mrb[34].mxu0 %vm12774_vm0, %v6632_v44  ;;  %v6646_v38 = vsel %vm1321_vm3, 1.0, %v12755_v7  ;;  %vm1308_vm4 = vmand %vm924_vm12, %vm1180_vm1  ;;  %vm1194_vm6 = vcmp.lt.s32.totalorder %v8540_v9, %v1066_v16  ;;  %v798_v10 = vadd.s32 %v8460_v37, %v622_v56  ;;  %v636_v55 = vsub.s32 %v9203_v26, %v8426_v33 }
 0x1c1   : > { %7216 = vmatmul.mubr.msk.f32.vlgmr.msra.gmra.mrb[32].mxu1 %vm12774_vm0, %v6646_v38  ;;  %v6633_v46 = vsel %vm1308_vm4, 1.0, %v12755_v7  ;;  %vm1322_vm7 = vmand %vm938_vm2, %vm1194_vm6  ;;  %vm1181_vm8 = vcmp.lt.s32.totalorder %v8540_v9, %v1053_v59  ;;  %vm939_vm9 = vcmp.ge.s32.totalorder %v8540_v9, %v811_v18  ;;  %v1067_v45 = vadd.s32 %v811_v18, %v8386_v23 }
 0x1c2   : > { %7189 = vmatprep.mubr.msk.f32.mxu0 %vm12774_vm0, %v6633_v46  ;;  %v6647_v17 = vsel %vm1322_vm7, 1.0, %v12755_v7  ;;  %vm1309_vm10 = vmand %vm925_vm5, %vm1181_vm8  ;;  %vm926_vm11 = vcmp.ge.s32.totalorder %v8540_v9, %v798_v10  ;;  %v1054_v16 = vadd.s32 %v798_v10, %v8417_v43  ;;  %v812_v32 = vadd.s32 %v8432_v49, %v636_v55 }
 0x1c3   : > { %7218 = vmatprep.mubr.msk.f32.mxu1 %vm12774_vm0, %v6647_v17  ;;  %v6634_v56 = vsel %vm1309_vm10, 1.0, %v12755_v7  ;;  %vm1195_vm12 = vcmp.lt.s32.totalorder %v8540_v9, %v1067_v45  ;;  %v623_v44 = vsub.s32 %v9146_v48, %v8474_v19  ;;  %v637_v59 = vsub.s32 %v9203_v26, %v8442_v57 }
 0x1c4   : > { %7190 = vmatmul.mubr.msk.f32.gmra.mrb[36].mxu0 %vm12774_vm0, %v6634_v56  ;;  %vm1323_vm13 = vmand %vm939_vm9, %vm1195_vm12  ;;  %vm1182_vm14 = vcmp.lt.s32.totalorder %v8540_v9, %v1054_v16  ;;  %vm940_vm15 = vcmp.ge.s32.totalorder %v8540_v9, %v812_v32  ;;  %v1068_v21 = vadd.s32 %v812_v32, %v8393_v27  ;;  %v624_v18 = vsub.s32 %v9146_v48, %v8498_v6 }
 0x1c5   : > { %v6648_v38 = vsel %vm1323_vm13, 1.0, %v12755_v7  ;;  %vm1310_vm1 = vmand %vm926_vm11, %vm1182_vm14  ;;  %v799_v55 = vadd.s32 %v8477_v24, %v623_v44  ;;  %v813_v46 = vadd.s32 %v8450_v63, %v637_v59  ;;  %v638_v45 = vsub.s32 %v9203_v26, %v8453_v1 }
 0x1c6   : > { %7219 = vmatmul.mubr.msk.f32.gmra.mrb[34].mxu1 %vm12774_vm0, %v6648_v38  ;;  %v6635_v17 = vsel %vm1310_vm1, 1.0, %v12755_v7  ;;  %vm1196_vm2 = vcmp.lt.s32.totalorder %v8540_v9, %v1068_v21  ;;  %v800_v16 = vadd.s32 %v8501_v8, %v624_v18  ;;  %v625_v32 = vsub.s32 %v9146_v48, %v8506_v62 }
 0x1c7   : > { %7192 = vmatprep.mubr.msk.f32.mxu0 %vm12774_vm0, %v6635_v17  ;;  %vm1324_vm3 = vmand %vm940_vm15, %vm1196_vm2  ;;  %vm927_vm5 = vcmp.ge.s32.totalorder %v8540_v9, %v799_v55  ;;  %v1055_v10 = vadd.s32 %v799_v55, %v8444_v58  ;;  %vm941_vm4 = vcmp.ge.s32.totalorder %v8540_v9, %v813_v46  ;;  %v1069_v56 = vadd.s32 %v813_v46, %v8410_v36 }
 0x1c8   : > { %v6649_v44 = vsel %vm1324_vm3, 1.0, %v12755_v7  ;;  %vm928_vm6 = vcmp.ge.s32.totalorder %v8540_v9, %v800_v16  ;;  %v1056_v59 = vadd.s32 %v800_v16, %v8467_v12  ;;  %v814_v21 = vadd.s32 %v8460_v37, %v638_v45 }
 0x1c9   : > { %7221 = vmatprep.mubr.msk.f32.mxu1 %vm12774_vm0, %v6649_v44  ;;  %vm1183_vm7 = vcmp.lt.s32.totalorder %v8540_v9, %v1055_v10  ;;  %vm1197_vm8 = vcmp.lt.s32.totalorder %v8540_v9, %v1069_v56  ;;  %v801_v18 = vadd.s32 %v8512_v42, %v625_v32  ;;  %v639_v38 = vsub.s32 %v9203_v26, %v8474_v19 }
 0x1ca   : > { %vm1311_vm9 = vmand %vm927_vm5, %vm1183_vm7  ;;  %vm1184_vm10 = vcmp.lt.s32.totalorder %v8540_v9, %v1056_v59  ;;  %vm942_vm11 = vcmp.ge.s32.totalorder %v8540_v9, %v814_v21  ;;  %v1070_v55 = vadd.s32 %v814_v21, %v8417_v43  ;;  %v626_v45 = vsub.s32 %v9146_v48, %v8515_v2 }
 0x1cb   : > { %v6636_v17 = vsel %vm1311_vm9, 1.0, %v12755_v7  ;;  %vm1325_vm12 = vmand %vm941_vm4, %vm1197_vm8  ;;  %vm929_vm13 = vcmp.ge.s32.totalorder %v8540_v9, %v801_v18  ;;  %v1057_v32 = vadd.s32 %v801_v18, %v8481_v28  ;;  %v815_v10 = vadd.s32 %v8477_v24, %v639_v38 }
 0x1cc   : > { %7193 = vmatmul.mubr.msk.f32.gmra.mrb[38].mxu0 %vm12774_vm0, %v6636_v17  ;;  %v6650_v56 = vsel %vm1325_vm12, 1.0, %v12755_v7  ;;  %vm1312_vm14 = vmand %vm928_vm6, %vm1184_vm10  ;;  %vm1198_vm15 = vcmp.lt.s32.totalorder %v8540_v9, %v1070_v55  ;;  %v802_v44 = vadd.s32 %v8520_v34, %v626_v45  ;;  %v640_v46 = vsub.s32 %v9203_v26, %v8498_v6 }
 0x1cd   : > { %7222 = vmatmul.mubr.msk.f32.gmra.mrb[36].mxu1 %vm12774_vm0, %v6650_v56  ;;  %v6637_v59 = vsel %vm1312_vm14, 1.0, %v12755_v7  ;;  %vm1326_vm1 = vmand %vm942_vm11, %vm1198_vm15  ;;  %vm1185_vm2 = vcmp.lt.s32.totalorder %v8540_v9, %v1057_v32  ;;  %vm943_vm3 = vcmp.ge.s32.totalorder %v8540_v9, %v815_v10  ;;  %v1071_v16 = vadd.s32 %v815_v10, %v8444_v58 }
 0x1ce   : > { %7195 = vmatprep.mubr.msk.f32.mxu0 %vm12774_vm0, %v6637_v59  ;;  %v6651_v38 = vsel %vm1326_vm1, 1.0, %v12755_v7  ;;  %vm1313_vm5 = vmand %vm929_vm13, %vm1185_vm2  ;;  %vm930_vm4 = vcmp.ge.s32.totalorder %v8540_v9, %v802_v44  ;;  %v1058_v55 = vadd.s32 %v802_v44, %v8488_v39  ;;  %v816_v21 = vadd.s32 %v8501_v8, %v640_v46 }
 0x1cf   : > { %7224 = vmatprep.mubr.msk.f32.mxu1 %vm12774_vm0, %v6651_v38  ;;  %v6638_v45 = vsel %vm1313_vm5, 1.0, %v12755_v7  ;;  %vm1199_vm6 = vcmp.lt.s32.totalorder %v8540_v9, %v1071_v16  ;;  %v627_v17 = vsub.s32 %v9146_v48, %v13054_v60  ;;  %v641_v32 = vsub.s32 %v9203_v26, %v8506_v62 }
 0x1d0   : > { %7196 = vmatmul.mubr.msk.f32.gmra.mrb[40].mxu0 %vm12774_vm0, %v6638_v45  ;;  %vm1327_vm7 = vmand %vm943_vm3, %vm1199_vm6  ;;  %vm1186_vm8 = vcmp.lt.s32.totalorder %v8540_v9, %v1058_v55  ;;  %vm944_vm9 = vcmp.ge.s32.totalorder %v8540_v9, %v816_v21  ;;  %v1072_v18 = vadd.s32 %v816_v21, %v8467_v12  ;;  %v628_v10 = vsub.s32 %v9146_v48, %v8529_v41 }
 0x1d1   : > { %v6652_v56 = vsel %vm1327_vm7, 1.0, %v12755_v7  ;;  %vm1314_vm10 = vmand %vm930_vm4, %vm1186_vm8  ;;  %v803_v46 = vadd.s32 %v13043_v53, %v627_v17  ;;  %v817_v59 = vadd.s32 %v8512_v42, %v641_v32  ;;  %v642_v16 = vsub.s32 %v9203_v26, %v8515_v2  ;;  %v2632_v17 = vld [vmem:[#allocation3 + $0xc0] sm:$0xff]  ;;  %v2633_v32 = vld [vmem:[#allocation3 + $0xc8] sm:$0xff] }
 0x1d2   : > { %7225 = vmatmul.mubr.msk.f32.gmra.mrb[38].mxu1 %vm12774_vm0, %v6652_v56  ;;  %v6639_v38 = vsel %vm1314_vm10, 1.0, %v12755_v7  ;;  %vm1200_vm11 = vcmp.lt.s32.totalorder %v8540_v9, %v1072_v18  ;;  %v804_v55 = vadd.s32 %v13044_v61, %v628_v10  ;;  %v629_v21 = vsub.s32 %v9146_v48, %v13045_v54 }
 0x1d3   : > { %7198 = vmatprep.mubr.msk.f32.mxu0 %vm12774_vm0, %v6639_v38  ;;  %vm1328_vm12 = vmand %vm944_vm9, %vm1200_vm11  ;;  %vm931_vm13 = vcmp.ge.s32.totalorder %v8540_v9, %v803_v46  ;;  %v1059_v44 = vadd.s32 %v803_v46, %v13046_v11  ;;  %vm945_vm14 = vcmp.ge.s32.totalorder %v8540_v9, %v817_v59  ;;  %v1073_v45 = vadd.s32 %v817_v59, %v8481_v28 }
 0x1d4   : > { %v6653_v18 = vsel %vm1328_vm12, 1.0, %v12755_v7  ;;  %vm932_vm15 = vcmp.ge.s32.totalorder %v8540_v9, %v804_v55  ;;  %v1060_v10 = vadd.s32 %v804_v55, %v13047_v51  ;;  %v818_v56 = vadd.s32 %v8520_v34, %v642_v16 }
 0x1d5   : > { %7227 = vmatprep.mubr.msk.f32.mxu1 %vm12774_vm0, %v6653_v18  ;;  %vm1187_vm1 = vcmp.lt.s32.totalorder %v8540_v9, %v1059_v44  ;;  %vm1201_vm2 = vcmp.lt.s32.totalorder %v8540_v9, %v1073_v45  ;;  %v805_v38 = vadd.s32 %v8543_v52, %v629_v21  ;;  %v643_v28 = vsub.s32 %v9203_v26, %v13054_v60 }
 0x1d6   : > { %vm1315_vm3 = vmand %vm931_vm13, %vm1187_vm1  ;;  %vm1188_vm5 = vcmp.lt.s32.totalorder %v8540_v9, %v1060_v10  ;;  %vm946_vm4 = vcmp.ge.s32.totalorder %v8540_v9, %v818_v56  ;;  %v1074_v16 = vadd.s32 %v818_v56, %v8488_v39  ;;  %v7440_v7 = vpack.c.bf16 %v2633_v32, %v2632_v17  ;;  %v2634_v17 = vld [vmem:[#allocation3 + $0xd0] sm:$0xff]  ;;  %v2635_v32 = vld [vmem:[#allocation3 + $0xd8] sm:$0xff] }
 0x1d7   : > { %v13057_v18 = vmov 0.0   ;;  %vm1329_vm6 = vmand %vm945_vm14, %vm1201_vm2  ;;  %vm933_vm7 = vcmp.ge.s32.totalorder %v8540_v9, %v805_v38  ;;  %v1061_v21 = vadd.s32 %v805_v38, %v13049_v47  ;;  %v819_v44 = vadd.s32 %v13043_v53, %v643_v28 }
 0x1d8   : > { %v6640_v34 = vsel %vm1315_vm3, 1.0, %v13057_v18  ;;  %v6654_v46 = vsel %vm1329_vm6, 1.0, %v13057_v18  ;;  %vm1316_vm8 = vmand %vm932_vm15, %vm1188_vm5  ;;  %vm1202_vm9 = vcmp.lt.s32.totalorder %v8540_v9, %v1074_v16  ;;  %7441 = vmatprep.subr.bf16.mxu0 %v7440_v7  ;;  %v630_v59 = vsub.s32 %v9146_v48, %v13055_v20 }
 0x1d9   : > { %7199 = vmatmul.mubr.msk.f32.gmra.mrb[42].mxu0 %vm12774_vm0, %v6640_v34  ;;  %v644_v45 = vsub.s32 %v9203_v26, %v8529_v41  ;;  %7228 = vmatmul.mubr.msk.f32.gmra.mrb[40].mxu1 %vm12774_vm0, %v6654_v46  ;;  %v6641_v34 = vsel %vm1316_vm8, 1.0, %v13057_v18  ;;  %vm1330_vm10 = vmand %vm946_vm4, %vm1202_vm9  ;;  %vm1189_vm11 = vcmp.lt.s32.totalorder %v8540_v9, %v1061_v21  ;;  %vm947_vm12 = vcmp.ge.s32.totalorder %v8540_v9, %v819_v44  ;;  %v2636_v21 = vld [vmem:[#allocation3 + $0xe0] sm:$0xff]  ;;  %v2637_v46 = vld [vmem:[#allocation3 + $0xe8] sm:$0xff] }
 0x1da   : > { %v1075_v28 = vadd.s32 %v819_v44, %v13046_v11  ;;  %7443 = vmatpush3.bf16.msra.mxu0 %v7440_v7  ;;  %7201 = vmatprep.mubr.msk.f32.mxu0 %vm12774_vm0, %v6641_v34  ;;  %v6655_v55 = vsel %vm1330_vm10, 1.0, %v13057_v18  ;;  %vm1317_vm13 = vmand %vm933_vm7, %vm1189_vm11  ;;  %v806_v10 = vadd.s32 %v8549_v15, %v630_v59  ;;  %v631_v56 = vsub.s32 %v9146_v48, %v8759_v3 }
 0x1db   : > { %v820_v16 = vadd.s32 %v13044_v61, %v644_v45  ;;  %7230 = vmatprep.mubr.msk.f32.mxu1 %vm12774_vm0, %v6655_v55  ;;  %v6642_v7 = vsel %vm1317_vm13, 1.0, %v13057_v18  ;;  %v645_v34 = vsub.s32 %v9203_v26, %v13045_v54  ;;  %v7444_v38 = vpack.c.bf16 %v2635_v32, %v2634_v17  ;;  %v9471_v45 = vpop.permute.xlu0 %547 }
 0x1dc   : > { %vm1203_vm14 = vcmp.lt.s32.totalorder %v8540_v9, %v1075_v28  ;;  %vm934_vm1 = vcmp.ge.s32.totalorder %v8540_v9, %v806_v10  ;;  %v1062_v48 = vadd.s32 %v806_v10, %v8517_v13  ;;  %v807_v55 = vadd.s32 %v13050_v50, %v631_v56  ;;  %v13058_v56 = vld [vmem:[#allocation71_spill] sm:$0xff] }
 0x1dd   : > { %7202 = vmatmul.mubr.msk.f32.gmra.mrb[44].mxu0 %vm12774_vm0, %v6642_v7  ;;  %vm1331_vm15 = vmand %vm947_vm12, %vm1203_vm14  ;;  %vm948_vm2 = vcmp.ge.s32.totalorder %v8540_v9, %v820_v16  ;;  %v1076_v59 = vadd.s32 %v820_v16, %v13047_v51  ;;  %v821_v17 = vadd.s32 %v8543_v52, %v645_v34  ;;  %7445 = vmatprep.subr.bf16.mxu0 %v7444_v38 }
 0x1de   : > { %v6656_v28 = vsel %vm1331_vm15, 1.0, %v13057_v18  ;;  %v7448_v32 = vpack.c.bf16 %v2637_v46, %v2636_v21  ;;  %vm1190_vm3 = vcmp.lt.s32.totalorder %v8540_v9, %v1062_v48  ;;  %v646_v44 = vsub.s32 %v9203_v26, %v13055_v20  ;;  %7447 = vmatpush3.bf16.msra.mxu0 %v7444_v38  ;;  %v2638_v48 = vld [vmem:[#allocation3 + $0xf0] sm:$0xff] }
 0x1df   : > { %7231 = vmatmul.mubr.msk.f32.gmra.mrb[42].mxu1 %vm12774_vm0, %v6656_v28  ;;  %vm1204_vm5 = vcmp.lt.s32.totalorder %v8540_v9, %v1076_v59  ;;  %vm1318_vm4 = vmand %vm934_vm1, %vm1190_vm3  ;;  %vm935_vm6 = vcmp.ge.s32.totalorder %v8540_v9, %v807_v55  ;;  %v1063_v7 = vadd.s32 %v807_v55, %v13058_v56  ;;  %vm949_vm7 = vcmp.ge.s32.totalorder %v8540_v9, %v821_v17  ;;  %v2639_v59 = vld [vmem:[#allocation3 + $0xf8] sm:$0xff] }
 0x1e0   : > { %v1077_v21 = vadd.s32 %v821_v17, %v13049_v47  ;;  %7449 = vmatprep.subr.bf16.mxu1 %v7448_v32  ;;  %v6643_v46 = vsel %vm1318_vm4, 1.0, %v13057_v18  ;;  %vm1332_vm8 = vmand %vm948_vm2, %vm1204_vm5  ;;  %v822_v34 = vadd.s32 %v8549_v15, %v646_v44  ;;  %v648_v10 = vsub.s32 %v9471_v45, %v13051_v5 }
 0x1e1   : > { %7451 = vmatpush3.bf16.msra.mxu1 %v7448_v32  ;;  %v647_v38 = vsub.s32 %v9203_v26, %v8759_v3  ;;  %7204 = vmatprep.mubr.msk.f32.mxu0 %vm12774_vm0, %v6643_v46  ;;  %v6657_v28 = vsel %vm1332_vm8, 1.0, %v13057_v18  ;;  %vm1191_vm9 = vcmp.lt.s32.totalorder %v8540_v9, %v1063_v7  ;;  %v649_v16 = vsub.s32 %v9471_v45, %v8384_v22  ;;  %v9508_v46 = vpop.permute.xlu1 %550 }
 0x1e2   : > { %vm1205_vm10 = vcmp.lt.s32.totalorder %v8540_v9, %v1077_v21  ;;  %7233 = vmatprep.mubr.msk.f32.mxu1 %vm12774_vm0, %v6657_v28  ;;  %vm1319_vm11 = vmand %vm935_vm6, %vm1191_vm9  ;;  %vm950_vm12 = vcmp.ge.s32.totalorder %v8540_v9, %v822_v34  ;;  %v1078_v26 = vadd.s32 %v822_v34, %v8517_v13  ;;  %v824_v32 = vadd.s32 %v8391_v25, %v648_v10 }
 0x1e3   : > { %v823_v44 = vadd.s32 %v13050_v50, %v647_v38  ;;  %v6644_v7 = vsel %vm1319_vm11, 1.0, %v13057_v18  ;;  %vm1333_vm13 = vmand %vm949_vm7, %vm1205_vm10  ;;  %v825_v21 = vadd.s32 %v8397_v30, %v649_v16  ;;  %v7452_v28 = vpack.c.bf16 %v2639_v59, %v2638_v48  ;;  %v13059_v16 = vld [vmem:[#allocation24_spill] sm:$0xff] }
 0x1e4   : > { %v650_v55 = vsub.s32 %v9471_v45, %v8400_v31  ;;  %7205 = vmatmul.mubr.msk.f32.gmra.mrb[46].mxu0 %vm12774_vm0, %v6644_v7  ;;  %v6658_v13 = vsel %vm1333_vm13, 1.0, %v13057_v18  ;;  %vm1206_vm14 = vcmp.lt.s32.totalorder %v8540_v9, %v1078_v26  ;;  %vm952_vm15 = vcmp.ge.s32.totalorder %v8540_v9, %v824_v32 }
 0x1e5   : > { %v1080_v10 = vadd.s32 %v824_v32, %v8357_v0  ;;  %7234 = vmatmul.mubr.msk.f32.gmra.mrb[44].mxu1 %vm12774_vm0, %v6658_v13  ;;  %vm1334_vm1 = vmand %vm950_vm12, %vm1206_vm14  ;;  %vm951_vm2 = vcmp.ge.s32.totalorder %v8540_v9, %v823_v44  ;;  %v1079_v17 = vadd.s32 %v823_v44, %v13058_v56  ;;  %vm953_vm3 = vcmp.ge.s32.totalorder %v8540_v9, %v825_v21 }
 0x1e6   : > { %v1081_v38 = vadd.s32 %v825_v21, %v8363_v4  ;;  %v6659_v48 = vsel %vm1334_vm1, 1.0, %v13057_v18  ;;  %7453 = vmatprep.subr.bf16.mxu1 %v7452_v28  ;;  %v826_v59 = vadd.s32 %v8408_v35, %v650_v55  ;;  %v664_v13 = vsub.s32 %v9508_v46, %v13051_v5 }
 0x1e7   : > { %vm1208_vm5 = vcmp.lt.s32.totalorder %v8540_v9, %v1080_v10  ;;  %7236 = vmatprep.mubr.msk.f32.mxu1 %vm12774_vm0, %v6659_v48  ;;  %vm1207_vm6 = vcmp.lt.s32.totalorder %v8540_v9, %v1079_v17  ;;  %7455 = vmatpush3.bf16.msra.mxu1 %v7452_v28  ;;  %v651_v34 = vsub.s32 %v9471_v45, %v8415_v40  ;;  %v1777_v26 = vand.u32 7, %v13059_v16 }
 0x1e8   : > { %vm1336_vm4 = vmand %vm952_vm15, %vm1208_vm5  ;;  %vm1209_vm7 = vcmp.lt.s32.totalorder %v8540_v9, %v1081_v38  ;;  %vm954_vm9 = vcmp.ge.s32.totalorder %v8540_v9, %v826_v59  ;;  %v1082_v7 = vadd.s32 %v826_v59, %v8371_v14  ;;  %v840_v55 = vadd.s32 %v8391_v25, %v664_v13  ;;  %7338 = vmatprep.subr.mxu1 %v13057_v18 }
 0x1e9   : > { %v6661_v32 = vsel %vm1336_vm4, 1.0, %v13057_v18  ;;  %vm1335_vm8 = vmand %vm951_vm2, %vm1207_vm6  ;;  %v827_v10 = vadd.s32 %v8423_v29, %v651_v34  ;;  %v665_v44 = vsub.s32 %v9508_v46, %v8384_v22  ;;  %v652_v17 = vsub.s32 %v9471_v45, %v8426_v33 }
 0x1ea   : > { %7247 = vmatprep.mubr.msk.f32.mxu0 %vm12774_vm0, %v6661_v32  ;;  %v6660_v28 = vsel %vm1335_vm8, 1.0, %v13057_v18  ;;  %vm1337_vm10 = vmand %vm953_vm3, %vm1209_vm7  ;;  %vm1210_vm11 = vcmp.lt.s32.totalorder %v8540_v9, %v1082_v7  ;;  %vm968_vm12 = vcmp.ge.s32.totalorder %v8540_v9, %v840_v55  ;;  %v1096_v38 = vadd.s32 %v840_v55, %v8357_v0 }
 0x1eb   : > { %7237 = vmatmul.mubr.msk.f32.gmra.mrb[46].mxu1 %vm12774_vm0, %v6660_v28  ;;  %v6662_v25 = vsel %vm1337_vm10, 1.0, %v13057_v18  ;;  %vm1338_vm13 = vmand %vm954_vm9, %vm1210_vm11  ;;  %vm955_vm14 = vcmp.ge.s32.totalorder %v8540_v9, %v827_v10  ;;  %v1083_v21 = vadd.s32 %v827_v10, %v8386_v23  ;;  %v841_v48 = vadd.s32 %v8397_v30, %v665_v44 }
 0x1ec   : > { %7248 = vmatmul.mubr.msk.f32.vlgmr.msra.gmra.mrb[48].mxu0 %vm12774_vm0, %v6662_v25  ;;  %v828_v13 = vadd.s32 %v8432_v49, %v652_v17  ;;  %v6663_v34 = vsel %vm1338_vm13, 1.0, %v13057_v18  ;;  %vm1224_vm15 = vcmp.lt.s32.totalorder %v8540_v9, %v1096_v38  ;;  %v666_v32 = vsub.s32 %v9508_v46, %v8400_v31 }
 0x1ed   : > { %v653_v7 = vsub.s32 %v9471_v45, %v8442_v57  ;;  %7250 = vmatprep.mubr.msk.f32.mxu0 %vm12774_vm0, %v6663_v34  ;;  %vm1352_vm1 = vmand %vm968_vm12, %vm1224_vm15  ;;  %vm1211_vm2 = vcmp.lt.s32.totalorder %v8540_v9, %v1083_v21  ;;  %vm969_vm3 = vcmp.ge.s32.totalorder %v8540_v9, %v841_v48  ;;  %v1097_v30 = vadd.s32 %v841_v48, %v8363_v4 }
 0x1ee   : > { %vm956_vm5 = vcmp.ge.s32.totalorder %v8540_v9, %v828_v13  ;;  %v6677_v59 = vsel %vm1352_vm1, 1.0, %v13057_v18  ;;  %vm1339_vm4 = vmand %vm955_vm14, %vm1211_vm2  ;;  %v1084_v55 = vadd.s32 %v828_v13, %v8393_v27  ;;  %v842_v28 = vadd.s32 %v8408_v35, %v666_v32 }
 0x1ef   : > { %v829_v44 = vadd.s32 %v8450_v63, %v653_v7  ;;  %7279 = vmatprep.mubr.msk.f32.mxu1 %vm12774_vm0, %v6677_v59  ;;  %v6664_v17 = vsel %vm1339_vm4, 1.0, %v13057_v18  ;;  %vm1225_vm6 = vcmp.lt.s32.totalorder %v8540_v9, %v1097_v30  ;;  %v667_v25 = vsub.s32 %v9508_v46, %v8415_v40 }
 0x1f0   : > { %v654_v38 = vsub.s32 %v9471_v45, %v8453_v1  ;;  %7251 = vmatmul.mubr.msk.f32.gmra.mrb[50].mxu0 %vm12774_vm0, %v6664_v17  ;;  %vm1353_vm7 = vmand %vm969_vm3, %vm1225_vm6  ;;  %vm1212_vm8 = vcmp.lt.s32.totalorder %v8540_v9, %v1084_v55  ;;  %vm970_vm9 = vcmp.ge.s32.totalorder %v8540_v9, %v842_v28  ;;  %v1098_v35 = vadd.s32 %v842_v28, %v8371_v14 }
 0x1f1   : > { %vm957_vm10 = vcmp.ge.s32.totalorder %v8540_v9, %v829_v44  ;;  %v6678_v10 = vsel %vm1353_vm7, 1.0, %v13057_v18  ;;  %vm1340_vm11 = vmand %vm956_vm5, %vm1212_vm8  ;;  %v1085_v21 = vadd.s32 %v829_v44, %v8410_v36  ;;  %v843_v48 = vadd.s32 %v8423_v29, %v667_v25 }
 0x1f2   : > { %v830_v34 = vadd.s32 %v8460_v37, %v654_v38  ;;  %7280 = vmatmul.mubr.msk.f32.vlgmr.msra.gmra.mrb[48].mxu1 %vm12774_vm0, %v6678_v10  ;;  %v6665_v32 = vsel %vm1340_vm11, 1.0, %v13057_v18  ;;  %vm1226_vm12 = vcmp.lt.s32.totalorder %v8540_v9, %v1098_v35  ;;  %v668_v7 = vsub.s32 %v9508_v46, %v8426_v33 }
 0x1f3   : > { %v655_v30 = vsub.s32 %v9471_v45, %v8474_v19  ;;  %7253 = vmatprep.mubr.msk.f32.mxu0 %vm12774_vm0, %v6665_v32  ;;  %vm1354_vm13 = vmand %vm970_vm9, %vm1226_vm12  ;;  %vm1213_vm14 = vcmp.lt.s32.totalorder %v8540_v9, %v1085_v21  ;;  %vm971_vm15 = vcmp.ge.s32.totalorder %v8540_v9, %v843_v48  ;;  %v1099_v29 = vadd.s32 %v843_v48, %v8386_v23 }
 0x1f4   : > { %vm958_vm1 = vcmp.ge.s32.totalorder %v8540_v9, %v830_v34  ;;  %v6679_v13 = vsel %vm1354_vm13, 1.0, %v13057_v18  ;;  %vm1341_vm2 = vmand %vm957_vm10, %vm1213_vm14  ;;  %v1086_v59 = vadd.s32 %v830_v34, %v8417_v43  ;;  %v844_v55 = vadd.s32 %v8432_v49, %v668_v7 }
 0x1f5   : > { %v831_v28 = vadd.s32 %v8477_v24, %v655_v30  ;;  %7282 = vmatprep.mubr.msk.f32.mxu1 %vm12774_vm0, %v6679_v13  ;;  %v6666_v17 = vsel %vm1341_vm2, 1.0, %v13057_v18  ;;  %vm1227_vm3 = vcmp.lt.s32.totalorder %v8540_v9, %v1099_v29  ;;  %v669_v25 = vsub.s32 %v9508_v46, %v8442_v57 }
 0x1f6   : > { %v656_v38 = vsub.s32 %v9471_v45, %v8498_v6  ;;  %7254 = vmatmul.mubr.msk.f32.gmra.mrb[52].mxu0 %vm12774_vm0, %v6666_v17  ;;  %vm1355_vm5 = vmand %vm971_vm15, %vm1227_vm3  ;;  %vm1214_vm4 = vcmp.lt.s32.totalorder %v8540_v9, %v1086_v59  ;;  %vm972_vm6 = vcmp.ge.s32.totalorder %v8540_v9, %v844_v55  ;;  %v1100_v49 = vadd.s32 %v844_v55, %v8393_v27 }
 0x1f7   : > { %vm959_vm7 = vcmp.ge.s32.totalorder %v8540_v9, %v831_v28  ;;  %v6680_v44 = vsel %vm1355_vm5, 1.0, %v13057_v18  ;;  %vm1342_vm8 = vmand %vm958_vm1, %vm1214_vm4  ;;  %v1087_v35 = vadd.s32 %v831_v28, %v8444_v58  ;;  %v845_v10 = vadd.s32 %v8450_v63, %v669_v25  ;;  %v13060_v25 = vld [vmem:[#allocation55_spill] sm:$0xff] }
 0x1f8   : > { %v832_v21 = vadd.s32 %v8501_v8, %v656_v38  ;;  %7283 = vmatmul.mubr.msk.f32.gmra.mrb[50].mxu1 %vm12774_vm0, %v6680_v44  ;;  %v6667_v48 = vsel %vm1342_vm8, 1.0, %v13057_v18  ;;  %vm1228_vm9 = vcmp.lt.s32.totalorder %v8540_v9, %v1100_v49  ;;  %v670_v32 = vsub.s32 %v9508_v46, %v8453_v1  ;;  %v13061_v44 = vld [vmem:[#allocation65_spill] sm:$0xff] }
 0x1f9   : > { %v657_v7 = vsub.s32 %v9471_v45, %v8506_v62  ;;  %7256 = vmatprep.mubr.msk.f32.mxu0 %vm12774_vm0, %v6667_v48  ;;  %vm1356_vm10 = vmand %vm972_vm6, %vm1228_vm9  ;;  %vm1215_vm11 = vcmp.lt.s32.totalorder %v8540_v9, %v1087_v35  ;;  %vm973_vm12 = vcmp.ge.s32.totalorder %v8540_v9, %v845_v10  ;;  %v1101_v63 = vadd.s32 %v845_v10, %v8410_v36 }
 0x1fa   : > { %vm960_vm13 = vcmp.ge.s32.totalorder %v8540_v9, %v832_v21  ;;  %v6681_v34 = vsel %vm1356_vm10, 1.0, %v13057_v18  ;;  %vm1343_vm14 = vmand %vm959_vm7, %vm1215_vm11  ;;  %v1088_v30 = vadd.s32 %v832_v21, %v8467_v12  ;;  %v846_v29 = vadd.s32 %v8460_v37, %v670_v32 }
 0x1fb   : > { %v833_v13 = vadd.s32 %v8512_v42, %v657_v7  ;;  %7285 = vmatprep.mubr.msk.f32.mxu1 %vm12774_vm0, %v6681_v34  ;;  %v6668_v59 = vsel %vm1343_vm14, 1.0, %v13057_v18  ;;  %vm1229_vm15 = vcmp.lt.s32.totalorder %v8540_v9, %v1101_v63  ;;  %v671_v55 = vsub.s32 %v9508_v46, %v8474_v19 }
 0x1fc   : > { %v658_v17 = vsub.s32 %v9471_v45, %v8515_v2  ;;  %7257 = vmatmul.mubr.msk.f32.gmra.mrb[54].mxu0 %vm12774_vm0, %v6668_v59  ;;  %vm1357_vm1 = vmand %vm973_vm12, %vm1229_vm15  ;;  %vm1216_vm2 = vcmp.lt.s32.totalorder %v8540_v9, %v1088_v30  ;;  %vm974_vm3 = vcmp.ge.s32.totalorder %v8540_v9, %v846_v29  ;;  %v1102_v37 = vadd.s32 %v846_v29, %v8417_v43 }
 0x1fd   : > { %vm961_vm5 = vcmp.ge.s32.totalorder %v8540_v9, %v833_v13  ;;  %v6682_v28 = vsel %vm1357_vm1, 1.0, %v13057_v18  ;;  %vm1344_vm4 = vmand %vm960_vm13, %vm1216_vm2  ;;  %v1089_v38 = vadd.s32 %v833_v13, %v13060_v25  ;;  %v847_v49 = vadd.s32 %v8477_v24, %v671_v55 }
 0x1fe   : > { %v834_v35 = vadd.s32 %v13061_v44, %v658_v17  ;;  %7286 = vmatmul.mubr.msk.f32.gmra.mrb[52].mxu1 %vm12774_vm0, %v6682_v28  ;;  %v6669_v10 = vsel %vm1344_vm4, 1.0, %v13057_v18  ;;  %vm1230_vm6 = vcmp.lt.s32.totalorder %v8540_v9, %v1102_v37  ;;  %v672_v48 = vsub.s32 %v9508_v46, %v8498_v6 }
 0x1ff   : > { %v659_v32 = vsub.s32 %v9471_v45, %v13054_v60  ;;  %7259 = vmatprep.mubr.msk.f32.mxu0 %vm12774_vm0, %v6669_v10  ;;  %vm1358_vm7 = vmand %vm974_vm3, %vm1230_vm6  ;;  %vm1217_vm8 = vcmp.lt.s32.totalorder %v8540_v9, %v1089_v38  ;;  %vm975_vm9 = vcmp.ge.s32.totalorder %v8540_v9, %v847_v49  ;;  %v1103_v24 = vadd.s32 %v847_v49, %v8444_v58 }
 0x200   : > { %vm962_vm10 = vcmp.ge.s32.totalorder %v8540_v9, %v834_v35  ;;  %v6683_v21 = vsel %vm1358_vm7, 1.0, %v13057_v18  ;;  %vm1345_vm11 = vmand %vm961_vm5, %vm1217_vm8  ;;  %v1090_v7 = vadd.s32 %v834_v35, %v8488_v39  ;;  %v848_v63 = vadd.s32 %v8501_v8, %v672_v48 }
 0x201   : > { %v835_v34 = vadd.s32 %v13043_v53, %v659_v32  ;;  %7288 = vmatprep.mubr.msk.f32.mxu1 %vm12774_vm0, %v6683_v21  ;;  %v6670_v30 = vsel %vm1345_vm11, 1.0, %v13057_v18  ;;  %vm1231_vm12 = vcmp.lt.s32.totalorder %v8540_v9, %v1103_v24  ;;  %v673_v29 = vsub.s32 %v9508_v46, %v8506_v62 }
 0x202   : > { %v660_v59 = vsub.s32 %v9471_v45, %v8529_v41  ;;  %7260 = vmatmul.mubr.msk.f32.gmra.mrb[56].mxu0 %vm12774_vm0, %v6670_v30  ;;  %vm1359_vm13 = vmand %vm975_vm9, %vm1231_vm12  ;;  %vm1218_vm14 = vcmp.lt.s32.totalorder %v8540_v9, %v1090_v7  ;;  %vm976_vm15 = vcmp.ge.s32.totalorder %v8540_v9, %v848_v63  ;;  %v1104_v8 = vadd.s32 %v848_v63, %v8467_v12 }
 0x203   : > { %vm963_vm1 = vcmp.ge.s32.totalorder %v8540_v9, %v835_v34  ;;  %v6684_v13 = vsel %vm1359_vm13, 1.0, %v13057_v18  ;;  %vm1346_vm2 = vmand %vm962_vm10, %vm1218_vm14  ;;  %v1091_v55 = vadd.s32 %v835_v34, %v13046_v11  ;;  %v849_v17 = vadd.s32 %v8512_v42, %v673_v29 }
 0x204   : > { %v836_v37 = vadd.s32 %v13044_v61, %v660_v59  ;;  %7289 = vmatmul.mubr.msk.f32.gmra.mrb[54].mxu1 %vm12774_vm0, %v6684_v13  ;;  %v6671_v28 = vsel %vm1346_vm2, 1.0, %v13057_v18  ;;  %vm1232_vm3 = vcmp.lt.s32.totalorder %v8540_v9, %v1104_v8  ;;  %v674_v38 = vsub.s32 %v9508_v46, %v8515_v2 }
 0x205   : > { %v661_v49 = vsub.s32 %v9471_v45, %v13045_v54  ;;  %7262 = vmatprep.mubr.msk.f32.mxu0 %vm12774_vm0, %v6671_v28  ;;  %vm1360_vm5 = vmand %vm976_vm15, %vm1232_vm3  ;;  %vm1219_vm4 = vcmp.lt.s32.totalorder %v8540_v9, %v1091_v55  ;;  %vm977_vm6 = vcmp.ge.s32.totalorder %v8540_v9, %v849_v17  ;;  %v1105_v42 = vadd.s32 %v849_v17, %v13060_v25  ;;  %v13062_v17 = vld [vmem:[#allocation64_spill] sm:$0xff] }
 0x206   : > { %vm964_vm7 = vcmp.ge.s32.totalorder %v8540_v9, %v836_v37  ;;  %v6685_v35 = vsel %vm1360_vm5, 1.0, %v13057_v18  ;;  %vm1347_vm8 = vmand %vm963_vm1, %vm1219_vm4  ;;  %v1092_v10 = vadd.s32 %v836_v37, %v13047_v51  ;;  %v850_v48 = vadd.s32 %v13061_v44, %v674_v38 }
 0x207   : > { %v837_v32 = vadd.s32 %v8543_v52, %v661_v49  ;;  %7291 = vmatprep.mubr.msk.f32.mxu1 %vm12774_vm0, %v6685_v35  ;;  %v6672_v24 = vsel %vm1347_vm8, 1.0, %v13057_v18  ;;  %vm1233_vm9 = vcmp.lt.s32.totalorder %v8540_v9, %v1105_v42  ;;  %v675_v21 = vsub.s32 %v9508_v46, %v13054_v60 }
 0x208   : > { %v662_v7 = vsub.s32 %v9471_v45, %v13055_v20  ;;  %7263 = vmatmul.mubr.msk.f32.gmra.mrb[58].mxu0 %vm12774_vm0, %v6672_v24  ;;  %vm1361_vm10 = vmand %vm977_vm6, %vm1233_vm9  ;;  %vm1220_vm11 = vcmp.lt.s32.totalorder %v8540_v9, %v1092_v10  ;;  %vm978_vm12 = vcmp.ge.s32.totalorder %v8540_v9, %v850_v48  ;;  %v1106_v44 = vadd.s32 %v850_v48, %v8488_v39  ;;  %v9782_v24 = vpop.permute.xlu0 %1625 }
 0x209   : > { %vm965_vm13 = vcmp.ge.s32.totalorder %v8540_v9, %v837_v32  ;;  %v6686_v63 = vsel %vm1361_vm10, 1.0, %v13057_v18  ;;  %vm1348_vm14 = vmand %vm964_vm7, %vm1220_vm11  ;;  %v1093_v34 = vadd.s32 %v837_v32, %v13049_v47  ;;  %v851_v30 = vadd.s32 %v13043_v53, %v675_v21 }
 0x20a   : > { %v838_v29 = vadd.s32 %v8549_v15, %v662_v7  ;;  %7292 = vmatmul.mubr.msk.f32.gmra.mrb[56].mxu1 %vm12774_vm0, %v6686_v63  ;;  %v6673_v59 = vsel %vm1348_vm14, 1.0, %v13057_v18  ;;  %vm1234_vm15 = vcmp.lt.s32.totalorder %v8540_v9, %v1106_v44  ;;  %v676_v8 = vsub.s32 %v9508_v46, %v8529_v41 }
 0x20b   : > { %v663_v13 = vsub.s32 %v9471_v45, %v8759_v3  ;;  %7265 = vmatprep.mubr.msk.f32.mxu0 %vm12774_vm0, %v6673_v59  ;;  %vm1362_vm1 = vmand %vm978_vm12, %vm1234_vm15  ;;  %vm1221_vm2 = vcmp.lt.s32.totalorder %v8540_v9, %v1093_v34  ;;  %vm979_vm3 = vcmp.ge.s32.totalorder %v8540_v9, %v851_v30  ;;  %v1107_v53 = vadd.s32 %v851_v30, %v13046_v11  ;;  %v13064_v59 = vld [vmem:[#allocation22_spill] sm:$0xff] }
 0x20c   : > { %vm966_vm5 = vcmp.ge.s32.totalorder %v8540_v9, %v838_v29  ;;  %v6687_v55 = vsel %vm1362_vm1, 1.0, %v13057_v18  ;;  %vm1349_vm4 = vmand %vm965_vm13, %vm1221_vm2  ;;  %v1094_v37 = vadd.s32 %v838_v29, %v13062_v17  ;;  %v852_v45 = vadd.s32 %v13044_v61, %v676_v8 }
 0x20d   : > { %v839_v28 = vadd.s32 %v13050_v50, %v663_v13  ;;  %7294 = vmatprep.mubr.msk.f32.mxu1 %vm12774_vm0, %v6687_v55  ;;  %v6674_v38 = vsel %vm1349_vm4, 1.0, %v13057_v18  ;;  %vm1235_vm6 = vcmp.lt.s32.totalorder %v8540_v9, %v1107_v53  ;;  %v677_v49 = vsub.s32 %v9508_v46, %v13045_v54  ;;  %v9830_v55 = vpop.permute.xlu1 %1628 }
 0x20e   : > { %v678_v42 = vsub.s32 %v9508_v46, %v13055_v20  ;;  %7266 = vmatmul.mubr.msk.f32.gmra.mrb[60].mxu0 %vm12774_vm0, %v6674_v38  ;;  %vm1363_vm7 = vmand %vm979_vm3, %vm1235_vm6  ;;  %vm1222_vm8 = vcmp.lt.s32.totalorder %v8540_v9, %v1094_v37  ;;  %vm980_vm9 = vcmp.ge.s32.totalorder %v8540_v9, %v852_v45  ;;  %v1108_v61 = vadd.s32 %v852_v45, %v13047_v51 }
 0x20f   : > { %vm967_vm10 = vcmp.ge.s32.totalorder %v8540_v9, %v839_v28  ;;  %v6688_v35 = vsel %vm1363_vm7, 1.0, %v13057_v18  ;;  %vm1350_vm11 = vmand %vm966_vm5, %vm1222_vm8  ;;  %v1095_v10 = vadd.s32 %v839_v28, %v13058_v56  ;;  %v853_v48 = vadd.s32 %v8543_v52, %v677_v49  ;;  %v13067_v49 = vld [vmem:[#allocation26_spill] sm:$0xff] }
 0x210   : > { %v854_v32 = vadd.s32 %v8549_v15, %v678_v42  ;;  %7295 = vmatmul.mubr.msk.f32.gmra.mrb[58].mxu1 %vm12774_vm0, %v6688_v35  ;;  %v6675_v21 = vsel %vm1350_vm11, 1.0, %v13057_v18  ;;  %vm1236_vm12 = vcmp.lt.s32.totalorder %v8540_v9, %v1108_v61  ;;  %v679_v7 = vsub.s32 %v9508_v46, %v8759_v3 }
 0x211   : > { %v1649_v44 = vsub.s32 %v9782_v24, %v8384_v22  ;;  %7268 = vmatprep.mubr.msk.f32.mxu0 %vm12774_vm0, %v6675_v21  ;;  %vm1364_vm13 = vmand %vm980_vm9, %vm1236_vm12  ;;  %vm1223_vm14 = vcmp.lt.s32.totalorder %v8540_v9, %v1095_v10  ;;  %vm981_vm15 = vcmp.ge.s32.totalorder %v8540_v9, %v853_v48  ;;  %v1109_v52 = vadd.s32 %v853_v48, %v13049_v47 }
 0x212   : > { %vm982_vm1 = vcmp.ge.s32.totalorder %v8540_v9, %v854_v32  ;;  %v6689_v15 = vsel %vm1364_vm13, 1.0, %v13057_v18  ;;  %vm1351_vm2 = vmand %vm967_vm10, %vm1223_vm14  ;;  %v1110_v46 = vadd.s32 %v854_v32, %v13062_v17  ;;  %v855_v63 = vadd.s32 %v13050_v50, %v679_v7 }
 0x213   : > { %v9806_v34 = vmul.u32 %v1777_v26, %v8363_v4  ;;  %7297 = vmatprep.mubr.msk.f32.mxu1 %vm12774_vm0, %v6689_v15  ;;  %v6676_v30 = vsel %vm1351_vm2, 1.0, %v13057_v18  ;;  %vm1237_vm3 = vcmp.lt.s32.totalorder %v8540_v9, %v1109_v52  ;;  %vm1937_vm5 = vcmp.eq.s32.totalorder %v8363_v4, 1  ;;  %v13073_v15 = vld [vmem:[#allocation25_spill] sm:$0xff] }
 0x214   : > { %7269 = vmatmul.mubr.msk.f32.gmra.mrb[62].mxu0 %vm12774_vm0, %v6676_v30  ;;  %vm1365_vm4 = vmand %vm981_vm15, %vm1237_vm3  ;;  %vm1238_vm6 = vcmp.lt.s32.totalorder %v8540_v9, %v1110_v46  ;;  %vm983_vm7 = vcmp.ge.s32.totalorder %v8540_v9, %v855_v63  ;;  %v1111_v50 = vadd.s32 %v855_v63, %v13058_v56  ;;  %v1648_v29 = vsub.s32 %v9782_v24, %v13051_v5 }
 0x215   : > { %13063 = vst [vmem:[#allocation67_spill] sm:$0xff] %v9806_v34  ;;  %v1809_v16 = vadd.s32 %v9806_v34, %v1649_v44  ;;  %v6690_v26 = vsel %vm1365_vm4, 1.0, %v13057_v18  ;;  %vm1366_vm8 = vmand %vm982_vm1, %vm1238_vm6  ;;  %v1776_v8 = vand.u32 7, %v13064_v59  ;;  %vm1936_vm9 = vcmp.eq.s32.totalorder %v8357_v0, 1  ;;  %v13095_v59 = vld [vmem:[#allocation34_spill] sm:$0xff] }
 0x216   : > { %7298 = vmatmul.mubr.msk.f32.gmra.mrb[60].mxu1 %vm12774_vm0, %v6690_v26  ;;  %v6691_v13 = vsel %vm1366_vm8, 1.0, %v13057_v18  ;;  %vm1239_vm10 = vcmp.lt.s32.totalorder %v8540_v9, %v1111_v50  ;;  %v12761_v37 = vmov 0.25   ;;  %v1651_v38 = vsub.s32 %v9782_v24, %v8415_v40 }
 0x217   : > { %vm1969_vm11 = vcmp.ge.s32.totalorder %v8540_v9, %v1809_v16  ;;  %v2097_v53 = vadd.s32 %v1809_v16, %v8363_v4  ;;  %7300 = vmatprep.mubr.msk.f32.mxu1 %vm12774_vm0, %v6691_v13  ;;  %vm1367_vm12 = vmand %vm983_vm7, %vm1239_vm10  ;;  %v9835_v45 = vsel %vm1937_vm5, 1.0, %v12761_v37  ;;  %v9838_v28 = vmul.u32 %v1776_v8, %v8357_v0 }
 0x218   : > { %13065 = vst [vmem:[#allocation69_spill] sm:$0xff] %v9835_v45  ;;  %v1779_v42 = vand.u32 7, %v13067_v49  ;;  %v9845_v61 = vsel %vm1936_vm9, 1.0, %v12761_v37  ;;  %vm1939_vm14 = vcmp.eq.s32.totalorder %v8386_v23, 1  ;;  %v1665_v35 = vsub.s32 %v9830_v55, %v8384_v22 }
 0x219   : > { %13066 = vst [vmem:[#allocation73_spill] sm:$0xff] %v9838_v28  ;;  %vm2225_vm13 = vcmp.lt.s32.totalorder %v8540_v9, %v2097_v53  ;;  %13068 = vst [vmem:[#allocation74_spill] sm:$0xff] %v9845_v61  ;;  %v6692_v10 = vsel %vm1367_vm12, 1.0, %v13057_v18  ;;  %v1808_v32 = vadd.s32 %v9838_v28, %v1648_v29  ;;  %v9862_v7 = vsel %vm1939_vm14, 1.0, %v12761_v37 }
 0x21a   : > { %vm9853_vm15 = vmand %vm1969_vm11, %vm2225_vm13  ;;  %v9859_v21 = vmul.u32 %v1779_v42, %v8386_v23  ;;  %13072 = vst [vmem:[#allocation24_spill] sm:$0xff] %v9862_v7  ;;  %7301 = vmatmul.mubr.msk.f32.gmra.mrb[62].mxu1 %vm12774_vm0, %v6692_v10  ;;  %v1825_v44 = vadd.s32 %v9806_v34, %v1665_v35  ;;  %v1650_v52 = vsub.s32 %v9782_v24, %v8400_v31  ;;  %v1778_v46 = vand.u32 7, %v13073_v15  ;;  %v13078_v42 = vld [vmem:[#allocation29_spill] sm:$0xff] }
 0x21b   : > { %vm1938_vm1 = vcmp.eq.s32.totalorder %v8371_v14, 1  ;;  %vm1968_vm2 = vcmp.ge.s32.totalorder %v8540_v9, %v1808_v32  ;;  %v2096_v30 = vadd.s32 %v1808_v32, %v8357_v0  ;;  %v1664_v29 = vsub.s32 %v9830_v55, %v13051_v5 }
 0x21c   : > { %13071 = vst [vmem:[#allocation75_spill] sm:$0xff] %v9859_v21  ;;  %v1811_v50 = vadd.s32 %v9859_v21, %v1651_v38  ;;  %vm1985_vm3 = vcmp.ge.s32.totalorder %v8540_v9, %v1825_v44  ;;  %v2113_v16 = vadd.s32 %v1825_v44, %v8363_v4  ;;  %v9879_v26 = vmul.u32 %v1778_v46, %v8371_v14 }
 0x21d   : > { %vm2224_vm5 = vcmp.lt.s32.totalorder %v8540_v9, %v2096_v30  ;;  %v9887_v13 = vsel %vm1938_vm1, 1.0, %v12761_v37  ;;  %v1824_v49 = vadd.s32 %v9838_v28, %v1664_v29  ;;  %v1781_v35 = vand.u32 7, %v13078_v42  ;;  %v13084_v42 = vld [vmem:[#allocation27_spill] sm:$0xff] }
 0x21e   : > { %13074 = vst [vmem:[#allocation65_spill] sm:$0xff] %v9879_v26  ;;  %vm1971_vm4 = vcmp.ge.s32.totalorder %v8540_v9, %v1811_v50  ;;  %v2099_v8 = vadd.s32 %v1811_v50, %v8386_v23  ;;  %13075 = vst [vmem:[#allocation26_spill] sm:$0xff] %v9887_v13  ;;  %vm2241_vm7 = vcmp.lt.s32.totalorder %v8540_v9, %v2113_v16  ;;  %vm1941_vm12 = vcmp.eq.s32.totalorder %v8410_v36, 1 }
 0x21f   : > { %vm9889_vm6 = vmand %vm1968_vm2, %vm2224_vm5  ;;  %v1810_v38 = vadd.s32 %v9879_v26, %v1650_v52  ;;  %v1653_v15 = vsub.s32 %v9782_v24, %v8442_v57  ;;  %v1667_v52 = vsub.s32 %v9830_v55, %v8415_v40  ;;  %vm1984_vm13 = vcmp.ge.s32.totalorder %v8540_v9, %v1824_v49 }
 0x220   : > { %vm2227_vm8 = vcmp.lt.s32.totalorder %v8540_v9, %v2099_v8  ;;  %vm9903_vm9 = vmand %vm1985_vm3, %vm2241_vm7  ;;  %v2112_v16 = vadd.s32 %v1824_v49, %v8357_v0  ;;  %v9927_v29 = vmul.u32 %v1781_v35, %v8410_v36  ;;  %v1780_v30 = vand.u32 7, %v13084_v42 }
 0x221   : > { %vm9911_vm10 = vmand %vm1971_vm4, %vm2227_vm8  ;;  %vm1970_vm11 = vcmp.ge.s32.totalorder %v8540_v9, %v1810_v38  ;;  %v2098_v44 = vadd.s32 %v1810_v38, %v8371_v14  ;;  %v1827_v8 = vadd.s32 %v9859_v21, %v1667_v52  ;;  %v1652_v38 = vsub.s32 %v9782_v24, %v8426_v33 }
 0x222   : > { %13083 = vst [vmem:[#allocation25_spill] sm:$0xff] %v9927_v29  ;;  %vm2240_vm2 = vcmp.lt.s32.totalorder %v8540_v9, %v2112_v16  ;;  %v1813_v49 = vadd.s32 %v9927_v29, %v1653_v15  ;;  %vm1940_vm3 = vcmp.eq.s32.totalorder %v8393_v27, 1  ;;  %v1666_v35 = vsub.s32 %v9830_v55, %v8400_v31  ;;  %v13136_v31 = vld [vmem:[#allocation45_spill] sm:$0xff] }
 0x223   : > { %vm2226_vm14 = vcmp.lt.s32.totalorder %v8540_v9, %v2098_v44  ;;  %vm9943_vm5 = vmand %vm1984_vm13, %vm2240_vm2  ;;  %v9950_v44 = vsel %vm1941_vm12, 1.0, %v12761_v37  ;;  %vm1987_vm4 = vcmp.ge.s32.totalorder %v8540_v9, %v1827_v8  ;;  %v2115_v16 = vadd.s32 %v1827_v8, %v8386_v23  ;;  %v13099_v23 = vld [vmem:[#allocation31_spill] sm:$0xff] }
 0x224   : > { %vm9934_vm1 = vmand %vm1970_vm11, %vm2226_vm14  ;;  %13089 = vst [vmem:[#allocation29_spill] sm:$0xff] %v9950_v44  ;;  %v9955_v15 = vmul.u32 %v1780_v30, %v8393_v27  ;;  %vm1973_vm7 = vcmp.ge.s32.totalorder %v8540_v9, %v1813_v49  ;;  %v2101_v63 = vadd.s32 %v1813_v49, %v8410_v36  ;;  %v13091_v8 = vmov 0.25  }
 0x225   : > { %vm2243_vm8 = vcmp.lt.s32.totalorder %v8540_v9, %v2115_v16  ;;  %v9968_v18 = vsel %vm1940_vm3, 1.0, %v13091_v8  ;;  %v1826_v30 = vadd.s32 %v9879_v26, %v1666_v35  ;;  %v1655_v50 = vsub.s32 %v9782_v24, %v8474_v19 }
 0x226   : > { %13090 = vst [vmem:[#allocation27_spill] sm:$0xff] %v9955_v15  ;;  %v1812_v37 = vadd.s32 %v9955_v15, %v1652_v38  ;;  %13092 = vst [vmem:[#allocation77_spill] sm:$0xff] %v9968_v18  ;;  %vm2229_vm11 = vcmp.lt.s32.totalorder %v8540_v9, %v2101_v63  ;;  %v1783_v49 = vand.u32 7, %v13095_v59  ;;  %v1669_v16 = vsub.s32 %v9830_v55, %v8442_v57 }
 0x227   : > { %vm9972_vm12 = vmand %vm1987_vm4, %vm2243_vm8  ;;  %vm1943_vm2 = vcmp.eq.s32.totalorder %v8444_v58, 1  ;;  %vm1986_vm3 = vcmp.ge.s32.totalorder %v8540_v9, %v1826_v30  ;;  %v2114_v57 = vadd.s32 %v1826_v30, %v8371_v14  ;;  %v1782_v0 = vand.u32 7, %v13099_v23 }
 0x228   : > { %vm9981_vm13 = vmand %vm1973_vm7, %vm2229_vm11  ;;  %vm1972_vm14 = vcmp.ge.s32.totalorder %v8540_v9, %v1812_v37  ;;  %v2100_v35 = vadd.s32 %v1812_v37, %v8393_v27  ;;  %v9997_v26 = vmul.u32 %v1783_v49, %v8444_v58  ;;  %v1829_v63 = vadd.s32 %v9927_v29, %v1669_v16 }
 0x229   : > { %v1654_v37 = vsub.s32 %v9782_v24, %v8453_v1  ;;  %vm2242_vm8 = vcmp.lt.s32.totalorder %v8540_v9, %v2114_v57  ;;  %vm1942_vm11 = vcmp.eq.s32.totalorder %v8417_v43, 1  ;;  %v1668_v49 = vsub.s32 %v9830_v55, %v8426_v33 }
 0x22a   : > { %13098 = vst [vmem:[#allocation34_spill] sm:$0xff] %v9997_v26  ;;  %vm2228_vm4 = vcmp.lt.s32.totalorder %v8540_v9, %v2100_v35  ;;  %v1815_v30 = vadd.s32 %v9997_v26, %v1655_v50  ;;  %vm10013_vm0 = vmand %vm1986_vm3, %vm2242_vm8  ;;  %v13102_v16 = vmov 0  ;;  %v10020_v23 = vsel %vm1943_vm2, 1.0, %v13091_v8 }
 0x22b   : > { %vm10004_vm7 = vmand %vm1972_vm14, %vm2228_vm4  ;;  %v13103_v16 = vsel %vm10013_vm0, 4294967295, %v13102_v16  ;;  %13104 = vst [vmem:[#allocation31_spill] sm:$0xff] %v10020_v23  ;;  %vm1989_vm14 = vcmp.ge.s32.totalorder %v8540_v9, %v1829_v63  ;;  %v2117_v57 = vadd.s32 %v1829_v63, %v8410_v36  ;;  %v10025_v50 = vmul.u32 %v1782_v0, %v8417_v43  ;;  %v13109_v36 = vld [vmem:[#allocation43_spill] sm:$0xff] }
 0x22c   : > { %vm1975_vm3 = vcmp.ge.s32.totalorder %v8540_v9, %v1815_v30  ;;  %v2103_v33 = vadd.s32 %v1815_v30, %v8444_v58  ;;  %v10038_v63 = vsel %vm1942_vm11, 1.0, %v13091_v8  ;;  %v1828_v0 = vadd.s32 %v9955_v15, %v1668_v49 }
 0x22d   : > { %13105 = vst [vmem:[#allocation78_spill] sm:$0xff] %v10025_v50  ;;  %vm2245_vm2 = vcmp.lt.s32.totalorder %v8540_v9, %v2117_v57  ;;  %v1814_v29 = vadd.s32 %v10025_v50, %v1654_v37  ;;  %13106 = vst [vmem:[#allocation79_spill] sm:$0xff] %v10038_v63  ;;  %v1657_v59 = vsub.s32 %v9782_v24, %v8506_v62  ;;  %v1785_v30 = vand.u32 7, %v13109_v36 }
 0x22e   : > { %vm2231_vm4 = vcmp.lt.s32.totalorder %v8540_v9, %v2103_v33  ;;  %vm10042_vm8 = vmand %vm1989_vm14, %vm2245_vm2  ;;  %v1671_v57 = vsub.s32 %v9830_v55, %v8474_v19  ;;  %vm1945_vm14 = vcmp.eq.s32.totalorder %v13060_v25, 1  ;;  %v13112_v36 = vsel %vm9853_vm15, %v9835_v45, 0.0 }
 0x22f   : > { %vm10051_vm0 = vmand %vm1975_vm3, %vm2231_vm4  ;;  %vm1974_vm11 = vcmp.ge.s32.totalorder %v8540_v9, %v1814_v29  ;;  %v2102_v49 = vadd.s32 %v1814_v29, %v8417_v43  ;;  %vm1988_vm3 = vcmp.ge.s32.totalorder %v8540_v9, %v1828_v0  ;;  %v2116_v21 = vadd.s32 %v1828_v0, %v8393_v27 }
 0x230   : > { %v7057_v37 = vpop.f32.mrb[0].mxu0  ;;  %v10068_v28 = vmul.u32 %v1785_v30, %v13060_v25  ;;  %v13114_v33 = vsel %vm9889_vm6, %v9845_v61, 0.0  ;;  %v10086_v30 = vsel %vm1945_vm14, 1.0, %v13091_v8  ;;  %v13122_v48 = vsel %vm9903_vm9, %v9835_v45, 0.0 }
 0x231   : > { %v4186_v19 = vmul.f32 %v7057_v37, %v13112_v36  ;;  %v2755_v15 = vpop.f32.mrb[1].mxu0  ;;  %vm2230_vm15 = vcmp.lt.s32.totalorder %v8540_v9, %v2102_v49  ;;  %v1831_v37 = vadd.s32 %v9997_v26, %v1671_v57  ;;  %vm2244_vm4 = vcmp.lt.s32.totalorder %v8540_v9, %v2116_v21  ;;  %13117 = vst [vmem:[#allocation80_spill] sm:$0xff] %v10086_v30 }
 0x232   : > { %13113 = vst [vmem:[#allocation43_spill] sm:$0xff] %v10068_v28  ;;  %v4185_v29 = vmul.f32 %v2755_v15, %v13114_v33  ;;  %vm10079_vm2 = vmand %vm1974_vm11, %vm2230_vm15  ;;  %v1817_v53 = vadd.s32 %v10068_v28, %v1657_v59  ;;  %v13118_v15 = vld [vmem:[#allocation39_spill] sm:$0xff]  ;;  %v1656_v59 = vsub.s32 %v9782_v24, %v8498_v6  ;;  %v13121_v49 = vsel %vm9911_vm10, %v9862_v7, 0.0 }
 0x233   : > { %4315 = vadd.xlane.f32.xlu0 %v4186_v19  ;;  %v1784_v33 = vand.u32 7, %v13118_v15  ;;  %v2486_v57 = vsel %vm10079_vm2, %v10038_v63, 0.0  ;;  %vm10094_vm6 = vmand %vm1988_vm3, %vm2244_vm4  ;;  %vm1991_vm11 = vcmp.ge.s32.totalorder %v8540_v9, %v1831_v37  ;;  %v2119_v21 = vadd.s32 %v1831_v37, %v8444_v58 }
 0x234   : > { %v7060_v27 = vpop.f32.mrb[2].mxu0  ;;  %4313 = vadd.xlane.f32.xlu1 %v4185_v29  ;;  %v7089_v36 = vpop.f32.mrb[0].mxu1  ;;  %vm1977_vm14 = vcmp.ge.s32.totalorder %v8540_v9, %v1817_v53  ;;  %v2105_v0 = vadd.s32 %v1817_v53, %v13060_v25  ;;  %vm1944_vm3 = vcmp.eq.s32.totalorder %v8467_v12, 1  ;;  %v13125_v32 = vsel %vm9943_vm5, %v9845_v61, 0.0 }
 0x235   : > { %v4188_v29 = vmul.f32 %v7060_v27, %v13121_v49  ;;  %v2765_v15 = vpop.f32.mrb[3].mxu0  ;;  %v4202_v58 = vmul.f32 %v7089_v36, %v13122_v48  ;;  %v2948_v26 = vpop.f32.mrb[1].mxu1  ;;  %vm2247_vm10 = vcmp.lt.s32.totalorder %v8540_v9, %v2119_v21  ;;  %v10118_v27 = vmul.u32 %v1784_v33, %v8467_v12 }
 0x236   : > { %v13124_v49 = vsel %vm9934_vm1, %v9887_v13, 0.0  ;;  %v4201_v48 = vmul.f32 %v2948_v26, %v13125_v32  ;;  %vm2233_vm9 = vcmp.lt.s32.totalorder %v8540_v9, %v2105_v0  ;;  %vm10131_vm15 = vmand %vm1991_vm11, %vm2247_vm10  ;;  %v1670_v33 = vsub.s32 %v9830_v55, %v8453_v1 }
 0x237   : > { %13123 = vst [vmem:[#allocation39_spill] sm:$0xff] %v10118_v27  ;;  %v4187_v4 = vmul.f32 %v2765_v15, %v13124_v49  ;;  %vm10139_vm1 = vmand %vm1977_vm14, %vm2233_vm9  ;;  %v1816_v26 = vadd.s32 %v10118_v27, %v1656_v59  ;;  %v10145_v21 = vsel %vm1944_vm3, 1.0, %v13091_v8  ;;  %v1659_v37 = vsub.s32 %v9782_v24, %v13054_v60  ;;  %v13131_v15 = vld [vmem:[#allocation46_spill] sm:$0xff] }
 0x238   : > { %v7063_v10 = vpop.f32.mrb[4].mxu0  ;;  %4347 = vadd.xlane.f32.xlu1 %v4202_v58  ;;  %13130 = vst [vmem:[#allocation81_spill] sm:$0xff] %v10145_v21  ;;  %v1787_v0 = vand.u32 7, %v13131_v15  ;;  %v13132_v58 = vsel %vm9981_vm13, %v9950_v44, 0.0  ;;  %4345 = vadd.xlane.f32.xlu0 %v4201_v48  ;;  %v1830_v32 = vadd.s32 %v10025_v50, %v1670_v33  ;;  %vm1947_vm5 = vcmp.eq.s32.totalorder %v13046_v11, 1 }
 0x239   : > { %v10154_v49 = vmul.f32 %v7063_v10, %v13132_v58  ;;  %v2775_v53 = vpop.f32.mrb[5].mxu0  ;;  %v2489_v15 = vsel %vm10139_vm1, %v10086_v30, 0.0  ;;  %vm1976_vm2 = vcmp.ge.s32.totalorder %v8540_v9, %v1816_v26  ;;  %v2104_v38 = vadd.s32 %v1816_v26, %v8467_v12 }
 0x23a   : > { %v10167_v10 = vmul.u32 %v1787_v0, %v13046_v11  ;;  %v13134_v48 = vsel %vm10004_vm7, %v9968_v18, 0.0  ;;  %vm1990_vm13 = vcmp.ge.s32.totalorder %v8540_v9, %v1830_v32  ;;  %v2118_v33 = vadd.s32 %v1830_v32, %v8417_v43 }
 0x23b   : > { %v10173_v58 = vmul.f32 %v2775_v53, %v13134_v48  ;;  %v1673_v52 = vsub.s32 %v9830_v55, %v8506_v62  ;;  %v7092_v59 = vpop.f32.mrb[2].mxu1  ;;  %vm2232_vm4 = vcmp.lt.s32.totalorder %v8540_v9, %v2104_v38  ;;  %v10182_v50 = vsel %vm1947_vm5, 1.0, %v13091_v8 }
 0x23c   : > { %13133 = vst [vmem:[#allocation46_spill] sm:$0xff] %v10167_v10  ;;  %v7066_v46 = vpop.f32.mrb[6].mxu0  ;;  %v1819_v0 = vadd.s32 %v10167_v10, %v1659_v37  ;;  %13135 = vst [vmem:[#allocation82_spill] sm:$0xff] %v10182_v50  ;;  %v1786_v1 = vand.u32 7, %v13136_v31  ;;  %v13137_v53 = vsel %vm9972_vm12, %v9862_v7, 0.0  ;;  %v2958_v43 = vpop.f32.mrb[3].mxu1  ;;  %4319 = vadd.xlane.f32.xlu0 %v4188_v29  ;;  %vm2246_vm11 = vcmp.lt.s32.totalorder %v8540_v9, %v2118_v33 }
 0x23d   : > { %v4204_v48 = vmul.f32 %v7092_v59, %v13137_v53  ;;  %v2785_v61 = vpop.f32.mrb[7].mxu0  ;;  %vm10191_vm7 = vmand %vm1976_vm2, %vm2232_vm4  ;;  %v1833_v37 = vadd.s32 %v10068_v28, %v1673_v52  ;;  %v1658_v38 = vsub.s32 %v9782_v24, %v8515_v2  ;;  %vm13140_vm14 = vnez %v13103_v16 }
 0x23e   : > { %v13141_v42 = vsel %vm13140_vm14, %v9887_v13, 0.0  ;;  %v13142_v29 = vsel %vm10051_vm0, %v10020_v23, 0.0  ;;  %v10209_v31 = vmul.f32 %v2785_v61, %v2486_v57  ;;  %v2488_v33 = vsel %vm10191_vm7, %v10145_v21, 0.0  ;;  %vm10216_vm12 = vmand %vm1990_vm13, %vm2246_vm11 }
 0x23f   : > { %v4203_v59 = vmul.f32 %v2958_v43, %v13141_v42  ;;  %v10207_v26 = vmul.f32 %v7066_v46, %v13142_v29  ;;  %4351 = vadd.xlane.f32.xlu1 %v4204_v48  ;;  %v2502_v14 = vsel %vm10216_vm12, %v10038_v63, 0.0  ;;  %vm1979_vm0 = vcmp.ge.s32.totalorder %v8540_v9, %v1819_v0  ;;  %v7095_v16 = vpop.f32.mrb[4].mxu1  ;;  %v13150_v29 = vld [vmem:[#allocation51_spill] sm:$0xff] }
 0x240   : > { %v2107_v43 = vadd.s32 %v1819_v0, %v13046_v11  ;;  %v2121_v61 = vadd.s32 %v1833_v37, %v13060_v25  ;;  %vm1993_vm3 = vcmp.ge.s32.totalorder %v8540_v9, %v1833_v37  ;;  %v10228_v62 = vmul.u32 %v1786_v1, %v8488_v39  ;;  %v2968_v53 = vpop.f32.mrb[5].mxu1  ;;  %4317 = vadd.xlane.f32.xlu0 %v4187_v4 }
 0x241   : > { %vm1946_vm10 = vcmp.eq.s32.totalorder %v8488_v39, 1  ;;  %v1672_v57 = vsub.s32 %v9830_v55, %v8498_v6  ;;  %v13146_v46 = vsel %vm10042_vm8, %v9950_v44, 0.0  ;;  %v1661_v1 = vsub.s32 %v9782_v24, %v13045_v54 }
 0x242   : > { %13145 = vst [vmem:[#allocation45_spill] sm:$0xff] %v10228_v62  ;;  %v4206_v32 = vmul.f32 %v7095_v16, %v13146_v46  ;;  %vm2235_vm9 = vcmp.lt.s32.totalorder %v8540_v9, %v2107_v43  ;;  %vm2249_vm1 = vcmp.lt.s32.totalorder %v8540_v9, %v2121_v61  ;;  %v1818_v48 = vadd.s32 %v10228_v62, %v1658_v38 }
 0x243   : > { %vm10241_vm5 = vmand %vm1979_vm0, %vm2235_vm9  ;;  %v10247_v35 = vsel %vm1946_vm10, 1.0, %v13091_v8  ;;  %v1832_v42 = vadd.s32 %v10118_v27, %v1672_v57  ;;  %v1789_v4 = vand.u32 7, %v13150_v29  ;;  %v13151_v52 = vsel %vm10094_vm6, %v9968_v18, 0.0  ;;  %v7069_v61 = vpop.f32.mrb[8].mxu0  ;;  %4349 = vadd.xlane.f32.xlu1 %v4203_v59 }
 0x244   : > { %13149 = vst [vmem:[#allocation83_spill] sm:$0xff] %v10247_v35  ;;  %v4205_v43 = vmul.f32 %v2968_v53, %v13151_v52  ;;  %v2491_v16 = vsel %vm10241_vm5, %v10182_v50, 0.0  ;;  %vm10260_vm8 = vmand %vm1993_vm3, %vm2249_vm1  ;;  %vm1949_vm2 = vcmp.eq.s32.totalorder %v13049_v47, 1  ;;  %v1675_v19 = vsub.s32 %v9830_v55, %v13054_v60  ;;  %v2795_v46 = vpop.f32.mrb[9].mxu0  ;;  %4355 = vadd.xlane.f32.xlu0 %v4206_v32 }
 0x245   : > { %v10267_v57 = vmul.f32 %v7069_v61, %v2489_v15  ;;  %vm1978_vm6 = vcmp.ge.s32.totalorder %v8540_v9, %v1818_v48  ;;  %v2106_v59 = vadd.s32 %v1818_v48, %v8488_v39  ;;  %v1660_v53 = vsub.s32 %v9782_v24, %v8529_v41  ;;  %v7098_v37 = vpop.f32.mrb[6].mxu1 }
 0x246   : > { %v2505_v0 = vsel %vm10260_vm8, %v10086_v30, 0.0  ;;  %vm1992_vm13 = vcmp.ge.s32.totalorder %v8540_v9, %v1832_v42  ;;  %v2120_v29 = vadd.s32 %v1832_v42, %v8467_v12  ;;  %v10279_v15 = vmul.u32 %v1789_v4, %v13049_v47  ;;  %v2978_v27 = vpop.f32.mrb[7].mxu1  ;;  %v13159_v4 = vld [vmem:[#allocation49_spill] sm:$0xff] }
 0x247   : > { %v13155_v52 = vsel %vm10131_vm15, %v10020_v23, 0.0  ;;  %v10285_v60 = vmul.f32 %v2795_v46, %v2488_v33  ;;  %vm2234_vm4 = vcmp.lt.s32.totalorder %v8540_v9, %v2106_v59  ;;  %v1835_v38 = vadd.s32 %v10167_v10, %v1675_v19  ;;  %4323 = vadd.xlane.f32.xlu1 %v10154_v49 }
 0x248   : > { %13154 = vst [vmem:[#allocation51_spill] sm:$0xff] %v10279_v15  ;;  %v4208_v61 = vmul.f32 %v7098_v37, %v13155_v52  ;;  %vm10292_vm7 = vmand %vm1978_vm6, %vm2234_vm4  ;;  %vm2248_vm11 = vcmp.lt.s32.totalorder %v8540_v9, %v2120_v29  ;;  %v1821_v36 = vadd.s32 %v10279_v15, %v1661_v1  ;;  %v10301_v33 = vsel %vm1949_vm2, 1.0, %v13091_v8  ;;  %4353 = vadd.xlane.f32.xlu0 %v4205_v43 }
 0x249   : > { %13158 = vst [vmem:[#allocation84_spill] sm:$0xff] %v10301_v33  ;;  %v1788_v46 = vand.u32 7, %v13159_v4  ;;  %v10304_v19 = vmul.f32 %v2978_v27, %v2502_v14  ;;  %vm10308_vm15 = vmand %vm1992_vm13, %vm2248_vm11  ;;  %vm1995_vm14 = vcmp.ge.s32.totalorder %v8540_v9, %v1835_v38  ;;  %v2123_v48 = vadd.s32 %v1835_v38, %v13046_v11  ;;  %v13166_v38 = vld [vmem:[#allocation56_spill] sm:$0xff] }
 0x24a   : > { %vm1948_vm12 = vcmp.eq.s32.totalorder %v13047_v51, 1  ;;  %v2490_v1 = vsel %vm10292_vm7, %v10247_v35, 0.0  ;;  %vm1981_vm0 = vcmp.ge.s32.totalorder %v8540_v9, %v1821_v36  ;;  %v2109_v27 = vadd.s32 %v1821_v36, %v13049_v47 }
 0x24b   : > { %v10321_v14 = vmul.u32 %v1788_v46, %v13047_v51  ;;  %v2504_v42 = vsel %vm10308_vm15, %v10145_v21, 0.0  ;;  %vm2251_vm3 = vcmp.lt.s32.totalorder %v8540_v9, %v2123_v48  ;;  %v10328_v59 = vsel %vm1948_vm12, 1.0, %v13091_v8  ;;  %v7072_v29 = vpop.f32.mrb[10].mxu0  ;;  %4321 = vadd.xlane.f32.xlu1 %v10173_v58  ;;  %v13171_v48 = vld [vmem:[#allocation52_spill] sm:$0xff] }
 0x24c   : > { %13163 = vst [vmem:[#allocation85_spill] sm:$0xff] %v10328_v59  ;;  %v1674_v37 = vsub.s32 %v9830_v55, %v8515_v2  ;;  %vm2237_vm10 = vcmp.lt.s32.totalorder %v8540_v9, %v2109_v27  ;;  %vm10333_vm9 = vmand %vm1995_vm14, %vm2251_vm3  ;;  %v1791_v32 = vand.u32 7, %v13166_v38  ;;  %vm1951_vm1 = vcmp.eq.s32.totalorder %v13058_v56, 1  ;;  %v7101_v46 = vpop.f32.mrb[8].mxu1  ;;  %v2805_v49 = vpop.f32.mrb[11].mxu0  ;;  %4327 = vadd.xlane.f32.xlu0 %v10207_v26 }
 0x24d   : > { %13162 = vst [vmem:[#allocation49_spill] sm:$0xff] %v10321_v14  ;;  %v1820_v52 = vadd.s32 %v10321_v14, %v1660_v53  ;;  %v10341_v4 = vmul.f32 %v7072_v29, %v2491_v16  ;;  %vm10345_vm5 = vmand %vm1981_vm0, %vm2237_vm10  ;;  %v2507_v58 = vsel %vm10333_vm9, %v10182_v50, 0.0  ;;  %v1663_v27 = vsub.s32 %v9782_v24, %v8759_v3  ;;  %v2988_v29 = vpop.f32.mrb[9].mxu1 }
 0x24e   : > { %v1834_v53 = vadd.s32 %v10228_v62, %v1674_v37  ;;  %v4210_v38 = vmul.f32 %v7101_v46, %v2505_v0  ;;  %v10355_v16 = vmul.f32 %v2805_v49, %v2490_v1  ;;  %v2493_v36 = vsel %vm10345_vm5, %v10301_v33, 0.0 }
 0x24f   : > { %v10361_v11 = vsel %vm1951_vm1, 1.0, %v13091_v8  ;;  %v10364_v43 = vmul.f32 %v2988_v29, %v2504_v42  ;;  %vm1980_vm8 = vcmp.ge.s32.totalorder %v8540_v9, %v1820_v52  ;;  %v2108_v37 = vadd.s32 %v1820_v52, %v13047_v51  ;;  %v7075_v1 = vpop.f32.mrb[12].mxu0  ;;  %4359 = vadd.xlane.f32.xlu1 %v4208_v61 }
 0x250   : > { %13169 = vst [vmem:[#allocation56_spill] sm:$0xff] %v10361_v11  ;;  %v2122_v0 = vadd.s32 %v1834_v53, %v8488_v39  ;;  %vm1994_vm2 = vcmp.ge.s32.totalorder %v8540_v9, %v1834_v53  ;;  %v10371_v46 = vmul.u32 %v1791_v32, %v13058_v56  ;;  %v1677_v49 = vsub.s32 %v9830_v55, %v13045_v54  ;;  %v2815_v42 = vpop.f32.mrb[13].mxu0 }
 0x251   : > { %v1790_v26 = vand.u32 7, %v13171_v48  ;;  %vm2236_vm6 = vcmp.lt.s32.totalorder %v8540_v9, %v2108_v37  ;;  %v1662_v29 = vsub.s32 %v9782_v24, %v13055_v20  ;;  %vm1950_vm4 = vcmp.eq.s32.totalorder %v13062_v17, 1  ;;  %v7104_v32 = vpop.f32.mrb[10].mxu1  ;;  %4325 = vadd.xlane.f32.xlu0 %v10209_v31 }
 0x252   : > { %13170 = vst [vmem:[#allocation86_spill] sm:$0xff] %v10371_v46  ;;  %vm2250_vm13 = vcmp.lt.s32.totalorder %v8540_v9, %v2122_v0  ;;  %v10381_v50 = vmul.f32 %v7075_v1, %v2493_v36  ;;  %vm2364_vm7 = vmand %vm1980_vm8, %vm2236_vm6  ;;  %v1823_v61 = vadd.s32 %v10371_v46, %v1663_v27  ;;  %v1837_v48 = vadd.s32 %v10279_v15, %v1677_v49  ;;  %v2998_v36 = vpop.f32.mrb[11].mxu1 }
 0x253   : > { %v10388_v37 = vmul.u32 %v1790_v26, %v13062_v17  ;;  %v2492_v0 = vsel %vm2364_vm7, %v10328_v59, 0.0  ;;  %vm10394_vm11 = vmand %vm1994_vm2, %vm2250_vm13  ;;  %v10399_v52 = vsel %vm1950_vm4, 1.0, %v13091_v8  ;;  %v1676_v27 = vsub.s32 %v9830_v55, %v8529_v41  ;;  %4357 = vadd.xlane.f32.xlu1 %v10304_v19  ;;  %v10412_v26 = vpop.permute.xlu1 %1631 }
 0x254   : > { %13175 = vst [vmem:[#allocation87_spill] sm:$0xff] %v10399_v52  ;;  %v1679_v1 = vsub.s32 %v9830_v55, %v8759_v3  ;;  %v10405_v49 = vmul.f32 %v7104_v32, %v2507_v58  ;;  %v10407_v31 = vmul.f32 %v2815_v42, %v2492_v0  ;;  %vm1983_vm15 = vcmp.ge.s32.totalorder %v8540_v9, %v1823_v61 }
 0x255   : > { %13172 = vst [vmem:[#allocation52_spill] sm:$0xff] %v10388_v37  ;;  %v2111_v53 = vadd.s32 %v1823_v61, %v13058_v56  ;;  %v2506_v8 = vsel %vm10394_vm11, %v10247_v35, 0.0  ;;  %vm1997_vm14 = vcmp.ge.s32.totalorder %v8540_v9, %v1837_v48  ;;  %v2125_v3 = vadd.s32 %v1837_v48, %v13049_v47  ;;  %4363 = vadd.xlane.f32.xlu0 %v4210_v38 }
 0x256   : > { %v1822_v58 = vadd.s32 %v10388_v37, %v1662_v29  ;;  %v1836_v42 = vadd.s32 %v10321_v14, %v1676_v27  ;;  %v1839_v32 = vadd.s32 %v10371_v46, %v1679_v1  ;;  %v1681_v19 = vsub.s32 %v10412_v26, %v8384_v22  ;;  %v13184_v46 = vld [vmem:[#allocation75_spill] sm:$0xff]  ;;  %v13204_v14 = vld [vmem:[#allocation54_spill] sm:$0xff] }
 0x257   : > { %vm2239_vm12 = vcmp.lt.s32.totalorder %v8540_v9, %v2111_v53  ;;  %vm2253_vm3 = vcmp.lt.s32.totalorder %v8540_v9, %v2125_v3  ;;  %v1678_v29 = vsub.s32 %v9830_v55, %v13055_v20  ;;  %v10430_v0 = vmul.f32 %v2998_v36, %v2506_v8  ;;  %v7078_v27 = vpop.f32.mrb[14].mxu0  ;;  %4331 = vadd.xlane.f32.xlu1 %v10267_v57 }
 0x258   : > { %vm2367_vm0 = vmand %vm1983_vm15, %vm2239_vm12  ;;  %vm1982_vm10 = vcmp.ge.s32.totalorder %v8540_v9, %v1822_v58  ;;  %v2110_v61 = vadd.s32 %v1822_v58, %v13062_v17  ;;  %vm1996_vm1 = vcmp.ge.s32.totalorder %v8540_v9, %v1836_v42  ;;  %v2124_v3 = vadd.s32 %v1836_v42, %v13047_v51  ;;  %v7107_v55 = vpop.f32.mrb[12].mxu1  ;;  %v2825_v36 = vpop.f32.mrb[15].mxu0  ;;  %v13182_v42 = vld [vmem:[#allocation30_spill] sm:$0xff] }
 0x259   : > { %v2495_v24 = vsel %vm2367_vm0, %v10361_v11, 0.0  ;;  %vm10435_vm9 = vmand %vm1997_vm14, %vm2253_vm3  ;;  %vm1999_vm8 = vcmp.ge.s32.totalorder %v8540_v9, %v1839_v32  ;;  %v2127_v48 = vadd.s32 %v1839_v32, %v13058_v56  ;;  %v3008_v57 = vpop.f32.mrb[13].mxu1  ;;  %4361 = vadd.xlane.f32.xlu0 %v10364_v43  ;;  %v1680_v58 = vsub.s32 %v10412_v26, %v13051_v5 }
 0x25a   : > { %v10442_v38 = vmul.f32 %v7078_v27, %v2495_v24  ;;  %vm2238_vm5 = vcmp.lt.s32.totalorder %v8540_v9, %v2110_v61  ;;  %v2509_v53 = vsel %vm10435_vm9, %v10301_v33, 0.0  ;;  %vm2252_vm6 = vcmp.lt.s32.totalorder %v8540_v9, %v2124_v3 }
 0x25b   : > { %vm10452_vm2 = vmand %vm1982_vm10, %vm2238_vm5  ;;  %v1841_v61 = vadd.s32 %v9806_v34, %v1681_v19  ;;  %v1838_v24 = vadd.s32 %v10388_v37, %v1678_v29  ;;  %v10460_v27 = vmul.f32 %v7107_v55, %v2509_v53  ;;  %vm2255_vm4 = vcmp.lt.s32.totalorder %v8540_v9, %v2127_v48  ;;  %4329 = vadd.xlane.f32.xlu1 %v10285_v60  ;;  %v10482_v55 = vpop.permute.xlu0 %1634  ;;  %v13183_v60 = vld [vmem:[#allocation73_spill] sm:$0xff] }
 0x25c   : > { %vm2380_vm13 = vmand %vm1996_vm1, %vm2252_vm6  ;;  %v1683_v1 = vsub.s32 %v10412_v26, %v8415_v40  ;;  %v2494_v19 = vsel %vm10452_vm2, %v10399_v52, 0.0  ;;  %v7110_v8 = vpop.f32.mrb[14].mxu1  ;;  %v1840_v20 = vadd.s32 %v13183_v60, %v1680_v58 }
 0x25d   : > { %v2508_v29 = vsel %vm2380_vm13, %v10328_v59, 0.0  ;;  %vm10475_vm7 = vmand %vm1999_vm8, %vm2255_vm4  ;;  %vm2001_vm11 = vcmp.ge.s32.totalorder %v8540_v9, %v1841_v61  ;;  %v2129_v3 = vadd.s32 %v1841_v61, %v13182_v42  ;;  %v10484_v48 = vmul.f32 %v2825_v36, %v2494_v19  ;;  %v7121_v59 = vpop.f32.mrb[16].mxu0  ;;  %v3018_v56 = vpop.f32.mrb[15].mxu1  ;;  %4367 = vadd.xlane.f32.xlu0 %v10405_v49  ;;  %v13188_v61 = vld [vmem:[#allocation28_spill] sm:$0xff]  ;;  %v13192_v49 = vld [vmem:[#allocation74_spill] sm:$0xff] }
 0x25e   : > { %v10486_v53 = vmul.f32 %v3008_v57, %v2508_v29  ;;  %vm1998_vm15 = vcmp.ge.s32.totalorder %v8540_v9, %v1838_v24  ;;  %v2126_v32 = vadd.s32 %v1838_v24, %v13062_v17  ;;  %v2511_v37 = vsel %vm10475_vm7, %v10361_v11, 0.0  ;;  %v3141_v57 = vpop.f32.mrb[17].mxu0  ;;  %v13185_v29 = vld [vmem:[#allocation38_spill] sm:$0xff]  ;;  %v13190_v11 = vld [vmem:[#allocation65_spill] sm:$0xff] }
 0x25f   : > { %vm2257_vm14 = vcmp.lt.s32.totalorder %v8540_v9, %v2129_v3  ;;  %v1843_v36 = vadd.s32 %v13184_v46, %v1683_v1  ;;  %v1697_v19 = vsub.s32 %v10482_v55, %v8384_v22  ;;  %v1682_v43 = vsub.s32 %v10412_v26, %v13185_v29  ;;  %4335 = vadd.xlane.f32.xlu1 %v10341_v4  ;;  %v13191_v4 = vld [vmem:[#allocation47_spill] sm:$0xff] }
 0x260   : > { %vm2385_vm12 = vmand %vm2001_vm11, %vm2257_vm14  ;;  %vm2254_vm0 = vcmp.lt.s32.totalorder %v8540_v9, %v2126_v32  ;;  %v1696_v3 = vsub.s32 %v10482_v55, %v13051_v5  ;;  %v10506_v58 = vmul.f32 %v7110_v8, %v2511_v37  ;;  %vm2000_vm10 = vcmp.ge.s32.totalorder %v8540_v9, %v1840_v20  ;;  %v13189_v37 = vld [vmem:[#allocation36_spill] sm:$0xff] }
 0x261   : > { %v2513_v1 = vsel %vm2385_vm12, %v9835_v45, 0.0  ;;  %vm10511_vm3 = vmand %vm1998_vm15, %vm2254_vm0  ;;  %v2128_v32 = vadd.s32 %v1840_v20, %v13188_v61  ;;  %vm2003_vm9 = vcmp.ge.s32.totalorder %v8540_v9, %v1843_v36  ;;  %v2131_v8 = vadd.s32 %v1843_v36, %v13189_v37  ;;  %4365 = vadd.xlane.f32.xlu0 %v10430_v0 }
 0x262   : > { %v10518_v22 = vmul.f32 %v7121_v59, %v2513_v1  ;;  %v1857_v5 = vadd.s32 %v9806_v34, %v1697_v19  ;;  %v2510_v24 = vsel %vm10511_vm3, %v10399_v52, 0.0  ;;  %v1842_v17 = vadd.s32 %v13190_v11, %v1682_v43 }
 0x263   : > { %vm2256_vm1 = vcmp.lt.s32.totalorder %v8540_v9, %v2128_v32  ;;  %v1856_v20 = vadd.s32 %v13183_v60, %v1696_v3  ;;  %vm2259_vm8 = vcmp.lt.s32.totalorder %v8540_v9, %v2131_v8  ;;  %v1685_v19 = vsub.s32 %v10412_v26, %v13191_v4  ;;  %v7124_v0 = vpop.f32.mrb[18].mxu0  ;;  %v13195_v3 = vld [vmem:[#allocation32_spill] sm:$0xff]  ;;  %4333 = vadd.xlane.f32.xlu1 %v10355_v16 }
 0x264   : > { %vm2384_vm5 = vmand %vm2000_vm10, %vm2256_vm1  ;;  %vm2017_vm2 = vcmp.ge.s32.totalorder %v8540_v9, %v1857_v5  ;;  %v2145_v59 = vadd.s32 %v1857_v5, %v13182_v42  ;;  %v10535_v1 = vmul.f32 %v3018_v56, %v2510_v24  ;;  %vm2002_vm13 = vcmp.ge.s32.totalorder %v8540_v9, %v1842_v17  ;;  %v7153_v56 = vpop.f32.mrb[16].mxu1  ;;  %v3151_v24 = vpop.f32.mrb[19].mxu0  ;;  %v13199_v5 = vld [vmem:[#allocation44_spill] sm:$0xff] }
 0x265   : > { %v2512_v32 = vsel %vm2384_vm5, %v13192_v49, 0.0  ;;  %vm10540_vm6 = vmand %vm2003_vm9, %vm2259_vm8  ;;  %v2130_v8 = vadd.s32 %v1842_v17, %v13195_v3  ;;  %vm2016_vm7 = vcmp.ge.s32.totalorder %v8540_v9, %v1856_v20  ;;  %v2144_v36 = vadd.s32 %v1856_v20, %v13188_v61  ;;  %v3334_v16 = vpop.f32.mrb[17].mxu1  ;;  %4371 = vadd.xlane.f32.xlu0 %v10460_v27  ;;  %v13202_v17 = vld [vmem:[#allocation40_spill] sm:$0xff] }
 0x266   : > { %v10547_v42 = vmul.f32 %v3141_v57, %v2512_v32  ;;  %vm2273_vm4 = vcmp.lt.s32.totalorder %v8540_v9, %v2145_v59  ;;  %v2515_v60 = vsel %vm10540_vm6, %v9862_v7, 0.0  ;;  %v13198_v57 = vld [vmem:[#allocation25_spill] sm:$0xff]  ;;  %v1699_v32 = vsub.s32 %v10482_v55, %v8415_v40  ;;  %v13209_v27 = vld [vmem:[#allocation48_spill] sm:$0xff] }
 0x267   : > { %vm10557_vm11 = vmand %vm2017_vm2, %vm2273_vm4  ;;  %vm2258_vm15 = vcmp.lt.s32.totalorder %v8540_v9, %v2130_v8  ;;  %v1845_v59 = vadd.s32 %v13198_v57, %v1685_v19  ;;  %v10566_v61 = vmul.f32 %v7124_v0, %v2515_v60  ;;  %vm2272_vm12 = vcmp.lt.s32.totalorder %v8540_v9, %v2144_v36  ;;  %v7127_v0 = vpop.f32.mrb[20].mxu0  ;;  %4339 = vadd.xlane.f32.xlu1 %v10381_v50 }
 0x268   : > { %vm2386_vm14 = vmand %vm2002_vm13, %vm2258_vm15  ;;  %v1684_v43 = vsub.s32 %v10412_v26, %v13199_v5  ;;  %v1698_v8 = vsub.s32 %v10482_v55, %v13185_v29  ;;  %v2529_v19 = vsel %vm10557_vm11, %v9835_v45, 0.0  ;;  %v1859_v34 = vadd.s32 %v13184_v46, %v1699_v32  ;;  %v13203_v45 = vld [vmem:[#allocation27_spill] sm:$0xff]  ;;  %v3161_v20 = vpop.f32.mrb[21].mxu0  ;;  %v13207_v32 = vld [vmem:[#allocation37_spill] sm:$0xff] }
 0x269   : > { %v2514_v40 = vsel %vm2386_vm14, %v9887_v13, 0.0  ;;  %vm10581_vm0 = vmand %vm2016_vm7, %vm2272_vm12  ;;  %vm2005_vm3 = vcmp.ge.s32.totalorder %v8540_v9, %v1845_v59  ;;  %v2133_v60 = vadd.s32 %v1845_v59, %v13202_v17  ;;  %v10588_v36 = vmul.f32 %v7153_v56, %v2529_v19  ;;  %v7156_v51 = vpop.f32.mrb[18].mxu1  ;;  %4369 = vadd.xlane.f32.xlu0 %v10486_v53  ;;  %v13208_v53 = vld [vmem:[#allocation34_spill] sm:$0xff] }
 0x26a   : > { %v10590_v29 = vmul.f32 %v3151_v24, %v2514_v40  ;;  %v1844_v52 = vadd.s32 %v13203_v45, %v1684_v43  ;;  %v2528_v33 = vsel %vm10581_vm0, %v13192_v49, 0.0  ;;  %v1858_v35 = vadd.s32 %v13190_v11, %v1698_v8  ;;  %v3344_v8 = vpop.f32.mrb[19].mxu1 }
 0x26b   : > { %vm2261_vm10 = vcmp.lt.s32.totalorder %v8540_v9, %v2133_v60  ;;  %v1687_v50 = vsub.s32 %v10412_v26, %v13204_v14  ;;  %v10602_v40 = vmul.f32 %v3334_v16, %v2528_v33  ;;  %vm2019_vm1 = vcmp.ge.s32.totalorder %v8540_v9, %v1859_v34  ;;  %4337 = vadd.xlane.f32.xlu1 %v10407_v31 }
 0x26c   : > { %vm10606_vm9 = vmand %vm2005_vm3, %vm2261_vm10  ;;  %v2147_v24 = vadd.s32 %v1859_v34, %v13189_v37  ;;  %v2132_v43 = vadd.s32 %v1844_v52, %v13207_v32  ;;  %vm2004_vm5 = vcmp.ge.s32.totalorder %v8540_v9, %v1844_v52  ;;  %v2146_v33 = vadd.s32 %v1858_v35, %v13195_v3  ;;  %v13210_v34 = vld [vmem:[#allocation50_spill] sm:$0xff] }
 0x26d   : > { %v2517_v19 = vsel %vm10606_vm9, %v9950_v44, 0.0  ;;  %v1847_v16 = vadd.s32 %v13208_v53, %v1687_v50  ;;  %vm2018_vm6 = vcmp.ge.s32.totalorder %v8540_v9, %v1858_v35  ;;  %v1701_v59 = vsub.s32 %v10482_v55, %v13191_v4  ;;  %4375 = vadd.xlane.f32.xlu0 %v10506_v58  ;;  %v13214_v58 = vld [vmem:[#allocation78_spill] sm:$0xff] }
 0x26e   : > { %vm2275_vm8 = vcmp.lt.s32.totalorder %v8540_v9, %v2147_v24  ;;  %vm2260_vm2 = vcmp.lt.s32.totalorder %v8540_v9, %v2132_v43  ;;  %vm2274_vm4 = vcmp.lt.s32.totalorder %v8540_v9, %v2146_v33  ;;  %v1686_v50 = vsub.s32 %v10412_v26, %v13210_v34  ;;  %v13213_v33 = vld [vmem:[#allocation61_spill] sm:$0xff] }
 0x26f   : > { %vm2403_vm13 = vmand %vm2019_vm1, %vm2275_vm8  ;;  %vm2007_vm7 = vcmp.ge.s32.totalorder %v8540_v9, %v1847_v16  ;;  %v2135_v60 = vadd.s32 %v1847_v16, %v13209_v27  ;;  %v1861_v24 = vadd.s32 %v13198_v57, %v1701_v59  ;;  %v1700_v43 = vsub.s32 %v10482_v55, %v13199_v5  ;;  %v7130_v52 = vpop.f32.mrb[22].mxu0  ;;  %4343 = vadd.xlane.f32.xlu1 %v10442_v38 }
 0x270   : > { %v2531_v31 = vsel %vm2403_vm13, %v9862_v7, 0.0  ;;  %vm10634_vm11 = vmand %vm2004_vm5, %vm2260_vm2  ;;  %v1689_v3 = vsub.s32 %v10412_v26, %v13213_v33  ;;  %v10643_v49 = vmul.f32 %v7127_v0, %v2517_v19  ;;  %v1846_v7 = vadd.s32 %v13214_v58, %v1686_v50  ;;  %v7159_v0 = vpop.f32.mrb[20].mxu1  ;;  %v3171_v19 = vpop.f32.mrb[23].mxu0  ;;  %v13217_v50 = vld [vmem:[#allocation42_spill] sm:$0xff] }
 0x271   : > { %v10645_v11 = vmul.f32 %v7156_v51, %v2531_v31  ;;  %vm2402_vm15 = vmand %vm2018_vm6, %vm2274_vm4  ;;  %vm2263_vm14 = vcmp.lt.s32.totalorder %v8540_v9, %v2135_v60  ;;  %v2516_v59 = vsel %vm10634_vm11, %v9968_v18, 0.0  ;;  %vm2021_vm0 = vcmp.ge.s32.totalorder %v8540_v9, %v1861_v24  ;;  %v3354_v56 = vpop.f32.mrb[21].mxu1  ;;  %4373 = vadd.xlane.f32.xlu0 %v10535_v1 }
 0x272   : > { %v2530_v5 = vsel %vm2402_vm15, %v9887_v13, 0.0  ;;  %vm10658_vm12 = vmand %vm2007_vm7, %vm2263_vm14  ;;  %v2149_v35 = vadd.s32 %v1861_v24, %v13202_v17  ;;  %v10664_v60 = vmul.f32 %v3161_v20, %v2516_v59  ;;  %vm2006_vm3 = vcmp.ge.s32.totalorder %v8540_v9, %v1846_v7 }
 0x273   : > { %v10666_v38 = vmul.f32 %v3344_v8, %v2530_v5  ;;  %v2134_v31 = vadd.s32 %v1846_v7, %v13217_v50  ;;  %v2519_v16 = vsel %vm10658_vm12, %v10020_v23, 0.0  ;;  %v1860_v24 = vadd.s32 %v13203_v45, %v1700_v43  ;;  %v7133_v5 = vpop.f32.mrb[24].mxu0  ;;  %4341 = vadd.xlane.f32.xlu1 %v10484_v48 }
 0x274   : > { %vm2277_vm10 = vcmp.lt.s32.totalorder %v8540_v9, %v2149_v35  ;;  %v1849_v20 = vadd.s32 %v10068_v28, %v1689_v3  ;;  %v1703_v8 = vsub.s32 %v10482_v55, %v13204_v14  ;;  %v1688_v1 = vsub.s32 %v10412_v26, %v8498_v6 }
 0x275   : > { %vm2405_vm9 = vmand %vm2021_vm0, %vm2277_vm10  ;;  %vm2262_vm1 = vcmp.lt.s32.totalorder %v8540_v9, %v2134_v31  ;;  %v1702_v59 = vsub.s32 %v10482_v55, %v13210_v34  ;;  %v10685_v51 = vmul.f32 %v7130_v52, %v2519_v16  ;;  %vm2020_vm8 = vcmp.ge.s32.totalorder %v8540_v9, %v1860_v24  ;;  %v3181_v31 = vpop.f32.mrb[25].mxu0  ;;  %v7162_v16 = vpop.f32.mrb[22].mxu1  ;;  %4377 = vadd.xlane.f32.xlu0 %v10547_v42  ;;  %v13220_v34 = vld [vmem:[#allocation39_spill] sm:$0xff] }
 0x276   : > { %v2533_v43 = vsel %vm2405_vm9, %v9950_v44, 0.0  ;;  %vm10690_vm5 = vmand %vm2006_vm3, %vm2262_vm1  ;;  %v2148_v35 = vadd.s32 %v1860_v24, %v13207_v32  ;;  %vm2009_vm2 = vcmp.ge.s32.totalorder %v8540_v9, %v1849_v20  ;;  %v2137_v48 = vadd.s32 %v1849_v20, %v13060_v25 }
 0x277   : > { %v10696_v14 = vmul.f32 %v7159_v0, %v2533_v43  ;;  %v1863_v52 = vadd.s32 %v13208_v53, %v1703_v8  ;;  %v2518_v7 = vsel %vm10690_vm5, %v10038_v63, 0.0  ;;  %v1848_v24 = vadd.s32 %v13220_v34, %v1688_v1  ;;  %v3364_v43 = vpop.f32.mrb[23].mxu1  ;;  %v13221_v53 = vld [vmem:[#allocation66_spill] sm:$0xff]  ;;  %4379 = vadd.xlane.f32.xlu1 %v10518_v22 }
 0x278   : > { %vm2276_vm6 = vcmp.lt.s32.totalorder %v8540_v9, %v2148_v35  ;;  %v1862_v0 = vadd.s32 %v13214_v58, %v1702_v59  ;;  %vm2265_vm4 = vcmp.lt.s32.totalorder %v8540_v9, %v2137_v48  ;;  %v1691_v42 = vsub.s32 %v10412_v26, %v13221_v53 }
 0x279   : > { %vm2404_vm13 = vmand %vm2020_vm8, %vm2276_vm6  ;;  %vm2023_vm7 = vcmp.ge.s32.totalorder %v8540_v9, %v1863_v52  ;;  %v2151_v8 = vadd.s32 %v1863_v52, %v13209_v27  ;;  %v10714_v3 = vmul.f32 %v3171_v19, %v2518_v7  ;;  %vm2008_vm15 = vcmp.ge.s32.totalorder %v8540_v9, %v1848_v24  ;;  %4411 = vadd.xlane.f32.xlu0 %v10588_v36 }
 0x27a   : > { %v2532_v35 = vsel %vm2404_vm13, %v9968_v18, 0.0  ;;  %vm2393_vm11 = vmand %vm2009_vm2, %vm2265_vm4  ;;  %v2136_v1 = vadd.s32 %v1848_v24, %v8467_v12  ;;  %vm2022_vm12 = vcmp.ge.s32.totalorder %v8540_v9, %v1862_v0  ;;  %v2150_v48 = vadd.s32 %v1862_v0, %v13217_v50 }
 0x27b   : > { %v10721_v59 = vmul.f32 %v3354_v56, %v2532_v35  ;;  %vm2279_vm14 = vcmp.lt.s32.totalorder %v8540_v9, %v2151_v8  ;;  %v2521_v22 = vsel %vm2393_vm11, %v10086_v30, 0.0  ;;  %v1851_v56 = vadd.s32 %v10167_v10, %v1691_v42  ;;  %v7136_v36 = vpop.f32.mrb[26].mxu0  ;;  %4409 = vadd.xlane.f32.xlu1 %v10602_v40 }
 0x27c   : > { %vm10730_vm0 = vmand %vm2023_vm7, %vm2279_vm14  ;;  %vm2264_vm3 = vcmp.lt.s32.totalorder %v8540_v9, %v2136_v1  ;;  %v1705_v20 = vsub.s32 %v10482_v55, %v13213_v33  ;;  %v10738_v7 = vmul.f32 %v7133_v5, %v2521_v22  ;;  %vm2278_vm9 = vcmp.lt.s32.totalorder %v8540_v9, %v2150_v48  ;;  %v13224_v5 = vld [vmem:[#allocation58_spill] sm:$0xff]  ;;  %v7165_v1 = vpop.f32.mrb[24].mxu1  ;;  %v3191_v48 = vpop.f32.mrb[27].mxu0 }
 0x27d   : > { %vm2392_vm10 = vmand %vm2008_vm15, %vm2264_vm3  ;;  %v1690_v52 = vsub.s32 %v10412_v26, %v8515_v2  ;;  %v1704_v24 = vsub.s32 %v10482_v55, %v8498_v6  ;;  %v2535_v8 = vsel %vm10730_vm0, %v10020_v23, 0.0  ;;  %vm2011_vm5 = vcmp.ge.s32.totalorder %v8540_v9, %v1851_v56  ;;  %v3374_v23 = vpop.f32.mrb[25].mxu1  ;;  %4381 = vadd.xlane.f32.xlu0 %v10590_v29 }
 0x27e   : > { %v2520_v42 = vsel %vm2392_vm10, %v10145_v21, 0.0  ;;  %vm2406_vm1 = vmand %vm2022_vm12, %vm2278_vm9  ;;  %v2139_v35 = vadd.s32 %v1851_v56, %v13224_v5  ;;  %v10754_v22 = vmul.f32 %v7162_v16, %v2535_v8  ;;  %v1865_v40 = vadd.s32 %v10068_v28, %v1705_v20 }
 0x27f   : > { %v10756_v6 = vmul.f32 %v3181_v31, %v2520_v42  ;;  %v1850_v19 = vadd.s32 %v10228_v62, %v1690_v52  ;;  %v2534_v0 = vsel %vm2406_vm1, %v10038_v63, 0.0  ;;  %v1864_v50 = vadd.s32 %v13220_v34, %v1704_v24  ;;  %v7139_v52 = vpop.f32.mrb[28].mxu0  ;;  %4383 = vadd.xlane.f32.xlu1 %v10566_v61  ;;  %v13227_v24 = vld [vmem:[#allocation82_spill] sm:$0xff] }
 0x280   : > { %vm2267_vm8 = vcmp.lt.s32.totalorder %v8540_v9, %v2139_v35  ;;  %v1693_v33 = vsub.s32 %v10412_v26, %v13045_v54  ;;  %v10766_v16 = vmul.f32 %v3364_v43, %v2534_v0  ;;  %vm2025_vm6 = vcmp.ge.s32.totalorder %v8540_v9, %v1865_v40  ;;  %v10784_v42 = vpop.f32.mrb[29].mxu0 }
 0x281   : > { %vm10770_vm2 = vmand %vm2011_vm5, %vm2267_vm8  ;;  %v2153_v29 = vadd.s32 %v1865_v40, %v13060_v25  ;;  %v2138_v20 = vadd.s32 %v1850_v19, %v8488_v39  ;;  %vm2010_vm13 = vcmp.ge.s32.totalorder %v8540_v9, %v1850_v19  ;;  %v2152_v56 = vadd.s32 %v1864_v50, %v8467_v12  ;;  %v7168_v35 = vpop.f32.mrb[26].mxu1  ;;  %4415 = vadd.xlane.f32.xlu0 %v10645_v11  ;;  %v13231_v19 = vld [vmem:[#allocation49_spill] sm:$0xff]  ;;  %v13237_v11 = vld [vmem:[#allocation86_spill] sm:$0xff] }
 0x282   : > { %v2523_v43 = vsel %vm10770_vm2, %v13227_v24, 0.0  ;;  %v1853_v8 = vadd.s32 %v10279_v15, %v1693_v33  ;;  %vm2024_vm11 = vcmp.ge.s32.totalorder %v8540_v9, %v1864_v50  ;;  %v1707_v61 = vsub.s32 %v10482_v55, %v13221_v53  ;;  %v10799_v31 = vpop.f32.mrb[27].mxu1 }
 0x283   : > { %vm2281_vm4 = vcmp.lt.s32.totalorder %v8540_v9, %v2153_v29  ;;  %vm2266_vm7 = vcmp.lt.s32.totalorder %v8540_v9, %v2138_v20  ;;  %vm2280_vm14 = vcmp.lt.s32.totalorder %v8540_v9, %v2152_v56  ;;  %v1692_v0 = vsub.s32 %v10412_v26, %v8529_v41  ;;  %v13230_v56 = vld [vmem:[#allocation76_spill] sm:$0xff]  ;;  %4385 = vadd.xlane.f32.xlu1 %v10664_v60 }
 0x284   : > { %vm2409_vm15 = vmand %vm2025_vm6, %vm2281_vm4  ;;  %vm2013_vm12 = vcmp.ge.s32.totalorder %v8540_v9, %v1853_v8  ;;  %v2141_v33 = vadd.s32 %v1853_v8, %v13049_v47  ;;  %v1867_v40 = vadd.s32 %v10167_v10, %v1707_v61  ;;  %v1706_v20 = vsub.s32 %v10482_v55, %v8515_v2  ;;  %v13232_v61 = vld [vmem:[#allocation83_spill] sm:$0xff] }
 0x285   : > { %v2537_v29 = vsel %vm2409_vm15, %v10086_v30, 0.0  ;;  %vm10804_vm0 = vmand %vm2010_vm13, %vm2266_vm7  ;;  %v1695_v12 = vsub.s32 %v10412_v26, %v13230_v56  ;;  %v10814_v63 = vmul.f32 %v7136_v36, %v2523_v43  ;;  %v1852_v30 = vadd.s32 %v13231_v19, %v1692_v0  ;;  %4413 = vadd.xlane.f32.xlu0 %v10666_v38  ;;  %v13235_v43 = vld [vmem:[#allocation60_spill] sm:$0xff] }
 0x286   : > { %v10816_v34 = vmul.f32 %v7165_v1, %v2537_v29  ;;  %vm2408_vm3 = vmand %vm2024_vm11, %vm2280_vm14  ;;  %vm2269_vm10 = vcmp.lt.s32.totalorder %v8540_v9, %v2141_v33  ;;  %v2522_v2 = vsel %vm10804_vm0, %v13232_v61, 0.0  ;;  %vm2027_vm1 = vcmp.ge.s32.totalorder %v8540_v9, %v1867_v40  ;;  %v13236_v0 = vld [vmem:[#allocation84_spill] sm:$0xff] }
 0x287   : > { %v2536_v10 = vsel %vm2408_vm3, %v10145_v21, 0.0  ;;  %vm10828_vm9 = vmand %vm2013_vm12, %vm2269_vm10  ;;  %v2155_v50 = vadd.s32 %v1867_v40, %v13224_v5  ;;  %v10835_v36 = vmul.f32 %v3191_v48, %v2522_v2  ;;  %vm2012_vm5 = vcmp.ge.s32.totalorder %v8540_v9, %v1852_v30  ;;  %v7142_v21 = vpop.f32.mrb[30].mxu0  ;;  %4419 = vadd.xlane.f32.xlu1 %v10696_v14 }
 0x288   : > { %v10837_v1 = vmul.f32 %v3374_v23, %v2536_v10  ;;  %v2140_v33 = vadd.s32 %v1852_v30, %v13235_v43  ;;  %v2525_v8 = vsel %vm10828_vm9, %v13236_v0, 0.0  ;;  %v1866_v29 = vadd.s32 %v10228_v62, %v1706_v20  ;;  %v7171_v23 = vpop.f32.mrb[28].mxu1  ;;  %v13238_v10 = vld [vmem:[#allocation72_spill] sm:$0xff]  ;;  %v3211_v48 = vpop.f32.mrb[31].mxu0  ;;  %v13242_v30 = vld [vmem:[#allocation85_spill] sm:$0xff] }
 0x289   : > { %vm2283_vm8 = vcmp.lt.s32.totalorder %v8540_v9, %v2155_v50  ;;  %v1855_v40 = vadd.s32 %v13237_v11, %v1695_v12  ;;  %v1709_v2 = vsub.s32 %v10482_v55, %v13045_v54  ;;  %v1694_v38 = vsub.s32 %v10412_v26, %v13238_v10  ;;  %4387 = vadd.xlane.f32.xlu0 %v10643_v49  ;;  %v13243_v54 = vld [vmem:[#allocation52_spill] sm:$0xff] }
 0x28a   : > { %vm2411_vm2 = vmand %vm2027_vm1, %vm2283_vm8  ;;  %vm2268_vm6 = vcmp.lt.s32.totalorder %v8540_v9, %v2140_v33  ;;  %v1708_v60 = vsub.s32 %v10482_v55, %v8529_v41  ;;  %v10855_v20 = vmul.f32 %v7139_v52, %v2525_v8  ;;  %vm2026_vm4 = vcmp.ge.s32.totalorder %v8540_v9, %v1866_v29  ;;  %v3394_v33 = vpop.f32.mrb[29].mxu1  ;;  %v13241_v52 = vld [vmem:[#allocation71_spill] sm:$0xff] }
 0x28b   : > { %v2539_v12 = vsel %vm2411_vm2, %v13227_v24, 0.0  ;;  %vm10860_vm13 = vmand %vm2012_vm5, %vm2268_vm6  ;;  %v2154_v50 = vadd.s32 %v1866_v29, %v8488_v39  ;;  %vm2015_vm7 = vcmp.ge.s32.totalorder %v8540_v9, %v1855_v40  ;;  %v2143_v8 = vadd.s32 %v1855_v40, %v13241_v52  ;;  %4417 = vadd.xlane.f32.xlu1 %v10721_v59  ;;  %v13251_v59 = vld [vmem:[#allocation33_spill] sm:$0xff] }
 0x28c   : > { %v10867_v26 = vmul.f32 %v7168_v35, %v2539_v12  ;;  %v1869_v41 = vadd.s32 %v10279_v15, %v1709_v2  ;;  %v2524_v24 = vsel %vm10860_vm13, %v13242_v30, 0.0  ;;  %v1854_v62 = vadd.s32 %v13243_v54, %v1694_v38  ;;  %v10884_v2 = vpop.f32.mrb[30].mxu1 }
 0x28d   : > { %vm2282_vm11 = vcmp.lt.s32.totalorder %v8540_v9, %v2154_v50  ;;  %v1868_v29 = vadd.s32 %v13231_v19, %v1708_v60  ;;  %vm2271_vm14 = vcmp.lt.s32.totalorder %v8540_v9, %v2143_v8  ;;  %v1711_v35 = vsub.s32 %v10482_v55, %v13230_v56  ;;  %v13246_v60 = vld [vmem:[#allocation64_spill] sm:$0xff]  ;;  %v10898_v50 = vpop.f32.mrb[32].mxu0  ;;  %v10900_v8 = vpop.f32.mrb[31].mxu1  ;;  %4389 = vadd.xlane.f32.xlu0 %v10714_v3 }
 0x28e   : > { %vm2410_vm15 = vmand %vm2026_vm4, %vm2282_vm11  ;;  %vm2029_vm12 = vcmp.ge.s32.totalorder %v8540_v9, %v1869_v41  ;;  %v2157_v49 = vadd.s32 %v1869_v41, %v13049_v47  ;;  %v10887_v12 = vmul.f32 %v10784_v42, %v2524_v24  ;;  %vm2014_vm3 = vcmp.ge.s32.totalorder %v8540_v9, %v1854_v62  ;;  %v10903_v24 = vpop.permute.xlu1 %1637  ;;  %v10911_v56 = vpop.f32.mrb[33].mxu0  ;;  %v13247_v19 = vld [vmem:[#allocation56_spill] sm:$0xff] }
 0x28f   : > { %v2538_v38 = vsel %vm2410_vm15, %v13232_v61, 0.0  ;;  %vm10892_vm0 = vmand %vm2015_vm7, %vm2271_vm14  ;;  %v2142_v14 = vadd.s32 %v1854_v62, %v13246_v60  ;;  %vm2028_vm9 = vcmp.ge.s32.totalorder %v8540_v9, %v1868_v29  ;;  %v2156_v40 = vadd.s32 %v1868_v29, %v13235_v43  ;;  %4391 = vadd.xlane.f32.xlu1 %v10685_v51  ;;  %v13254_v29 = vld [vmem:[#allocation73_spill] sm:$0xff] }
 0x290   : > { %v10906_v42 = vmul.f32 %v10799_v31, %v2538_v38  ;;  %vm2285_vm10 = vcmp.lt.s32.totalorder %v8540_v9, %v2157_v49  ;;  %v2527_v47 = vsel %vm10892_vm0, %v13247_v19, 0.0  ;;  %v1871_v31 = vadd.s32 %v13237_v11, %v1711_v35  ;;  %v13250_v49 = vld [vmem:[#allocation35_spill] sm:$0xff] }
 0x291   : > { %vm10918_vm1 = vmand %vm2029_vm12, %vm2285_vm10  ;;  %vm2270_vm5 = vcmp.lt.s32.totalorder %v8540_v9, %v2142_v14  ;;  %v1713_v38 = vsub.s32 %v10903_v24, %v13250_v49  ;;  %v10927_v43 = vmul.f32 %v7142_v21, %v2527_v47  ;;  %vm2284_vm2 = vcmp.lt.s32.totalorder %v8540_v9, %v2156_v40  ;;  %v13252_v11 = vld [vmem:[#allocation87_spill] sm:$0xff]  ;;  %4423 = vadd.xlane.f32.xlu0 %v10754_v22 }
 0x292   : > { %vm2398_vm8 = vmand %vm2014_vm3, %vm2270_vm5  ;;  %v1710_v41 = vsub.s32 %v10482_v55, %v13238_v10  ;;  %v1712_v14 = vsub.s32 %v10903_v24, %v13251_v59  ;;  %v2541_v35 = vsel %vm10918_vm1, %v13236_v0, 0.0  ;;  %vm2031_vm13 = vcmp.ge.s32.totalorder %v8540_v9, %v1871_v31  ;;  %v13253_v55 = vld [vmem:[#allocation67_spill] sm:$0xff]  ;;  %v13255_v0 = vld [vmem:[#allocation41_spill] sm:$0xff] }
 0x293   : > { %v2526_v61 = vsel %vm2398_vm8, %v13252_v11, 0.0  ;;  %vm2412_vm6 = vmand %vm2028_vm9, %vm2284_vm2  ;;  %v2159_v47 = vadd.s32 %v1871_v31, %v13241_v52  ;;  %v10945_v21 = vmul.f32 %v7171_v23, %v2541_v35  ;;  %v1873_v51 = vadd.s32 %v13253_v55, %v1713_v38  ;;  %v7188_v31 = vpop.f32.mrb[34].mxu0  ;;  %4395 = vadd.xlane.f32.xlu1 %v10738_v7  ;;  %v13258_v23 = vld [vmem:[#allocation30_spill] sm:$0xff]  ;;  %v10968_v35 = vpop.permute.xlu0 %1640 }
 0x294   : > { %v10947_v62 = vmul.f32 %v3211_v48, %v2526_v61  ;;  %v1870_v40 = vadd.s32 %v13243_v54, %v1710_v41  ;;  %v2540_v3 = vsel %vm2412_vm6, %v13242_v30, 0.0  ;;  %v1872_v10 = vadd.s32 %v13254_v29, %v1712_v14  ;;  %v7217_v41 = vpop.f32.mrb[32].mxu1  ;;  %v10966_v14 = vpop.f32.mrb[35].mxu0 }
 0x295   : > { %vm2287_vm4 = vcmp.lt.s32.totalorder %v8540_v9, %v2159_v47  ;;  %v1715_v15 = vsub.s32 %v10903_v24, %v13255_v0  ;;  %v10957_v22 = vmul.f32 %v3394_v33, %v2540_v3  ;;  %vm2033_vm11 = vcmp.ge.s32.totalorder %v8540_v9, %v1873_v51  ;;  %v13259_v33 = vld [vmem:[#allocation28_spill] sm:$0xff]  ;;  %v10976_v30 = vpop.f32.mrb[33].mxu1  ;;  %4421 = vadd.xlane.f32.xlu0 %v10766_v16 }
 0x296   : > { %vm10959_vm7 = vmand %vm2031_vm13, %vm2287_vm4  ;;  %v2161_v48 = vadd.s32 %v1873_v51, %v13258_v23  ;;  %v2158_v38 = vadd.s32 %v1870_v40, %v13246_v60  ;;  %vm2030_vm15 = vcmp.ge.s32.totalorder %v8540_v9, %v1870_v40  ;;  %v2160_v47 = vadd.s32 %v1872_v10, %v13259_v33  ;;  %v13264_v40 = vld [vmem:[#allocation65_spill] sm:$0xff]  ;;  %v13269_v51 = vld [vmem:[#allocation24_spill] sm:$0xff] }
 0x297   : > { %v2543_v7 = vsel %vm10959_vm7, %v13247_v19, 0.0  ;;  %v1875_v3 = vadd.s32 %v13184_v46, %v1715_v15  ;;  %vm2032_vm0 = vcmp.ge.s32.totalorder %v8540_v9, %v1872_v10  ;;  %v1729_v61 = vsub.s32 %v10968_v35, %v13250_v49  ;;  %v13260_v19 = vld [vmem:[#allocation38_spill] sm:$0xff]  ;;  %4393 = vadd.xlane.f32.xlu1 %v10756_v6 }
 0x298   : > { %vm2289_vm14 = vcmp.lt.s32.totalorder %v8540_v9, %v2161_v48  ;;  %vm2286_vm12 = vcmp.lt.s32.totalorder %v8540_v9, %v2158_v38  ;;  %vm2288_vm10 = vcmp.lt.s32.totalorder %v8540_v9, %v2160_v47  ;;  %v1714_v16 = vsub.s32 %v10903_v24, %v13260_v19  ;;  %v10991_v48 = vpop.f32.mrb[36].mxu0  ;;  %v13261_v38 = vld [vmem:[#allocation69_spill] sm:$0xff] }
 0x299   : > { %vm2417_vm3 = vmand %vm2033_vm11, %vm2289_vm14  ;;  %vm2035_vm9 = vcmp.ge.s32.totalorder %v8540_v9, %v1875_v3  ;;  %v2163_v15 = vadd.s32 %v1875_v3, %v13189_v37  ;;  %v1889_v47 = vadd.s32 %v13253_v55, %v1729_v61  ;;  %v1728_v49 = vsub.s32 %v10968_v35, %v13251_v59  ;;  %v11006_v52 = vpop.f32.mrb[37].mxu0  ;;  %v11018_v55 = vpop.f32.mrb[34].mxu1  ;;  %4427 = vadd.xlane.f32.xlu0 %v10816_v34 }
 0x29a   : > { %v2545_v60 = vsel %vm2417_vm3, %v13261_v38, 0.0  ;;  %vm10997_vm1 = vmand %vm2030_vm15, %vm2286_vm12  ;;  %v1717_v54 = vsub.s32 %v10903_v24, %v13191_v4  ;;  %v11009_v6 = vmul.f32 %v10884_v2, %v2543_v7  ;;  %v1874_v61 = vadd.s32 %v13264_v40, %v1714_v16  ;;  %v13265_v2 = vld [vmem:[#allocation74_spill] sm:$0xff]  ;;  %v13268_v16 = vld [vmem:[#allocation32_spill] sm:$0xff] }
 0x29b   : > { %v11012_v39 = vmul.f32 %v10898_v50, %v2545_v60  ;;  %vm2416_vm5 = vmand %vm2032_vm0, %vm2288_vm10  ;;  %vm2291_vm8 = vcmp.lt.s32.totalorder %v8540_v9, %v2163_v15  ;;  %v2542_v59 = vsel %vm10997_vm1, %v13252_v11, 0.0  ;;  %vm2049_vm6 = vcmp.ge.s32.totalorder %v8540_v9, %v1889_v47  ;;  %v11033_v50 = vpop.f32.mrb[35].mxu1  ;;  %4399 = vadd.xlane.f32.xlu1 %v10814_v63 }
 0x29c   : > { %v2544_v7 = vsel %vm2416_vm5, %v13265_v2, 0.0  ;;  %vm11027_vm2 = vmand %vm2035_vm9, %vm2291_vm8  ;;  %v2177_v10 = vadd.s32 %v1889_v47, %v13258_v23  ;;  %v11036_v34 = vmul.f32 %v10900_v8, %v2542_v59  ;;  %vm2034_vm13 = vcmp.ge.s32.totalorder %v8540_v9, %v1874_v61  ;;  %v13270_v59 = vld [vmem:[#allocation44_spill] sm:$0xff] }
 0x29d   : > { %v11039_v15 = vmul.f32 %v10911_v56, %v2544_v7  ;;  %v2162_v3 = vadd.s32 %v1874_v61, %v13268_v16  ;;  %v2547_v11 = vsel %vm11027_vm2, %v13269_v51, 0.0  ;;  %v1888_v47 = vadd.s32 %v13254_v29, %v1728_v49  ;;  %4425 = vadd.xlane.f32.xlu0 %v10837_v1 }
 0x29e   : > { %vm2305_vm4 = vcmp.lt.s32.totalorder %v8540_v9, %v2177_v10  ;;  %v1877_v8 = vadd.s32 %v13198_v57, %v1717_v54  ;;  %v1731_v56 = vsub.s32 %v10968_v35, %v13255_v0  ;;  %v1716_v7 = vsub.s32 %v10903_v24, %v13270_v59 }
 0x29f   : > { %vm2433_vm7 = vmand %vm2049_vm6, %vm2305_vm4  ;;  %vm2290_vm11 = vcmp.lt.s32.totalorder %v8540_v9, %v2162_v3  ;;  %v1730_v63 = vsub.s32 %v10968_v35, %v13260_v19  ;;  %v11058_v60 = vmul.f32 %v7188_v31, %v2547_v11  ;;  %vm2048_vm14 = vcmp.ge.s32.totalorder %v8540_v9, %v1888_v47  ;;  %v11074_v31 = vpop.f32.mrb[38].mxu0  ;;  %4397 = vadd.xlane.f32.xlu1 %v10835_v36 }
 0x2a0   : > { %v2561_v49 = vsel %vm2433_vm7, %v13261_v38, 0.0  ;;  %vm11063_vm15 = vmand %vm2034_vm13, %vm2290_vm11  ;;  %v2176_v10 = vadd.s32 %v1888_v47, %v13259_v33  ;;  %vm2037_vm12 = vcmp.ge.s32.totalorder %v8540_v9, %v1877_v8  ;;  %v2165_v1 = vadd.s32 %v1877_v8, %v13202_v17  ;;  %v11085_v38 = vpop.f32.mrb[39].mxu0 }
 0x2a1   : > { %v11069_v3 = vmul.f32 %v7217_v41, %v2561_v49  ;;  %v1891_v11 = vadd.s32 %v13184_v46, %v1731_v56  ;;  %v2546_v61 = vsel %vm11063_vm15, %v9887_v13, 0.0  ;;  %v1876_v47 = vadd.s32 %v13203_v45, %v1716_v7  ;;  %v11083_v49 = vpop.f32.mrb[36].mxu1  ;;  %v13273_v56 = vld [vmem:[#allocation54_spill] sm:$0xff]  ;;  %4431 = vadd.xlane.f32.xlu0 %v10867_v26 }
 0x2a2   : > { %vm2304_vm0 = vcmp.lt.s32.totalorder %v8540_v9, %v2176_v10  ;;  %v1890_v41 = vadd.s32 %v13264_v40, %v1730_v63  ;;  %vm2293_vm10 = vcmp.lt.s32.totalorder %v8540_v9, %v2165_v1  ;;  %v1719_v54 = vsub.s32 %v10903_v24, %v13273_v56  ;;  %v11092_v19 = vpop.f32.mrb[37].mxu1 }
 0x2a3   : > { %vm2432_vm3 = vmand %vm2048_vm14, %vm2304_vm0  ;;  %vm2051_vm9 = vcmp.ge.s32.totalorder %v8540_v9, %v1891_v11  ;;  %v2179_v36 = vadd.s32 %v1891_v11, %v13189_v37  ;;  %v11096_v7 = vmul.f32 %v10966_v14, %v2546_v61  ;;  %vm2036_vm5 = vcmp.ge.s32.totalorder %v8540_v9, %v1876_v47  ;;  %v11109_v14 = vpop.f32.mrb[40].mxu0  ;;  %4403 = vadd.xlane.f32.xlu1 %v10855_v20  ;;  %v13277_v20 = vld [vmem:[#allocation50_spill] sm:$0xff] }
 0x2a4   : > { %v2560_v63 = vsel %vm2432_vm3, %v13265_v2, 0.0  ;;  %vm2421_vm1 = vmand %vm2037_vm12, %vm2293_vm10  ;;  %v2164_v10 = vadd.s32 %v1876_v47, %v13207_v32  ;;  %vm2050_vm2 = vcmp.ge.s32.totalorder %v8540_v9, %v1890_v41  ;;  %v2178_v26 = vadd.s32 %v1890_v41, %v13268_v16  ;;  %v11123_v16 = vpop.f32.mrb[41].mxu0 }
 0x2a5   : > { %v11104_v1 = vmul.f32 %v10976_v30, %v2560_v63  ;;  %vm2307_vm8 = vcmp.lt.s32.totalorder %v8540_v9, %v2179_v36  ;;  %v2549_v8 = vsel %vm2421_vm1, %v9950_v44, 0.0  ;;  %v13276_v30 = vld [vmem:[#allocation34_spill] sm:$0xff]  ;;  %v1733_v63 = vsub.s32 %v10968_v35, %v13191_v4  ;;  %4429 = vadd.xlane.f32.xlu0 %v10906_v42  ;;  %v13278_v4 = vld [vmem:[#allocation61_spill] sm:$0xff] }
 0x2a6   : > { %vm11115_vm6 = vmand %vm2051_vm9, %vm2307_vm8  ;;  %vm2292_vm13 = vcmp.lt.s32.totalorder %v8540_v9, %v2164_v10  ;;  %v1879_v36 = vadd.s32 %v13276_v30, %v1719_v54  ;;  %v11126_v2 = vmul.f32 %v10991_v48, %v2549_v8  ;;  %vm2306_vm7 = vcmp.lt.s32.totalorder %v8540_v9, %v2178_v26  ;;  %v11135_v54 = vpop.f32.mrb[38].mxu1 }
 0x2a7   : > { %vm2420_vm4 = vmand %vm2036_vm5, %vm2292_vm13  ;;  %v1718_v11 = vsub.s32 %v10903_v24, %v13277_v20  ;;  %v1732_v10 = vsub.s32 %v10968_v35, %v13270_v59  ;;  %v2563_v48 = vsel %vm11115_vm6, %v13269_v51, 0.0  ;;  %v11146_v26 = vpop.f32.mrb[39].mxu1  ;;  %v1893_v61 = vadd.s32 %v13198_v57, %v1733_v63  ;;  %4401 = vadd.xlane.f32.xlu1 %v10887_v12  ;;  %v13281_v63 = vld [vmem:[#allocation42_spill] sm:$0xff] }
 0x2a8   : > { %v2548_v8 = vsel %vm2420_vm4, %v9968_v18, 0.0  ;;  %vm2434_vm11 = vmand %vm2050_vm2, %vm2306_vm7  ;;  %vm2039_vm15 = vcmp.ge.s32.totalorder %v8540_v9, %v1879_v36  ;;  %v2167_v47 = vadd.s32 %v1879_v36, %v13209_v27  ;;  %v11149_v59 = vmul.f32 %v11018_v55, %v2563_v48  ;;  %v13282_v48 = vld [vmem:[#allocation31_spill] sm:$0xff] }
 0x2a9   : > { %v11152_v42 = vmul.f32 %v11006_v52, %v2548_v8  ;;  %v1878_v51 = vadd.s32 %v13214_v58, %v1718_v11  ;;  %v2562_v41 = vsel %vm2434_vm11, %v9887_v13, 0.0  ;;  %v1892_v36 = vadd.s32 %v13203_v45, %v1732_v10  ;;  %4435 = vadd.xlane.f32.xlu0 %v10945_v21 }
 0x2aa   : > { %vm2295_vm14 = vcmp.lt.s32.totalorder %v8540_v9, %v2167_v47  ;;  %v1721_v40 = vsub.s32 %v10903_v24, %v13278_v4  ;;  %v11163_v55 = vmul.f32 %v11033_v50, %v2562_v41  ;;  %vm2053_vm0 = vcmp.ge.s32.totalorder %v8540_v9, %v1893_v61 }
 0x2ab   : > { %vm11165_vm12 = vmand %vm2039_vm15, %vm2295_vm14  ;;  %v2181_v12 = vadd.s32 %v1893_v61, %v13202_v17  ;;  %v2166_v11 = vadd.s32 %v1878_v51, %v13281_v63  ;;  %vm2038_vm3 = vcmp.ge.s32.totalorder %v8540_v9, %v1878_v51  ;;  %v2180_v50 = vadd.s32 %v1892_v36, %v13207_v32  ;;  %4407 = vadd.xlane.f32.xlu1 %v10927_v43  ;;  %v13283_v61 = vld [vmem:[#allocation59_spill] sm:$0xff] }
 0x2ac   : > { %v2551_v10 = vsel %vm11165_vm12, %v13282_v48, 0.0  ;;  %v1881_v8 = vadd.s32 %v10068_v28, %v1721_v40  ;;  %vm2052_vm1 = vcmp.ge.s32.totalorder %v8540_v9, %v1892_v36  ;;  %v1735_v47 = vsub.s32 %v10968_v35, %v13273_v56  ;;  %v11184_v21 = vpop.f32.mrb[42].mxu0  ;;  %v11192_v52 = vpop.f32.mrb[40].mxu1 }
 0x2ad   : > { %vm2309_vm10 = vcmp.lt.s32.totalorder %v8540_v9, %v2181_v12  ;;  %vm2294_vm9 = vcmp.lt.s32.totalorder %v8540_v9, %v2166_v11  ;;  %vm2308_vm8 = vcmp.lt.s32.totalorder %v8540_v9, %v2180_v50  ;;  %v1720_v41 = vsub.s32 %v10903_v24, %v13283_v61  ;;  %v11194_v12 = vpop.f32.mrb[43].mxu0  ;;  %v11208_v56 = vpop.f32.mrb[41].mxu1  ;;  %4433 = vadd.xlane.f32.xlu0 %v10957_v22 }
 0x2ae   : > { %vm2437_vm5 = vmand %vm2053_vm0, %vm2309_vm10  ;;  %vm2041_vm2 = vcmp.ge.s32.totalorder %v8540_v9, %v1881_v8  ;;  %v2169_v40 = vadd.s32 %v1881_v8, %v13060_v25  ;;  %v1895_v32 = vadd.s32 %v13276_v30, %v1735_v47  ;;  %v1734_v13 = vsub.s32 %v10968_v35, %v13277_v20  ;;  %v13286_v47 = vld [vmem:[#allocation39_spill] sm:$0xff]  ;;  %v13290_v8 = vld [vmem:[#allocation53_spill] sm:$0xff] }
 0x2af   : > { %v2565_v11 = vsel %vm2437_vm5, %v9950_v44, 0.0  ;;  %vm11199_vm6 = vmand %vm2038_vm3, %vm2294_vm9  ;;  %v1723_v45 = vsub.s32 %v10903_v24, %v13221_v53  ;;  %v11212_v44 = vmul.f32 %v11074_v31, %v2551_v10  ;;  %v1880_v20 = vadd.s32 %v13286_v47, %v1720_v41  ;;  %v13287_v30 = vld [vmem:[#allocation79_spill] sm:$0xff]  ;;  %4405 = vadd.xlane.f32.xlu1 %v10947_v62 }
 0x2b0   : > { %v11215_v51 = vmul.f32 %v11083_v49, %v2565_v11  ;;  %vm2436_vm13 = vmand %vm2052_vm1, %vm2308_vm8  ;;  %vm2297_vm4 = vcmp.lt.s32.totalorder %v8540_v9, %v2169_v40  ;;  %v2550_v17 = vsel %vm11199_vm6, %v13287_v30, 0.0  ;;  %vm2055_vm11 = vcmp.ge.s32.totalorder %v8540_v9, %v1895_v32  ;;  %v11235_v36 = vpop.f32.mrb[44].mxu0  ;;  %v13291_v11 = vld [vmem:[#allocation80_spill] sm:$0xff] }
 0x2b1   : > { %v2564_v22 = vsel %vm2436_vm13, %v9968_v18, 0.0  ;;  %vm11229_vm7 = vmand %vm2041_vm2, %vm2297_vm4  ;;  %v2183_v49 = vadd.s32 %v1895_v32, %v13209_v27  ;;  %v11239_v10 = vmul.f32 %v11085_v38, %v2550_v17  ;;  %vm2040_vm15 = vcmp.ge.s32.totalorder %v8540_v9, %v1880_v20  ;;  %v11246_v41 = vpop.f32.mrb[45].mxu0  ;;  %v13292_v18 = vld [vmem:[#allocation46_spill] sm:$0xff]  ;;  %4437 = vadd.xlane.f32.xlu0 %v11036_v34  ;;  %v13313_v27 = vld [vmem:[#allocation76_spill] sm:$0xff] }
 0x2b2   : > { %v11242_v50 = vmul.f32 %v11092_v19, %v2564_v22  ;;  %v2168_v40 = vadd.s32 %v1880_v20, %v13290_v8  ;;  %v2553_v43 = vsel %vm11229_vm7, %v13291_v11, 0.0  ;;  %v1894_v62 = vadd.s32 %v13214_v58, %v1734_v13  ;;  %v11254_v38 = vpop.f32.mrb[42].mxu1  ;;  %v13293_v22 = vld [vmem:[#allocation63_spill] sm:$0xff]  ;;  %v13296_v20 = vld [vmem:[#allocation81_spill] sm:$0xff] }
 0x2b3   : > { %vm2311_vm14 = vcmp.lt.s32.totalorder %v8540_v9, %v2183_v49  ;;  %v1883_v17 = vadd.s32 %v13292_v18, %v1723_v45  ;;  %v1737_v19 = vsub.s32 %v10968_v35, %v13278_v4  ;;  %v1722_v31 = vsub.s32 %v10903_v24, %v13293_v22  ;;  %v11266_v49 = vpop.f32.mrb[43].mxu1  ;;  %4439 = vadd.xlane.f32.xlu1 %v11009_v6  ;;  %v13297_v4 = vld [vmem:[#allocation45_spill] sm:$0xff] }
 0x2b4   : > { %vm2439_vm12 = vmand %vm2055_vm11, %vm2311_vm14  ;;  %vm2296_vm0 = vcmp.lt.s32.totalorder %v8540_v9, %v2168_v40  ;;  %v1736_v13 = vsub.s32 %v10968_v35, %v13283_v61  ;;  %v11269_v45 = vmul.f32 %v11109_v14, %v2553_v43  ;;  %vm2054_vm10 = vcmp.ge.s32.totalorder %v8540_v9, %v1894_v62 }
 0x2b5   : > { %v2567_v34 = vsel %vm2439_vm12, %v13282_v48, 0.0  ;;  %vm11274_vm3 = vmand %vm2040_vm15, %vm2296_vm0  ;;  %v2182_v40 = vadd.s32 %v1894_v62, %v13281_v63  ;;  %vm2043_vm9 = vcmp.ge.s32.totalorder %v8540_v9, %v1883_v17  ;;  %v2171_v14 = vadd.s32 %v1883_v17, %v13224_v5  ;;  %4443 = vadd.xlane.f32.xlu0 %v11012_v39  ;;  %v13301_v39 = vld [vmem:[#allocation57_spill] sm:$0xff]  ;;  %v11373_v63 = vpop.permute.xlu1 %1643 }
 0x2b6   : > { %v11282_v61 = vmul.f32 %v11135_v54, %v2567_v34  ;;  %v1897_v43 = vadd.s32 %v10068_v28, %v1737_v19  ;;  %v2552_v48 = vsel %vm11274_vm3, %v13296_v20, 0.0  ;;  %v1882_v58 = vadd.s32 %v13297_v4, %v1722_v31  ;;  %v13298_v54 = vld [vmem:[#allocation70_spill] sm:$0xff] }
 0x2b7   : > { %vm2310_vm1 = vcmp.lt.s32.totalorder %v8540_v9, %v2182_v40  ;;  %v1896_v62 = vadd.s32 %v13286_v47, %v1736_v13  ;;  %vm2299_vm8 = vcmp.lt.s32.totalorder %v8540_v9, %v2171_v14  ;;  %v1725_v19 = vsub.s32 %v10903_v24, %v13298_v54  ;;  %v11311_v40 = vpop.f32.mrb[46].mxu0  ;;  %4441 = vadd.xlane.f32.xlu1 %v11039_v15  ;;  %v13302_v47 = vld [vmem:[#allocation82_spill] sm:$0xff] }
 0x2b8   : > { %vm2438_vm5 = vmand %vm2054_vm10, %vm2310_vm1  ;;  %vm2057_vm2 = vcmp.ge.s32.totalorder %v8540_v9, %v1897_v43  ;;  %v2185_v6 = vadd.s32 %v1897_v43, %v13060_v25  ;;  %v11300_v34 = vmul.f32 %v11123_v16, %v2552_v48  ;;  %vm2042_vm13 = vcmp.ge.s32.totalorder %v8540_v9, %v1882_v58  ;;  %v11320_v48 = vpop.f32.mrb[44].mxu1  ;;  %v11322_v17 = vpop.f32.mrb[47].mxu0  ;;  %v13307_v43 = vld [vmem:[#allocation68_spill] sm:$0xff] }
 0x2b9   : > { %v2566_v32 = vsel %vm2438_vm5, %v13287_v30, 0.0  ;;  %vm11305_vm6 = vmand %vm2043_vm9, %vm2299_vm8  ;;  %v2170_v13 = vadd.s32 %v1882_v58, %v13301_v39  ;;  %vm2056_vm7 = vcmp.ge.s32.totalorder %v8540_v9, %v1896_v62  ;;  %v2184_v16 = vadd.s32 %v1896_v62, %v13290_v8  ;;  %v11337_v8 = vpop.f32.mrb[45].mxu1  ;;  %4473 = vadd.xlane.f32.xlu0 %v11104_v1  ;;  %v13308_v30 = vld [vmem:[#allocation83_spill] sm:$0xff]  ;;  %v13311_v58 = vld [vmem:[#allocation62_spill] sm:$0xff] }
 0x2ba   : > { %v11315_v14 = vmul.f32 %v11146_v26, %v2566_v32  ;;  %vm2313_vm4 = vcmp.lt.s32.totalorder %v8540_v9, %v2185_v6  ;;  %v2555_v25 = vsel %vm11305_vm6, %v13302_v47, 0.0  ;;  %v13305_v26 = vld [vmem:[#allocation51_spill] sm:$0xff]  ;;  %v1739_v32 = vsub.s32 %v10968_v35, %v13221_v53 }
 0x2bb   : > { %vm11329_vm11 = vmand %vm2057_vm2, %vm2313_vm4  ;;  %vm2298_vm15 = vcmp.lt.s32.totalorder %v8540_v9, %v2170_v13  ;;  %v1885_v6 = vadd.s32 %v13305_v26, %v1725_v19  ;;  %v11341_v31 = vmul.f32 %v11184_v21, %v2555_v25  ;;  %vm2312_vm12 = vcmp.lt.s32.totalorder %v8540_v9, %v2184_v16  ;;  %4475 = vadd.xlane.f32.xlu1 %v11069_v3  ;;  %v11363_v16 = vpop.permute.xlu0 %1646 }
 0x2bc   : > { %vm2426_vm14 = vmand %vm2042_vm13, %vm2298_vm15  ;;  %v1724_v13 = vsub.s32 %v10903_v24, %v13307_v43  ;;  %v1738_v19 = vsub.s32 %v10968_v35, %v13293_v22  ;;  %v2569_v53 = vsel %vm11329_vm11, %v13291_v11, 0.0  ;;  %v1899_v62 = vadd.s32 %v13292_v18, %v1739_v32  ;;  %v13312_v11 = vld [vmem:[#allocation49_spill] sm:$0xff] }
 0x2bd   : > { %13306 = vst [vmem:[#allocation75_spill] sm:$0xff] %v11341_v31  ;;  %v2554_v1 = vsel %vm2426_vm14, %v13308_v30, 0.0  ;;  %vm11356_vm0 = vmand %vm2056_vm7, %vm2312_vm12  ;;  %vm2045_vm3 = vcmp.ge.s32.totalorder %v8540_v9, %v1885_v6  ;;  %v2173_v21 = vadd.s32 %v1885_v6, %v13311_v58  ;;  %v11366_v22 = vmul.f32 %v11192_v52, %v2569_v53  ;;  %4447 = vadd.xlane.f32.xlu0 %v11058_v60  ;;  %v13317_v60 = vld [vmem:[#allocation84_spill] sm:$0xff] }
 0x2be   : > { %v11369_v15 = vmul.f32 %v11194_v12, %v2554_v1  ;;  %v1884_v28 = vadd.s32 %v13312_v11, %v1724_v13  ;;  %v2568_v31 = vsel %vm11356_vm0, %v13296_v20, 0.0  ;;  %v1898_v3 = vadd.s32 %v13297_v4, %v1738_v19  ;;  %v11382_v52 = vpop.f32.mrb[46].mxu1  ;;  %v13316_v19 = vld [vmem:[#allocation60_spill] sm:$0xff] }
 0x2bf   : > { %vm2301_vm10 = vcmp.lt.s32.totalorder %v8540_v9, %v2173_v21  ;;  %v1727_v53 = vsub.s32 %v10903_v24, %v13313_v27  ;;  %v11386_v12 = vmul.f32 %v11208_v56, %v2568_v31  ;;  %vm2059_vm1 = vcmp.ge.s32.totalorder %v8540_v9, %v1899_v62  ;;  %v11397_v25 = vpop.f32.mrb[48].mxu0  ;;  %v11399_v21 = vpop.f32.mrb[47].mxu1  ;;  %v13318_v31 = vld [vmem:[#allocation86_spill] sm:$0xff]  ;;  %4445 = vadd.xlane.f32.xlu1 %v11096_v7 }
 0x2c0   : > { %vm11390_vm9 = vmand %vm2045_vm3, %vm2301_vm10  ;;  %v2187_v13 = vadd.s32 %v1899_v62, %v13224_v5  ;;  %v2172_v1 = vadd.s32 %v1884_v28, %v13316_v19  ;;  %vm2044_vm5 = vcmp.ge.s32.totalorder %v8540_v9, %v1884_v28  ;;  %v2186_v6 = vadd.s32 %v1898_v3, %v13301_v39  ;;  %v11407_v20 = vpop.f32.mrb[49].mxu0  ;;  %v11415_v5 = vpop.xlane.xlu0 %4315  ;;  %v13321_v39 = vld [vmem:[#allocation72_spill] sm:$0xff] }
 0x2c1   : > { %v2557_v56 = vsel %vm11390_vm9, %v13317_v60, 0.0  ;;  %v1887_v4 = vadd.s32 %v13318_v31, %v1727_v53  ;;  %vm2058_vm6 = vcmp.ge.s32.totalorder %v8540_v9, %v1898_v3  ;;  %v1741_v32 = vsub.s32 %v10968_v35, %v13298_v54  ;;  %13319 = vst [vmem:[#allocation36_spill] sm:$0xff] %v11415_v5  ;;  %v13320_v53 = vld [vmem:[#allocation71_spill] sm:$0xff]  ;;  %4449 = vadd.xlane.f32.xlu0 %v11152_v42  ;;  %v13325_v28 = vld [vmem:[#allocation52_spill] sm:$0xff] }
 0x2c2   : > { %vm2315_vm8 = vcmp.lt.s32.totalorder %v8540_v9, %v2187_v13  ;;  %vm2300_vm2 = vcmp.lt.s32.totalorder %v8540_v9, %v2172_v1  ;;  %vm2314_vm4 = vcmp.lt.s32.totalorder %v8540_v9, %v2186_v6  ;;  %v1726_v13 = vsub.s32 %v10903_v24, %v13321_v39  ;;  %v11425_v1 = vpop.xlane.xlu1 %4313 }
 0x2c3   : > { %vm2443_vm13 = vmand %vm2059_vm1, %vm2315_vm8  ;;  %vm2047_vm7 = vcmp.ge.s32.totalorder %v8540_v9, %v1887_v4  ;;  %v2175_v7 = vadd.s32 %v1887_v4, %v13320_v53  ;;  %13322 = vst [vmem:[#allocation25_spill] sm:$0xff] %v11425_v1  ;;  %v1901_v6 = vadd.s32 %v13305_v26, %v1741_v32  ;;  %v1740_v5 = vsub.s32 %v10968_v35, %v13307_v43  ;;  %v11449_v32 = vpop.f32.mrb[50].mxu0  ;;  %v13326_v43 = vld [vmem:[#allocation85_spill] sm:$0xff] }
 0x2c4   : > { %v2571_v54 = vsel %vm2443_vm13, %v13302_v47, 0.0  ;;  %vm11430_vm11 = vmand %vm2044_vm5, %vm2300_vm2  ;;  %v1743_v24 = vsub.s32 %v10968_v35, %v13313_v27  ;;  %v11440_v42 = vmul.f32 %v11235_v36, %v2557_v56  ;;  %v1886_v47 = vadd.s32 %v13325_v28, %v1726_v13  ;;  %4479 = vadd.xlane.f32.xlu1 %v11149_v59  ;;  %v11464_v3 = vpop.f32.mrb[51].mxu0 }
 0x2c5   : > { %v11443_v1 = vmul.f32 %v11254_v38, %v2571_v54  ;;  %vm2442_vm15 = vmand %vm2058_vm6, %vm2314_vm4  ;;  %vm2303_vm14 = vcmp.lt.s32.totalorder %v8540_v9, %v2175_v7  ;;  %v2556_v27 = vsel %vm11430_vm11, %v13326_v43, 0.0  ;;  %vm2061_vm0 = vcmp.ge.s32.totalorder %v8540_v9, %v1901_v6  ;;  %v13329_v7 = vld [vmem:[#allocation64_spill] sm:$0xff]  ;;  %v11474_v13 = vpop.f32.mrb[48].mxu1  ;;  %4483 = vadd.xlane.f32.xlu0 %v11215_v51  ;;  %v13333_v51 = vld [vmem:[#allocation35_spill] sm:$0xff] }
 0x2c6   : > { %v2570_v36 = vsel %vm2442_vm15, %v13308_v30, 0.0  ;;  %vm11458_vm12 = vmand %vm2047_vm7, %vm2303_vm14  ;;  %v2189_v54 = vadd.s32 %v1901_v6, %v13311_v58  ;;  %v11467_v59 = vmul.f32 %v11246_v41, %v2556_v27  ;;  %vm2046_vm3 = vcmp.ge.s32.totalorder %v8540_v9, %v1886_v47  ;;  %v11477_v62 = vpop.xlane.xlu1 %4347  ;;  %v13331_v30 = vld [vmem:[#allocation56_spill] sm:$0xff] }
 0x2c7   : > { %v11470_v56 = vmul.f32 %v11266_v49, %v2570_v36  ;;  %v2174_v4 = vadd.s32 %v1886_v47, %v13329_v7  ;;  %13330 = vst [vmem:[#allocation73_spill] sm:$0xff] %v11477_v62  ;;  %v2559_v58 = vsel %vm11458_vm12, %v13331_v30, 0.0  ;;  %v1900_v27 = vadd.s32 %v13312_v11, %v1740_v5  ;;  %v11485_v49 = vpop.f32.mrb[49].mxu1  ;;  %v11487_v36 = vpop.xlane.xlu0 %4345  ;;  %v13338_v47 = vld [vmem:[#allocation87_spill] sm:$0xff] }
 0x2c8   : > { %vm2317_vm10 = vcmp.lt.s32.totalorder %v8540_v9, %v2189_v54  ;;  %v1903_v41 = vadd.s32 %v13318_v31, %v1743_v24  ;;  %13332 = vst [vmem:[#allocation41_spill] sm:$0xff] %v11487_v36  ;;  %v1745_v62 = vsub.s32 %v11373_v63, %v13333_v51  ;;  %v1742_v38 = vsub.s32 %v10968_v35, %v13321_v39  ;;  %v13334_v54 = vld [vmem:[#allocation33_spill] sm:$0xff] }
 0x2c9   : > { %vm2445_vm9 = vmand %vm2061_vm0, %vm2317_vm10  ;;  %vm2302_vm1 = vcmp.lt.s32.totalorder %v8540_v9, %v2174_v4  ;;  %v1744_v5 = vsub.s32 %v11373_v63, %v13334_v54  ;;  %4477 = vadd.xlane.f32.xlu1 %v11163_v55  ;;  %v11500_v24 = vmul.f32 %v11311_v40, %v2559_v58  ;;  %vm2060_vm8 = vcmp.ge.s32.totalorder %v8540_v9, %v1900_v27  ;;  %v13337_v40 = vld [vmem:[#allocation67_spill] sm:$0xff]  ;;  %v11517_v39 = vpop.f32.mrb[52].mxu0 }
 0x2ca   : > { %v2573_v36 = vsel %vm2445_vm9, %v13317_v60, 0.0  ;;  %vm11505_vm5 = vmand %vm2046_vm3, %vm2302_vm1  ;;  %v2188_v35 = vadd.s32 %v1900_v27, %v13316_v19  ;;  %vm2063_vm2 = vcmp.ge.s32.totalorder %v8540_v9, %v1903_v41  ;;  %v2191_v55 = vadd.s32 %v1903_v41, %v13320_v53  ;;  %4481 = vadd.xlane.f32.xlu0 %v11242_v50 }
 0x2cb   : > { %v11512_v4 = vmul.f32 %v11320_v48, %v2573_v36  ;;  %v1905_v58 = vadd.s32 %v13337_v40, %v1745_v62  ;;  %v2558_v31 = vsel %vm11505_vm5, %v13338_v47, 0.0  ;;  %v1902_v27 = vadd.s32 %v13325_v28, %v1742_v38  ;;  %v11526_v36 = vpop.f32.mrb[53].mxu0  ;;  %v11528_v60 = vpop.xlane.xlu0 %4319 }
 0x2cc   : > { %vm2316_vm6 = vcmp.lt.s32.totalorder %v8540_v9, %v2188_v35  ;;  %v1904_v48 = vadd.s32 %v13254_v29, %v1744_v5  ;;  %13339 = vst [vmem:[#allocation30_spill] sm:$0xff] %v11528_v60  ;;  %vm2319_vm4 = vcmp.lt.s32.totalorder %v8540_v9, %v2191_v55  ;;  %v1747_v62 = vsub.s32 %v11373_v63, %v13255_v0  ;;  %v11535_v6 = vpop.f32.mrb[50].mxu1  ;;  %v11552_v28 = vpop.xlane.xlu1 %4351 }
 0x2cd   : > { %vm2444_vm13 = vmand %vm2060_vm8, %vm2316_vm6  ;;  %vm2065_vm7 = vcmp.ge.s32.totalorder %v8540_v9, %v1905_v58  ;;  %v2193_v50 = vadd.s32 %v1905_v58, %v13258_v23  ;;  %4451 = vadd.xlane.f32.xlu1 %v11126_v2  ;;  %v11539_v38 = vmul.f32 %v11322_v17, %v2558_v31  ;;  %vm2062_vm15 = vcmp.ge.s32.totalorder %v8540_v9, %v1902_v27  ;;  %v11550_v60 = vpop.f32.mrb[51].mxu1  ;;  %v13346_v58 = vld [vmem:[#allocation38_spill] sm:$0xff] }
 0x2ce   : > { %v2572_v5 = vsel %vm2444_vm13, %v13326_v43, 0.0  ;;  %vm11544_vm11 = vmand %vm2063_vm2, %vm2319_vm4  ;;  %v2190_v55 = vadd.s32 %v1902_v27, %v13329_v7  ;;  %13342 = vst [vmem:[#allocation28_spill] sm:$0xff] %v11552_v28  ;;  %vm2064_vm12 = vcmp.ge.s32.totalorder %v8540_v9, %v1904_v48  ;;  %v2192_v17 = vadd.s32 %v1904_v48, %v13259_v33  ;;  %4487 = vadd.xlane.f32.xlu0 %v11282_v61  ;;  %v13353_v7 = vld [vmem:[#allocation74_spill] sm:$0xff]  ;;  %v13359_v27 = vld [vmem:[#allocation24_spill] sm:$0xff] }
 0x2cf   : > { %v11555_v2 = vmul.f32 %v11337_v8, %v2572_v5  ;;  %vm2321_vm14 = vcmp.lt.s32.totalorder %v8540_v9, %v2193_v50  ;;  %v2575_v31 = vsel %vm11544_vm11, %v13331_v30, 0.0  ;;  %v1907_v8 = vadd.s32 %v13184_v46, %v1747_v62  ;;  %v11574_v5 = vpop.xlane.xlu0 %4317  ;;  %v11586_v62 = vpop.f32.mrb[54].mxu0 }
 0x2d0   : > { %vm11566_vm0 = vmand %vm2065_vm7, %vm2321_vm14  ;;  %vm2318_vm3 = vcmp.lt.s32.totalorder %v8540_v9, %v2190_v55  ;;  %v1761_v50 = vsub.s32 %v11363_v16, %v13333_v51  ;;  %13345 = vst [vmem:[#allocation46_spill] sm:$0xff] %v11574_v5  ;;  %v11577_v61 = vmul.f32 %v11382_v52, %v2575_v31  ;;  %vm2320_vm9 = vcmp.lt.s32.totalorder %v8540_v9, %v2192_v17  ;;  %v13347_v51 = vld [vmem:[#allocation69_spill] sm:$0xff]  ;;  %v11601_v17 = vpop.f32.mrb[55].mxu0  ;;  %v11603_v28 = vpop.xlane.xlu1 %4349 }
 0x2d1   : > { %vm2446_vm10 = vmand %vm2062_vm15, %vm2318_vm3  ;;  %v1746_v35 = vsub.s32 %v11373_v63, %v13346_v58  ;;  %v1760_v55 = vsub.s32 %v11363_v16, %v13334_v54  ;;  %4455 = vadd.xlane.f32.xlu1 %v11212_v44  ;;  %v2577_v52 = vsel %vm11566_vm0, %v13347_v51, 0.0  ;;  %vm2067_vm5 = vcmp.ge.s32.totalorder %v8540_v9, %v1907_v8  ;;  %13350 = vst [vmem:[#allocation51_spill] sm:$0xff] %v11603_v28  ;;  %v13351_v5 = vld [vmem:[#allocation65_spill] sm:$0xff]  ;;  %v11613_v30 = vpop.f32.mrb[52].mxu1  ;;  %v13366_v28 = vld [vmem:[#allocation54_spill] sm:$0xff] }
 0x2d2   : > { %v2574_v31 = vsel %vm2446_vm10, %v13338_v47, 0.0  ;;  %vm11595_vm1 = vmand %vm2064_vm12, %vm2320_vm9  ;;  %v2195_v54 = vadd.s32 %v1907_v8, %v13189_v37  ;;  %v11606_v44 = vmul.f32 %v11397_v25, %v2577_v52  ;;  %v1921_v48 = vadd.s32 %v13337_v40, %v1761_v50  ;;  %13352 = vst [vmem:[#allocation49_spill] sm:$0xff] %v11613_v30  ;;  %4485 = vadd.xlane.f32.xlu0 %v11315_v14  ;;  %v13354_v52 = vld [vmem:[#allocation47_spill] sm:$0xff]  ;;  %v13362_v14 = vld [vmem:[#allocation44_spill] sm:$0xff] }
 0x2d3   : > { %v11609_v41 = vmul.f32 %v11399_v21, %v2574_v31  ;;  %v1906_v47 = vadd.s32 %v13351_v5, %v1746_v35  ;;  %v2576_v53 = vsel %vm11595_vm1, %v13353_v7, 0.0  ;;  %v1920_v25 = vadd.s32 %v13254_v29, %v1760_v55  ;;  %v11623_v31 = vpop.f32.mrb[53].mxu1  ;;  %v11625_v40 = vpop.xlane.xlu0 %4355  ;;  %v13358_v35 = vld [vmem:[#allocation32_spill] sm:$0xff] }
 0x2d4   : > { %vm2323_vm8 = vcmp.lt.s32.totalorder %v8540_v9, %v2195_v54  ;;  %v1749_v21 = vsub.s32 %v11373_v63, %v13354_v52  ;;  %13355 = vst [vmem:[#allocation60_spill] sm:$0xff] %v11625_v40  ;;  %v11628_v50 = vmul.f32 %v11407_v20, %v2576_v53  ;;  %vm2081_vm6 = vcmp.ge.s32.totalorder %v8540_v9, %v1921_v48  ;;  %v11646_v8 = vpop.xlane.xlu1 %4323 }
 0x2d5   : > { %vm11632_vm2 = vmand %vm2067_vm5, %vm2323_vm8  ;;  %v2209_v29 = vadd.s32 %v1921_v48, %v13258_v23  ;;  %v2194_v55 = vadd.s32 %v1906_v47, %v13358_v35  ;;  %4453 = vadd.xlane.f32.xlu1 %v11239_v10  ;;  %vm2066_vm13 = vcmp.ge.s32.totalorder %v8540_v9, %v1906_v47  ;;  %v2208_v20 = vadd.s32 %v1920_v25, %v13259_v33  ;;  %v11653_v10 = vpop.f32.mrb[56].mxu0  ;;  %v13361_v33 = vld [vmem:[#allocation40_spill] sm:$0xff] }
 0x2d6   : > { %v2579_v54 = vsel %vm11632_vm2, %v13359_v27, 0.0  ;;  %v1909_v53 = vadd.s32 %v13198_v57, %v1749_v21  ;;  %13360 = vst [vmem:[#allocation35_spill] sm:$0xff] %v11646_v8  ;;  %vm2080_vm11 = vcmp.ge.s32.totalorder %v8540_v9, %v1920_v25  ;;  %v1763_v23 = vsub.s32 %v11363_v16, %v13255_v0  ;;  %4491 = vadd.xlane.f32.xlu0 %v11366_v22 }
 0x2d7   : > { %vm2337_vm4 = vcmp.lt.s32.totalorder %v8540_v9, %v2209_v29  ;;  %vm2322_vm7 = vcmp.lt.s32.totalorder %v8540_v9, %v2194_v55  ;;  %vm2336_vm14 = vcmp.lt.s32.totalorder %v8540_v9, %v2208_v20  ;;  %v1748_v29 = vsub.s32 %v11373_v63, %v13362_v14  ;;  %v11663_v55 = vpop.f32.mrb[57].mxu0  ;;  %v11665_v8 = vpop.xlane.xlu0 %4353 }
 0x2d8   : > { %vm2465_vm15 = vmand %vm2081_vm6, %vm2337_vm4  ;;  %vm2069_vm12 = vcmp.ge.s32.totalorder %v8540_v9, %v1909_v53  ;;  %v2197_v21 = vadd.s32 %v1909_v53, %v13361_v33  ;;  %13363 = vst [vmem:[#allocation33_spill] sm:$0xff] %v11665_v8  ;;  %v1923_v48 = vadd.s32 %v13184_v46, %v1763_v23  ;;  %v1762_v40 = vsub.s32 %v11363_v16, %v13346_v58  ;;  %v11679_v43 = vpop.f32.mrb[54].mxu1  ;;  %v13367_v46 = vld [vmem:[#allocation27_spill] sm:$0xff]  ;;  %v11696_v8 = vpop.xlane.xlu1 %4321 }
 0x2d9   : > { %v2593_v0 = vsel %vm2465_vm15, %v13347_v51, 0.0  ;;  %vm11670_vm0 = vmand %vm2066_vm13, %vm2322_vm7  ;;  %v1751_v30 = vsub.s32 %v11373_v63, %v13366_v28  ;;  %4459 = vadd.xlane.f32.xlu1 %v11269_v45  ;;  %v11683_v51 = vmul.f32 %v11449_v32, %v2579_v54  ;;  %v1908_v58 = vadd.s32 %v13367_v46, %v1748_v29  ;;  %v11694_v23 = vpop.f32.mrb[55].mxu1  ;;  %13368 = vst [vmem:[#allocation67_spill] sm:$0xff] %v11696_v8  ;;  %v13369_v45 = vld [vmem:[#allocation26_spill] sm:$0xff] }
 0x2da   : > { %v11686_v47 = vmul.f32 %v11474_v13, %v2593_v0  ;;  %vm2464_vm3 = vmand %vm2080_vm11, %vm2336_vm14  ;;  %vm2325_vm10 = vcmp.lt.s32.totalorder %v8540_v9, %v2197_v21  ;;  %v2578_v32 = vsel %vm11670_vm0, %v13369_v45, 0.0  ;;  %vm2083_vm1 = vcmp.ge.s32.totalorder %v8540_v9, %v1923_v48  ;;  %4489 = vadd.xlane.f32.xlu0 %v11386_v12  ;;  %v13374_v0 = vld [vmem:[#allocation29_spill] sm:$0xff]  ;;  %v13375_v12 = vld [vmem:[#allocation34_spill] sm:$0xff] }
 0x2db   : > { %v2592_v13 = vsel %vm2464_vm3, %v13353_v7, 0.0  ;;  %vm11704_vm9 = vmand %vm2069_vm12, %vm2325_vm10  ;;  %v2211_v25 = vadd.s32 %v1923_v48, %v13189_v37  ;;  %v11712_v20 = vmul.f32 %v11464_v3, %v2578_v32  ;;  %vm2068_vm5 = vcmp.ge.s32.totalorder %v8540_v9, %v1908_v58  ;;  %v13372_v7 = vld [vmem:[#allocation37_spill] sm:$0xff]  ;;  %v11719_v29 = vpop.xlane.xlu0 %4327  ;;  %v11727_v48 = vpop.f32.mrb[58].mxu0  ;;  %v13376_v32 = vld [vmem:[#allocation50_spill] sm:$0xff] }
 0x2dc   : > { %v11715_v21 = vmul.f32 %v11485_v49, %v2592_v13  ;;  %v2196_v53 = vadd.s32 %v1908_v58, %v13372_v7  ;;  %13373 = vst [vmem:[#allocation38_spill] sm:$0xff] %v11719_v29  ;;  %v2581_v22 = vsel %vm11704_vm9, %v13374_v0, 0.0  ;;  %v1922_v37 = vadd.s32 %v13351_v5, %v1762_v40  ;;  %v11739_v5 = vpop.xlane.xlu1 %4359  ;;  %v13382_v29 = vld [vmem:[#allocation77_spill] sm:$0xff]  ;;  %v13403_v0 = vld [vmem:[#allocation66_spill] sm:$0xff] }
 0x2dd   : > { %vm2339_vm8 = vcmp.lt.s32.totalorder %v8540_v9, %v2211_v25  ;;  %v1911_v3 = vadd.s32 %v13375_v12, %v1751_v30  ;;  %4457 = vadd.xlane.f32.xlu1 %v11300_v34  ;;  %v1765_v49 = vsub.s32 %v11363_v16, %v13354_v52  ;;  %v1750_v13 = vsub.s32 %v11373_v63, %v13376_v32  ;;  %v11737_v25 = vpop.f32.mrb[59].mxu0 }
 0x2de   : > { %vm2467_vm2 = vmand %vm2083_vm1, %vm2339_vm8  ;;  %vm2324_vm6 = vcmp.lt.s32.totalorder %v8540_v9, %v2196_v53  ;;  %v1764_v54 = vsub.s32 %v11363_v16, %v13362_v14  ;;  %13377 = vst [vmem:[#allocation69_spill] sm:$0xff] %v11739_v5  ;;  %v11742_v30 = vmul.f32 %v11517_v39, %v2581_v22  ;;  %vm2082_vm4 = vcmp.ge.s32.totalorder %v8540_v9, %v1922_v37  ;;  %v11753_v14 = vpop.f32.mrb[56].mxu1  ;;  %v13380_v39 = vld [vmem:[#allocation48_spill] sm:$0xff] }
 0x2df   : > { %v2595_v34 = vsel %vm2467_vm2, %v13359_v27, 0.0  ;;  %vm11747_vm13 = vmand %vm2068_vm5, %vm2324_vm6  ;;  %v2210_v52 = vadd.s32 %v1922_v37, %v13358_v35  ;;  %4495 = vadd.xlane.f32.xlu0 %v11443_v1  ;;  %vm2071_vm7 = vcmp.ge.s32.totalorder %v8540_v9, %v1911_v3  ;;  %v2199_v27 = vadd.s32 %v1911_v3, %v13380_v39  ;;  %v11762_v22 = vpop.f32.mrb[57].mxu1  ;;  %v11764_v5 = vpop.xlane.xlu0 %4325  ;;  %v13383_v1 = vld [vmem:[#allocation78_spill] sm:$0xff] }
 0x2e0   : > { %v11757_v53 = vmul.f32 %v11535_v6, %v2595_v34  ;;  %v1925_v58 = vadd.s32 %v13198_v57, %v1765_v49  ;;  %13381 = vst [vmem:[#allocation65_spill] sm:$0xff] %v11764_v5  ;;  %v2580_v35 = vsel %vm11747_vm13, %v13382_v29, 0.0  ;;  %v1910_v8 = vadd.s32 %v13383_v1, %v1750_v13  ;;  %v13384_v34 = vld [vmem:[#allocation75_spill] sm:$0xff]  ;;  %v13385_v49 = vld [vmem:[#allocation61_spill] sm:$0xff]  ;;  %v11780_v5 = vpop.xlane.xlu1 %4357 }
 0x2e1   : > { %vm2338_vm11 = vcmp.lt.s32.totalorder %v8540_v9, %v2210_v52  ;;  %v1924_v6 = vadd.s32 %v13367_v46, %v1764_v54  ;;  %4463 = vadd.xlane.f32.xlu1 %v13384_v34  ;;  %vm2327_vm14 = vcmp.lt.s32.totalorder %v8540_v9, %v2199_v27  ;;  %v1753_v40 = vsub.s32 %v11373_v63, %v13385_v49  ;;  %v13390_v54 = vld [vmem:[#allocation42_spill] sm:$0xff]  ;;  %v11794_v52 = vpop.f32.mrb[60].mxu0 }
 0x2e2   : > { %vm2466_vm15 = vmand %vm2082_vm4, %vm2338_vm11  ;;  %vm2085_vm12 = vcmp.ge.s32.totalorder %v8540_v9, %v1925_v58  ;;  %v2213_v57 = vadd.s32 %v1925_v58, %v13361_v33  ;;  %13386 = vst [vmem:[#allocation74_spill] sm:$0xff] %v11780_v5  ;;  %v11783_v13 = vmul.f32 %v11526_v36, %v2580_v35  ;;  %vm2070_vm3 = vcmp.ge.s32.totalorder %v8540_v9, %v1910_v8  ;;  %v13392_v35 = vld [vmem:[#allocation31_spill] sm:$0xff] }
 0x2e3   : > { %v2594_v46 = vsel %vm2466_vm15, %v13369_v45, 0.0  ;;  %vm11788_vm0 = vmand %vm2071_vm7, %vm2327_vm14  ;;  %v2198_v33 = vadd.s32 %v1910_v8, %v13390_v54  ;;  %4493 = vadd.xlane.f32.xlu0 %v11470_v56  ;;  %vm2084_vm9 = vcmp.ge.s32.totalorder %v8540_v9, %v1924_v6  ;;  %v2212_v36 = vadd.s32 %v1924_v6, %v13372_v7  ;;  %v11803_v45 = vpop.f32.mrb[61].mxu0  ;;  %v11805_v3 = vpop.xlane.xlu0 %4363  ;;  %v13397_v58 = vld [vmem:[#allocation59_spill] sm:$0xff] }
 0x2e4   : > { %13387 = vst [vmem:[#allocation47_spill] sm:$0xff] %v11783_v13  ;;  %v11798_v27 = vmul.f32 %v11550_v60, %v2594_v46  ;;  %vm2341_vm10 = vcmp.lt.s32.totalorder %v8540_v9, %v2213_v57  ;;  %13391 = vst [vmem:[#allocation32_spill] sm:$0xff] %v11805_v3  ;;  %v2583_v34 = vsel %vm11788_vm0, %v13392_v35, 0.0  ;;  %v13395_v60 = vld [vmem:[#allocation43_spill] sm:$0xff]  ;;  %v1767_v7 = vsub.s32 %v11363_v16, %v13366_v28  ;;  %v11820_v46 = vpop.f32.mrb[58].mxu1  ;;  %v11835_v28 = vpop.xlane.xlu1 %4331 }
 0x2e5   : > { %vm11812_vm1 = vmand %vm2085_vm12, %vm2341_vm10  ;;  %vm2326_vm5 = vcmp.lt.s32.totalorder %v8540_v9, %v2198_v33  ;;  %v1913_v57 = vadd.s32 %v13395_v60, %v1753_v40  ;;  %4461 = vadd.xlane.f32.xlu1 %v11369_v15  ;;  %v11824_v37 = vmul.f32 %v11586_v62, %v2583_v34  ;;  %vm2340_vm2 = vcmp.lt.s32.totalorder %v8540_v9, %v2212_v36  ;;  %v11833_v3 = vpop.f32.mrb[59].mxu1  ;;  %v13399_v62 = vld [vmem:[#allocation79_spill] sm:$0xff] }
 0x2e6   : > { %vm2454_vm8 = vmand %vm2070_vm3, %vm2326_vm5  ;;  %v1752_v33 = vsub.s32 %v11373_v63, %v13397_v58  ;;  %v1766_v40 = vsub.s32 %v11363_v16, %v13376_v32  ;;  %13398 = vst [vmem:[#allocation40_spill] sm:$0xff] %v11835_v28  ;;  %v13400_v8 = vld [vmem:[#allocation55_spill] sm:$0xff]  ;;  %v1927_v5 = vadd.s32 %v13375_v12, %v1767_v7 }
 0x2e7   : > { %13396 = vst [vmem:[#allocation24_spill] sm:$0xff] %v11824_v37  ;;  %v2582_v34 = vsel %vm2454_vm8, %v13399_v62, 0.0  ;;  %vm2468_vm6 = vmand %vm2084_vm9, %vm2340_vm2  ;;  %vm2073_vm13 = vcmp.ge.s32.totalorder %v8540_v9, %v1913_v57  ;;  %v2201_v36 = vadd.s32 %v1913_v57, %v13400_v8  ;;  %4497 = vadd.xlane.f32.xlu0 %v11555_v2  ;;  %v13401_v37 = vld [vmem:[#allocation39_spill] sm:$0xff]  ;;  %v11852_v13 = vpop.xlane.xlu0 %4361  ;;  %v1755_v2 = vsub.s32 %v11373_v63, %v13403_v0 }
 0x2e8   : > { %v11847_v32 = vmul.f32 %v11601_v17, %v2582_v34  ;;  %v2596_v28 = vsel %vm2468_vm6, %v13382_v29, 0.0  ;;  %v1912_v15 = vadd.s32 %v13401_v37, %v1752_v33  ;;  %13402 = vst [vmem:[#allocation44_spill] sm:$0xff] %v11852_v13  ;;  %v1926_v57 = vadd.s32 %v13383_v1, %v1766_v40  ;;  %v11861_v17 = vpop.f32.mrb[62].mxu0  ;;  %v11870_v33 = vpop.xlane.xlu1 %4329  ;;  %v13406_v1 = vld [vmem:[#allocation80_spill] sm:$0xff] }
 0x2e9   : > { %v11855_v6 = vmul.f32 %v11623_v31, %v2596_v28  ;;  %vm2329_vm4 = vcmp.lt.s32.totalorder %v8540_v9, %v2201_v36  ;;  %4467 = vadd.xlane.f32.xlu1 %v11440_v42  ;;  %vm2087_vm11 = vcmp.ge.s32.totalorder %v8540_v9, %v1927_v5  ;;  %v2215_v29 = vadd.s32 %v1927_v5, %v13380_v39  ;;  %v13404_v31 = vld [vmem:[#allocation53_spill] sm:$0xff]  ;;  %v11868_v7 = vpop.f32.mrb[63].mxu0  ;;  %v11876_v34 = vpop.f32.mrb[60].mxu1 }
 0x2ea   : > { %vm2457_vm7 = vmand %vm2073_vm13, %vm2329_vm4  ;;  %vm2072_vm15 = vcmp.ge.s32.totalorder %v8540_v9, %v1912_v15  ;;  %v2200_v12 = vadd.s32 %v1912_v15, %v13404_v31  ;;  %13405 = vst [vmem:[#allocation54_spill] sm:$0xff] %v11870_v33  ;;  %vm2086_vm14 = vcmp.ge.s32.totalorder %v8540_v9, %v1926_v57  ;;  %v2214_v28 = vadd.s32 %v1926_v57, %v13390_v54  ;;  %v11886_v33 = vpop.f32.mrb[61].mxu1  ;;  %v13410_v54 = vld [vmem:[#allocation63_spill] sm:$0xff] }
 0x2eb   : > { %v2585_v40 = vsel %vm2457_vm7, %v13406_v1, 0.0  ;;  %v1915_v42 = vadd.s32 %v13292_v18, %v1755_v2  ;;  %4471 = vadd.xlane.f32.xlu0 %v11500_v24  ;;  %vm2343_vm12 = vcmp.lt.s32.totalorder %v8540_v9, %v2215_v29  ;;  %v1769_v36 = vsub.s32 %v11363_v16, %v13385_v49  ;;  %v11888_v13 = vpop.xlane.xlu0 %4367  ;;  %v13409_v24 = vld [vmem:[#allocation58_spill] sm:$0xff]  ;;  %v13438_v56 = vld [vmem:[#allocation47_spill] sm:$0xff] }
 0x2ec   : > { %v11880_v39 = vmul.f32 %v11653_v10, %v2585_v40  ;;  %vm2328_vm0 = vcmp.lt.s32.totalorder %v8540_v9, %v2200_v12  ;;  %13408 = vst [vmem:[#allocation26_spill] sm:$0xff] %v11888_v13  ;;  %vm2471_vm3 = vmand %vm2087_vm11, %vm2343_vm12  ;;  %vm2342_vm10 = vcmp.lt.s32.totalorder %v8540_v9, %v2214_v28  ;;  %v1754_v2 = vsub.s32 %v11373_v63, %v13410_v54  ;;  %v13411_v12 = vld [vmem:[#allocation70_spill] sm:$0xff]  ;;  %v11906_v28 = vpop.xlane.xlu1 %4335 }
 0x2ed   : > { %vm2075_vm9 = vcmp.ge.s32.totalorder %v8540_v9, %v1915_v42  ;;  %v2203_v10 = vadd.s32 %v1915_v42, %v13409_v24  ;;  %4465 = vadd.xlane.f32.xlu1 %v11467_v59  ;;  %v2599_v49 = vsel %vm2471_vm3, %v13392_v35, 0.0  ;;  %vm2456_vm5 = vmand %vm2072_vm15, %vm2328_vm0  ;;  %v1929_v29 = vadd.s32 %v13395_v60, %v1769_v36  ;;  %v13413_v35 = vld [vmem:[#allocation45_spill] sm:$0xff]  ;;  %v11916_v15 = vpop.f32.mrb[62].mxu1 }
 0x2ee   : > { %13407 = vst [vmem:[#allocation27_spill] sm:$0xff] %v11880_v39  ;;  %v1768_v5 = vsub.s32 %v11363_v16, %v13397_v58  ;;  %v1757_v40 = vsub.s32 %v11373_v63, %v13411_v12  ;;  %v11909_v13 = vmul.f32 %v11679_v43, %v2599_v49  ;;  %v13412_v39 = vld [vmem:[#allocation81_spill] sm:$0xff]  ;;  %vm2470_vm8 = vmand %vm2086_vm14, %vm2342_vm10  ;;  %v1914_v60 = vadd.s32 %v13413_v35, %v1754_v2  ;;  %v11927_v57 = vpop.f32.mrb[63].mxu1 }
 0x2ef   : > { %v2584_v59 = vsel %vm2456_vm5, %v13412_v39, 0.0  ;;  %vm2331_vm2 = vcmp.lt.s32.totalorder %v8540_v9, %v2203_v10  ;;  %4469 = vadd.xlane.f32.xlu0 %v11539_v38  ;;  %v2598_v36 = vsel %vm2470_vm8, %v13399_v62, 0.0  ;;  %vm2089_vm13 = vcmp.ge.s32.totalorder %v8540_v9, %v1929_v29  ;;  %v11929_v10 = vpop.xlane.xlu0 %4365  ;;  %v13414_v38 = vld [vmem:[#allocation82_spill] sm:$0xff] }
 0x2f0   : > { %v11920_v58 = vmul.f32 %v11663_v55, %v2584_v59  ;;  %vm2459_vm6 = vmand %vm2075_vm9, %vm2331_vm2  ;;  %v2217_v43 = vadd.s32 %v1929_v29, %v13400_v8  ;;  %v11932_v2 = vmul.f32 %v11694_v23, %v2598_v36  ;;  %vm2074_vm4 = vcmp.ge.s32.totalorder %v8540_v9, %v1914_v60  ;;  %v13415_v55 = vld [vmem:[#allocation57_spill] sm:$0xff]  ;;  %v11944_v59 = vpop.xlane.xlu1 %4333  ;;  %v13416_v36 = vld [vmem:[#allocation68_spill] sm:$0xff] }
 0x2f1   : > { %v2587_v49 = vsel %vm2459_vm6, %v13414_v38, 0.0  ;;  %v2202_v62 = vadd.s32 %v1914_v60, %v13415_v55  ;;  %4499 = vadd.xlane.f32.xlu1 %v11512_v4  ;;  %v1928_v8 = vadd.s32 %v13401_v37, %v1768_v5  ;;  %v1917_v29 = vadd.s32 %v13305_v26, %v1757_v40 }
 0x2f2   : > { %v11939_v42 = vmul.f32 %v11727_v48, %v2587_v49  ;;  %vm2345_vm7 = vcmp.lt.s32.totalorder %v8540_v9, %v2217_v43  ;;  %v1771_v23 = vsub.s32 %v11363_v16, %v13403_v0  ;;  %v1756_v4 = vsub.s32 %v11373_v63, %v13416_v36  ;;  %v13417_v43 = vld [vmem:[#allocation83_spill] sm:$0xff]  ;;  %v13418_v49 = vld [vmem:[#allocation62_spill] sm:$0xff] }
 0x2f3   : > { %vm2473_vm11 = vmand %vm2089_vm13, %vm2345_vm7  ;;  %vm2330_vm15 = vcmp.lt.s32.totalorder %v8540_v9, %v2202_v62  ;;  %v1770_v48 = vsub.s32 %v11363_v16, %v13410_v54  ;;  %4503 = vadd.xlane.f32.xlu0 %v11577_v61  ;;  %vm2088_vm12 = vcmp.ge.s32.totalorder %v8540_v9, %v1928_v8  ;;  %v2216_v5 = vadd.s32 %v1928_v8, %v13404_v31  ;;  %v11960_v0 = vpop.xlane.xlu0 %4371 }
 0x2f4   : > { %v2601_v37 = vsel %vm2473_vm11, %v13406_v1, 0.0  ;;  %vm2458_vm14 = vmand %vm2074_vm4, %vm2330_vm15  ;;  %vm2077_vm0 = vcmp.ge.s32.totalorder %v8540_v9, %v1917_v29  ;;  %v2205_v61 = vadd.s32 %v1917_v29, %v13418_v49  ;;  %v1931_v1 = vadd.s32 %v13292_v18, %v1771_v23  ;;  %v11975_v8 = vpop.xlane.xlu1 %4339  ;;  %v13421_v29 = vld [vmem:[#allocation86_spill] sm:$0xff] }
 0x2f5   : > { %v11963_v40 = vmul.f32 %v11753_v14, %v2601_v37  ;;  %v2586_v54 = vsel %vm2458_vm14, %v13417_v43, 0.0  ;;  %4501 = vadd.xlane.f32.xlu1 %v11609_v41  ;;  %vm2344_vm3 = vcmp.lt.s32.totalorder %v8540_v9, %v2216_v5  ;;  %v1916_v31 = vadd.s32 %v13312_v11, %v1756_v4  ;;  %v13419_v14 = vld [vmem:[#allocation76_spill] sm:$0xff] }
 0x2f6   : > { %v11970_v60 = vmul.f32 %v11737_v25, %v2586_v54  ;;  %v1930_v62 = vadd.s32 %v13413_v35, %v1770_v48  ;;  %vm2472_vm10 = vmand %vm2088_vm12, %vm2344_vm3  ;;  %vm2333_vm9 = vcmp.lt.s32.totalorder %v8540_v9, %v2205_v61  ;;  %vm2091_vm5 = vcmp.ge.s32.totalorder %v8540_v9, %v1931_v1  ;;  %v13420_v4 = vld [vmem:[#allocation84_spill] sm:$0xff] }
 0x2f7   : > { %v2219_v18 = vadd.s32 %v1931_v1, %v13409_v24  ;;  %v1759_v41 = vsub.s32 %v11373_v63, %v13419_v14  ;;  %4505 = vadd.xlane.f32.xlu0 %v11628_v50  ;;  %v2600_v25 = vsel %vm2472_vm10, %v13412_v39, 0.0  ;;  %vm2461_vm8 = vmand %vm2077_vm0, %vm2333_vm9  ;;  %vm2076_vm2 = vcmp.ge.s32.totalorder %v8540_v9, %v1916_v31  ;;  %v11989_v23 = vpop.xlane.xlu0 %4369 }
 0x2f8   : > { %v2204_v35 = vadd.s32 %v1916_v31, %v13316_v19  ;;  %vm2090_vm6 = vcmp.ge.s32.totalorder %v8540_v9, %v1930_v62  ;;  %v11992_v24 = vmul.f32 %v11762_v22, %v2600_v25  ;;  %v2589_v48 = vsel %vm2461_vm8, %v13420_v4, 0.0  ;;  %v12007_v5 = vpop.xlane.xlu1 %4337 }
 0x2f9   : > { %vm2347_vm13 = vcmp.lt.s32.totalorder %v8540_v9, %v2219_v18  ;;  %v2218_v50 = vadd.s32 %v1930_v62, %v13415_v55  ;;  %4507 = vadd.xlane.f32.xlu1 %v11606_v44  ;;  %v11999_v39 = vmul.f32 %v11794_v52, %v2589_v48  ;;  %v1919_v37 = vadd.s32 %v13421_v29, %v1759_v41  ;;  %v13422_v44 = vld [vmem:[#allocation72_spill] sm:$0xff] }
 0x2fa   : > { %vm2475_vm4 = vmand %vm2091_vm5, %vm2347_vm13  ;;  %vm2332_vm7 = vcmp.lt.s32.totalorder %v8540_v9, %v2204_v35  ;;  %v1773_v22 = vsub.s32 %v11363_v16, %v13411_v12  ;;  %v1758_v52 = vsub.s32 %v11373_v63, %v13422_v44  ;;  %v1772_v55 = vsub.s32 %v11363_v16, %v13416_v36  ;;  %v13423_v12 = vld [vmem:[#allocation85_spill] sm:$0xff] }
 0x2fb   : > { %v2603_v54 = vsel %vm2475_vm4, %v13414_v38, 0.0  ;;  %vm2460_vm11 = vmand %vm2076_vm2, %vm2332_vm7  ;;  %vm2346_vm15 = vcmp.lt.s32.totalorder %v8540_v9, %v2218_v50  ;;  %4539 = vadd.xlane.f32.xlu0 %v11686_v47  ;;  %vm2079_vm12 = vcmp.ge.s32.totalorder %v8540_v9, %v1919_v37  ;;  %v13424_v38 = vld [vmem:[#allocation71_spill] sm:$0xff]  ;;  %v12026_v18 = vpop.xlane.xlu0 %4375  ;;  %v1775_v35 = vsub.s32 %v11363_v16, %v13419_v14 }
 0x2fc   : > { %v12019_v61 = vmul.f32 %v11820_v46, %v2603_v54  ;;  %v2588_v1 = vsel %vm2460_vm11, %v13423_v12, 0.0  ;;  %vm2474_vm14 = vmand %vm2090_vm6, %vm2346_vm15  ;;  %v2207_v31 = vadd.s32 %v1919_v37, %v13424_v38  ;;  %v1933_v47 = vadd.s32 %v13305_v26, %v1773_v22  ;;  %v13425_v46 = vld [vmem:[#allocation52_spill] sm:$0xff] }
 0x2fd   : > { %v12029_v63 = vmul.f32 %v11803_v45, %v2588_v1  ;;  %v2602_v36 = vsel %vm2474_vm14, %v13417_v43, 0.0  ;;  %v1918_v41 = vadd.s32 %v13425_v46, %v1758_v52  ;;  %4537 = vadd.xlane.f32.xlu1 %v11715_v21  ;;  %v1932_v25 = vadd.s32 %v13312_v11, %v1772_v55  ;;  %v12042_v45 = vpop.xlane.xlu1 %4343  ;;  %v13426_v21 = vld [vmem:[#allocation64_spill] sm:$0xff] }
 0x2fe   : > { %v12036_v62 = vmul.f32 %v11833_v3, %v2602_v36  ;;  %vm2335_vm0 = vcmp.lt.s32.totalorder %v8540_v9, %v2207_v31  ;;  %vm2093_vm10 = vcmp.ge.s32.totalorder %v8540_v9, %v1933_v47  ;;  %v2221_v26 = vadd.s32 %v1933_v47, %v13418_v49  ;;  %v13427_v3 = vld [vmem:[#allocation56_spill] sm:$0xff]  ;;  %v13431_v47 = vld [vmem:[#allocation25_spill] sm:$0xff] }
 0x2ff   : > { %vm2463_vm3 = vmand %vm2079_vm12, %vm2335_vm0  ;;  %vm2078_vm9 = vcmp.ge.s32.totalorder %v8540_v9, %v1918_v41  ;;  %v2206_v43 = vadd.s32 %v1918_v41, %v13426_v21  ;;  %4509 = vadd.xlane.f32.xlu0 %v11712_v20  ;;  %vm2092_vm5 = vcmp.ge.s32.totalorder %v8540_v9, %v1932_v25  ;;  %v2220_v11 = vadd.s32 %v1932_v25, %v13316_v19  ;;  %v12053_v50 = vpop.xlane.xlu0 %4373  ;;  %v13430_v36 = vld [vmem:[#allocation36_spill] sm:$0xff] }
 0x300   : > { %v2591_v48 = vsel %vm2463_vm3, %v13427_v3, 0.0  ;;  %v1935_v14 = vadd.s32 %v13421_v29, %v1775_v35  ;;  %vm2349_vm8 = vcmp.lt.s32.totalorder %v8540_v9, %v2221_v26  ;;  %v1774_v20 = vsub.s32 %v11363_v16, %v13422_v44  ;;  %v13429_v44 = vld [vmem:[#allocation87_spill] sm:$0xff]  ;;  %v13435_v26 = vld [vmem:[#allocation29_spill] sm:$0xff] }
 0x301   : > { %v12056_v37 = vmul.f32 %v11861_v17, %v2591_v48  ;;  %vm2334_vm2 = vcmp.lt.s32.totalorder %v8540_v9, %v2206_v43  ;;  %4511 = vadd.xlane.f32.xlu1 %v11683_v51  ;;  %vm2477_vm6 = vmand %vm2093_vm10, %vm2349_vm8  ;;  %vm2348_vm13 = vcmp.lt.s32.totalorder %v8540_v9, %v2220_v11  ;;  %v4740_v17 = vadd.s32 4294967288, %v8540_v9  ;;  %v12069_v49 = vpop.xlane.xlu1 %4341  ;;  %v13428_v51 = vld [vmem:[#allocation22_spill] sm:$0xff]  ;;  %v13437_v43 = vld [vmem:[#allocation49_spill] sm:$0xff] }
 0x302   : > { %vm2095_vm4 = vcmp.ge.s32.totalorder %v8540_v9, %v1935_v14  ;;  %v2223_v19 = vadd.s32 %v1935_v14, %v13424_v38  ;;  %v2605_v29 = vsel %vm2477_vm6, %v13420_v4, 0.0  ;;  %vm2462_vm7 = vmand %vm2078_vm9, %vm2334_vm2  ;;  %v1934_v16 = vadd.s32 %v13425_v46, %v1774_v20 }
 0x303   : > { %v12077_v22 = vsub.s32 %v8540_v9, %v13428_v51  ;;  %vm4745_vm11 = vcmask 130112   ;;  %4543 = vadd.xlane.f32.xlu0 %v11757_v53  ;;  %v12081_v54 = vmul.f32 %v11876_v34, %v2605_v29  ;;  %v2590_v52 = vsel %vm2462_vm7, %v13429_v44, 0.0  ;;  %vm2476_vm15 = vmand %vm2092_vm5, %vm2348_vm13  ;;  %v12090_v55 = vpop.xlane.xlu0 %4377 }
 0x304   : > { %vm2351_vm14 = vcmp.lt.s32.totalorder %v8540_v9, %v2223_v19  ;;  %v12088_v4 = vsub.s32 %v4740_v17, %v13428_v51  ;;  %v12093_v1 = vmul.f32 %v11868_v7, %v2590_v52  ;;  %v2604_v53 = vsel %vm2476_vm15, %v13423_v12, 0.0 }
 0x305   : > { %vm2479_vm12 = vmand %vm2095_vm4, %vm2351_vm14  ;;  %vm2094_vm0 = vcmp.ge.s32.totalorder %v8540_v9, %v1934_v16  ;;  %v2222_v34 = vadd.s32 %v1934_v16, %v13426_v21  ;;  %4515 = vadd.xlane.f32.xlu1 %v11742_v30  ;;  %v12102_v38 = vmul.f32 %v11886_v33, %v2604_v53  ;;  %v4739_v12 = vrot.slane %v13431_v47, %v12077_v22  ;;  %v12109_v46 = vpop.xlane.xlu1 %4379  ;;  %v13433_v30 = vld [vmem:[#allocation41_spill] sm:$0xff]  ;;  %v13441_v47 = vld [vmem:[#allocation51_spill] sm:$0xff] }
 0x306   : > { %v2607_v31 = vsel %vm2479_vm12, %v13427_v3, 0.0  ;;  %v4744_v7 = vrot.slane %v13430_v36, %v12088_v4  ;;  %v4848_v25 = vrot.slane %v13433_v30, %v12077_v22  ;;  %v13434_v33 = vld [vmem:[#allocation73_spill] sm:$0xff]  ;;  %v13436_v21 = vsel %vm11812_vm1, %v13435_v26, 0.0  ;;  %v13440_v36 = vld [vmem:[#allocation46_spill] sm:$0xff] }
 0x307   : > { %v12112_v41 = vmul.f32 %v11916_v15, %v2607_v31  ;;  %vm2350_vm3 = vcmp.lt.s32.totalorder %v8540_v9, %v2222_v34  ;;  %v4852_v35 = vrot.slane %v13434_v33, %v12088_v4  ;;  %4541 = vadd.xlane.f32.xlu0 %v11798_v27  ;;  %v4302_v3 = vmul.f32 %v13437_v43, %v13436_v21  ;;  %v12128_v14 = vpop.xlane.xlu0 %4411 }
 0x308   : > { %vm2478_vm10 = vmand %vm2094_vm0, %vm2350_vm3  ;;  %v4746_v15 = vsel %vm4745_vm11, %v4744_v7, %v4739_v12  ;;  %v4754_v48 = vadd.s32 4294967272, %v8540_v9  ;;  %v4747_v11 = vadd.s32 4294967280, %v8540_v9  ;;  %vm4752_vm9 = vcmask 195712  }
 0x309   : > { %13432 = vst [vmem:[#allocation37_spill] sm:$0xff] %v12112_v41  ;;  %v2606_v20 = vsel %vm2478_vm10, %v13429_v44, 0.0  ;;  %v4853_v19 = vsel %vm4745_vm11, %v4852_v35, %v4848_v25  ;;  %v4768_v27 = vadd.s32 4294967256, %v8540_v9  ;;  %4513 = vadd.xlane.f32.xlu1 %v13438_v56  ;;  %v4761_v52 = vadd.s32 4294967264, %v8540_v9  ;;  %v12144_v53 = vpop.xlane.xlu1 %4409  ;;  %v13442_v25 = vld [vmem:[#allocation28_spill] sm:$0xff]  ;;  %v13454_v41 = vld [vmem:[#allocation27_spill] sm:$0xff] }
 0x30a   : > { %v12135_v17 = vmul.f32 %v11927_v57, %v2606_v20  ;;  %v12138_v29 = vsub.s32 %v4754_v48, %v13428_v51  ;;  %v12141_v16 = vsub.s32 %v4747_v11, %v13428_v51  ;;  %vm4759_vm1 = vcmask 261312   ;;  %v13439_v57 = vld [vmem:[#allocation30_spill] sm:$0xff]  ;;  %v13443_v35 = vld [vmem:[#allocation60_spill] sm:$0xff]  ;;  %v13445_v20 = vld [vmem:[#allocation35_spill] sm:$0xff] }
 0x30b   : > { %v12147_v44 = vsub.s32 %v4768_v27, %v13428_v51  ;;  %vm4766_vm5 = vcmask 326912   ;;  %v4782_v34 = vadd.s32 4294967240, %v8540_v9  ;;  %4547 = vadd.xlane.f32.xlu0 %v4302_v3  ;;  %vm4773_vm8 = vcmask 392512   ;;  %v12156_v30 = vpop.xlane.xlu0 %4381  ;;  %v13444_v3 = vld [vmem:[#allocation24_spill] sm:$0xff] }
 0x30c   : > { %v4758_v31 = vrot.slane %v13439_v57, %v12138_v29  ;;  %v4751_v7 = vrot.slane %v13440_v36, %v12141_v16  ;;  %v4857_v12 = vrot.slane %v13441_v47, %v12141_v16  ;;  %v4862_v33 = vrot.slane %v13442_v25, %v12138_v29  ;;  %v13447_v25 = vld [vmem:[#allocation67_spill] sm:$0xff] }
 0x30d   : > { %v4872_v26 = vrot.slane %v13443_v35, %v12147_v44  ;;  %v12163_v21 = vsub.s32 %v4761_v52, %v13428_v51  ;;  %v12166_v43 = vsub.s32 %v4782_v34, %v13428_v51  ;;  %4519 = vadd.xlane.f32.xlu1 %v13444_v3  ;;  %v4772_v27 = vrot.slane %v13445_v20, %v12147_v44  ;;  %v12174_v57 = vpop.xlane.xlu1 %4383  ;;  %v13446_v52 = vld [vmem:[#allocation33_spill] sm:$0xff] }
 0x30e   : > { %v4753_v48 = vsel %vm4752_vm9, %v4751_v7, %v4746_v15  ;;  %v4858_v11 = vsel %vm4752_vm9, %v4857_v12, %v4853_v19  ;;  %v4775_v56 = vadd.s32 4294967248, %v8540_v9  ;;  %v13448_v15 = vld [vmem:[#allocation38_spill] sm:$0xff]  ;;  %vm4780_vm2 = vcmask 458112  }
 0x30f   : > { %v4863_v36 = vsel %vm4759_vm1, %v4862_v33, %v4858_v11  ;;  %v4867_v47 = vrot.slane %v13446_v52, %v12163_v21  ;;  %v4760_v34 = vsel %vm4759_vm1, %v4758_v31, %v4753_v48  ;;  %v4765_v35 = vrot.slane %v13447_v25, %v12163_v21  ;;  %4545 = vadd.xlane.f32.xlu0 %v11855_v6  ;;  %v12189_v33 = vpop.xlane.xlu0 %4415  ;;  %v13449_v11 = vld [vmem:[#allocation65_spill] sm:$0xff]  ;;  %v13450_v52 = vld [vmem:[#allocation74_spill] sm:$0xff] }
 0x310   : > { %v4786_v19 = vrot.slane %v13448_v15, %v12166_v43  ;;  %v12186_v7 = vsub.s32 %v4775_v56, %v13428_v51  ;;  %v4796_v12 = vadd.s32 4294967224, %v8540_v9  ;;  %vm4787_vm6 = vcmask 523712  }
 0x311   : > { %v4868_v3 = vsel %vm4766_vm5, %v4867_v47, %v4863_v36  ;;  %v4767_v31 = vsel %vm4766_vm5, %v4765_v35, %v4760_v34  ;;  %v4789_v48 = vadd.s32 4294967232, %v8540_v9  ;;  %4517 = vadd.xlane.f32.xlu1 %v11847_v32  ;;  %v12201_v15 = vpop.xlane.xlu1 %4385  ;;  %v13451_v36 = vld [vmem:[#allocation69_spill] sm:$0xff]  ;;  %vm4794_vm13 = vcmask 589312  }
 0x312   : > { %v4774_v6 = vsel %vm4773_vm8, %v4772_v27, %v4767_v31  ;;  %v4779_v20 = vrot.slane %v13449_v11, %v12186_v7  ;;  %v4873_v56 = vsel %vm4773_vm8, %v4872_v26, %v4868_v3  ;;  %v4877_v25 = vrot.slane %v13450_v52, %v12186_v7  ;;  %v13452_v11 = vld [vmem:[#allocation32_spill] sm:$0xff] }
 0x313   : > { %v4882_v47 = vrot.slane %v13451_v36, %v12166_v43  ;;  %v12206_v34 = vsub.s32 %v4796_v12, %v13428_v51  ;;  %v12209_v32 = vsub.s32 %v4789_v48, %v13428_v51  ;;  %v4810_v27 = vadd.s32 4294967208, %v8540_v9  ;;  %4551 = vadd.xlane.f32.xlu0 %v11909_v13  ;;  %v12216_v31 = vpop.xlane.xlu0 %4413  ;;  %v13453_v48 = vld [vmem:[#allocation44_spill] sm:$0xff] }
 0x314   : > { %v4781_v26 = vsel %vm4780_vm2, %v4779_v20, %v4774_v6  ;;  %v4878_v35 = vsel %vm4780_vm2, %v4877_v25, %v4873_v56  ;;  %v4803_v3 = vadd.s32 4294967216, %v8540_v9  ;;  %vm4801_vm4 = vcmask 654912   ;;  %v13455_v6 = vld [vmem:[#allocation54_spill] sm:$0xff] }
 0x315   : > { %v4892_v12 = vrot.slane %v13452_v11, %v12206_v34  ;;  %v4883_v52 = vsel %vm4787_vm6, %v4882_v47, %v4878_v35  ;;  %v4887_v36 = vrot.slane %v13453_v48, %v12209_v32  ;;  %4523 = vadd.xlane.f32.xlu1 %v13454_v41  ;;  %v4788_v13 = vsel %vm4787_vm6, %v4786_v19, %v4781_v26  ;;  %v12233_v11 = vpop.xlane.xlu1 %4419  ;;  %v13456_v47 = vld [vmem:[#allocation40_spill] sm:$0xff] }
 0x316   : > { %v4793_v20 = vrot.slane %v13455_v6, %v12209_v32  ;;  %v12228_v56 = vsub.s32 %v4810_v27, %v13428_v51  ;;  %v12231_v25 = vsub.s32 %v4803_v3, %v13428_v51  ;;  %v4800_v35 = vrot.slane %v13456_v47, %v12206_v34  ;;  %v13457_v27 = vld [vmem:[#allocation26_spill] sm:$0xff] }
 0x317   : > { %v4888_v48 = vsel %vm4794_vm13, %v4887_v36, %v4883_v52  ;;  %vm4808_vm7 = vcmask 720512   ;;  %v4824_v41 = vadd.s32 4294967192, %v8540_v9  ;;  %4549 = vadd.xlane.f32.xlu0 %v11932_v2  ;;  %vm12961_vm15 = vcmask 786112   ;;  %v12244_v6 = vpop.xlane.xlu0 %4387 }
 0x318   : > { %v4795_v19 = vsel %vm4794_vm13, %v4793_v20, %v4788_v13  ;;  %v4902_v26 = vrot.slane %v13457_v27, %v12228_v56  ;;  %v4893_v3 = vsel %vm4801_vm4, %v4892_v12, %v4888_v48  ;;  %v4897_v47 = vrot.slane %v11929_v10, %v12231_v25 }
 0x319   : > { %v4802_v52 = vsel %vm4801_vm4, %v4800_v35, %v4795_v19  ;;  %v4807_v36 = vrot.slane %v11944_v59, %v12231_v25  ;;  %v12252_v2 = vsub.s32 %v4824_v41, %v13428_v51  ;;  %4521 = vadd.xlane.f32.xlu1 %v11920_v58  ;;  %v4814_v13 = vrot.slane %v11906_v28, %v12228_v56  ;;  %v12259_v48 = vpop.xlane.xlu1 %4417 }
 0x31a   : > { %v4817_v12 = vadd.s32 4294967200, %v8540_v9  ;;  %vm4822_vm14 = vcmask 851712   ;;  %v4838_v20 = vadd.s32 4294967176, %v8540_v9  ;;  %v4898_v10 = vsel %vm4808_vm7, %v4897_v47, %v4893_v3 }
 0x31b   : > { %v4809_v35 = vsel %vm4808_vm7, %v4807_v36, %v4802_v52  ;;  %v4912_v59 = vrot.slane %v11960_v0, %v12252_v2  ;;  %vm4829_vm12 = vcmask 917312   ;;  %4555 = vadd.xlane.f32.xlu0 %v11963_v40  ;;  %v4903_v28 = vsel %vm12961_vm15, %v4902_v26, %v4898_v10  ;;  %v4390_v27 = vpop.xlane.xlu0 %4389 }
 0x31c   : > { %v12267_v58 = vsub.s32 %v4817_v12, %v13428_v51  ;;  %v4816_v41 = vsel %vm12961_vm15, %v4814_v13, %v4809_v35  ;;  %v12272_v19 = vsub.s32 %v4838_v20, %v13428_v51  ;;  %v4828_v3 = vrot.slane %v11975_v8, %v12252_v2 }
 0x31d   : > { %v4831_v47 = vadd.s32 4294967184, %v8540_v9  ;;  %vm4836_vm0 = vcmask 982912   ;;  %vm4843_vm3 = vcmask 1048512   ;;  %4527 = vadd.xlane.f32.xlu1 %v11939_v42  ;;  %vm5398_vm10 = vcmask 1041409   ;;  %v4392_v52 = vpop.xlane.xlu1 %4391 }
 0x31e   : > { %v4907_v0 = vrot.slane %v11989_v23, %v12267_v58  ;;  %v4821_v40 = vrot.slane %v12007_v5, %v12267_v58  ;;  %v4922_v26 = vrot.slane %v12026_v18, %v12272_v19  ;;  %v4927_v8 = vrot.slane %v12090_v55, %v12077_v22 }
 0x31f   : > { %v12285_v36 = vsub.s32 %v4831_v47, %v13428_v51  ;;  %v4931_v42 = vrot.slane %v12109_v46, %v12088_v4  ;;  %v5010_v23 = vrot.slane %v12128_v14, %v12088_v4  ;;  %4553 = vadd.xlane.f32.xlu0 %v11992_v24  ;;  %v5006_v13 = vrot.slane %v12144_v53, %v12077_v22  ;;  %v4424_v20 = vpop.xlane.xlu0 %4423 }
 0x320   : > { %v4908_v5 = vsel %vm4822_vm14, %v4907_v0, %v4903_v28  ;;  %v4823_v18 = vsel %vm4822_vm14, %v4821_v40, %v4816_v41  ;;  %v4936_v12 = vrot.slane %v12156_v30, %v12141_v16  ;;  %v4842_v10 = vrot.slane %v12042_v45, %v12272_v19 }
 0x321   : > { %v4913_v55 = vsel %vm4829_vm12, %v4912_v59, %v4908_v5  ;;  %v4917_v46 = vrot.slane %v12053_v50, %v12285_v36  ;;  %v4830_v14 = vsel %vm4829_vm12, %v4828_v3, %v4823_v18  ;;  %v4835_v24 = vrot.slane %v12069_v49, %v12285_v36  ;;  %4525 = vadd.xlane.f32.xlu1 %v11970_v60  ;;  %v4396_v59 = vpop.xlane.xlu1 %4395 }
 0x322   : > { %v4932_v53 = vsel %vm4745_vm11, %v4931_v42, %v4927_v8  ;;  %v5011_v30 = vsel %vm4745_vm11, %v5010_v23, %v5006_v13  ;;  %v4941_v35 = vrot.slane %v12174_v57, %v12138_v29  ;;  %v4946_v60 = vrot.slane %v12201_v15, %v12163_v21 }
 0x323   : > { %v4918_v50 = vsel %vm4836_vm0, %v4917_v46, %v4913_v55  ;;  %v4837_v28 = vsel %vm4836_vm0, %v4835_v24, %v4830_v14  ;;  %v4937_v41 = vsel %vm4752_vm9, %v4936_v12, %v4932_v53  ;;  %4557 = vadd.xlane.f32.xlu0 %v12036_v62  ;;  %v5015_v57 = vrot.slane %v12216_v31, %v12141_v16  ;;  %v4422_v47 = vpop.xlane.xlu0 %4421  ;;  %v4570_v46 = vld [vmem:[#allocation9 + $0x8] sm:$0xff] }
 0x324   : > { %v4923_v45 = vsel %vm4843_vm3, %v4922_v26, %v4918_v50  ;;  %v4844_v49 = vsel %vm4843_vm3, %v4842_v10, %v4837_v28  ;;  %v4942_v3 = vsel %vm4759_vm1, %v4941_v35, %v4937_v41  ;;  %v5020_v40 = vrot.slane %v12189_v33, %v12138_v29  ;;  %v4572_v35 = vld [vmem:[#allocation9 + $0x18] sm:$0xff] }
 0x325   : > { %v12325_v0 = vsel %vm5398_vm10, %v4923_v45, %v4844_v49  ;;  %v4947_v15 = vsel %vm4766_vm5, %v4946_v60, %v4942_v3  ;;  %v4951_v62 = vrot.slane %v12244_v6, %v12147_v44  ;;  %4559 = vadd.xlane.f32.xlu1 %v12019_v61  ;;  %v5016_v26 = vsel %vm4752_vm9, %v5015_v57, %v5011_v30  ;;  %v4394_v23 = vpop.xlane.xlu1 %4393 }
 0x326   : > { %v5025_v8 = vrot.slane %v12259_v48, %v12163_v21  ;;  %v4956_v31 = vrot.slane %v4390_v27, %v12186_v7  ;;  %v4961_v42 = vrot.slane %v4392_v52, %v12166_v43  ;;  %v5030_v33 = vrot.slane %v12233_v11, %v12147_v44 }
 0x327   : > { %v4952_v5 = vsel %vm4773_vm8, %v4951_v62, %v4947_v15  ;;  %v5021_v18 = vsel %vm4759_vm1, %v5020_v40, %v5016_v26  ;;  %4531 = vadd.xlane.f32.xlu0 %v11999_v39  ;;  %v5035_v48 = vrot.slane %v4422_v47, %v12186_v7  ;;  %v4966_v27 = vrot.slane %v4394_v23, %v12209_v32  ;;  %v4428_v13 = vpop.xlane.xlu0 %4427  ;;  %v4569_v39 = vld [vmem:[#allocation9] sm:$0xff]  ;;  %v4574_v15 = vld [vmem:[#allocation9 + $0x28] sm:$0xff]  ;;  %v4575_v23 = vld [vmem:[#allocation9 + $0x30] sm:$0xff] }
 0x328   : > { %v5026_v61 = vsel %vm4766_vm5, %v5025_v8, %v5021_v18  ;;  %v4957_v6 = vsel %vm4780_vm2, %v4956_v31, %v4952_v5  ;;  %v5040_v12 = vrot.slane %v4424_v20, %v12166_v43  ;;  %v4971_v11 = vrot.slane %v4396_v59, %v12206_v34  ;;  %v4571_v20 = vld [vmem:[#allocation9 + $0x10] sm:$0xff]  ;;  %v4573_v40 = vld [vmem:[#allocation9 + $0x20] sm:$0xff]  ;;  %v13458_v31 = vld [vmem:[#allocation37_spill] sm:$0xff] }
 0x329   : > { %v4962_v52 = vsel %vm4787_vm6, %v4961_v42, %v4957_v6  ;;  %v5031_v55 = vsel %vm4773_vm8, %v5030_v33, %v5026_v61  ;;  %4561 = vadd.xlane.f32.xlu1 %v12102_v38  ;;  %v4400_v10 = vpop.xlane.xlu1 %4399  ;;  %v7457_v50 = vpack.c.bf16 %v4570_v46, %v4569_v39  ;;  %v7979_v28 = vmov 0.0|0.0   ;;  %v4576_v33 = vld [vmem:[#allocation9 + $0x38] sm:$0xff]  ;;  %v4579_v46 = vld [vmem:[#allocation9 + $0x50] sm:$0xff] }
 0x32a   : > { %v5036_v14 = vsel %vm4780_vm2, %v5035_v48, %v5031_v55  ;;  %v4967_v24 = vsel %vm4794_vm13, %v4966_v27, %v4962_v52  ;;  %7456 = vmatprep.subr.bf16.mxu0 %v7979_v28  ;;  %v5050_v41 = vrot.slane %v4428_v13, %v12206_v34  ;;  %v7463_v8 = vpack.c.bf16 %v4574_v15, %v4573_v40  ;;  %v4577_v52 = vld [vmem:[#allocation9 + $0x40] sm:$0xff] }
 0x32b   : > { %4529 = vadd.xlane.f32.xlu0 %v12029_v63  ;;  %v5041_v53 = vsel %vm4787_vm6, %v5040_v12, %v5036_v14  ;;  %v4972_v30 = vsel %vm4801_vm4, %v4971_v11, %v4967_v24  ;;  %v4426_v59 = vpop.xlane.xlu0 %4425  ;;  %7458 = vmatpush3.bf16.msra.mxu0 %v7457_v50  ;;  %v7460_v63 = vpack.c.bf16 %v4572_v35, %v4571_v20  ;;  %v4578_v12 = vld [vmem:[#allocation9 + $0x48] sm:$0xff]  ;;  %v4580_v14 = vld [vmem:[#allocation9 + $0x58] sm:$0xff]  ;;  %vm5400_vm10 = vcmask 1042434  }
 0x32c   : > { %v5045_v38 = vrot.slane %v4426_v59, %v12209_v32  ;;  %7459 = vmatprep.subr.bf16.mxu0 %v7979_v28  ;;  %v7466_v18 = vpack.c.bf16 %v4576_v33, %v4575_v23  ;;  %v7469_v39 = vpack.c.bf16 %v4578_v12, %v4577_v52  ;;  %v7472_v20 = vpack.c.bf16 %v4580_v14, %v4579_v46  ;;  %v12401_v33 = vld [vmem:[#allocation2] sm:$0xff] }
 0x32d   : > { %4535 = vadd.xlane.f32.xlu1 %v12056_v37  ;;  %v4398_v60 = vpop.xlane.xlu1 %4397  ;;  %v4981_v37 = vrot.slane %v4400_v10, %v12228_v56  ;;  %v13460_v12 = vmov 33   ;;  %v4589_v46 = vld [vmem:[#allocation9 + $0xa0] sm:$0xff] }
 0x32e   : > { %v5046_v45 = vsel %vm4794_vm13, %v5045_v38, %v5041_v53  ;;  %v4976_v49 = vrot.slane %v4398_v60, %v12231_v25  ;;  %7339 = vmatpush3.msra.mxu1 %v4589_v46 }
 0x32f   : > { %4563 = vadd.xlane.f32.xlu0 %v12081_v54  ;;  %v4432_v3 = vpop.xlane.xlu0 %4431  ;;  %v5051_v57 = vsel %vm4801_vm4, %v5050_v41, %v5046_v45  ;;  %7461 = vmatpush3.bf16.msra.mxu0 %v7460_v63 }
 0x330   : > { %v4977_v47 = vsel %vm4808_vm7, %v4976_v49, %v4972_v30  ;;  %7462 = vmatprep.subr.bf16.mxu0 %v7979_v28  ;;  %7483 = vmatprep.subr.bf16.mxu1 %v7979_v28 }
 0x331   : > { %4533 = vadd.xlane.f32.xlu1 %v12093_v1  ;;  %v4404_v62 = vpop.xlane.xlu1 %4403  ;;  %v4982_v26 = vsel %vm12961_vm15, %v4981_v37, %v4977_v47  ;;  %v5060_v1 = vrot.slane %v4432_v3, %v12228_v56  ;;  %v4581_v37 = vld [vmem:[#allocation9 + $0x60] sm:$0xff]  ;;  %v4582_v3 = vld [vmem:[#allocation9 + $0x68] sm:$0xff] }
 0x332   : > { %v7475_v15 = vpack.c.bf16 %v4582_v3, %v4581_v37 }
 0x333   : > { %4565 = vadd.xlane.f32.xlu0 %v12135_v17  ;;  %v4430_v54 = vpop.xlane.xlu0 %4429  ;;  %7464 = vmatpush3.bf16.msra.mxu0 %v7463_v8  ;;  %v4991_v17 = vrot.slane %v4404_v62, %v12252_v2 }
 0x334   : > { %v5055_v42 = vrot.slane %v4430_v54, %v12231_v25  ;;  %7465 = vmatprep.subr.bf16.mxu0 %v7979_v28  ;;  %v4583_v54 = vld [vmem:[#allocation9 + $0x70] sm:$0xff] }
 0x335   : > { %4567 = vadd.xlane.f32.xlu1 %v13458_v31  ;;  %v4402_v5 = vpop.xlane.xlu1 %4401  ;;  %v4584_v31 = vld [vmem:[#allocation9 + $0x78] sm:$0xff] }
 0x336   : > { %v5056_v61 = vsel %vm4808_vm7, %v5055_v42, %v5051_v57  ;;  %v4986_v6 = vrot.slane %v4402_v5, %v12267_v58  ;;  %v12405_v5 = vld [vmem:[#allocation9 + $0x108] ss:$0 sm:$0xff] }
 0x337   : > { %v4436_v48 = vpop.xlane.xlu0 %4435  ;;  %v5061_v27 = vsel %vm12961_vm15, %v5060_v1, %v5056_v61  ;;  %7467 = vmatpush3.bf16.msra.mxu0 %v7466_v18  ;;  %vm5402_vm15 = vcmask 1043459   ;;  %v13459_v18 = vmov 0.0  }
 0x338   : > { %v4987_v13 = vsel %vm4822_vm14, %v4986_v6, %v4982_v26  ;;  %7468 = vmatprep.subr.bf16.mxu0 %v7979_v28  ;;  %v5070_v53 = vrot.slane %v4436_v48, %v12252_v2 }
 0x339   : > { %v4408_v11 = vpop.xlane.xlu1 %4407  ;;  %v4992_v55 = vsel %vm4829_vm12, %v4991_v17, %v4987_v13 }
 0x33a   : > { %v5001_v50 = vrot.slane %v4408_v11, %v12272_v19 }
 0x33b   : > { %v4434_v24 = vpop.xlane.xlu0 %4433  ;;  %7470 = vmatpush3.bf16.msra.mxu0 %v7469_v39 }
 0x33c   : > { %v5065_v10 = vrot.slane %v4434_v24, %v12267_v58  ;;  %7471 = vmatprep.subr.bf16.mxu0 %v7979_v28 }
 0x33d   : > { %v4406_v30 = vpop.xlane.xlu1 %4405 }
 0x33e   : > { %v5066_v35 = vsel %vm4822_vm14, %v5065_v10, %v5061_v27  ;;  %v4996_v59 = vrot.slane %v4406_v30, %v12285_v36 }
 0x33f   : > { %v4438_v38 = vpop.xlane.xlu0 %4437  ;;  %v5071_v41 = vsel %vm4829_vm12, %v5070_v53, %v5066_v35  ;;  %7473 = vmatpush3.bf16.msra.mxu0 %v7472_v20 }
 0x340   : > { %v4997_v60 = vsel %vm4836_vm0, %v4996_v59, %v4992_v55  ;;  %v5075_v63 = vrot.slane %v4438_v38, %v12285_v36  ;;  %7474 = vmatprep.subr.bf16.mxu0 %v7979_v28 }
 0x341   : > { %v5002_v45 = vsel %vm4843_vm3, %v5001_v50, %v4997_v60  ;;  %v4440_v49 = vpop.xlane.xlu1 %4439 }
 0x342   : > { %v5076_v57 = vsel %vm4836_vm0, %v5075_v63, %v5071_v41  ;;  %v5401_v47 = vsel %vm5400_vm10, %v5002_v45, %v12325_v0  ;;  %v5080_v40 = vrot.slane %v4440_v49, %v12272_v19  ;;  %v7478_v0 = vpack.c.bf16 %v4584_v31, %v4583_v54 }
 0x343   : > { %v4444_v62 = vpop.xlane.xlu0 %4443  ;;  %7476 = vmatpush3.bf16.msra.mxu0 %v7475_v15  ;;  %vm12962_vm10 = vmmov 0  }
 0x344   : > { %v5081_v26 = vsel %vm4843_vm3, %v5080_v40, %v5076_v57  ;;  %v5089_v8 = vrot.slane %v4444_v62, %v12088_v4  ;;  %7477 = vmatprep.subr.bf16.mxu0 %v7979_v28  ;;  %7335 = vmatprep.mubr.msk.f32.mxu0 %vm12962_vm10, %v13459_v18 }
 0x345   : > { %v12399_v42 = vsel %vm5402_vm15, %v5081_v26, %v5401_v47  ;;  %v4442_v23 = vpop.xlane.xlu1 %4441  ;;  %7340 = vmatprep.mubr.msk.f32.mxu1 %vm12962_vm10, %v13459_v18  ;;  %vm13461_vm15 = vcmask 786112  }
 0x346   : > { %5495 = vperm.xlu1 %7652, %v12401_v33   ;;  %v5085_v1 = vrot.slane %v4442_v23, %v12077_v22  ;;  %vm13462_vm10 = vmmov %vm13461_vm15 }
 0x347   : > { %v4474_v61 = vpop.xlane.xlu0 %4473  ;;  %7479 = vmatpush3.bf16.msra.mxu0 %v7478_v0 }
 0x348   : > { %v5090_v6 = vsel %vm4745_vm11, %v5089_v8, %v5085_v1  ;;  %v5164_v17 = vrot.slane %v4474_v61, %v12077_v22  ;;  %7480 = vmatprep.subr.bf16.mxu0 %v7979_v28 }
 0x349   : > { %5486 = vperm.xlu0 %7650, %v12401_v33   ;;  %v4476_v48 = vpop.xlane.xlu1 %4475 }
 0x34a   : > { %5505 = vrot.lane.b32.xlu1 %v12405_v5, %s7981_s27  ;;  %v5168_v27 = vrot.slane %v4476_v48, %v12088_v4  ;;  %s12615_s27 = scalar_lea.hbm %s12706_s6, %s7519_s0 }
 0x34b   : > { %v4448_v13 = vpop.xlane.xlu0 %4447 }
 0x34c   : > { %v5169_v52 = vsel %vm4745_vm11, %v5168_v27, %v5164_v17  ;;  %v5099_v11 = vrot.slane %v4448_v13, %v12138_v29 }
 0x34d   : > { %7653 = vset.pattern.permute.xlu0 %v13460_v12  ;;  %v4446_v55 = vpop.xlane.xlu1 %4445 }
 0x34e   : > { %v5094_v39 = vrot.slane %v4446_v55, %v12141_v16  ;;  %5658 = vrot.lane.b32.xlu0 %v12405_v5, %s7982_s13  ;;  %5808 = vrot.lane.b32.xlu1 %v12405_v5, %s7983_s17  ;;  %s6360_s13 = scalar_lea.sflag [#allocation14], %s8270_s30  ;;  %s7833_s17 = scalar_lea.vmem %s12617_s28, 896 }
 0x34f   : > { %v4450_v14 = vpop.xlane.xlu0 %4449  ;;  %p7834_p8 = scmp.ne.s32.totalorder %s12617_s28, %s7833_s17 }
 0x350   : > { %v5095_v24 = vsel %vm4752_vm9, %v5094_v39, %v5090_v6  ;;  %v5104_v10 = vrot.slane %v4450_v14, %v12163_v21 }
 0x351   : > { %v5100_v53 = vsel %vm4759_vm1, %v5099_v11, %v5095_v24  ;;  %v4480_v30 = vpop.xlane.xlu1 %4479  ;;  %p7835_p3 = pnand %p7834_p8, %p13470_p0 }
 0x352   : > { %v5105_v20 = vsel %vm4766_vm5, %v5104_v10, %v5100_v53  ;;  %v5178_v38 = vrot.slane %v4480_v30, %v12138_v29 }
 0x353   : > { %v4484_v35 = vpop.xlane.xlu0 %4483  ;;  %p7836_p5 = pneg %p7835_p3 }
 0x354   : > { %v5188_v45 = vrot.slane %v4484_v35, %v12147_v44 }
 0x356   : > { %v4478_v59 = vpop.xlane.xlu1 %4477 }
 0x357   : > { %v5173_v50 = vrot.slane %v4478_v59, %v12141_v16  ;;  %v4482_v41 = vpop.xlane.xlu0 %4481 }
 0x358   : > { %v5183_v63 = vrot.slane %v4482_v41, %v12163_v21 }
 0x359   : > { %v5174_v60 = vsel %vm4752_vm9, %v5173_v50, %v5169_v52 }
 0x35a   : > { %v5179_v49 = vsel %vm4759_vm1, %v5178_v38, %v5174_v60  ;;  %v4452_v37 = vpop.xlane.xlu1 %4451 }
 0x35b   : > { %v5184_v3 = vsel %vm4766_vm5, %v5183_v63, %v5179_v49  ;;  %v5109_v57 = vrot.slane %v4452_v37, %v12147_v44  ;;  %v4488_v47 = vpop.xlane.xlu0 %4487 }
 0x35c   : > { %v5189_v40 = vsel %vm4773_vm8, %v5188_v45, %v5184_v3  ;;  %v5198_v54 = vrot.slane %v4488_v47, %v12166_v43 }
 0x35d   : > { %v5110_v15 = vsel %vm4773_vm8, %v5109_v57, %v5105_v20 }
 0x35e   : > { %v4456_v62 = vpop.xlane.xlu1 %4455 }
 0x35f   : > { %v4486_v26 = vpop.xlane.xlu0 %4485  ;;  %v5119_v1 = vrot.slane %v4456_v62, %v12166_v43 }
 0x360   : > { %v5193_v8 = vrot.slane %v4486_v26, %v12186_v7 }
 0x362   : > { %v4454_v31 = vpop.xlane.xlu1 %4453  ;;  %v5194_v23 = vsel %vm4780_vm2, %v5193_v8, %v5189_v40 }
 0x363   : > { %v5114_v0 = vrot.slane %v4454_v31, %v12186_v7  ;;  %v4492_v61 = vpop.xlane.xlu0 %4491  ;;  %v5199_v6 = vsel %vm4787_vm6, %v5198_v54, %v5194_v23 }
 0x364   : > { %v5208_v12 = vrot.slane %v4492_v61, %v12206_v34 }
 0x365   : > { %v5115_v17 = vsel %vm4780_vm2, %v5114_v0, %v5110_v15 }
 0x366   : > { %v4460_v48 = vpop.xlane.xlu1 %4459  ;;  %v5120_v27 = vsel %vm4787_vm6, %v5119_v1, %v5115_v17 }
 0x367   : > { %v4490_v13 = vpop.xlane.xlu0 %4489  ;;  %v5129_v46 = vrot.slane %v4460_v48, %v12206_v34 }
 0x368   : > { %v5203_v52 = vrot.slane %v4490_v13, %v12209_v32 }
 0x36a   : > { %v4458_v11 = vpop.xlane.xlu1 %4457  ;;  %v5204_v55 = vsel %vm4794_vm13, %v5203_v52, %v5199_v6 }
 0x36b   : > { %v5124_v39 = vrot.slane %v4458_v11, %v12209_v32  ;;  %v5209_v24 = vsel %vm4801_vm4, %v5208_v12, %v5204_v55 }
 0x36c   : > { %v4496_v14 = vpop.xlane.xlu0 %4495 }
 0x36d   : > { %v5125_v10 = vsel %vm4794_vm13, %v5124_v39, %v5120_v27  ;;  %v5218_v59 = vrot.slane %v4496_v14, %v12228_v56 }
 0x36e   : > { %v4464_v53 = vpop.xlane.xlu1 %4463  ;;  %v5130_v30 = vsel %vm4801_vm4, %v5129_v46, %v5125_v10 }
 0x36f   : > { %v5139_v60 = vrot.slane %v4464_v53, %v12228_v56 }
 0x370   : > { %v4494_v20 = vpop.xlane.xlu0 %4493 }
 0x371   : > { %v5213_v35 = vrot.slane %v4494_v20, %v12231_v25 }
 0x372   : > { %v4462_v50 = vpop.xlane.xlu1 %4461 }
 0x373   : > { %v5214_v38 = vsel %vm4808_vm7, %v5213_v35, %v5209_v24  ;;  %v5134_v41 = vrot.slane %v4462_v50, %v12231_v25 }
 0x374   : > { %v4498_v63 = vpop.xlane.xlu0 %4497  ;;  %v5219_v45 = vsel %vm13461_vm15, %v5218_v59, %v5214_v38  ;;  %vm5404_vm15 = vcmask 1044484  }
 0x375   : > { %v5135_v49 = vsel %vm4808_vm7, %v5134_v41, %v5130_v30  ;;  %v5223_v37 = vrot.slane %v4498_v63, %v12267_v58 }
 0x376   : > { %v4468_v3 = vpop.xlane.xlu1 %4467  ;;  %v5140_v57 = vsel %vm13462_vm10, %v5139_v60, %v5135_v49  ;;  %vm5406_vm10 = vcmask 1045509  }
 0x377   : > { %v5224_v47 = vsel %vm4822_vm14, %v5223_v37, %v5219_v45  ;;  %v5149_v26 = vrot.slane %v4468_v3, %v12252_v2 }
 0x378   : > { %v4472_v40 = vpop.xlane.xlu0 %4471 }
 0x379   : > { %v5159_v23 = vrot.slane %v4472_v40, %v12272_v19 }
 0x37a   : > { %v4466_v15 = vpop.xlane.xlu1 %4465 }
 0x37b   : > { %v5144_v62 = vrot.slane %v4466_v15, %v12267_v58 }
 0x37c   : > { %v4470_v8 = vpop.xlane.xlu0 %4469 }
 0x37d   : > { %v5145_v54 = vsel %vm4822_vm14, %v5144_v62, %v5140_v57  ;;  %v5154_v31 = vrot.slane %v4470_v8, %v12285_v36 }
 0x37e   : > { %v5150_v0 = vsel %vm4829_vm12, %v5149_v26, %v5145_v54  ;;  %v4500_v1 = vpop.xlane.xlu1 %4499 }
 0x37f   : > { %v5155_v61 = vsel %vm4836_vm0, %v5154_v31, %v5150_v0  ;;  %v5228_v6 = vrot.slane %v4500_v1, %v12252_v2 }
 0x380   : > { %v5160_v17 = vsel %vm4843_vm3, %v5159_v23, %v5155_v61  ;;  %v4504_v48 = vpop.xlane.xlu0 %4503 }
 0x381   : > { %v5405_v27 = vsel %vm5404_vm15, %v5160_v17, %v12399_v42  ;;  %v5229_v13 = vsel %vm4829_vm12, %v5228_v6, %v5224_v47  ;;  %v5238_v52 = vrot.slane %v4504_v48, %v12272_v19  ;;  %vm5925_vm15 = vcmp.ge.s32.totalorder %v8540_v9, 33 }
 0x382   : > { %v4502_v12 = vpop.xlane.xlu1 %4501 }
 0x383   : > { %v5233_v11 = vrot.slane %v4502_v12, %v12285_v36 }
 0x384   : > { %v4506_v55 = vpop.xlane.xlu0 %4505 }
 0x385   : > { %v5234_v39 = vsel %vm4836_vm0, %v5233_v11, %v5229_v13  ;;  %v5243_v37 = vrot.slane %v4506_v55, %v12077_v22 }
 0x386   : > { %v5239_v46 = vsel %vm4843_vm3, %v5238_v52, %v5234_v39  ;;  %v4508_v14 = vpop.xlane.xlu1 %4507 }
 0x387   : > { %v12478_v24 = vsel %vm5406_vm10, %v5239_v46, %v5405_v27  ;;  %v5247_v3 = vrot.slane %v4508_v14, %v12088_v4  ;;  %vm5926_vm10 = vcmp.lt.s32.totalorder %v8540_v9, 43 }
 0x388   : > { %v4540_v10 = vpop.xlane.xlu0 %4539 }
 0x389   : > { %v5248_v15 = vsel %vm4745_vm11, %v5247_v3, %v5243_v37  ;;  %v5326_v62 = vrot.slane %v4540_v10, %v12088_v4 }
 0x38a   : > { %v4538_v53 = vpop.xlane.xlu1 %4537 }
 0x38b   : > { %v5322_v26 = vrot.slane %v4538_v53, %v12077_v22 }
 0x38c   : > { %v4510_v30 = vpop.xlane.xlu0 %4509 }
 0x38d   : > { %v5252_v47 = vrot.slane %v4510_v30, %v12141_v16  ;;  %v5327_v61 = vsel %vm4745_vm11, %v5326_v62, %v5322_v26  ;;  %vm13463_vm11 = vcmask 786112  }
 0x38e   : > { %v4512_v42 = vpop.xlane.xlu1 %4511 }
 0x38f   : > { %v5257_v8 = vrot.slane %v4512_v42, %v12138_v29  ;;  %v5253_v31 = vsel %vm4752_vm9, %v5252_v47, %v5248_v15 }
 0x390   : > { %v4544_v20 = vpop.xlane.xlu0 %4543 }
 0x391   : > { %v5258_v6 = vsel %vm4759_vm1, %v5257_v8, %v5253_v31  ;;  %v5336_v13 = vrot.slane %v4544_v20, %v12138_v29 }
 0x392   : > { %v4516_v35 = vpop.xlane.xlu1 %4515 }
 0x394   : > { %v4542_v59 = vpop.xlane.xlu0 %4541 }
 0x395   : > { %v5331_v23 = vrot.slane %v4542_v59, %v12141_v16  ;;  %v5267_v16 = vrot.slane %v4516_v35, %v12147_v44 }
 0x396   : > { %v4514_v50 = vpop.xlane.xlu1 %4513 }
 0x397   : > { %v5262_v0 = vrot.slane %v4514_v50, %v12163_v21  ;;  %v5332_v48 = vsel %vm4752_vm9, %v5331_v23, %v5327_v61  ;;  %vm13464_vm9 = vmmov %vm13463_vm11 }
 0x398   : > { %v4548_v38 = vpop.xlane.xlu0 %4547  ;;  %v5337_v12 = vsel %vm4759_vm1, %v5336_v13, %v5332_v48  ;;  %v4585_v48 = vld [vmem:[#allocation9 + $0x80] sm:$0x3]  ;;  %vm5408_vm1 = vcmask 1046534  }
 0x399   : > { %v5263_v4 = vsel %vm4766_vm5, %v5262_v0, %v5258_v6  ;;  %v5346_v10 = vrot.slane %v4548_v38, %v12147_v44 }
 0x39a   : > { %v4520_v41 = vpop.xlane.xlu1 %4519  ;;  %v5268_v11 = vsel %vm4773_vm8, %v5267_v16, %v5263_v4 }
 0x39b   : > { %v5277_v29 = vrot.slane %v4520_v41, %v12166_v43 }
 0x39c   : > { %v4546_v60 = vpop.xlane.xlu0 %4545 }
 0x39d   : > { %v5341_v22 = vrot.slane %v4546_v60, %v12163_v21 }
 0x39e   : > { %v4518_v63 = vpop.xlane.xlu1 %4517 }
 0x39f   : > { %v5272_v27 = vrot.slane %v4518_v63, %v12186_v7  ;;  %v5342_v39 = vsel %vm4766_vm5, %v5341_v22, %v5337_v12  ;;  %vm5410_vm5 = vcmask 1047559  }
 0x3a0   : > { %v4552_v45 = vpop.xlane.xlu0 %4551  ;;  %v5347_v30 = vsel %vm4773_vm8, %v5346_v10, %v5342_v39  ;;  %vm13466_vm8 = vmmov 0  }
 0x3a1   : > { %v5273_v46 = vsel %vm4780_vm2, %v5272_v27, %v5268_v11  ;;  %v5356_v60 = vrot.slane %v4552_v45, %v12166_v43  ;;  %v4587_v27 = vld [vmem:[#allocation9 + $0x90] sm:$0xff] }
 0x3a2   : > { %v4524_v49 = vpop.xlane.xlu1 %4523  ;;  %v5278_v42 = vsel %vm4787_vm6, %v5277_v29, %v5273_v46 }
 0x3a3   : > { %v5287_v44 = vrot.slane %v4524_v49, %v12206_v34 }
 0x3a4   : > { %v4550_v57 = vpop.xlane.xlu0 %4549 }
 0x3a5   : > { %v5351_v14 = vrot.slane %v4550_v57, %v12186_v7 }
 0x3a6   : > { %v4522_v40 = vpop.xlane.xlu1 %4521 }
 0x3a7   : > { %v5282_v21 = vrot.slane %v4522_v40, %v12209_v32  ;;  %v5352_v35 = vsel %vm4780_vm2, %v5351_v14, %v5347_v30  ;;  %v13465_v14 = vld [vmem:[#allocation23_spill] sm:$0xff]  ;;  %vm5510_vm2 = vcmask 64512  }
 0x3a8   : > { %v4556_v54 = vpop.xlane.xlu0 %4555  ;;  %v5357_v41 = vsel %vm4787_vm6, %v5356_v60, %v5352_v35  ;;  %vm5584_vm6 = vcmask 195584  }
 0x3a9   : > { %v5283_v59 = vsel %vm4794_vm13, %v5282_v21, %v5278_v42  ;;  %v5366_v40 = vrot.slane %v4556_v54, %v12206_v34  ;;  %v5492_v21 = vrot.slane %v4585_v48, %v13465_v14 }
 0x3aa   : > { %v4528_v1 = vpop.xlane.xlu1 %4527  ;;  %v5288_v63 = vsel %vm4801_vm4, %v5287_v44, %v5283_v59 }
 0x3ab   : > { %v5297_v43 = vrot.slane %v4528_v1, %v12228_v56  ;;  %v5500_v1 = vsub.s32 1, %v13428_v51 }
 0x3ac   : > { %v4554_v17 = vpop.xlane.xlu0 %4553 }
 0x3ad   : > { %v5361_v50 = vrot.slane %v4554_v17, %v12209_v32 }
 0x3ae   : > { %v4526_v52 = vpop.xlane.xlu1 %4525 }
 0x3af   : > { %v5292_v7 = vrot.slane %v4526_v52, %v12231_v25  ;;  %v5362_v3 = vsel %vm4794_vm13, %v5361_v50, %v5357_v41  ;;  %v4594_v50 = vld [vmem:[#allocation9 + $0xc8] sm:$0xff]  ;;  %vm13467_vm13 = vcmask 261120  }
 0x3b0   : > { %v4558_v55 = vpop.xlane.xlu0 %4557  ;;  %v5367_v49 = vsel %vm4801_vm4, %v5366_v40, %v5362_v3  ;;  %v4596_v40 = vld [vmem:[#allocation9 + $0xd8] sm:$0xff]  ;;  %vm13468_vm4 = vmmov %vm13467_vm13 }
 0x3b1   : > { %v5293_v57 = vsel %vm4808_vm7, %v5292_v7, %v5288_v63  ;;  %v5371_v47 = vrot.slane %v4558_v55, %v12231_v25  ;;  %v5501_v55 = vrot.slane %v4585_v48, %v5500_v1  ;;  %v4595_v7 = vld [vmem:[#allocation9 + $0xd0] sm:$0xff] }
 0x3b2   : > { %v4560_v53 = vpop.xlane.xlu1 %4559  ;;  %v5298_v62 = vsel %vm13463_vm11, %v5297_v43, %v5293_v57  ;;  %v7484_v60 = vpack.c.bf16 %v4595_v7, %v4594_v50  ;;  %v4590_v57 = vld [vmem:[#allocation9 + $0xa8] sm:$0xff]  ;;  %v4597_v43 = vld [vmem:[#allocation9 + $0xe0] sm:$0xff]  ;;  %vm5927_vm11 = vmand %vm5925_vm15, %vm5926_vm10 }
 0x3b3   : > { %v5376_v15 = vrot.slane %v4560_v53, %v12228_v56  ;;  %v5372_v8 = vsel %vm4808_vm7, %v5371_v47, %v5367_v49  ;;  %v4591_v47 = vld [vmem:[#allocation9 + $0xb0] sm:$0xff]  ;;  %v7487_v49 = vpack.c.bf16 %v4597_v43, %v4596_v40  ;;  %vm13469_vm7 = vmmov %vm13468_vm4  ;;  %v5947_v7 = vld [vmem:[#allocation10 + $0x10] sm:$0xff] }
 0x3b4   : > { %v4532_v20 = vpop.xlane.xlu0 %4531  ;;  %v5956_v43 = vld [vmem:[#allocation10 + $0x58] sm:$0xff] }
 0x3b5   : > { %v5307_v23 = vrot.slane %v4532_v20, %v12252_v2  ;;  %v5377_v56 = vsel %vm13464_vm9, %v5376_v15, %v5372_v8  ;;  %v4593_v15 = vld [vmem:[#allocation9 + $0xc0] sm:$0xff] }
 0x3b6   : > { %v4562_v38 = vpop.xlane.xlu1 %4561 }
 0x3b7   : > { %v5381_v31 = vrot.slane %v4562_v38, %v12267_v58 }
 0x3b8   : > { %v4530_v37 = vpop.xlane.xlu0 %4529 }
 0x3b9   : > { %v5302_v32 = vrot.slane %v4530_v37, %v12267_v58  ;;  %v5382_v58 = vsel %vm4822_vm14, %v5381_v31, %v5377_v56 }
 0x3ba   : > { %v4536_v45 = vpop.xlane.xlu1 %4535 }
 0x3bb   : > { %v5303_v25 = vsel %vm4822_vm14, %v5302_v32, %v5298_v62  ;;  %v5317_v61 = vrot.slane %v4536_v45, %v12272_v19  ;;  %v7490_v32 = vpack.c.bf16 %v4591_v47, %v4590_v57  ;;  %v4592_v45 = vld [vmem:[#allocation9 + $0xb8] sm:$0xff]  ;;  %vm5907_vm14 = vcmask 351496  }
 0x3bc   : > { %v4564_v26 = vpop.xlane.xlu0 %4563  ;;  %v5308_v6 = vsel %vm4829_vm12, %v5307_v23, %v5303_v25  ;;  %v7493_v62 = vpack.c.bf16 %v4593_v15, %v4592_v45  ;;  %v5951_v45 = vld [vmem:[#allocation10 + $0x30] sm:$0xff] }
 0x3bd   : > { %v5386_v34 = vrot.slane %v4564_v26, %v12252_v2  ;;  %v4586_v2 = vld [vmem:[#allocation9 + $0x88] sm:$0xff] }
 0x3be   : > { %v4534_v54 = vpop.xlane.xlu1 %4533  ;;  %v7481_v39 = vpack.c.bf16 %v4587_v27, %v4586_v2 }
 0x3bf   : > { %v5312_v0 = vrot.slane %v4534_v54, %v12285_v36  ;;  %v5387_v13 = vsel %vm4829_vm12, %v5386_v34, %v5382_v58  ;;  %v4599_v54 = vld [vmem:[#allocation9 + $0xf0] sm:$0xff]  ;;  %vm6002_vm12 = vcmask 130048  }
 0x3c0   : > { %v4566_v17 = vpop.xlane.xlu0 %4565 }
 0x3c1   : > { %v5313_v4 = vsel %vm4836_vm0, %v5312_v0, %v5308_v6  ;;  %v5391_v22 = vrot.slane %v4566_v17, %v12285_v36  ;;  %v4601_v6 = vld [vmem:[#allocation9 + $0x100] sm:$0xff] }
 0x3c2   : > { %v5318_v16 = vsel %vm4843_vm3, %v5317_v61, %v5313_v4  ;;  %v4568_v52 = vpop.xlane.xlu1 %4567 }
 0x3c3   : > { %v5392_v12 = vsel %vm4836_vm0, %v5391_v22, %v5387_v13  ;;  %v5396_v11 = vrot.slane %v4568_v52, %v12272_v19  ;;  %v5409_v36 = vsel %vm5408_vm1, %v5318_v16, %v12478_v24  ;;  %v4588_v24 = vld [vmem:[#allocation9 + $0x98] sm:$0xff]  ;;  %v6826_v13 = vld [vmem:[#allocation9 + $0x110] ss:$0 sm:$0xff]  ;;  %vm5918_vm0 = vcmask 80896  }
 0x3c5   : > { %v5397_v46 = vsel %vm4843_vm3, %v5396_v11, %v5392_v12  ;;  %vm5901_vm3 = vcmask 15360  }
 0x3c6   : > { %v5411_v10 = vsel %vm5410_vm5, %v5397_v46, %v5409_v36  ;;  %v5496_v29 = vpop.permute.xlu1 %5495  ;;  %v5890_v46 = vld [vmem:[%s8273_s15] sm:$0xff] }
 0x3c7   : > { %7336 = vmatmul.mubr.f32.vlgmr.msra.gmra.mrb[64].mxu0 %v5411_v10  ;;  %v5502_v53 = vmul.f32 %v5501_v55, %v5496_v29  ;;  %v5892_v29 = vmul.f32 0.17, %v5890_v46 }
 0x3c8   : > { %v5487_v30 = vpop.permute.xlu0 %5486  ;;  %7482 = vmatpush3.bf16.msra.mxu0 %v7481_v39  ;;  %7349 = vmatprep.mubr.msk.f32.mxu0 %vm13466_vm8, %v13459_v18 }
 0x3c9   : > { %v5493_v19 = vmul.f32 %v5492_v21, %v5487_v30  ;;  %7347 = vmatprep.subr.mxu0 %v13459_v18  ;;  %v5953_v30 = vld [vmem:[#allocation10 + $0x40] sm:$0xff] }
 0x3ca   : > { %v5506_v42 = vpop.permute.xlu1 %5505 }
 0x3cb   : > { %v5503_v20 = vadd.f32 %v5502_v53, %v5493_v19  ;;  %v5946_v53 = vld [vmem:[#allocation10 + $0x8] sm:$0xff]  ;;  %v5948_v19 = vld [vmem:[#allocation10 + $0x18] sm:$0xff] }
 0x3cc   : > { %7348 = vmatpush3.msra.mxu0 %v4588_v24  ;;  %v5659_v8 = vpop.permute.xlu0 %5658 }
 0x3cd   : > { %v5508_v35 = vadd.f32 %v5506_v42, %v5503_v20  ;;  %7489 = vmatprep.subr.bf16.mxu0 %v7979_v28  ;;  %v7501_v42 = vpack.c.bf16 %v5953_v30, %v5946_v53  ;;  %v5955_v20 = vld [vmem:[#allocation10 + $0x50] sm:$0xff] }
 0x3ce   : > { %v5809_v58 = vpop.permute.xlu1 %5808  ;;  %v7505_v24 = vpack.c.bf16 %v5955_v20, %v5948_v19 }
 0x3cf   : > { %v5509_v59 = vmax.f32 %v5508_v35, 0.0  ;;  %v5945_v35 = vld [vmem:[#allocation10] sm:$0xff] }
 0x3d1   : > { %7341 = vmatmul.mubr.msk.f32.vlgmr.msra.gmra.mrb[64].mxu1 %vm5510_vm2, %v5509_v59  ;;  %v5952_v59 = vld [vmem:[#allocation10 + $0x38] sm:$0xff] }
 0x3d2   : > { %7360 = vmatprep.mubr.msk.f32.mxu1 %vm13466_vm8, %v13459_v18  ;;  %7485 = vmatpush3.bf16.msra.mxu1 %v7484_v60  ;;  %v7503_v50 = vpack.c.bf16 %v5952_v59, %v5945_v35  ;;  %v5954_v60 = vld [vmem:[#allocation10 + $0x48] sm:$0xff] }
 0x3d3   : > { %7486 = vmatprep.subr.bf16.mxu1 %v7979_v28 }
 0x3d6   : > { %7488 = vmatpush3.bf16.msra.mxu1 %v7487_v49  ;;  %v5958_v49 = vld [vmem:[#allocation10 + $0x68] sm:$0xff] }
 0x3d7   : > { %7495 = vmatprep.subr.bf16.mxu1 %v7979_v28 }
 0x3d9   : > { %7361 = vmatmul.mubr.msk.f32.vlgmr.msra.gmra.mrb[66].mxu1 %vm13467_vm13, %v12401_v33  ;;  %v4600_v33 = vld [vmem:[#allocation9 + $0xf8] sm:$0xff] }
 0x3da   : > { %7382 = vmatprep.mubr.msk.f32.mxu1 %vm13466_vm8, %v13459_v18  ;;  %v7499_v17 = vpack.c.bf16 %v4601_v6, %v4600_v33  ;;  %v5974_v6 = vsub.s32 2, %v13428_v51 }
 0x49a   : > { %v5479_v44 = vpop.f32.mrb[64].mxu0 }
 0x49b   : > { %v5480_v38 = vadd.f32 %v12405_v5, %v5479_v44  ;;  %v7337_v41 = vpop.f32.mrb[65].mxu0  ;;  %v4598_v5 = vld [vmem:[#allocation9 + $0xe8] sm:$0xff]  ;;  %v7507_v44 = vpack.c.bf16 %v5954_v60, %v5947_v7 }
 0x49c   : > { %v7496_v0 = vpack.c.bf16 %v4599_v54, %v4598_v5  ;;  %v5957_v41 = vld [vmem:[#allocation10 + $0x60] sm:$0xff] }
 0x49d   : > { %v5483_v63 = vmax.f32 %v5480_v38, 0.0  ;;  %v5950_v38 = vld [vmem:[#allocation10 + $0x28] sm:$0xff] }
 0x49e   : > { %7497 = vmatpush3.bf16.msra.mxu1 %v7496_v0 }
 0x49f   : > { %7350 = vmatmul.mubr.msk.f32.vlgmr.msra.gmra.mrb[66].mxu0 %vm5584_vm6, %v5483_v63  ;;  %7498 = vmatprep.subr.bf16.mxu1 %v7979_v28  ;;  %v7509_v63 = vpack.c.bf16 %v5957_v41, %v5950_v38 }
 0x4a0   : > { %7371 = vmatprep.mubr.msk.f32.mxu0 %vm13466_vm8, %v13459_v18  ;;  %7491 = vmatpush3.bf16.msra.mxu0 %v7490_v32 }
 0x4a1   : > { %7492 = vmatprep.subr.bf16.mxu0 %v7979_v28 }
 0x4a2   : > { %7500 = vmatpush3.bf16.msra.mxu1 %v7499_v17  ;;  %v5978_v17 = vsub.s32 3, %v13428_v51 }
 0x4a3   : > { %7506 = vmatprep.subr.bf16.mxu1 %v7505_v24 }
 0x4a4   : > { %v5580_v37 = vpop.f32.mrb[64].mxu1  ;;  %7494 = vmatpush3.bf16.msra.mxu0 %v7493_v62  ;;  %v7514_v62 = vpack.c.bf16 %v5958_v49, %v5951_v45 }
 0x4a5   : > { %v7342_v3 = vpop.f32.mrb[65].mxu1  ;;  %7502 = vmatprep.subr.bf16.mxu0 %v7501_v42 }
 0x4ac   : > { %v5731_v56 = vpop.f32.mrb[66].mxu1 }
 0x4ad   : > { %v7362_v61 = vpop.f32.mrb[67].mxu1 }
 0x4ae   : > { %v5961_v61 = vld [vmem:[#allocation10 + $0x70] ss:$8 sm:$0xf0] }
 0x572   : > { %v5654_v26 = vpop.f32.mrb[66].mxu0 }
 0x573   : > { %v5655_v31 = vadd.f32 %v5654_v26, %v5580_v37  ;;  %v7351_v25 = vpop.f32.mrb[67].mxu0 }
 0x575   : > { %v5661_v23 = vadd.f32 %v5659_v8, %v5655_v31  ;;  %v5900_v8 = vmul.f32 %v5890_v46, %v5890_v46 }
 0x577   : > { %v5662_v34 = vmax.f32 %v5661_v23, 0.0  ;;  %v5902_v23 = vsel %vm5901_vm3, %v5900_v8, 0.0 }
 0x579   : > { %7372 = vmatmul.mubr.msk.f32.vlgmr.msra.gmra.mrb[68].mxu0 %vm13468_vm4, %v5662_v34 }
 0x57a   : > { %6069 = vmatprep.mubr.f32.mxu0 %v13459_v18  ;;  %7504 = vmatpush1.bf16.msra.mxu0 %v7503_v50 }
 0x57b   : > { %7510 = vmatprep.subr.bf16.mxu0 %v7509_v63 }
 0x64c   : > { %v5804_v48 = vpop.f32.mrb[68].mxu0 }
 0x64d   : > { %v5805_v4 = vadd.f32 %v5804_v48, %v5731_v56  ;;  %v7373_v22 = vpop.f32.mrb[69].mxu0  ;;  %v5960_v56 = vld [vmem:[#allocation10 + $0x70] ss:$8 sm:$0xf] }
 0x64e   : > { %v5962_v33 = vor.u32 %v5961_v61, %v5960_v56  ;;  %v5990_v22 = vsub.s32 6, %v13428_v51 }
 0x64f   : > { %v12568_v2 = vadd.f32 %v5809_v58, %v5805_v4  ;;  %v5982_v4 = vsub.s32 4, %v13428_v51 }
 0x650   : > { %v5967_v48 = vrot.slane %v5962_v33, %v13465_v14  ;;  %v5975_v58 = vrot.slane %v5962_v33, %v5974_v6 }
 0x651   : > { %v5812_v27 = vmax.f32 %v12568_v2, 0.0 }
 0x653   : > { %7383 = vmatmul.mubr.msk.f32.vlgmr.msra.gmra.mrb[68].mxu1 %vm13469_vm7, %v5812_v27 }
 0x654   : > { %6140 = vmatprep.mubr.f32.mxu1 %v13459_v18  ;;  %7508 = vmatpush1.bf16.msra.mxu1 %v7507_v44 }
 0x655   : > { %7513 = vmatprep.subr.bf16.mxu1 %v7979_v28  ;;  %v5949_v28 = vld [vmem:[#allocation10 + $0x20] sm:$0xff] }
 0x656   : > { %v7511_v15 = vpack.c.bf16 %v5956_v43, %v5949_v28 }
 0x726   : > { %v5886_v16 = vpop.f32.mrb[68].mxu1 }
 0x727   : > { %v12575_v52 = vadd.f32 %v6826_v13, %v5886_v16  ;;  %v7384_v12 = vpop.f32.mrb[69].mxu1  ;;  %v5971_v13 = vrot.slane %v5962_v33, %v5500_v1  ;;  %v5979_v16 = vrot.slane %v5962_v33, %v5978_v17 }
 0x728   : > { %v5986_v12 = vsub.s32 5, %v13428_v51 }
 0x729   : > { %v5932_v11 = vmul.f32 0.5, %v12575_v52  ;;  %v5908_v10 = vsel %vm5907_vm14, %v12575_v52, -inf }
 0x72a   : > { %v5987_v30 = vrot.slane %v5962_v33, %v5986_v12 }
 0x72b   : > { %v5933_v55 = vmul.f32 1.442695, %v5932_v11 }
 0x72d   : > { %7654 = vpow2.f32 %v5933_v55 }
 0x737   : > { %v7655_v39 = vpop.eup %7654 }
 0x738   : > { %5936 = vrot.lane.b32.xlu0 %v7655_v39, %s7984_s8  ;;  %s7990_s8 = smov [#allocation13]  }
 0x7aa   : > { %v5937_v36 = vpop.permute.xlu0 %5936 }
 0x7ab   : > { %v5939_v21 = vmul.f32 %v5937_v36, %v5890_v46 }
 0x7ad   : > { %5941 = vrot.lane.b32.xlu1 %v5939_v21, %s7985_s18 }
 0x7d1   : > { %5909 = vmax.xlane.f32.xlu1 %v5908_v10  ;;  %v5983_v10 = vrot.slane %v5962_v33, %v5982_v4 }
 0x7e2   : > { %5894 = vrot.lane.b32.xlu1 %v5892_v29, %s7986_s29  ;;  %v5991_v29 = vrot.slane %v5962_v33, %v5990_v22 }
 0x81f   : > { %v5942_v37 = vpop.permute.xlu1 %5941 }
 0x820   : > { %v5944_v3 = vadd.f32 %v5942_v37, %v12575_v52 }
 0x822   : > { %6000 = vrot.lane.b32.xlu0 %v5944_v3, %s7985_s18  ;;  %s7837_s18 = sshll.u32 %s7990_s8, 4  ;;  %s7838_s18 = int_to_ptr.vmem [resolvable:$false] %s7837_s18 }
 0x823   : > { %s7839_s29 = scalar_lea.vmem %s7838_s18, 1792  ;;  %p7840_p13 = scmp.lt.s32.totalorder %s12617_s28, %s7838_s18 }
 0x824   : > { %p7841_p4 = scmp.lt.s32.totalorder %s7839_s29, %s7833_s17 }
 0x826   : > { %p7842_p9 = por %p7841_p4, %p7840_p13 }
 0x828   : > { %p7843_p2 = pnand %p7842_p9, %p7836_p5 }
 0x85e   : > { %v12584_v57 = vpop.xlane.xlu1 %5909 }
 0x85f   : > { %v5911_v47 = vsub.f32 %v12575_v52, %v12584_v57 }
 0x861   : > { %v5912_v32 = vmul.f32 1.442695, %v5911_v47 }
 0x862   : > { %v5895_v34 = vpop.permute.xlu1 %5894 }
 0x863   : > { %7656 = vpow2.f32 %v5912_v32 }
 0x864   : > { %7658 = vtanh.f32 %v12575_v52 }
 0x86d   : > { %v7657_v40 = vpop.eup %7656 }
 0x86e   : > { %5915 = vrot.lane.b32.xlu0 %v7657_v40, %s7987_s14  ;;  %v7659_v5 = vpop.eup %7658 }
 0x86f   : > { %v5897_v54 = vadd.f32 %v7659_v5, %v5895_v34 }
 0x871   : > { %v6828_v0 = vclamps-f32 %v5897_v54, 1.0 }
 0x894   : > { %v6001_v26 = vpop.permute.xlu0 %6000 }
 0x895   : > { %6830 = vmatmul.mubr.msk.f32.vlgmr.msra.gmra.mrb[70].mxu0 %vm6002_vm12, %v6001_v26  ;;  %6831 = vmatmul.mubr.msk.f32.vlgmr.msra.gmra.mrb[70].mxu1 %vm6002_vm12, %v6001_v26 }
 0x896   : > { %7512 = vmatpush1.bf16.msra.mxu0 %v7511_v15  ;;  %7515 = vmatpush3.bf16.msra.mxu1 %v7514_v62 }
 0x897   : > { %6211 = vmatprep.mubr.f32.mxu0 %v13459_v18  ;;  %7389 = vmatprep.mubr.msk.f32.mxu1 %vm13466_vm8, %v13459_v18 }
 0x899   : > { %6832 = vmatmul.mubr.msk.f32.vlgmr.msra.gmra.mrb[72].mxu0 %vm6002_vm12, %v6001_v26  ;;  %7390 = vmatmul.mubr.msk.f32.vlgmr.msra.gmra.mrb[72].mxu1 %vm6002_vm12, %v6001_v26 }
 0x8e0   : > { %v5916_v31 = vpop.permute.xlu0 %5915 }
 0x8e1   : > { %v5919_v25 = vsel %vm5918_vm0, %v5916_v31, 0.0 }
 0x8e2   : > { %5920 = vadd.xlane.f32.xlu0 %v5919_v25 }
 0x8e6   : > { %5903 = vadd.xlane.f32.xlu0 %v5902_v23  ;;  %v6829_v23 = vsel %vm5927_vm11, 1.0, %v13459_v18 }
 0x8fc   : > { %6338 = vrot.lane.b32.xlu0 %v6828_v0, %s7988_s1 }
 0x968   : > { %v6071_v11 = vpop.f32.mrb[70].mxu0  ;;  %v6142_v55 = vpop.f32.mrb[70].mxu1 }
 0x969   : > { %v6072_v39 = vadd.f32 %v6071_v11, %v5967_v48  ;;  %v6143_v46 = vadd.f32 %v6142_v55, %v5975_v58  ;;  %v6073_v36 = vpop.f32.mrb[71].mxu0  ;;  %v6144_v21 = vpop.f32.mrb[71].mxu1 }
 0x96a   : > { %v6074_v14 = vadd.f32 %v6073_v36, %v5971_v13  ;;  %v6145_v53 = vadd.f32 %v6144_v21, %v5979_v16 }
 0x96b   : > { %v6834_v19 = vmul.f32 -1.442695, %v6072_v39  ;;  %v6836_v42 = vmul.f32 -1.442695, %v6143_v46 }
 0x96c   : > { %v6835_v20 = vmul.f32 -1.442695, %v6074_v14  ;;  %v6837_v35 = vmul.f32 -1.442695, %v6145_v53  ;;  %v6213_v59 = vpop.f32.mrb[72].mxu0  ;;  %v6284_v1 = vpop.f32.mrb[72].mxu1 }
 0x96d   : > { %7660 = vpow2.f32 %v6834_v19  ;;  %v6214_v24 = vadd.f32 %v6213_v59, %v5983_v10  ;;  %v6285_v51 = vadd.f32 %v6284_v1, %v5991_v29  ;;  %v6215_v50 = vpop.f32.mrb[73].mxu0  ;;  %v7391_v7 = vpop.f32.mrb[73].mxu1 }
 0x96e   : > { %7662 = vpow2.f32 %v6836_v42  ;;  %v6216_v60 = vadd.f32 %v6215_v50, %v5987_v30 }
 0x96f   : > { %7664 = vpow2.f32 %v6835_v20  ;;  %v6838_v44 = vmul.f32 -1.442695, %v6214_v24  ;;  %v6840_v38 = vmul.f32 -1.442695, %v6285_v51  ;;  %v5921_v63 = vpop.xlane.xlu0 %5920 }
 0x970   : > { %7666 = vpow2.f32 %v6837_v35  ;;  %v6839_v41 = vmul.f32 -1.442695, %v6216_v60 }
 0x971   : > { %7668 = vpow2.f32 %v6838_v44 }
 0x972   : > { %7670 = vpow2.f32 %v6840_v38 }
 0x973   : > { %7672 = vpow2.f32 %v6839_v41 }
 0x974   : > { %7674 = vlog2.f32 %v5921_v63 }
 0x977   : > { %v7661_v37 = vpop.eup %7660 }
 0x978   : > { %v7663_v3 = vpop.eup %7662  ;;  %v6309_v47 = vadd.f32 1.0, %v7661_v37 }
 0x979   : > { %v7665_v32 = vpop.eup %7664  ;;  %v6311_v40 = vadd.f32 1.0, %v7663_v3 }
 0x97a   : > { %v7667_v28 = vpop.eup %7666  ;;  %7676 = vrcp.f32 %v6309_v47  ;;  %v6310_v43 = vadd.f32 1.0, %v7665_v32 }
 0x97b   : > { %v7669_v45 = vpop.eup %7668  ;;  %7678 = vrcp.f32 %v6311_v40  ;;  %v6312_v49 = vadd.f32 1.0, %v7667_v28 }
 0x97c   : > { %v7671_v15 = vpop.eup %7670  ;;  %7680 = vrcp.f32 %v6310_v43  ;;  %v6313_v62 = vadd.f32 1.0, %v7669_v45 }
 0x97d   : > { %v7673_v26 = vpop.eup %7672  ;;  %7682 = vrcp.f32 %v6312_v49  ;;  %v6315_v8 = vadd.f32 1.0, %v7671_v15 }
 0x97e   : > { %v7675_v31 = vpop.eup %7674  ;;  %7684 = vrcp.f32 %v6313_v62  ;;  %v6314_v25 = vadd.f32 1.0, %v7673_v26 }
 0x97f   : > { %7686 = vrcp.f32 %v6315_v8  ;;  %v5923_v9 = vmul.f32 0.6931472, %v7675_v31 }
 0x980   : > { %7688 = vrcp.f32 %v6314_v25 }
 0x981   : > { %v5924_v34 = vadd.f32 %v5923_v9, %v12584_v57 }
 0x983   : > { %v5930_v5 = vmul.f32 %v6829_v23, %v5924_v34 }
 0x984   : > { %v7677_v54 = vpop.eup %7676 }
 0x985   : > { %v7679_v0 = vpop.eup %7678  ;;  %6330 = vst [vmem:[%s8290_s11] sm:$0xff] %v7677_v54  ;;  %v5931_v56 = vsub.f32 %v12575_v52, %v5930_v5 }
 0x986   : > { %v7681_v61 = vpop.eup %7680  ;;  %6332 = vst [vmem:[%s8290_s11 + $0x10] sm:$0xff] %v7679_v0 }
 0x987   : > { %v7683_v33 = vpop.eup %7682  ;;  %6331 = vst [vmem:[%s8290_s11 + $0x8] sm:$0xff] %v7681_v61  ;;  %6342 = vrot.lane.b32.xlu1 %v5931_v56, %s7989_s10 }
 0x988   : > { %v7685_v18 = vpop.eup %7684  ;;  %6333 = vst [vmem:[%s8290_s11 + $0x18] sm:$0xff] %v7683_v33 }
 0x989   : > { %v7687_v57 = vpop.eup %7686  ;;  %6334 = vst [vmem:[%s8290_s11 + $0x20] sm:$0xff] %v7685_v18 }
 0x98a   : > { %v7689_v52 = vpop.eup %7688  ;;  %6336 = vst [vmem:[%s8290_s11 + $0x30] sm:$0xff] %v7687_v57 }
 0x98b   : > { %6335 = vst [vmem:[%s8290_s11 + $0x28] sm:$0xff] %v7689_v52 }
 0x98c   : > { %7846 = shalt.err (!%p7843_p2)
}
 0x98d   : > { %s7847_s11 = scalar_lea.hbm %s12615_s27, 896  ;;  %s7851_s0 = scalar_lea.hbm %s12706_s6, 5376 }
 0x98e   : > { %p7848_p7 = scmp.ne.s32.totalorder %s12615_s27, %s7847_s11  ;;  %p7852_p10 = scmp.lt.u32.totalorder %s12615_s27, %s12706_s6 }
 0x98f   : > { %p7853_p1 = scmp.lt.u32.totalorder %s7851_s0, %s7847_s11  ;;  %p7855_p8 = scmp.lt.u32.totalorder %s7847_s11, %s12615_s27 }
 0x990   : > { %p7849_p11 = pnand %p7848_p7, %p13470_p0 }
 0x991   : > { %p7854_p6 = por %p7853_p1, %p7852_p10 }
 0x992   : > { %p7850_p12 = pneg %p7849_p11 }
 0x993   : > { %p7856_p3 = por %p7855_p8, %p7854_p6 }
 0x995   : > { %p7857_p5 = pnand %p7856_p3, %p7850_p12 }
 0x997   : > { %7860 = shalt.err (!%p7857_p5)
}
 0x998   : > { %7539 = dma.vmem_to_hbm [thread:$0]  (%p13470_p0), %s12617_s28, 896, %s12615_s27, %s6360_s13   ;;  %v5904_v6 = vpop.xlane.xlu0 %5903  ;;  %vm13471_vm9 = vmmov %vm13468_vm4  ;;  %vm6346_vm1 = vcmask 277504   ;;  %vm6348_vm5 = vcmask 285696   ;;  %vm6350_vm8 = vcmask 637952  }
 0x999   : > { %v5905_v17 = vmul.f32 -0.5, %v5904_v6  ;;  %s6842_s9 = sshll.u32 %s7955_s24, 7  ;;  %s6374_s17 = sshll.u32 %s8288_s7, 4  ;;  %s12653_s17 = int_to_ptr.vmem [resolvable:$true] %s6374_s17 }
 0x99a   : > { %s12651_s13 = scalar_lea.hbm %s12705_s5, %s6842_s9  ;;  %s6355_s8 = scalar_lea.sflag [#allocation5], %s8270_s30 }
 0x99b   : > { %v5906_v58 = vadd.f32 1.7060366, %v5905_v17  ;;  %s7861_s24 = scalar_lea.vmem %s12653_s17, 128  ;;  %s7991_s18 = smov [#allocation12]  }
 0x99c   : > { %v6339_v48 = vpop.permute.xlu0 %6338  ;;  %p7862_p13 = scmp.ne.s32.totalorder %s12653_s17, %s7861_s24  ;;  %s7865_s29 = sshll.u32 %s7991_s18, 4  ;;  %s7866_s29 = int_to_ptr.vmem [resolvable:$false] %s7865_s29 }
 0x99d   : > { %v6345_v4 = vsel %vm13471_vm9, %v5812_v27, %v6339_v48  ;;  %s7867_s11 = scalar_lea.vmem %s7866_s29, 256  ;;  %p7868_p2 = scmp.lt.s32.totalorder %s12653_s17, %s7866_s29 }
 0x99e   : > { %v6347_v13 = vsel %vm6346_vm1, %v6345_v4, %v5906_v58  ;;  %p7863_p4 = pnand %p7862_p13, %p13470_p0  ;;  %p7869_p7 = scmp.lt.s32.totalorder %s7867_s11, %s7861_s24 }
 0x9a0   : > { %p7864_p9 = pneg %p7863_p4  ;;  %p7870_p11 = por %p7869_p7, %p7868_p2 }
 0x9a2   : > { %p7871_p12 = pnand %p7870_p11, %p7864_p9 }
 0x9f9   : > { %v6343_v22 = vpop.permute.xlu1 %6342 }
 0x9fa   : > { %v6349_v16 = vsel %vm6348_vm5, %v6347_v13, %v6343_v22 }
 0x9fb   : > { %v6351_v2 = vsel %vm6350_vm8, %v6349_v16, 0.0 }
 0x9fc   : > { %6352 = vst [vmem:[#allocation2] sm:$0xff] %v6351_v2  ;;  %6353 = vst [vmem:[%s8288_s7] sm:$0xff] %v6351_v2 }
 0x9fd   : > { %7874 = shalt.err (!%p7871_p12)
}
 0x9fe   : > { %s7875_s30 = scalar_lea.hbm %s12651_s13, 128  ;;  %s7879_s1 = scalar_lea.hbm %s12705_s5, 768 }
 0x9ff   : > { %p7876_p10 = scmp.ne.s32.totalorder %s12651_s13, %s7875_s30  ;;  %p7880_p8 = scmp.lt.u32.totalorder %s12651_s13, %s12705_s5 }
 0xa00   : > { %p7881_p3 = scmp.lt.u32.totalorder %s7879_s1, %s7875_s30  ;;  %p7883_p13 = scmp.lt.u32.totalorder %s7875_s30, %s12651_s13 }
 0xa01   : > { %p7877_p1 = pnand %p7876_p10, %p13470_p0 }
 0xa02   : > { %p7882_p5 = por %p7881_p3, %p7880_p8 }
 0xa03   : > { %p7878_p6 = pneg %p7877_p1 }
 0xa04   : > { %p7884_p4 = por %p7883_p13, %p7882_p5 }
 0xa06   : > { %p7885_p9 = pnand %p7884_p4, %p7878_p6 }
 0xa08   : > { %7888 = shalt.err (!%p7885_p9)
}
 0xa09   : > { %7538 = dma.vmem_to_hbm [thread:$0]  (%p13470_p0), %s12653_s17, 128, %s12651_s13, %s6355_s8  }
 0xa0a PF: > { %p7575_p2 = scmp.ge.s32.totalorder %s7963_s26, 2  ;;  %s6402_s15 = sand.u32 1, %s7943_s21  }
 0xa0b   : > { %p13472_p7 = scmp.ne.s32.totalorder %s12976_s20, 0  ;;  %s6403_s9 = scalar_lea.sflag [#allocation5], %s6402_s15 }
 0xa0d   : > { %p7560_p11 = pnand %p7575_p2, %p13472_p7 }
 0xa0f   : > { %7934 = dma.done.wait (!%p7560_p11), %s6403_s9, 128  }
 0xa10   : > { %7936 = vsyncadd (!%p7560_p11), %s6403_s9, 4294967168  ;;  %s6412_s28 = scalar_lea.sflag [#allocation14], %s6402_s15 }
 0xa11   : > { %7938 = dma.done.wait (!%p7560_p11), %s6412_s28, 896  }
 0xa12   : > { %7940 = vsyncadd (!%p7560_p11), %s6412_s28, 4294966400  ;;  %s26_s26 = sadd.s32 1, %s7963_s26   ;;  %s13473_s21 = smov %s7947_s22 }
 0xa13   : > { %p23_p12 = scmp.ge.s32.totalorder %s26_s26, 8   ;;  %s13474_s22 = smov %s7951_s23 }
 0xa14   : > { %s13475_s23 = smov %s8212_s19  ;;  %s13476_s24 = smov %s7959_s25 }
 0xa15   : > { %s13477_s25 = smov %s13479_s12  ;;  %25 = sbr.rel (!%p23_p12) target bundleno = 12 (0xc), region = 124 }
 0xa1c   :  { %6417 = vsyncpa [#allocation4], 1 }
 0xa1d   :  { %6419 = vsyncpa [#allocation4 + $0x1], 1 }
 0xa1e   :  { %6420 = vsyncpa [#allocation7], 1 }
 0xa1f   :  { %6421 = vsyncpa [#allocation11], 1 }
 0xa20   :  { %6422 = vsyncpa [#allocation5], 1 }
 0xa21   :  { %6424 = vsyncpa [#allocation5 + $0x1], 1 }
 0xa22   :  { %6425 = vsyncpa [#allocation14], 1 }
 0xa23   :  { %6427 = vsyncpa [#allocation14 + $0x1], 1 }

</bundles_post_ra>
